<compile_context>
chip_gen: v5e
topology: v5e:2x2
jax: 0.10.0
libtpu: 0.0.40
codegen_flags: <defaults>
</compile_context>

<pallas_src>
import jax
import jax.numpy as jnp
from jax.experimental import pallas as pl
from jax.experimental.pallas import tpu as pltpu


# ---------------------------------------------------------------------------
# Fused Pallas kernel: conv1 -> pool -> conv2 -> pool -> conv3 -> pool -> MLP
# ---------------------------------------------------------------------------
def cnn1_fused_kernel(x_ref, w1_ref, b1_ref, w2_ref, b2_ref, w3_ref, b3_ref,
                      fw1_ref, fb1_ref, fw2_ref, fb2_ref, fw3_ref, fb3_ref,
                      o_ref, pad2_ref, pad3_ref):
    K = w1_ref.shape[0]
    pad = K // 2
    H = x_ref.shape[1]
    W1 = x_ref.shape[2] - 2 * pad            # width seen by conv1
    W2, W3, W4 = W1 // 2, W1 // 4, W1 // 8   # widths after each (1,2) pool
    C3 = w3_ref.shape[2]

    def pool_matrix(Wl):
        # P @ y stacks [y[0::2]; y[1::2]] via a 0/1 selection matrix (exact).
        Wo = Wl // 2
        r = jax.lax.broadcasted_iota(jnp.int32, (Wl, Wl), 0)
        c = jax.lax.broadcasted_iota(jnp.int32, (Wl, Wl), 1)
        src = jnp.where(r < Wo, 2 * r, 2 * (r - Wo) + 1)
        return (c == src).astype(jnp.float32)

    def pool_bias_relu(y, P, b):
        # relu(maxpool_(1,2)(y + b)); max and ReLU commute (monotone).
        Wo = y.shape[0] // 2
        z = jnp.dot(P, y, preferred_element_type=jnp.float32)
        return jnp.maximum(jnp.maximum(z[:Wo, :], z[Wo:, :]) + b, 0.0)

    def conv_taps(xp, w_ref3, Wl):
        # xp: (Wl + 2*pad, Cin) padded row value; w_ref3: (K, Cin, Cout) ref.
        acc = jnp.zeros((Wl, w_ref3.shape[2]), jnp.float32)
        for t in range(K):
            acc = acc + jnp.dot(xp[t:t + Wl, :], w_ref3[t, :, :],
                                preferred_element_type=jnp.float32)
        return acc

    # Constants / biases hoisted out of the row loop.
    P1, P2, P3 = pool_matrix(W1), pool_matrix(W2), pool_matrix(W3)
    b1, b2, b3 = b1_ref[...], b2_ref[...], b3_ref[...]
    # Zero the padded borders of the scratch activation rows (once per step).
    pad2_ref[...] = jnp.zeros(pad2_ref.shape, jnp.float32)
    pad3_ref[...] = jnp.zeros(pad3_ref.shape, jnp.float32)

    # ------- conv stack, one (n, h) row at a time (width on sublanes) -------
    a3_rows = []
    for h in range(H):
        xrow = x_ref[0, h, :, :]                       # (W1 + 2*pad, 1)

        # conv1: Cin == 1 -> VPU broadcast multiply-adds (skip the MXU).
        acc1 = jnp.zeros((W1, w1_ref.shape[1]), jnp.float32)
        for t in range(K):
            acc1 = acc1 + xrow[t:t + W1, :] * w1_ref[pl.ds(t, 1), :]
        a1 = pool_bias_relu(acc1, P1, b1)              # (W2, 16)

        # conv2: zero-padded row lives in VMEM scratch, K shifted MXU dots.
        pad2_ref[pl.ds(pad, W2), :] = a1
        a2 = pool_bias_relu(conv_taps(pad2_ref[...], w2_ref, W2), P2, b2)  # (W3, 32)

        # conv3
        pad3_ref[pl.ds(pad, W3), :] = a2
        a3 = pool_bias_relu(conv_taps(pad3_ref[...], w3_ref, W3), P3, b3)  # (W4, 64)
        a3_rows.append(a3)

    # ------- MLP: fc1 consumes the (C,H,W)-ordered flatten via permuted fw1 --
    h1 = fb1_ref[...]                                  # (1, 128)
    p = 0
    for h in range(H):
        for w in range(W4):
            h1 = h1 + jnp.dot(a3_rows[h][w:w + 1, :],
                              fw1_ref[pl.ds(p * C3, C3), :],
                              preferred_element_type=jnp.float32)
            p += 1
    h1 = jnp.maximum(h1, 0.0)
    h2 = jnp.maximum(
        jnp.dot(h1, fw2_ref[...], preferred_element_type=jnp.float32)
        + fb2_ref[...], 0.0)
    out = (jnp.dot(h2, fw3_ref[...], preferred_element_type=jnp.float32)
           + fb3_ref[...])
    o_ref[0, :, :] = out.astype(o_ref.dtype)


# ---------------------------------------------------------------------------
# Wrapper (layout prep only: width padding of x, fc1 weight permutation)
# ---------------------------------------------------------------------------
def cnn1_forward(x_nchw, params):
    """Pallas forward of CNN1.  x_nchw: (N, 1, H, W) float32 (PyTorch layout)."""
    N, Cin, H, W = x_nchw.shape
    assert Cin == 1, "CNN1 expects a single input channel"
    K = params["cw1"].shape[0]
    pad = K // 2
    assert W % 8 == 0, "width must survive three (1,2) max-pools"

    C1 = params["cw1"].shape[2]
    C2 = params["cw2"].shape[2]
    C3 = params["cw3"].shape[2]
    W4 = W // 8
    out_dim = params["fw3"].shape[1]
    nh = params["fb1"].shape[1]

    # NCHW -> (N, H, Wpad, 1) with the conv 'same' width padding applied once.
    x = jnp.transpose(x_nchw, (0, 2, 3, 1))
    xp = jnp.pad(x, ((0, 0), (0, 0), (pad, pad), (0, 0)))
    # Fold PyTorch's view(N, -1) (C, H, W) flatten order into fc1's weights.
    fw1_perm = (params["fw1"].reshape(C3, H, W4, nh)
                .transpose(1, 2, 0, 3).reshape(H * W4 * C3, nh))
    w1 = params["cw1"][:, 0, :]                        # (K, C1): drop Cin=1

    def const_spec(a):
        return pl.BlockSpec(a.shape, lambda n, _nd=a.ndim: (0,) * _nd)

    operands = (xp, w1, params["cb1"], params["cw2"], params["cb2"],
                params["cw3"], params["cb3"], fw1_perm, params["fb1"],
                params["fw2"], params["fb2"], params["fw3"], params["fb3"])
    in_specs = [pl.BlockSpec((1, H, W + 2 * pad, 1), lambda n: (n, 0, 0, 0))]
    in_specs += [const_spec(a) for a in operands[1:]]

    out = pl.pallas_call(
        cnn1_fused_kernel,
        grid=(N,),
        out_shape=jax.ShapeDtypeStruct((N, 1, out_dim), jnp.float32),
        in_specs=in_specs,
        out_specs=pl.BlockSpec((1, 1, out_dim), lambda n: (n, 0, 0)),
        scratch_shapes=[pltpu.VMEM((W // 2 + 2 * pad, C1), jnp.float32),
                        pltpu.VMEM((W // 4 + 2 * pad, C2), jnp.float32)],
        compiler_params=pltpu.CompilerParams(
            dimension_semantics=("parallel",)),
    )(*operands)
    return out.reshape(N, out_dim)


# ---------------------------------------------------------------------------
# Pure-JAX reference (correctness check only)
# ---------------------------------------------------------------------------
def cnn1_reference(x_nchw, params):
    x = jnp.transpose(x_nchw, (0, 2, 3, 1))

    def conv_relu(x, w, b):
        K = w.shape[0]
        wk = w.reshape(1, K, w.shape[1], w.shape[2])               # HWIO
        y = jax.lax.conv_general_dilated(
            x, wk, window_strides=(1, 1),
            padding=((0, 0), (K // 2, K // 2)),
            dimension_numbers=("NHWC", "HWIO", "NHWC"))
        return jax.nn.relu(y + b)

    def pool(x):
        N, H, W, C = x.shape
        return jnp.max(x.reshape(N, H, W // 2, 2, C), axis=3)

    x = pool(conv_relu(x, params["cw1"], params["cb1"]))
    x = pool(conv_relu(x, params["cw2"], params["cb2"]))
    x = pool(conv_relu(x, params["cw3"], params["cb3"]))
    N, H, W, C = x.shape
    x = jnp.transpose(x, (0, 3, 1, 2)).reshape(N, C * H * W)
    x = jax.nn.relu(x @ params["fw1"] + params["fb1"])
    x = jax.nn.relu(x @ params["fw2"] + params["fb2"])
    return x @ params["fw3"] + params["fb3"]


# ---------------------------------------------------------------------------
if __name__ == "__main__":
    key = jax.random.PRNGKey(0)
    N, H, W = 2, 2, 64            # batch, input_height, input_width (small config)
    OUT_DIM, K = 27, 21
    ks = jax.random.split(key, 16)

    def init(k, shape, fan_in):
        return jax.random.normal(k, shape, jnp.float32) / jnp.sqrt(float(fan_in))

    fc_in = 64 * H * (W // 8)     # fc_input_dim = 64 ch * H * (W after 3 pools)
    params = {
        "cw1": init(ks[0], (K, 1, 16), K * 1),   "cb1": init(ks[1], (1, 16), K * 1),
        "cw2": init(ks[2], (K, 16, 32), K * 16), "cb2": init(ks[3], (1, 32), K * 16),
        "cw3": init(ks[4], (K, 32, 64), K * 32), "cb3": init(ks[5], (1, 64), K * 32),
        "fw1": init(ks[6], (fc_in, 128), fc_in), "fb1": init(ks[7], (1, 128), fc_in),
        "fw2": init(ks[8], (128, 64), 128),      "fb2": init(ks[9], (1, 64), 128),
        "fw3": init(ks[10], (64, OUT_DIM), 64),  "fb3": init(ks[11], (1, OUT_DIM), 64),
    }
    x = jax.random.normal(ks[12], (N, 1, H, W), jnp.float32)   # NCHW like PyTorch

    out = jax.block_until_ready(jax.jit(cnn1_forward)(x, params))
    ref = jax.block_until_ready(cnn1_reference(x, params))

    assert out.shape == (N, OUT_DIM), out.shape
    assert bool(jnp.all(jnp.isfinite(out)))
    assert bool(jnp.allclose(out, ref, atol=2e-2, rtol=2e-2)), \
        float(jnp.max(jnp.abs(out - ref)))
    print("KERNEL_OK")
</pallas_src>

<mosaic_0001>
module attributes {stable_mosaic.version = 11 : i64} {
  func.func @cnn1_fused_kernel(%arg0: i32, %arg1: memref<1x2x84x1xf32, #tpu.memory_space<vmem>>, %arg2: memref<21x16xf32, #tpu.memory_space<vmem>>, %arg3: memref<1x16xf32, #tpu.memory_space<vmem>>, %arg4: memref<21x16x32xf32, #tpu.memory_space<vmem>>, %arg5: memref<1x32xf32, #tpu.memory_space<vmem>>, %arg6: memref<21x32x64xf32, #tpu.memory_space<vmem>>, %arg7: memref<1x64xf32, #tpu.memory_space<vmem>>, %arg8: memref<1024x128xf32, #tpu.memory_space<vmem>>, %arg9: memref<1x128xf32, #tpu.memory_space<vmem>>, %arg10: memref<128x64xf32, #tpu.memory_space<vmem>>, %arg11: memref<1x64xf32, #tpu.memory_space<vmem>>, %arg12: memref<64x27xf32, #tpu.memory_space<vmem>>, %arg13: memref<1x27xf32, #tpu.memory_space<vmem>>, %arg14: memref<1x1x27xf32, #tpu.memory_space<vmem>>, %arg15: memref<52x16xf32, #tpu.memory_space<vmem>>, %arg16: memref<36x32xf32, #tpu.memory_space<vmem>>) attributes {dimension_semantics = [#tpu.dimension_semantics<parallel>], iteration_bounds = array<i64: 2>, scalar_prefetch = 0 : i64, scratch_operands = 2 : i64, tpu.core_type = #tpu.core_type<tc>, window_params = [{transform_indices = @transform_0, window_bounds = array<i64: 1, 2, 84, 1>}, {pipeline_mode = #tpu.pipeline_mode<synchronous>, transform_indices = @transform_1, window_bounds = array<i64: 21, 16>}, {pipeline_mode = #tpu.pipeline_mode<synchronous>, transform_indices = @transform_2, window_bounds = array<i64: 1, 16>}, {pipeline_mode = #tpu.pipeline_mode<synchronous>, transform_indices = @transform_3, window_bounds = array<i64: 21, 16, 32>}, {pipeline_mode = #tpu.pipeline_mode<synchronous>, transform_indices = @transform_4, window_bounds = array<i64: 1, 32>}, {pipeline_mode = #tpu.pipeline_mode<synchronous>, transform_indices = @transform_5, window_bounds = array<i64: 21, 32, 64>}, {pipeline_mode = #tpu.pipeline_mode<synchronous>, transform_indices = @transform_6, window_bounds = array<i64: 1, 64>}, {pipeline_mode = #tpu.pipeline_mode<synchronous>, transform_indices = @transform_7, window_bounds = array<i64: 1024, 128>}, {pipeline_mode = #tpu.pipeline_mode<synchronous>, transform_indices = @transform_8, window_bounds = array<i64: 1, 128>}, {pipeline_mode = #tpu.pipeline_mode<synchronous>, transform_indices = @transform_9, window_bounds = array<i64: 128, 64>}, {pipeline_mode = #tpu.pipeline_mode<synchronous>, transform_indices = @transform_10, window_bounds = array<i64: 1, 64>}, {pipeline_mode = #tpu.pipeline_mode<synchronous>, transform_indices = @transform_11, window_bounds = array<i64: 64, 27>}, {pipeline_mode = #tpu.pipeline_mode<synchronous>, transform_indices = @transform_12, window_bounds = array<i64: 1, 27>}, {transform_indices = @transform_13, window_bounds = array<i64: 1, 1, 27>}]} {
    %0 = tpu.iota {dimensions = array<i32: 0>} : vector<64x64xi32>
    %1 = tpu.iota {dimensions = array<i32: 1>} : vector<64x64xi32>
    %c32_i32 = arith.constant 32 : i32
    %2 = vector.broadcast %c32_i32 : i32 to vector<64x64xi32>
    %3 = arith.cmpi slt, %0, %2 : vector<64x64xi32>
    %c2_i32 = arith.constant 2 : i32
    %4 = vector.broadcast %c2_i32 : i32 to vector<64x64xi32>
    %5 = arith.muli %4, %0 : vector<64x64xi32>
    %c32_i32_0 = arith.constant 32 : i32
    %6 = vector.broadcast %c32_i32_0 : i32 to vector<64x64xi32>
    %7 = arith.subi %0, %6 : vector<64x64xi32>
    %c2_i32_1 = arith.constant 2 : i32
    %8 = vector.broadcast %c2_i32_1 : i32 to vector<64x64xi32>
    %9 = arith.muli %8, %7 : vector<64x64xi32>
    %c1_i32 = arith.constant 1 : i32
    %10 = vector.broadcast %c1_i32 : i32 to vector<64x64xi32>
    %11 = arith.addi %9, %10 : vector<64x64xi32>
    %12 = arith.select %3, %5, %11 : vector<64x64xi1>, vector<64x64xi32>
    %13 = arith.cmpi eq, %1, %12 : vector<64x64xi32>
    %14 = arith.extui %13 : vector<64x64xi1> to vector<64x64xi32>
    %15 = arith.sitofp %14 : vector<64x64xi32> to vector<64x64xf32>
    %16 = tpu.iota {dimensions = array<i32: 0>} : vector<32x32xi32>
    %17 = tpu.iota {dimensions = array<i32: 1>} : vector<32x32xi32>
    %c16_i32 = arith.constant 16 : i32
    %18 = vector.broadcast %c16_i32 : i32 to vector<32x32xi32>
    %19 = arith.cmpi slt, %16, %18 : vector<32x32xi32>
    %c2_i32_2 = arith.constant 2 : i32
    %20 = vector.broadcast %c2_i32_2 : i32 to vector<32x32xi32>
    %21 = arith.muli %20, %16 : vector<32x32xi32>
    %c16_i32_3 = arith.constant 16 : i32
    %22 = vector.broadcast %c16_i32_3 : i32 to vector<32x32xi32>
    %23 = arith.subi %16, %22 : vector<32x32xi32>
    %c2_i32_4 = arith.constant 2 : i32
    %24 = vector.broadcast %c2_i32_4 : i32 to vector<32x32xi32>
    %25 = arith.muli %24, %23 : vector<32x32xi32>
    %c1_i32_5 = arith.constant 1 : i32
    %26 = vector.broadcast %c1_i32_5 : i32 to vector<32x32xi32>
    %27 = arith.addi %25, %26 : vector<32x32xi32>
    %28 = arith.select %19, %21, %27 : vector<32x32xi1>, vector<32x32xi32>
    %29 = arith.cmpi eq, %17, %28 : vector<32x32xi32>
    %30 = arith.extui %29 : vector<32x32xi1> to vector<32x32xi32>
    %31 = arith.sitofp %30 : vector<32x32xi32> to vector<32x32xf32>
    %32 = tpu.iota {dimensions = array<i32: 0>} : vector<16x16xi32>
    %33 = tpu.iota {dimensions = array<i32: 1>} : vector<16x16xi32>
    %c8_i32 = arith.constant 8 : i32
    %34 = vector.broadcast %c8_i32 : i32 to vector<16x16xi32>
    %35 = arith.cmpi slt, %32, %34 : vector<16x16xi32>
    %c2_i32_6 = arith.constant 2 : i32
    %36 = vector.broadcast %c2_i32_6 : i32 to vector<16x16xi32>
    %37 = arith.muli %36, %32 : vector<16x16xi32>
    %c8_i32_7 = arith.constant 8 : i32
    %38 = vector.broadcast %c8_i32_7 : i32 to vector<16x16xi32>
    %39 = arith.subi %32, %38 : vector<16x16xi32>
    %c2_i32_8 = arith.constant 2 : i32
    %40 = vector.broadcast %c2_i32_8 : i32 to vector<16x16xi32>
    %41 = arith.muli %40, %39 : vector<16x16xi32>
    %c1_i32_9 = arith.constant 1 : i32
    %42 = vector.broadcast %c1_i32_9 : i32 to vector<16x16xi32>
    %43 = arith.addi %41, %42 : vector<16x16xi32>
    %44 = arith.select %35, %37, %43 : vector<16x16xi1>, vector<16x16xi32>
    %45 = arith.cmpi eq, %33, %44 : vector<16x16xi32>
    %46 = arith.extui %45 : vector<16x16xi1> to vector<16x16xi32>
    %47 = arith.sitofp %46 : vector<16x16xi32> to vector<16x16xf32>
    %c0 = arith.constant 0 : index
    %c0_10 = arith.constant 0 : index
    %48 = vector.load %arg3[%c0, %c0_10] : memref<1x16xf32, #tpu.memory_space<vmem>>, vector<1x16xf32>
    %c0_11 = arith.constant 0 : index
    %c0_12 = arith.constant 0 : index
    %49 = vector.load %arg5[%c0_11, %c0_12] : memref<1x32xf32, #tpu.memory_space<vmem>>, vector<1x32xf32>
    %c0_13 = arith.constant 0 : index
    %c0_14 = arith.constant 0 : index
    %50 = vector.load %arg7[%c0_13, %c0_14] : memref<1x64xf32, #tpu.memory_space<vmem>>, vector<1x64xf32>
    %cst = arith.constant 0.000000e+00 : f32
    %51 = vector.broadcast %cst : f32 to vector<52x16xf32>
    %c0_15 = arith.constant 0 : index
    %c0_16 = arith.constant 0 : index
    %52 = vector.load %arg15[%c0_15, %c0_16] : memref<52x16xf32, #tpu.memory_space<vmem>>, vector<52x16xf32>
    tpu.vector_store %arg15[%c0_15, %c0_16], %51 {strides = array<i32>} : memref<52x16xf32, #tpu.memory_space<vmem>>, vector<52x16xf32>,
    %cst_17 = arith.constant 0.000000e+00 : f32
    %53 = vector.broadcast %cst_17 : f32 to vector<36x32xf32>
    %c0_18 = arith.constant 0 : index
    %c0_19 = arith.constant 0 : index
    %54 = vector.load %arg16[%c0_18, %c0_19] : memref<36x32xf32, #tpu.memory_space<vmem>>, vector<36x32xf32>
    tpu.vector_store %arg16[%c0_18, %c0_19], %53 {strides = array<i32>} : memref<36x32xf32, #tpu.memory_space<vmem>>, vector<36x32xf32>,
    %c0_20 = arith.constant 0 : index
    %c0_21 = arith.constant 0 : index
    %c0_22 = arith.constant 0 : index
    %c0_23 = arith.constant 0 : index
    %55 = vector.load %arg1[%c0_20, %c0_21, %c0_22, %c0_23] : memref<1x2x84x1xf32, #tpu.memory_space<vmem>>, vector<1x1x84x1xf32>
    %56 = vector.shape_cast %55 : vector<1x1x84x1xf32> to vector<84x1xf32>
    %cst_24 = arith.constant 0.000000e+00 : f32
    %57 = vector.broadcast %cst_24 : f32 to vector<64x16xf32>
    %58 = vector.extract_strided_slice %56 {offsets = [0, 0], sizes = [64, 1], strides = [1, 1]} : vector<84x1xf32> to vector<64x1xf32>
    %c0_25 = arith.constant 0 : index
    %c0_26 = arith.constant 0 : index
    %59 = vector.load %arg2[%c0_25, %c0_26] : memref<21x16xf32, #tpu.memory_space<vmem>>, vector<1x16xf32>
    %60 = vector.broadcast %58 : vector<64x1xf32> to vector<64x16xf32>
    %61 = vector.broadcast %59 : vector<1x16xf32> to vector<64x16xf32>
    %62 = arith.mulf %60, %61 : vector<64x16xf32>
    %63 = arith.addf %57, %62 : vector<64x16xf32>
    %64 = vector.extract_strided_slice %56 {offsets = [1, 0], sizes = [64, 1], strides = [1, 1]} : vector<84x1xf32> to vector<64x1xf32>
    %c1 = arith.constant 1 : index
    %c0_27 = arith.constant 0 : index
    %65 = vector.load %arg2[%c1, %c0_27] : memref<21x16xf32, #tpu.memory_space<vmem>>, vector<1x16xf32>
    %66 = vector.broadcast %64 : vector<64x1xf32> to vector<64x16xf32>
    %67 = vector.broadcast %65 : vector<1x16xf32> to vector<64x16xf32>
    %68 = arith.mulf %66, %67 : vector<64x16xf32>
    %69 = arith.addf %63, %68 : vector<64x16xf32>
    %70 = vector.extract_strided_slice %56 {offsets = [2, 0], sizes = [64, 1], strides = [1, 1]} : vector<84x1xf32> to vector<64x1xf32>
    %c2 = arith.constant 2 : index
    %c0_28 = arith.constant 0 : index
    %71 = vector.load %arg2[%c2, %c0_28] : memref<21x16xf32, #tpu.memory_space<vmem>>, vector<1x16xf32>
    %72 = vector.broadcast %70 : vector<64x1xf32> to vector<64x16xf32>
    %73 = vector.broadcast %71 : vector<1x16xf32> to vector<64x16xf32>
    %74 = arith.mulf %72, %73 : vector<64x16xf32>
    %75 = arith.addf %69, %74 : vector<64x16xf32>
    %76 = vector.extract_strided_slice %56 {offsets = [3, 0], sizes = [64, 1], strides = [1, 1]} : vector<84x1xf32> to vector<64x1xf32>
    %c3 = arith.constant 3 : index
    %c0_29 = arith.constant 0 : index
    %77 = vector.load %arg2[%c3, %c0_29] : memref<21x16xf32, #tpu.memory_space<vmem>>, vector<1x16xf32>
    %78 = vector.broadcast %76 : vector<64x1xf32> to vector<64x16xf32>
    %79 = vector.broadcast %77 : vector<1x16xf32> to vector<64x16xf32>
    %80 = arith.mulf %78, %79 : vector<64x16xf32>
    %81 = arith.addf %75, %80 : vector<64x16xf32>
    %82 = vector.extract_strided_slice %56 {offsets = [4, 0], sizes = [64, 1], strides = [1, 1]} : vector<84x1xf32> to vector<64x1xf32>
    %c4 = arith.constant 4 : index
    %c0_30 = arith.constant 0 : index
    %83 = vector.load %arg2[%c4, %c0_30] : memref<21x16xf32, #tpu.memory_space<vmem>>, vector<1x16xf32>
    %84 = vector.broadcast %82 : vector<64x1xf32> to vector<64x16xf32>
    %85 = vector.broadcast %83 : vector<1x16xf32> to vector<64x16xf32>
    %86 = arith.mulf %84, %85 : vector<64x16xf32>
    %87 = arith.addf %81, %86 : vector<64x16xf32>
    %88 = vector.extract_strided_slice %56 {offsets = [5, 0], sizes = [64, 1], strides = [1, 1]} : vector<84x1xf32> to vector<64x1xf32>
    %c5 = arith.constant 5 : index
    %c0_31 = arith.constant 0 : index
    %89 = vector.load %arg2[%c5, %c0_31] : memref<21x16xf32, #tpu.memory_space<vmem>>, vector<1x16xf32>
    %90 = vector.broadcast %88 : vector<64x1xf32> to vector<64x16xf32>
    %91 = vector.broadcast %89 : vector<1x16xf32> to vector<64x16xf32>
    %92 = arith.mulf %90, %91 : vector<64x16xf32>
    %93 = arith.addf %87, %92 : vector<64x16xf32>
    %94 = vector.extract_strided_slice %56 {offsets = [6, 0], sizes = [64, 1], strides = [1, 1]} : vector<84x1xf32> to vector<64x1xf32>
    %c6 = arith.constant 6 : index
    %c0_32 = arith.constant 0 : index
    %95 = vector.load %arg2[%c6, %c0_32] : memref<21x16xf32, #tpu.memory_space<vmem>>, vector<1x16xf32>
    %96 = vector.broadcast %94 : vector<64x1xf32> to vector<64x16xf32>
    %97 = vector.broadcast %95 : vector<1x16xf32> to vector<64x16xf32>
    %98 = arith.mulf %96, %97 : vector<64x16xf32>
    %99 = arith.addf %93, %98 : vector<64x16xf32>
    %100 = vector.extract_strided_slice %56 {offsets = [7, 0], sizes = [64, 1], strides = [1, 1]} : vector<84x1xf32> to vector<64x1xf32>
    %c7 = arith.constant 7 : index
    %c0_33 = arith.constant 0 : index
    %101 = vector.load %arg2[%c7, %c0_33] : memref<21x16xf32, #tpu.memory_space<vmem>>, vector<1x16xf32>
    %102 = vector.broadcast %100 : vector<64x1xf32> to vector<64x16xf32>
    %103 = vector.broadcast %101 : vector<1x16xf32> to vector<64x16xf32>
    %104 = arith.mulf %102, %103 : vector<64x16xf32>
    %105 = arith.addf %99, %104 : vector<64x16xf32>
    %106 = vector.extract_strided_slice %56 {offsets = [8, 0], sizes = [64, 1], strides = [1, 1]} : vector<84x1xf32> to vector<64x1xf32>
    %c8 = arith.constant 8 : index
    %c0_34 = arith.constant 0 : index
    %107 = vector.load %arg2[%c8, %c0_34] : memref<21x16xf32, #tpu.memory_space<vmem>>, vector<1x16xf32>
    %108 = vector.broadcast %106 : vector<64x1xf32> to vector<64x16xf32>
    %109 = vector.broadcast %107 : vector<1x16xf32> to vector<64x16xf32>
    %110 = arith.mulf %108, %109 : vector<64x16xf32>
    %111 = arith.addf %105, %110 : vector<64x16xf32>
    %112 = vector.extract_strided_slice %56 {offsets = [9, 0], sizes = [64, 1], strides = [1, 1]} : vector<84x1xf32> to vector<64x1xf32>
    %c9 = arith.constant 9 : index
    %c0_35 = arith.constant 0 : index
    %113 = vector.load %arg2[%c9, %c0_35] : memref<21x16xf32, #tpu.memory_space<vmem>>, vector<1x16xf32>
    %114 = vector.broadcast %112 : vector<64x1xf32> to vector<64x16xf32>
    %115 = vector.broadcast %113 : vector<1x16xf32> to vector<64x16xf32>
    %116 = arith.mulf %114, %115 : vector<64x16xf32>
    %117 = arith.addf %111, %116 : vector<64x16xf32>
    %118 = vector.extract_strided_slice %56 {offsets = [10, 0], sizes = [64, 1], strides = [1, 1]} : vector<84x1xf32> to vector<64x1xf32>
    %c10 = arith.constant 10 : index
    %c0_36 = arith.constant 0 : index
    %119 = vector.load %arg2[%c10, %c0_36] : memref<21x16xf32, #tpu.memory_space<vmem>>, vector<1x16xf32>
    %120 = vector.broadcast %118 : vector<64x1xf32> to vector<64x16xf32>
    %121 = vector.broadcast %119 : vector<1x16xf32> to vector<64x16xf32>
    %122 = arith.mulf %120, %121 : vector<64x16xf32>
    %123 = arith.addf %117, %122 : vector<64x16xf32>
    %124 = vector.extract_strided_slice %56 {offsets = [11, 0], sizes = [64, 1], strides = [1, 1]} : vector<84x1xf32> to vector<64x1xf32>
    %c11 = arith.constant 11 : index
    %c0_37 = arith.constant 0 : index
    %125 = vector.load %arg2[%c11, %c0_37] : memref<21x16xf32, #tpu.memory_space<vmem>>, vector<1x16xf32>
    %126 = vector.broadcast %124 : vector<64x1xf32> to vector<64x16xf32>
    %127 = vector.broadcast %125 : vector<1x16xf32> to vector<64x16xf32>
    %128 = arith.mulf %126, %127 : vector<64x16xf32>
    %129 = arith.addf %123, %128 : vector<64x16xf32>
    %130 = vector.extract_strided_slice %56 {offsets = [12, 0], sizes = [64, 1], strides = [1, 1]} : vector<84x1xf32> to vector<64x1xf32>
    %c12 = arith.constant 12 : index
    %c0_38 = arith.constant 0 : index
    %131 = vector.load %arg2[%c12, %c0_38] : memref<21x16xf32, #tpu.memory_space<vmem>>, vector<1x16xf32>
    %132 = vector.broadcast %130 : vector<64x1xf32> to vector<64x16xf32>
    %133 = vector.broadcast %131 : vector<1x16xf32> to vector<64x16xf32>
    %134 = arith.mulf %132, %133 : vector<64x16xf32>
    %135 = arith.addf %129, %134 : vector<64x16xf32>
    %136 = vector.extract_strided_slice %56 {offsets = [13, 0], sizes = [64, 1], strides = [1, 1]} : vector<84x1xf32> to vector<64x1xf32>
    %c13 = arith.constant 13 : index
    %c0_39 = arith.constant 0 : index
    %137 = vector.load %arg2[%c13, %c0_39] : memref<21x16xf32, #tpu.memory_space<vmem>>, vector<1x16xf32>
    %138 = vector.broadcast %136 : vector<64x1xf32> to vector<64x16xf32>
    %139 = vector.broadcast %137 : vector<1x16xf32> to vector<64x16xf32>
    %140 = arith.mulf %138, %139 : vector<64x16xf32>
    %141 = arith.addf %135, %140 : vector<64x16xf32>
    %142 = vector.extract_strided_slice %56 {offsets = [14, 0], sizes = [64, 1], strides = [1, 1]} : vector<84x1xf32> to vector<64x1xf32>
    %c14 = arith.constant 14 : index
    %c0_40 = arith.constant 0 : index
    %143 = vector.load %arg2[%c14, %c0_40] : memref<21x16xf32, #tpu.memory_space<vmem>>, vector<1x16xf32>
    %144 = vector.broadcast %142 : vector<64x1xf32> to vector<64x16xf32>
    %145 = vector.broadcast %143 : vector<1x16xf32> to vector<64x16xf32>
    %146 = arith.mulf %144, %145 : vector<64x16xf32>
    %147 = arith.addf %141, %146 : vector<64x16xf32>
    %148 = vector.extract_strided_slice %56 {offsets = [15, 0], sizes = [64, 1], strides = [1, 1]} : vector<84x1xf32> to vector<64x1xf32>
    %c15 = arith.constant 15 : index
    %c0_41 = arith.constant 0 : index
    %149 = vector.load %arg2[%c15, %c0_41] : memref<21x16xf32, #tpu.memory_space<vmem>>, vector<1x16xf32>
    %150 = vector.broadcast %148 : vector<64x1xf32> to vector<64x16xf32>
    %151 = vector.broadcast %149 : vector<1x16xf32> to vector<64x16xf32>
    %152 = arith.mulf %150, %151 : vector<64x16xf32>
    %153 = arith.addf %147, %152 : vector<64x16xf32>
    %154 = vector.extract_strided_slice %56 {offsets = [16, 0], sizes = [64, 1], strides = [1, 1]} : vector<84x1xf32> to vector<64x1xf32>
    %c16 = arith.constant 16 : index
    %c0_42 = arith.constant 0 : index
    %155 = vector.load %arg2[%c16, %c0_42] : memref<21x16xf32, #tpu.memory_space<vmem>>, vector<1x16xf32>
    %156 = vector.broadcast %154 : vector<64x1xf32> to vector<64x16xf32>
    %157 = vector.broadcast %155 : vector<1x16xf32> to vector<64x16xf32>
    %158 = arith.mulf %156, %157 : vector<64x16xf32>
    %159 = arith.addf %153, %158 : vector<64x16xf32>
    %160 = vector.extract_strided_slice %56 {offsets = [17, 0], sizes = [64, 1], strides = [1, 1]} : vector<84x1xf32> to vector<64x1xf32>
    %c17 = arith.constant 17 : index
    %c0_43 = arith.constant 0 : index
    %161 = vector.load %arg2[%c17, %c0_43] : memref<21x16xf32, #tpu.memory_space<vmem>>, vector<1x16xf32>
    %162 = vector.broadcast %160 : vector<64x1xf32> to vector<64x16xf32>
    %163 = vector.broadcast %161 : vector<1x16xf32> to vector<64x16xf32>
    %164 = arith.mulf %162, %163 : vector<64x16xf32>
    %165 = arith.addf %159, %164 : vector<64x16xf32>
    %166 = vector.extract_strided_slice %56 {offsets = [18, 0], sizes = [64, 1], strides = [1, 1]} : vector<84x1xf32> to vector<64x1xf32>
    %c18 = arith.constant 18 : index
    %c0_44 = arith.constant 0 : index
    %167 = vector.load %arg2[%c18, %c0_44] : memref<21x16xf32, #tpu.memory_space<vmem>>, vector<1x16xf32>
    %168 = vector.broadcast %166 : vector<64x1xf32> to vector<64x16xf32>
    %169 = vector.broadcast %167 : vector<1x16xf32> to vector<64x16xf32>
    %170 = arith.mulf %168, %169 : vector<64x16xf32>
    %171 = arith.addf %165, %170 : vector<64x16xf32>
    %172 = vector.extract_strided_slice %56 {offsets = [19, 0], sizes = [64, 1], strides = [1, 1]} : vector<84x1xf32> to vector<64x1xf32>
    %c19 = arith.constant 19 : index
    %c0_45 = arith.constant 0 : index
    %173 = vector.load %arg2[%c19, %c0_45] : memref<21x16xf32, #tpu.memory_space<vmem>>, vector<1x16xf32>
    %174 = vector.broadcast %172 : vector<64x1xf32> to vector<64x16xf32>
    %175 = vector.broadcast %173 : vector<1x16xf32> to vector<64x16xf32>
    %176 = arith.mulf %174, %175 : vector<64x16xf32>
    %177 = arith.addf %171, %176 : vector<64x16xf32>
    %178 = vector.extract_strided_slice %56 {offsets = [20, 0], sizes = [64, 1], strides = [1, 1]} : vector<84x1xf32> to vector<64x1xf32>
    %c20 = arith.constant 20 : index
    %c0_46 = arith.constant 0 : index
    %179 = vector.load %arg2[%c20, %c0_46] : memref<21x16xf32, #tpu.memory_space<vmem>>, vector<1x16xf32>
    %180 = vector.broadcast %178 : vector<64x1xf32> to vector<64x16xf32>
    %181 = vector.broadcast %179 : vector<1x16xf32> to vector<64x16xf32>
    %182 = arith.mulf %180, %181 : vector<64x16xf32>
    %183 = arith.addf %177, %182 : vector<64x16xf32>
    %cst_47 = arith.constant dense<0.000000e+00> : vector<64x16xf32>
    %184 = tpu.matmul %15, %183, %cst_47 {dimension_numbers = #tpu.dot_dimension_numbers<[1], [0], [0], [1], [0, 0, 1, 1], [], []>} : vector<64x64xf32>, vector<64x16xf32>, vector<64x16xf32> -> vector<64x16xf32>
    %185 = vector.extract_strided_slice %184 {offsets = [0, 0], sizes = [32, 16], strides = [1, 1]} : vector<64x16xf32> to vector<32x16xf32>
    %186 = vector.extract_strided_slice %184 {offsets = [32, 0], sizes = [32, 16], strides = [1, 1]} : vector<64x16xf32> to vector<32x16xf32>
    %187 = arith.maximumf %185, %186 : vector<32x16xf32>
    %188 = vector.broadcast %48 : vector<1x16xf32> to vector<32x16xf32>
    %189 = arith.addf %187, %188 : vector<32x16xf32>
    %cst_48 = arith.constant 0.000000e+00 : f32
    %190 = vector.broadcast %cst_48 : f32 to vector<32x16xf32>
    %191 = arith.maximumf %189, %190 : vector<32x16xf32>
    %c10_49 = arith.constant 10 : index
    %c0_50 = arith.constant 0 : index
    %192 = vector.load %arg15[%c10_49, %c0_50] : memref<52x16xf32, #tpu.memory_space<vmem>>, vector<32x16xf32>
    tpu.vector_store %arg15[%c10_49, %c0_50], %191 {strides = array<i32>} : memref<52x16xf32, #tpu.memory_space<vmem>>, vector<32x16xf32>,
    %c0_51 = arith.constant 0 : index
    %c0_52 = arith.constant 0 : index
    %193 = vector.load %arg15[%c0_51, %c0_52] : memref<52x16xf32, #tpu.memory_space<vmem>>, vector<52x16xf32>
    %cst_53 = arith.constant 0.000000e+00 : f32
    %194 = vector.broadcast %cst_53 : f32 to vector<32x32xf32>
    %195 = vector.extract_strided_slice %193 {offsets = [0, 0], sizes = [32, 16], strides = [1, 1]} : vector<52x16xf32> to vector<32x16xf32>
    %c0_54 = arith.constant 0 : index
    %c0_55 = arith.constant 0 : index
    %c0_56 = arith.constant 0 : index
    %196 = vector.load %arg4[%c0_54, %c0_55, %c0_56] : memref<21x16x32xf32, #tpu.memory_space<vmem>>, vector<1x16x32xf32>
    %197 = vector.shape_cast %196 : vector<1x16x32xf32> to vector<16x32xf32>
    %cst_57 = arith.constant dense<0.000000e+00> : vector<32x32xf32>
    %198 = tpu.matmul %195, %197, %cst_57 {dimension_numbers = #tpu.dot_dimension_numbers<[1], [0], [0], [1], [0, 0, 1, 1], [], []>} : vector<32x16xf32>, vector<16x32xf32>, vector<32x32xf32> -> vector<32x32xf32>
    %199 = arith.addf %194, %198 : vector<32x32xf32>
    %200 = vector.extract_strided_slice %193 {offsets = [1, 0], sizes = [32, 16], strides = [1, 1]} : vector<52x16xf32> to vector<32x16xf32>
    %c1_58 = arith.constant 1 : index
    %c0_59 = arith.constant 0 : index
    %c0_60 = arith.constant 0 : index
    %201 = vector.load %arg4[%c1_58, %c0_59, %c0_60] : memref<21x16x32xf32, #tpu.memory_space<vmem>>, vector<1x16x32xf32>
    %202 = vector.shape_cast %201 : vector<1x16x32xf32> to vector<16x32xf32>
    %cst_61 = arith.constant dense<0.000000e+00> : vector<32x32xf32>
    %203 = tpu.matmul %200, %202, %cst_61 {dimension_numbers = #tpu.dot_dimension_numbers<[1], [0], [0], [1], [0, 0, 1, 1], [], []>} : vector<32x16xf32>, vector<16x32xf32>, vector<32x32xf32> -> vector<32x32xf32>
    %204 = arith.addf %199, %203 : vector<32x32xf32>
    %205 = vector.extract_strided_slice %193 {offsets = [2, 0], sizes = [32, 16], strides = [1, 1]} : vector<52x16xf32> to vector<32x16xf32>
    %c2_62 = arith.constant 2 : index
    %c0_63 = arith.constant 0 : index
    %c0_64 = arith.constant 0 : index
    %206 = vector.load %arg4[%c2_62, %c0_63, %c0_64] : memref<21x16x32xf32, #tpu.memory_space<vmem>>, vector<1x16x32xf32>
    %207 = vector.shape_cast %206 : vector<1x16x32xf32> to vector<16x32xf32>
    %cst_65 = arith.constant dense<0.000000e+00> : vector<32x32xf32>
    %208 = tpu.matmul %205, %207, %cst_65 {dimension_numbers = #tpu.dot_dimension_numbers<[1], [0], [0], [1], [0, 0, 1, 1], [], []>} : vector<32x16xf32>, vector<16x32xf32>, vector<32x32xf32> -> vector<32x32xf32>
    %209 = arith.addf %204, %208 : vector<32x32xf32>
    %210 = vector.extract_strided_slice %193 {offsets = [3, 0], sizes = [32, 16], strides = [1, 1]} : vector<52x16xf32> to vector<32x16xf32>
    %c3_66 = arith.constant 3 : index
    %c0_67 = arith.constant 0 : index
    %c0_68 = arith.constant 0 : index
    %211 = vector.load %arg4[%c3_66, %c0_67, %c0_68] : memref<21x16x32xf32, #tpu.memory_space<vmem>>, vector<1x16x32xf32>
    %212 = vector.shape_cast %211 : vector<1x16x32xf32> to vector<16x32xf32>
    %cst_69 = arith.constant dense<0.000000e+00> : vector<32x32xf32>
    %213 = tpu.matmul %210, %212, %cst_69 {dimension_numbers = #tpu.dot_dimension_numbers<[1], [0], [0], [1], [0, 0, 1, 1], [], []>} : vector<32x16xf32>, vector<16x32xf32>, vector<32x32xf32> -> vector<32x32xf32>
    %214 = arith.addf %209, %213 : vector<32x32xf32>
    %215 = vector.extract_strided_slice %193 {offsets = [4, 0], sizes = [32, 16], strides = [1, 1]} : vector<52x16xf32> to vector<32x16xf32>
    %c4_70 = arith.constant 4 : index
    %c0_71 = arith.constant 0 : index
    %c0_72 = arith.constant 0 : index
    %216 = vector.load %arg4[%c4_70, %c0_71, %c0_72] : memref<21x16x32xf32, #tpu.memory_space<vmem>>, vector<1x16x32xf32>
    %217 = vector.shape_cast %216 : vector<1x16x32xf32> to vector<16x32xf32>
    %cst_73 = arith.constant dense<0.000000e+00> : vector<32x32xf32>
    %218 = tpu.matmul %215, %217, %cst_73 {dimension_numbers = #tpu.dot_dimension_numbers<[1], [0], [0], [1], [0, 0, 1, 1], [], []>} : vector<32x16xf32>, vector<16x32xf32>, vector<32x32xf32> -> vector<32x32xf32>
    %219 = arith.addf %214, %218 : vector<32x32xf32>
    %220 = vector.extract_strided_slice %193 {offsets = [5, 0], sizes = [32, 16], strides = [1, 1]} : vector<52x16xf32> to vector<32x16xf32>
    %c5_74 = arith.constant 5 : index
    %c0_75 = arith.constant 0 : index
    %c0_76 = arith.constant 0 : index
    %221 = vector.load %arg4[%c5_74, %c0_75, %c0_76] : memref<21x16x32xf32, #tpu.memory_space<vmem>>, vector<1x16x32xf32>
    %222 = vector.shape_cast %221 : vector<1x16x32xf32> to vector<16x32xf32>
    %cst_77 = arith.constant dense<0.000000e+00> : vector<32x32xf32>
    %223 = tpu.matmul %220, %222, %cst_77 {dimension_numbers = #tpu.dot_dimension_numbers<[1], [0], [0], [1], [0, 0, 1, 1], [], []>} : vector<32x16xf32>, vector<16x32xf32>, vector<32x32xf32> -> vector<32x32xf32>
    %224 = arith.addf %219, %223 : vector<32x32xf32>
    %225 = vector.extract_strided_slice %193 {offsets = [6, 0], sizes = [32, 16], strides = [1, 1]} : vector<52x16xf32> to vector<32x16xf32>
    %c6_78 = arith.constant 6 : index
    %c0_79 = arith.constant 0 : index
    %c0_80 = arith.constant 0 : index
    %226 = vector.load %arg4[%c6_78, %c0_79, %c0_80] : memref<21x16x32xf32, #tpu.memory_space<vmem>>, vector<1x16x32xf32>
    %227 = vector.shape_cast %226 : vector<1x16x32xf32> to vector<16x32xf32>
    %cst_81 = arith.constant dense<0.000000e+00> : vector<32x32xf32>
    %228 = tpu.matmul %225, %227, %cst_81 {dimension_numbers = #tpu.dot_dimension_numbers<[1], [0], [0], [1], [0, 0, 1, 1], [], []>} : vector<32x16xf32>, vector<16x32xf32>, vector<32x32xf32> -> vector<32x32xf32>
    %229 = arith.addf %224, %228 : vector<32x32xf32>
    %230 = vector.extract_strided_slice %193 {offsets = [7, 0], sizes = [32, 16], strides = [1, 1]} : vector<52x16xf32> to vector<32x16xf32>
    %c7_82 = arith.constant 7 : index
    %c0_83 = arith.constant 0 : index
    %c0_84 = arith.constant 0 : index
    %231 = vector.load %arg4[%c7_82, %c0_83, %c0_84] : memref<21x16x32xf32, #tpu.memory_space<vmem>>, vector<1x16x32xf32>
    %232 = vector.shape_cast %231 : vector<1x16x32xf32> to vector<16x32xf32>
    %cst_85 = arith.constant dense<0.000000e+00> : vector<32x32xf32>
    %233 = tpu.matmul %230, %232, %cst_85 {dimension_numbers = #tpu.dot_dimension_numbers<[1], [0], [0], [1], [0, 0, 1, 1], [], []>} : vector<32x16xf32>, vector<16x32xf32>, vector<32x32xf32> -> vector<32x32xf32>
    %234 = arith.addf %229, %233 : vector<32x32xf32>
    %235 = vector.extract_strided_slice %193 {offsets = [8, 0], sizes = [32, 16], strides = [1, 1]} : vector<52x16xf32> to vector<32x16xf32>
    %c8_86 = arith.constant 8 : index
    %c0_87 = arith.constant 0 : index
    %c0_88 = arith.constant 0 : index
    %236 = vector.load %arg4[%c8_86, %c0_87, %c0_88] : memref<21x16x32xf32, #tpu.memory_space<vmem>>, vector<1x16x32xf32>
    %237 = vector.shape_cast %236 : vector<1x16x32xf32> to vector<16x32xf32>
    %cst_89 = arith.constant dense<0.000000e+00> : vector<32x32xf32>
    %238 = tpu.matmul %235, %237, %cst_89 {dimension_numbers = #tpu.dot_dimension_numbers<[1], [0], [0], [1], [0, 0, 1, 1], [], []>} : vector<32x16xf32>, vector<16x32xf32>, vector<32x32xf32> -> vector<32x32xf32>
    %239 = arith.addf %234, %238 : vector<32x32xf32>
    %240 = vector.extract_strided_slice %193 {offsets = [9, 0], sizes = [32, 16], strides = [1, 1]} : vector<52x16xf32> to vector<32x16xf32>
    %c9_90 = arith.constant 9 : index
    %c0_91 = arith.constant 0 : index
    %c0_92 = arith.constant 0 : index
    %241 = vector.load %arg4[%c9_90, %c0_91, %c0_92] : memref<21x16x32xf32, #tpu.memory_space<vmem>>, vector<1x16x32xf32>
    %242 = vector.shape_cast %241 : vector<1x16x32xf32> to vector<16x32xf32>
    %cst_93 = arith.constant dense<0.000000e+00> : vector<32x32xf32>
    %243 = tpu.matmul %240, %242, %cst_93 {dimension_numbers = #tpu.dot_dimension_numbers<[1], [0], [0], [1], [0, 0, 1, 1], [], []>} : vector<32x16xf32>, vector<16x32xf32>, vector<32x32xf32> -> vector<32x32xf32>
    %244 = arith.addf %239, %243 : vector<32x32xf32>
    %245 = vector.extract_strided_slice %193 {offsets = [10, 0], sizes = [32, 16], strides = [1, 1]} : vector<52x16xf32> to vector<32x16xf32>
    %c10_94 = arith.constant 10 : index
    %c0_95 = arith.constant 0 : index
    %c0_96 = arith.constant 0 : index
    %246 = vector.load %arg4[%c10_94, %c0_95, %c0_96] : memref<21x16x32xf32, #tpu.memory_space<vmem>>, vector<1x16x32xf32>
    %247 = vector.shape_cast %246 : vector<1x16x32xf32> to vector<16x32xf32>
    %cst_97 = arith.constant dense<0.000000e+00> : vector<32x32xf32>
    %248 = tpu.matmul %245, %247, %cst_97 {dimension_numbers = #tpu.dot_dimension_numbers<[1], [0], [0], [1], [0, 0, 1, 1], [], []>} : vector<32x16xf32>, vector<16x32xf32>, vector<32x32xf32> -> vector<32x32xf32>
    %249 = arith.addf %244, %248 : vector<32x32xf32>
    %250 = vector.extract_strided_slice %193 {offsets = [11, 0], sizes = [32, 16], strides = [1, 1]} : vector<52x16xf32> to vector<32x16xf32>
    %c11_98 = arith.constant 11 : index
    %c0_99 = arith.constant 0 : index
    %c0_100 = arith.constant 0 : index
    %251 = vector.load %arg4[%c11_98, %c0_99, %c0_100] : memref<21x16x32xf32, #tpu.memory_space<vmem>>, vector<1x16x32xf32>
    %252 = vector.shape_cast %251 : vector<1x16x32xf32> to vector<16x32xf32>
    %cst_101 = arith.constant dense<0.000000e+00> : vector<32x32xf32>
    %253 = tpu.matmul %250, %252, %cst_101 {dimension_numbers = #tpu.dot_dimension_numbers<[1], [0], [0], [1], [0, 0, 1, 1], [], []>} : vector<32x16xf32>, vector<16x32xf32>, vector<32x32xf32> -> vector<32x32xf32>
    %254 = arith.addf %249, %253 : vector<32x32xf32>
    %255 = vector.extract_strided_slice %193 {offsets = [12, 0], sizes = [32, 16], strides = [1, 1]} : vector<52x16xf32> to vector<32x16xf32>
    %c12_102 = arith.constant 12 : index
    %c0_103 = arith.constant 0 : index
    %c0_104 = arith.constant 0 : index
    %256 = vector.load %arg4[%c12_102, %c0_103, %c0_104] : memref<21x16x32xf32, #tpu.memory_space<vmem>>, vector<1x16x32xf32>
    %257 = vector.shape_cast %256 : vector<1x16x32xf32> to vector<16x32xf32>
    %cst_105 = arith.constant dense<0.000000e+00> : vector<32x32xf32>
    %258 = tpu.matmul %255, %257, %cst_105 {dimension_numbers = #tpu.dot_dimension_numbers<[1], [0], [0], [1], [0, 0, 1, 1], [], []>} : vector<32x16xf32>, vector<16x32xf32>, vector<32x32xf32> -> vector<32x32xf32>
    %259 = arith.addf %254, %258 : vector<32x32xf32>
    %260 = vector.extract_strided_slice %193 {offsets = [13, 0], sizes = [32, 16], strides = [1, 1]} : vector<52x16xf32> to vector<32x16xf32>
    %c13_106 = arith.constant 13 : index
    %c0_107 = arith.constant 0 : index
    %c0_108 = arith.constant 0 : index
    %261 = vector.load %arg4[%c13_106, %c0_107, %c0_108] : memref<21x16x32xf32, #tpu.memory_space<vmem>>, vector<1x16x32xf32>
    %262 = vector.shape_cast %261 : vector<1x16x32xf32> to vector<16x32xf32>
    %cst_109 = arith.constant dense<0.000000e+00> : vector<32x32xf32>
    %263 = tpu.matmul %260, %262, %cst_109 {dimension_numbers = #tpu.dot_dimension_numbers<[1], [0], [0], [1], [0, 0, 1, 1], [], []>} : vector<32x16xf32>, vector<16x32xf32>, vector<32x32xf32> -> vector<32x32xf32>
    %264 = arith.addf %259, %263 : vector<32x32xf32>
    %265 = vector.extract_strided_slice %193 {offsets = [14, 0], sizes = [32, 16], strides = [1, 1]} : vector<52x16xf32> to vector<32x16xf32>
    %c14_110 = arith.constant 14 : index
    %c0_111 = arith.constant 0 : index
    %c0_112 = arith.constant 0 : index
    %266 = vector.load %arg4[%c14_110, %c0_111, %c0_112] : memref<21x16x32xf32, #tpu.memory_space<vmem>>, vector<1x16x32xf32>
    %267 = vector.shape_cast %266 : vector<1x16x32xf32> to vector<16x32xf32>
    %cst_113 = arith.constant dense<0.000000e+00> : vector<32x32xf32>
    %268 = tpu.matmul %265, %267, %cst_113 {dimension_numbers = #tpu.dot_dimension_numbers<[1], [0], [0], [1], [0, 0, 1, 1], [], []>} : vector<32x16xf32>, vector<16x32xf32>, vector<32x32xf32> -> vector<32x32xf32>
    %269 = arith.addf %264, %268 : vector<32x32xf32>
    %270 = vector.extract_strided_slice %193 {offsets = [15, 0], sizes = [32, 16], strides = [1, 1]} : vector<52x16xf32> to vector<32x16xf32>
    %c15_114 = arith.constant 15 : index
    %c0_115 = arith.constant 0 : index
    %c0_116 = arith.constant 0 : index
    %271 = vector.load %arg4[%c15_114, %c0_115, %c0_116] : memref<21x16x32xf32, #tpu.memory_space<vmem>>, vector<1x16x32xf32>
    %272 = vector.shape_cast %271 : vector<1x16x32xf32> to vector<16x32xf32>
    %cst_117 = arith.constant dense<0.000000e+00> : vector<32x32xf32>
    %273 = tpu.matmul %270, %272, %cst_117 {dimension_numbers = #tpu.dot_dimension_numbers<[1], [0], [0], [1], [0, 0, 1, 1], [], []>} : vector<32x16xf32>, vector<16x32xf32>, vector<32x32xf32> -> vector<32x32xf32>
    %274 = arith.addf %269, %273 : vector<32x32xf32>
    %275 = vector.extract_strided_slice %193 {offsets = [16, 0], sizes = [32, 16], strides = [1, 1]} : vector<52x16xf32> to vector<32x16xf32>
    %c16_118 = arith.constant 16 : index
    %c0_119 = arith.constant 0 : index
    %c0_120 = arith.constant 0 : index
    %276 = vector.load %arg4[%c16_118, %c0_119, %c0_120] : memref<21x16x32xf32, #tpu.memory_space<vmem>>, vector<1x16x32xf32>
    %277 = vector.shape_cast %276 : vector<1x16x32xf32> to vector<16x32xf32>
    %cst_121 = arith.constant dense<0.000000e+00> : vector<32x32xf32>
    %278 = tpu.matmul %275, %277, %cst_121 {dimension_numbers = #tpu.dot_dimension_numbers<[1], [0], [0], [1], [0, 0, 1, 1], [], []>} : vector<32x16xf32>, vector<16x32xf32>, vector<32x32xf32> -> vector<32x32xf32>
    %279 = arith.addf %274, %278 : vector<32x32xf32>
    %280 = vector.extract_strided_slice %193 {offsets = [17, 0], sizes = [32, 16], strides = [1, 1]} : vector<52x16xf32> to vector<32x16xf32>
    %c17_122 = arith.constant 17 : index
    %c0_123 = arith.constant 0 : index
    %c0_124 = arith.constant 0 : index
    %281 = vector.load %arg4[%c17_122, %c0_123, %c0_124] : memref<21x16x32xf32, #tpu.memory_space<vmem>>, vector<1x16x32xf32>
    %282 = vector.shape_cast %281 : vector<1x16x32xf32> to vector<16x32xf32>
    %cst_125 = arith.constant dense<0.000000e+00> : vector<32x32xf32>
    %283 = tpu.matmul %280, %282, %cst_125 {dimension_numbers = #tpu.dot_dimension_numbers<[1], [0], [0], [1], [0, 0, 1, 1], [], []>} : vector<32x16xf32>, vector<16x32xf32>, vector<32x32xf32> -> vector<32x32xf32>
    %284 = arith.addf %279, %283 : vector<32x32xf32>
    %285 = vector.extract_strided_slice %193 {offsets = [18, 0], sizes = [32, 16], strides = [1, 1]} : vector<52x16xf32> to vector<32x16xf32>
    %c18_126 = arith.constant 18 : index
    %c0_127 = arith.constant 0 : index
    %c0_128 = arith.constant 0 : index
    %286 = vector.load %arg4[%c18_126, %c0_127, %c0_128] : memref<21x16x32xf32, #tpu.memory_space<vmem>>, vector<1x16x32xf32>
    %287 = vector.shape_cast %286 : vector<1x16x32xf32> to vector<16x32xf32>
    %cst_129 = arith.constant dense<0.000000e+00> : vector<32x32xf32>
    %288 = tpu.matmul %285, %287, %cst_129 {dimension_numbers = #tpu.dot_dimension_numbers<[1], [0], [0], [1], [0, 0, 1, 1], [], []>} : vector<32x16xf32>, vector<16x32xf32>, vector<32x32xf32> -> vector<32x32xf32>
    %289 = arith.addf %284, %288 : vector<32x32xf32>
    %290 = vector.extract_strided_slice %193 {offsets = [19, 0], sizes = [32, 16], strides = [1, 1]} : vector<52x16xf32> to vector<32x16xf32>
    %c19_130 = arith.constant 19 : index
    %c0_131 = arith.constant 0 : index
    %c0_132 = arith.constant 0 : index
    %291 = vector.load %arg4[%c19_130, %c0_131, %c0_132] : memref<21x16x32xf32, #tpu.memory_space<vmem>>, vector<1x16x32xf32>
    %292 = vector.shape_cast %291 : vector<1x16x32xf32> to vector<16x32xf32>
    %cst_133 = arith.constant dense<0.000000e+00> : vector<32x32xf32>
    %293 = tpu.matmul %290, %292, %cst_133 {dimension_numbers = #tpu.dot_dimension_numbers<[1], [0], [0], [1], [0, 0, 1, 1], [], []>} : vector<32x16xf32>, vector<16x32xf32>, vector<32x32xf32> -> vector<32x32xf32>
    %294 = arith.addf %289, %293 : vector<32x32xf32>
    %295 = vector.extract_strided_slice %193 {offsets = [20, 0], sizes = [32, 16], strides = [1, 1]} : vector<52x16xf32> to vector<32x16xf32>
    %c20_134 = arith.constant 20 : index
    %c0_135 = arith.constant 0 : index
    %c0_136 = arith.constant 0 : index
    %296 = vector.load %arg4[%c20_134, %c0_135, %c0_136] : memref<21x16x32xf32, #tpu.memory_space<vmem>>, vector<1x16x32xf32>
    %297 = vector.shape_cast %296 : vector<1x16x32xf32> to vector<16x32xf32>
    %cst_137 = arith.constant dense<0.000000e+00> : vector<32x32xf32>
    %298 = tpu.matmul %295, %297, %cst_137 {dimension_numbers = #tpu.dot_dimension_numbers<[1], [0], [0], [1], [0, 0, 1, 1], [], []>} : vector<32x16xf32>, vector<16x32xf32>, vector<32x32xf32> -> vector<32x32xf32>
    %299 = arith.addf %294, %298 : vector<32x32xf32>
    %cst_138 = arith.constant dense<0.000000e+00> : vector<32x32xf32>
    %300 = tpu.matmul %31, %299, %cst_138 {dimension_numbers = #tpu.dot_dimension_numbers<[1], [0], [0], [1], [0, 0, 1, 1], [], []>} : vector<32x32xf32>, vector<32x32xf32>, vector<32x32xf32> -> vector<32x32xf32>
    %301 = vector.extract_strided_slice %300 {offsets = [0, 0], sizes = [16, 32], strides = [1, 1]} : vector<32x32xf32> to vector<16x32xf32>
    %302 = vector.extract_strided_slice %300 {offsets = [16, 0], sizes = [16, 32], strides = [1, 1]} : vector<32x32xf32> to vector<16x32xf32>
    %303 = arith.maximumf %301, %302 : vector<16x32xf32>
    %304 = vector.broadcast %49 : vector<1x32xf32> to vector<16x32xf32>
    %305 = arith.addf %303, %304 : vector<16x32xf32>
    %cst_139 = arith.constant 0.000000e+00 : f32
    %306 = vector.broadcast %cst_139 : f32 to vector<16x32xf32>
    %307 = arith.maximumf %305, %306 : vector<16x32xf32>
    %c10_140 = arith.constant 10 : index
    %c0_141 = arith.constant 0 : index
    %308 = vector.load %arg16[%c10_140, %c0_141] : memref<36x32xf32, #tpu.memory_space<vmem>>, vector<16x32xf32>
    tpu.vector_store %arg16[%c10_140, %c0_141], %307 {strides = array<i32>} : memref<36x32xf32, #tpu.memory_space<vmem>>, vector<16x32xf32>,
    %c0_142 = arith.constant 0 : index
    %c0_143 = arith.constant 0 : index
    %309 = vector.load %arg16[%c0_142, %c0_143] : memref<36x32xf32, #tpu.memory_space<vmem>>, vector<36x32xf32>
    %cst_144 = arith.constant 0.000000e+00 : f32
    %310 = vector.broadcast %cst_144 : f32 to vector<16x64xf32>
    %311 = vector.extract_strided_slice %309 {offsets = [0, 0], sizes = [16, 32], strides = [1, 1]} : vector<36x32xf32> to vector<16x32xf32>
    %c0_145 = arith.constant 0 : index
    %c0_146 = arith.constant 0 : index
    %c0_147 = arith.constant 0 : index
    %312 = vector.load %arg6[%c0_145, %c0_146, %c0_147] : memref<21x32x64xf32, #tpu.memory_space<vmem>>, vector<1x32x64xf32>
    %313 = vector.shape_cast %312 : vector<1x32x64xf32> to vector<32x64xf32>
    %cst_148 = arith.constant dense<0.000000e+00> : vector<16x64xf32>
    %314 = tpu.matmul %311, %313, %cst_148 {dimension_numbers = #tpu.dot_dimension_numbers<[1], [0], [0], [1], [0, 0, 1, 1], [], []>} : vector<16x32xf32>, vector<32x64xf32>, vector<16x64xf32> -> vector<16x64xf32>
    %315 = arith.addf %310, %314 : vector<16x64xf32>
    %316 = vector.extract_strided_slice %309 {offsets = [1, 0], sizes = [16, 32], strides = [1, 1]} : vector<36x32xf32> to vector<16x32xf32>
    %c1_149 = arith.constant 1 : index
    %c0_150 = arith.constant 0 : index
    %c0_151 = arith.constant 0 : index
    %317 = vector.load %arg6[%c1_149, %c0_150, %c0_151] : memref<21x32x64xf32, #tpu.memory_space<vmem>>, vector<1x32x64xf32>
    %318 = vector.shape_cast %317 : vector<1x32x64xf32> to vector<32x64xf32>
    %cst_152 = arith.constant dense<0.000000e+00> : vector<16x64xf32>
    %319 = tpu.matmul %316, %318, %cst_152 {dimension_numbers = #tpu.dot_dimension_numbers<[1], [0], [0], [1], [0, 0, 1, 1], [], []>} : vector<16x32xf32>, vector<32x64xf32>, vector<16x64xf32> -> vector<16x64xf32>
    %320 = arith.addf %315, %319 : vector<16x64xf32>
    %321 = vector.extract_strided_slice %309 {offsets = [2, 0], sizes = [16, 32], strides = [1, 1]} : vector<36x32xf32> to vector<16x32xf32>
    %c2_153 = arith.constant 2 : index
    %c0_154 = arith.constant 0 : index
    %c0_155 = arith.constant 0 : index
    %322 = vector.load %arg6[%c2_153, %c0_154, %c0_155] : memref<21x32x64xf32, #tpu.memory_space<vmem>>, vector<1x32x64xf32>
    %323 = vector.shape_cast %322 : vector<1x32x64xf32> to vector<32x64xf32>
    %cst_156 = arith.constant dense<0.000000e+00> : vector<16x64xf32>
    %324 = tpu.matmul %321, %323, %cst_156 {dimension_numbers = #tpu.dot_dimension_numbers<[1], [0], [0], [1], [0, 0, 1, 1], [], []>} : vector<16x32xf32>, vector<32x64xf32>, vector<16x64xf32> -> vector<16x64xf32>
    %325 = arith.addf %320, %324 : vector<16x64xf32>
    %326 = vector.extract_strided_slice %309 {offsets = [3, 0], sizes = [16, 32], strides = [1, 1]} : vector<36x32xf32> to vector<16x32xf32>
    %c3_157 = arith.constant 3 : index
    %c0_158 = arith.constant 0 : index
    %c0_159 = arith.constant 0 : index
    %327 = vector.load %arg6[%c3_157, %c0_158, %c0_159] : memref<21x32x64xf32, #tpu.memory_space<vmem>>, vector<1x32x64xf32>
    %328 = vector.shape_cast %327 : vector<1x32x64xf32> to vector<32x64xf32>
    %cst_160 = arith.constant dense<0.000000e+00> : vector<16x64xf32>
    %329 = tpu.matmul %326, %328, %cst_160 {dimension_numbers = #tpu.dot_dimension_numbers<[1], [0], [0], [1], [0, 0, 1, 1], [], []>} : vector<16x32xf32>, vector<32x64xf32>, vector<16x64xf32> -> vector<16x64xf32>
    %330 = arith.addf %325, %329 : vector<16x64xf32>
    %331 = vector.extract_strided_slice %309 {offsets = [4, 0], sizes = [16, 32], strides = [1, 1]} : vector<36x32xf32> to vector<16x32xf32>
    %c4_161 = arith.constant 4 : index
    %c0_162 = arith.constant 0 : index
    %c0_163 = arith.constant 0 : index
    %332 = vector.load %arg6[%c4_161, %c0_162, %c0_163] : memref<21x32x64xf32, #tpu.memory_space<vmem>>, vector<1x32x64xf32>
    %333 = vector.shape_cast %332 : vector<1x32x64xf32> to vector<32x64xf32>
    %cst_164 = arith.constant dense<0.000000e+00> : vector<16x64xf32>
    %334 = tpu.matmul %331, %333, %cst_164 {dimension_numbers = #tpu.dot_dimension_numbers<[1], [0], [0], [1], [0, 0, 1, 1], [], []>} : vector<16x32xf32>, vector<32x64xf32>, vector<16x64xf32> -> vector<16x64xf32>
    %335 = arith.addf %330, %334 : vector<16x64xf32>
    %336 = vector.extract_strided_slice %309 {offsets = [5, 0], sizes = [16, 32], strides = [1, 1]} : vector<36x32xf32> to vector<16x32xf32>
    %c5_165 = arith.constant 5 : index
    %c0_166 = arith.constant 0 : index
    %c0_167 = arith.constant 0 : index
    %337 = vector.load %arg6[%c5_165, %c0_166, %c0_167] : memref<21x32x64xf32, #tpu.memory_space<vmem>>, vector<1x32x64xf32>
    %338 = vector.shape_cast %337 : vector<1x32x64xf32> to vector<32x64xf32>
    %cst_168 = arith.constant dense<0.000000e+00> : vector<16x64xf32>
    %339 = tpu.matmul %336, %338, %cst_168 {dimension_numbers = #tpu.dot_dimension_numbers<[1], [0], [0], [1], [0, 0, 1, 1], [], []>} : vector<16x32xf32>, vector<32x64xf32>, vector<16x64xf32> -> vector<16x64xf32>
    %340 = arith.addf %335, %339 : vector<16x64xf32>
    %341 = vector.extract_strided_slice %309 {offsets = [6, 0], sizes = [16, 32], strides = [1, 1]} : vector<36x32xf32> to vector<16x32xf32>
    %c6_169 = arith.constant 6 : index
    %c0_170 = arith.constant 0 : index
    %c0_171 = arith.constant 0 : index
    %342 = vector.load %arg6[%c6_169, %c0_170, %c0_171] : memref<21x32x64xf32, #tpu.memory_space<vmem>>, vector<1x32x64xf32>
    %343 = vector.shape_cast %342 : vector<1x32x64xf32> to vector<32x64xf32>
    %cst_172 = arith.constant dense<0.000000e+00> : vector<16x64xf32>
    %344 = tpu.matmul %341, %343, %cst_172 {dimension_numbers = #tpu.dot_dimension_numbers<[1], [0], [0], [1], [0, 0, 1, 1], [], []>} : vector<16x32xf32>, vector<32x64xf32>, vector<16x64xf32> -> vector<16x64xf32>
    %345 = arith.addf %340, %344 : vector<16x64xf32>
    %346 = vector.extract_strided_slice %309 {offsets = [7, 0], sizes = [16, 32], strides = [1, 1]} : vector<36x32xf32> to vector<16x32xf32>
    %c7_173 = arith.constant 7 : index
    %c0_174 = arith.constant 0 : index
    %c0_175 = arith.constant 0 : index
    %347 = vector.load %arg6[%c7_173, %c0_174, %c0_175] : memref<21x32x64xf32, #tpu.memory_space<vmem>>, vector<1x32x64xf32>
    %348 = vector.shape_cast %347 : vector<1x32x64xf32> to vector<32x64xf32>
    %cst_176 = arith.constant dense<0.000000e+00> : vector<16x64xf32>
    %349 = tpu.matmul %346, %348, %cst_176 {dimension_numbers = #tpu.dot_dimension_numbers<[1], [0], [0], [1], [0, 0, 1, 1], [], []>} : vector<16x32xf32>, vector<32x64xf32>, vector<16x64xf32> -> vector<16x64xf32>
    %350 = arith.addf %345, %349 : vector<16x64xf32>
    %351 = vector.extract_strided_slice %309 {offsets = [8, 0], sizes = [16, 32], strides = [1, 1]} : vector<36x32xf32> to vector<16x32xf32>
    %c8_177 = arith.constant 8 : index
    %c0_178 = arith.constant 0 : index
    %c0_179 = arith.constant 0 : index
    %352 = vector.load %arg6[%c8_177, %c0_178, %c0_179] : memref<21x32x64xf32, #tpu.memory_space<vmem>>, vector<1x32x64xf32>
    %353 = vector.shape_cast %352 : vector<1x32x64xf32> to vector<32x64xf32>
    %cst_180 = arith.constant dense<0.000000e+00> : vector<16x64xf32>
    %354 = tpu.matmul %351, %353, %cst_180 {dimension_numbers = #tpu.dot_dimension_numbers<[1], [0], [0], [1], [0, 0, 1, 1], [], []>} : vector<16x32xf32>, vector<32x64xf32>, vector<16x64xf32> -> vector<16x64xf32>
    %355 = arith.addf %350, %354 : vector<16x64xf32>
    %356 = vector.extract_strided_slice %309 {offsets = [9, 0], sizes = [16, 32], strides = [1, 1]} : vector<36x32xf32> to vector<16x32xf32>
    %c9_181 = arith.constant 9 : index
    %c0_182 = arith.constant 0 : index
    %c0_183 = arith.constant 0 : index
    %357 = vector.load %arg6[%c9_181, %c0_182, %c0_183] : memref<21x32x64xf32, #tpu.memory_space<vmem>>, vector<1x32x64xf32>
    %358 = vector.shape_cast %357 : vector<1x32x64xf32> to vector<32x64xf32>
    %cst_184 = arith.constant dense<0.000000e+00> : vector<16x64xf32>
    %359 = tpu.matmul %356, %358, %cst_184 {dimension_numbers = #tpu.dot_dimension_numbers<[1], [0], [0], [1], [0, 0, 1, 1], [], []>} : vector<16x32xf32>, vector<32x64xf32>, vector<16x64xf32> -> vector<16x64xf32>
    %360 = arith.addf %355, %359 : vector<16x64xf32>
    %361 = vector.extract_strided_slice %309 {offsets = [10, 0], sizes = [16, 32], strides = [1, 1]} : vector<36x32xf32> to vector<16x32xf32>
    %c10_185 = arith.constant 10 : index
    %c0_186 = arith.constant 0 : index
    %c0_187 = arith.constant 0 : index
    %362 = vector.load %arg6[%c10_185, %c0_186, %c0_187] : memref<21x32x64xf32, #tpu.memory_space<vmem>>, vector<1x32x64xf32>
    %363 = vector.shape_cast %362 : vector<1x32x64xf32> to vector<32x64xf32>
    %cst_188 = arith.constant dense<0.000000e+00> : vector<16x64xf32>
    %364 = tpu.matmul %361, %363, %cst_188 {dimension_numbers = #tpu.dot_dimension_numbers<[1], [0], [0], [1], [0, 0, 1, 1], [], []>} : vector<16x32xf32>, vector<32x64xf32>, vector<16x64xf32> -> vector<16x64xf32>
    %365 = arith.addf %360, %364 : vector<16x64xf32>
    %366 = vector.extract_strided_slice %309 {offsets = [11, 0], sizes = [16, 32], strides = [1, 1]} : vector<36x32xf32> to vector<16x32xf32>
    %c11_189 = arith.constant 11 : index
    %c0_190 = arith.constant 0 : index
    %c0_191 = arith.constant 0 : index
    %367 = vector.load %arg6[%c11_189, %c0_190, %c0_191] : memref<21x32x64xf32, #tpu.memory_space<vmem>>, vector<1x32x64xf32>
    %368 = vector.shape_cast %367 : vector<1x32x64xf32> to vector<32x64xf32>
    %cst_192 = arith.constant dense<0.000000e+00> : vector<16x64xf32>
    %369 = tpu.matmul %366, %368, %cst_192 {dimension_numbers = #tpu.dot_dimension_numbers<[1], [0], [0], [1], [0, 0, 1, 1], [], []>} : vector<16x32xf32>, vector<32x64xf32>, vector<16x64xf32> -> vector<16x64xf32>
    %370 = arith.addf %365, %369 : vector<16x64xf32>
    %371 = vector.extract_strided_slice %309 {offsets = [12, 0], sizes = [16, 32], strides = [1, 1]} : vector<36x32xf32> to vector<16x32xf32>
    %c12_193 = arith.constant 12 : index
    %c0_194 = arith.constant 0 : index
    %c0_195 = arith.constant 0 : index
    %372 = vector.load %arg6[%c12_193, %c0_194, %c0_195] : memref<21x32x64xf32, #tpu.memory_space<vmem>>, vector<1x32x64xf32>
    %373 = vector.shape_cast %372 : vector<1x32x64xf32> to vector<32x64xf32>
    %cst_196 = arith.constant dense<0.000000e+00> : vector<16x64xf32>
    %374 = tpu.matmul %371, %373, %cst_196 {dimension_numbers = #tpu.dot_dimension_numbers<[1], [0], [0], [1], [0, 0, 1, 1], [], []>} : vector<16x32xf32>, vector<32x64xf32>, vector<16x64xf32> -> vector<16x64xf32>
    %375 = arith.addf %370, %374 : vector<16x64xf32>
    %376 = vector.extract_strided_slice %309 {offsets = [13, 0], sizes = [16, 32], strides = [1, 1]} : vector<36x32xf32> to vector<16x32xf32>
    %c13_197 = arith.constant 13 : index
    %c0_198 = arith.constant 0 : index
    %c0_199 = arith.constant 0 : index
    %377 = vector.load %arg6[%c13_197, %c0_198, %c0_199] : memref<21x32x64xf32, #tpu.memory_space<vmem>>, vector<1x32x64xf32>
    %378 = vector.shape_cast %377 : vector<1x32x64xf32> to vector<32x64xf32>
    %cst_200 = arith.constant dense<0.000000e+00> : vector<16x64xf32>
    %379 = tpu.matmul %376, %378, %cst_200 {dimension_numbers = #tpu.dot_dimension_numbers<[1], [0], [0], [1], [0, 0, 1, 1], [], []>} : vector<16x32xf32>, vector<32x64xf32>, vector<16x64xf32> -> vector<16x64xf32>
    %380 = arith.addf %375, %379 : vector<16x64xf32>
    %381 = vector.extract_strided_slice %309 {offsets = [14, 0], sizes = [16, 32], strides = [1, 1]} : vector<36x32xf32> to vector<16x32xf32>
    %c14_201 = arith.constant 14 : index
    %c0_202 = arith.constant 0 : index
    %c0_203 = arith.constant 0 : index
    %382 = vector.load %arg6[%c14_201, %c0_202, %c0_203] : memref<21x32x64xf32, #tpu.memory_space<vmem>>, vector<1x32x64xf32>
    %383 = vector.shape_cast %382 : vector<1x32x64xf32> to vector<32x64xf32>
    %cst_204 = arith.constant dense<0.000000e+00> : vector<16x64xf32>
    %384 = tpu.matmul %381, %383, %cst_204 {dimension_numbers = #tpu.dot_dimension_numbers<[1], [0], [0], [1], [0, 0, 1, 1], [], []>} : vector<16x32xf32>, vector<32x64xf32>, vector<16x64xf32> -> vector<16x64xf32>
    %385 = arith.addf %380, %384 : vector<16x64xf32>
    %386 = vector.extract_strided_slice %309 {offsets = [15, 0], sizes = [16, 32], strides = [1, 1]} : vector<36x32xf32> to vector<16x32xf32>
    %c15_205 = arith.constant 15 : index
    %c0_206 = arith.constant 0 : index
    %c0_207 = arith.constant 0 : index
    %387 = vector.load %arg6[%c15_205, %c0_206, %c0_207] : memref<21x32x64xf32, #tpu.memory_space<vmem>>, vector<1x32x64xf32>
    %388 = vector.shape_cast %387 : vector<1x32x64xf32> to vector<32x64xf32>
    %cst_208 = arith.constant dense<0.000000e+00> : vector<16x64xf32>
    %389 = tpu.matmul %386, %388, %cst_208 {dimension_numbers = #tpu.dot_dimension_numbers<[1], [0], [0], [1], [0, 0, 1, 1], [], []>} : vector<16x32xf32>, vector<32x64xf32>, vector<16x64xf32> -> vector<16x64xf32>
    %390 = arith.addf %385, %389 : vector<16x64xf32>
    %391 = vector.extract_strided_slice %309 {offsets = [16, 0], sizes = [16, 32], strides = [1, 1]} : vector<36x32xf32> to vector<16x32xf32>
    %c16_209 = arith.constant 16 : index
    %c0_210 = arith.constant 0 : index
    %c0_211 = arith.constant 0 : index
    %392 = vector.load %arg6[%c16_209, %c0_210, %c0_211] : memref<21x32x64xf32, #tpu.memory_space<vmem>>, vector<1x32x64xf32>
    %393 = vector.shape_cast %392 : vector<1x32x64xf32> to vector<32x64xf32>
    %cst_212 = arith.constant dense<0.000000e+00> : vector<16x64xf32>
    %394 = tpu.matmul %391, %393, %cst_212 {dimension_numbers = #tpu.dot_dimension_numbers<[1], [0], [0], [1], [0, 0, 1, 1], [], []>} : vector<16x32xf32>, vector<32x64xf32>, vector<16x64xf32> -> vector<16x64xf32>
    %395 = arith.addf %390, %394 : vector<16x64xf32>
    %396 = vector.extract_strided_slice %309 {offsets = [17, 0], sizes = [16, 32], strides = [1, 1]} : vector<36x32xf32> to vector<16x32xf32>
    %c17_213 = arith.constant 17 : index
    %c0_214 = arith.constant 0 : index
    %c0_215 = arith.constant 0 : index
    %397 = vector.load %arg6[%c17_213, %c0_214, %c0_215] : memref<21x32x64xf32, #tpu.memory_space<vmem>>, vector<1x32x64xf32>
    %398 = vector.shape_cast %397 : vector<1x32x64xf32> to vector<32x64xf32>
    %cst_216 = arith.constant dense<0.000000e+00> : vector<16x64xf32>
    %399 = tpu.matmul %396, %398, %cst_216 {dimension_numbers = #tpu.dot_dimension_numbers<[1], [0], [0], [1], [0, 0, 1, 1], [], []>} : vector<16x32xf32>, vector<32x64xf32>, vector<16x64xf32> -> vector<16x64xf32>
    %400 = arith.addf %395, %399 : vector<16x64xf32>
    %401 = vector.extract_strided_slice %309 {offsets = [18, 0], sizes = [16, 32], strides = [1, 1]} : vector<36x32xf32> to vector<16x32xf32>
    %c18_217 = arith.constant 18 : index
    %c0_218 = arith.constant 0 : index
    %c0_219 = arith.constant 0 : index
    %402 = vector.load %arg6[%c18_217, %c0_218, %c0_219] : memref<21x32x64xf32, #tpu.memory_space<vmem>>, vector<1x32x64xf32>
    %403 = vector.shape_cast %402 : vector<1x32x64xf32> to vector<32x64xf32>
    %cst_220 = arith.constant dense<0.000000e+00> : vector<16x64xf32>
    %404 = tpu.matmul %401, %403, %cst_220 {dimension_numbers = #tpu.dot_dimension_numbers<[1], [0], [0], [1], [0, 0, 1, 1], [], []>} : vector<16x32xf32>, vector<32x64xf32>, vector<16x64xf32> -> vector<16x64xf32>
    %405 = arith.addf %400, %404 : vector<16x64xf32>
    %406 = vector.extract_strided_slice %309 {offsets = [19, 0], sizes = [16, 32], strides = [1, 1]} : vector<36x32xf32> to vector<16x32xf32>
    %c19_221 = arith.constant 19 : index
    %c0_222 = arith.constant 0 : index
    %c0_223 = arith.constant 0 : index
    %407 = vector.load %arg6[%c19_221, %c0_222, %c0_223] : memref<21x32x64xf32, #tpu.memory_space<vmem>>, vector<1x32x64xf32>
    %408 = vector.shape_cast %407 : vector<1x32x64xf32> to vector<32x64xf32>
    %cst_224 = arith.constant dense<0.000000e+00> : vector<16x64xf32>
    %409 = tpu.matmul %406, %408, %cst_224 {dimension_numbers = #tpu.dot_dimension_numbers<[1], [0], [0], [1], [0, 0, 1, 1], [], []>} : vector<16x32xf32>, vector<32x64xf32>, vector<16x64xf32> -> vector<16x64xf32>
    %410 = arith.addf %405, %409 : vector<16x64xf32>
    %411 = vector.extract_strided_slice %309 {offsets = [20, 0], sizes = [16, 32], strides = [1, 1]} : vector<36x32xf32> to vector<16x32xf32>
    %c20_225 = arith.constant 20 : index
    %c0_226 = arith.constant 0 : index
    %c0_227 = arith.constant 0 : index
    %412 = vector.load %arg6[%c20_225, %c0_226, %c0_227] : memref<21x32x64xf32, #tpu.memory_space<vmem>>, vector<1x32x64xf32>
    %413 = vector.shape_cast %412 : vector<1x32x64xf32> to vector<32x64xf32>
    %cst_228 = arith.constant dense<0.000000e+00> : vector<16x64xf32>
    %414 = tpu.matmul %411, %413, %cst_228 {dimension_numbers = #tpu.dot_dimension_numbers<[1], [0], [0], [1], [0, 0, 1, 1], [], []>} : vector<16x32xf32>, vector<32x64xf32>, vector<16x64xf32> -> vector<16x64xf32>
    %415 = arith.addf %410, %414 : vector<16x64xf32>
    %cst_229 = arith.constant dense<0.000000e+00> : vector<16x64xf32>
    %416 = tpu.matmul %47, %415, %cst_229 {dimension_numbers = #tpu.dot_dimension_numbers<[1], [0], [0], [1], [0, 0, 1, 1], [], []>} : vector<16x16xf32>, vector<16x64xf32>, vector<16x64xf32> -> vector<16x64xf32>
    %417 = vector.extract_strided_slice %416 {offsets = [0, 0], sizes = [8, 64], strides = [1, 1]} : vector<16x64xf32> to vector<8x64xf32>
    %418 = vector.extract_strided_slice %416 {offsets = [8, 0], sizes = [8, 64], strides = [1, 1]} : vector<16x64xf32> to vector<8x64xf32>
    %419 = arith.maximumf %417, %418 : vector<8x64xf32>
    %420 = vector.broadcast %50 : vector<1x64xf32> to vector<8x64xf32>
    %421 = arith.addf %419, %420 : vector<8x64xf32>
    %cst_230 = arith.constant 0.000000e+00 : f32
    %422 = vector.broadcast %cst_230 : f32 to vector<8x64xf32>
    %423 = arith.maximumf %421, %422 : vector<8x64xf32>
    %c0_231 = arith.constant 0 : index
    %c1_232 = arith.constant 1 : index
    %c0_233 = arith.constant 0 : index
    %c0_234 = arith.constant 0 : index
    %424 = vector.load %arg1[%c0_231, %c1_232, %c0_233, %c0_234] : memref<1x2x84x1xf32, #tpu.memory_space<vmem>>, vector<1x1x84x1xf32>
    %425 = vector.shape_cast %424 : vector<1x1x84x1xf32> to vector<84x1xf32>
    %cst_235 = arith.constant 0.000000e+00 : f32
    %426 = vector.broadcast %cst_235 : f32 to vector<64x16xf32>
    %427 = vector.extract_strided_slice %425 {offsets = [0, 0], sizes = [64, 1], strides = [1, 1]} : vector<84x1xf32> to vector<64x1xf32>
    %c0_236 = arith.constant 0 : index
    %c0_237 = arith.constant 0 : index
    %428 = vector.load %arg2[%c0_236, %c0_237] : memref<21x16xf32, #tpu.memory_space<vmem>>, vector<1x16xf32>
    %429 = vector.broadcast %427 : vector<64x1xf32> to vector<64x16xf32>
    %430 = vector.broadcast %428 : vector<1x16xf32> to vector<64x16xf32>
    %431 = arith.mulf %429, %430 : vector<64x16xf32>
    %432 = arith.addf %426, %431 : vector<64x16xf32>
    %433 = vector.extract_strided_slice %425 {offsets = [1, 0], sizes = [64, 1], strides = [1, 1]} : vector<84x1xf32> to vector<64x1xf32>
    %c1_238 = arith.constant 1 : index
    %c0_239 = arith.constant 0 : index
    %434 = vector.load %arg2[%c1_238, %c0_239] : memref<21x16xf32, #tpu.memory_space<vmem>>, vector<1x16xf32>
    %435 = vector.broadcast %433 : vector<64x1xf32> to vector<64x16xf32>
    %436 = vector.broadcast %434 : vector<1x16xf32> to vector<64x16xf32>
    %437 = arith.mulf %435, %436 : vector<64x16xf32>
    %438 = arith.addf %432, %437 : vector<64x16xf32>
    %439 = vector.extract_strided_slice %425 {offsets = [2, 0], sizes = [64, 1], strides = [1, 1]} : vector<84x1xf32> to vector<64x1xf32>
    %c2_240 = arith.constant 2 : index
    %c0_241 = arith.constant 0 : index
    %440 = vector.load %arg2[%c2_240, %c0_241] : memref<21x16xf32, #tpu.memory_space<vmem>>, vector<1x16xf32>
    %441 = vector.broadcast %439 : vector<64x1xf32> to vector<64x16xf32>
    %442 = vector.broadcast %440 : vector<1x16xf32> to vector<64x16xf32>
    %443 = arith.mulf %441, %442 : vector<64x16xf32>
    %444 = arith.addf %438, %443 : vector<64x16xf32>
    %445 = vector.extract_strided_slice %425 {offsets = [3, 0], sizes = [64, 1], strides = [1, 1]} : vector<84x1xf32> to vector<64x1xf32>
    %c3_242 = arith.constant 3 : index
    %c0_243 = arith.constant 0 : index
    %446 = vector.load %arg2[%c3_242, %c0_243] : memref<21x16xf32, #tpu.memory_space<vmem>>, vector<1x16xf32>
    %447 = vector.broadcast %445 : vector<64x1xf32> to vector<64x16xf32>
    %448 = vector.broadcast %446 : vector<1x16xf32> to vector<64x16xf32>
    %449 = arith.mulf %447, %448 : vector<64x16xf32>
    %450 = arith.addf %444, %449 : vector<64x16xf32>
    %451 = vector.extract_strided_slice %425 {offsets = [4, 0], sizes = [64, 1], strides = [1, 1]} : vector<84x1xf32> to vector<64x1xf32>
    %c4_244 = arith.constant 4 : index
    %c0_245 = arith.constant 0 : index
    %452 = vector.load %arg2[%c4_244, %c0_245] : memref<21x16xf32, #tpu.memory_space<vmem>>, vector<1x16xf32>
    %453 = vector.broadcast %451 : vector<64x1xf32> to vector<64x16xf32>
    %454 = vector.broadcast %452 : vector<1x16xf32> to vector<64x16xf32>
    %455 = arith.mulf %453, %454 : vector<64x16xf32>
    %456 = arith.addf %450, %455 : vector<64x16xf32>
    %457 = vector.extract_strided_slice %425 {offsets = [5, 0], sizes = [64, 1], strides = [1, 1]} : vector<84x1xf32> to vector<64x1xf32>
    %c5_246 = arith.constant 5 : index
    %c0_247 = arith.constant 0 : index
    %458 = vector.load %arg2[%c5_246, %c0_247] : memref<21x16xf32, #tpu.memory_space<vmem>>, vector<1x16xf32>
    %459 = vector.broadcast %457 : vector<64x1xf32> to vector<64x16xf32>
    %460 = vector.broadcast %458 : vector<1x16xf32> to vector<64x16xf32>
    %461 = arith.mulf %459, %460 : vector<64x16xf32>
    %462 = arith.addf %456, %461 : vector<64x16xf32>
    %463 = vector.extract_strided_slice %425 {offsets = [6, 0], sizes = [64, 1], strides = [1, 1]} : vector<84x1xf32> to vector<64x1xf32>
    %c6_248 = arith.constant 6 : index
    %c0_249 = arith.constant 0 : index
    %464 = vector.load %arg2[%c6_248, %c0_249] : memref<21x16xf32, #tpu.memory_space<vmem>>, vector<1x16xf32>
    %465 = vector.broadcast %463 : vector<64x1xf32> to vector<64x16xf32>
    %466 = vector.broadcast %464 : vector<1x16xf32> to vector<64x16xf32>
    %467 = arith.mulf %465, %466 : vector<64x16xf32>
    %468 = arith.addf %462, %467 : vector<64x16xf32>
    %469 = vector.extract_strided_slice %425 {offsets = [7, 0], sizes = [64, 1], strides = [1, 1]} : vector<84x1xf32> to vector<64x1xf32>
    %c7_250 = arith.constant 7 : index
    %c0_251 = arith.constant 0 : index
    %470 = vector.load %arg2[%c7_250, %c0_251] : memref<21x16xf32, #tpu.memory_space<vmem>>, vector<1x16xf32>
    %471 = vector.broadcast %469 : vector<64x1xf32> to vector<64x16xf32>
    %472 = vector.broadcast %470 : vector<1x16xf32> to vector<64x16xf32>
    %473 = arith.mulf %471, %472 : vector<64x16xf32>
    %474 = arith.addf %468, %473 : vector<64x16xf32>
    %475 = vector.extract_strided_slice %425 {offsets = [8, 0], sizes = [64, 1], strides = [1, 1]} : vector<84x1xf32> to vector<64x1xf32>
    %c8_252 = arith.constant 8 : index
    %c0_253 = arith.constant 0 : index
    %476 = vector.load %arg2[%c8_252, %c0_253] : memref<21x16xf32, #tpu.memory_space<vmem>>, vector<1x16xf32>
    %477 = vector.broadcast %475 : vector<64x1xf32> to vector<64x16xf32>
    %478 = vector.broadcast %476 : vector<1x16xf32> to vector<64x16xf32>
    %479 = arith.mulf %477, %478 : vector<64x16xf32>
    %480 = arith.addf %474, %479 : vector<64x16xf32>
    %481 = vector.extract_strided_slice %425 {offsets = [9, 0], sizes = [64, 1], strides = [1, 1]} : vector<84x1xf32> to vector<64x1xf32>
    %c9_254 = arith.constant 9 : index
    %c0_255 = arith.constant 0 : index
    %482 = vector.load %arg2[%c9_254, %c0_255] : memref<21x16xf32, #tpu.memory_space<vmem>>, vector<1x16xf32>
    %483 = vector.broadcast %481 : vector<64x1xf32> to vector<64x16xf32>
    %484 = vector.broadcast %482 : vector<1x16xf32> to vector<64x16xf32>
    %485 = arith.mulf %483, %484 : vector<64x16xf32>
    %486 = arith.addf %480, %485 : vector<64x16xf32>
    %487 = vector.extract_strided_slice %425 {offsets = [10, 0], sizes = [64, 1], strides = [1, 1]} : vector<84x1xf32> to vector<64x1xf32>
    %c10_256 = arith.constant 10 : index
    %c0_257 = arith.constant 0 : index
    %488 = vector.load %arg2[%c10_256, %c0_257] : memref<21x16xf32, #tpu.memory_space<vmem>>, vector<1x16xf32>
    %489 = vector.broadcast %487 : vector<64x1xf32> to vector<64x16xf32>
    %490 = vector.broadcast %488 : vector<1x16xf32> to vector<64x16xf32>
    %491 = arith.mulf %489, %490 : vector<64x16xf32>
    %492 = arith.addf %486, %491 : vector<64x16xf32>
    %493 = vector.extract_strided_slice %425 {offsets = [11, 0], sizes = [64, 1], strides = [1, 1]} : vector<84x1xf32> to vector<64x1xf32>
    %c11_258 = arith.constant 11 : index
    %c0_259 = arith.constant 0 : index
    %494 = vector.load %arg2[%c11_258, %c0_259] : memref<21x16xf32, #tpu.memory_space<vmem>>, vector<1x16xf32>
    %495 = vector.broadcast %493 : vector<64x1xf32> to vector<64x16xf32>
    %496 = vector.broadcast %494 : vector<1x16xf32> to vector<64x16xf32>
    %497 = arith.mulf %495, %496 : vector<64x16xf32>
    %498 = arith.addf %492, %497 : vector<64x16xf32>
    %499 = vector.extract_strided_slice %425 {offsets = [12, 0], sizes = [64, 1], strides = [1, 1]} : vector<84x1xf32> to vector<64x1xf32>
    %c12_260 = arith.constant 12 : index
    %c0_261 = arith.constant 0 : index
    %500 = vector.load %arg2[%c12_260, %c0_261] : memref<21x16xf32, #tpu.memory_space<vmem>>, vector<1x16xf32>
    %501 = vector.broadcast %499 : vector<64x1xf32> to vector<64x16xf32>
    %502 = vector.broadcast %500 : vector<1x16xf32> to vector<64x16xf32>
    %503 = arith.mulf %501, %502 : vector<64x16xf32>
    %504 = arith.addf %498, %503 : vector<64x16xf32>
    %505 = vector.extract_strided_slice %425 {offsets = [13, 0], sizes = [64, 1], strides = [1, 1]} : vector<84x1xf32> to vector<64x1xf32>
    %c13_262 = arith.constant 13 : index
    %c0_263 = arith.constant 0 : index
    %506 = vector.load %arg2[%c13_262, %c0_263] : memref<21x16xf32, #tpu.memory_space<vmem>>, vector<1x16xf32>
    %507 = vector.broadcast %505 : vector<64x1xf32> to vector<64x16xf32>
    %508 = vector.broadcast %506 : vector<1x16xf32> to vector<64x16xf32>
    %509 = arith.mulf %507, %508 : vector<64x16xf32>
    %510 = arith.addf %504, %509 : vector<64x16xf32>
    %511 = vector.extract_strided_slice %425 {offsets = [14, 0], sizes = [64, 1], strides = [1, 1]} : vector<84x1xf32> to vector<64x1xf32>
    %c14_264 = arith.constant 14 : index
    %c0_265 = arith.constant 0 : index
    %512 = vector.load %arg2[%c14_264, %c0_265] : memref<21x16xf32, #tpu.memory_space<vmem>>, vector<1x16xf32>
    %513 = vector.broadcast %511 : vector<64x1xf32> to vector<64x16xf32>
    %514 = vector.broadcast %512 : vector<1x16xf32> to vector<64x16xf32>
    %515 = arith.mulf %513, %514 : vector<64x16xf32>
    %516 = arith.addf %510, %515 : vector<64x16xf32>
    %517 = vector.extract_strided_slice %425 {offsets = [15, 0], sizes = [64, 1], strides = [1, 1]} : vector<84x1xf32> to vector<64x1xf32>
    %c15_266 = arith.constant 15 : index
    %c0_267 = arith.constant 0 : index
    %518 = vector.load %arg2[%c15_266, %c0_267] : memref<21x16xf32, #tpu.memory_space<vmem>>, vector<1x16xf32>
    %519 = vector.broadcast %517 : vector<64x1xf32> to vector<64x16xf32>
    %520 = vector.broadcast %518 : vector<1x16xf32> to vector<64x16xf32>
    %521 = arith.mulf %519, %520 : vector<64x16xf32>
    %522 = arith.addf %516, %521 : vector<64x16xf32>
    %523 = vector.extract_strided_slice %425 {offsets = [16, 0], sizes = [64, 1], strides = [1, 1]} : vector<84x1xf32> to vector<64x1xf32>
    %c16_268 = arith.constant 16 : index
    %c0_269 = arith.constant 0 : index
    %524 = vector.load %arg2[%c16_268, %c0_269] : memref<21x16xf32, #tpu.memory_space<vmem>>, vector<1x16xf32>
    %525 = vector.broadcast %523 : vector<64x1xf32> to vector<64x16xf32>
    %526 = vector.broadcast %524 : vector<1x16xf32> to vector<64x16xf32>
    %527 = arith.mulf %525, %526 : vector<64x16xf32>
    %528 = arith.addf %522, %527 : vector<64x16xf32>
    %529 = vector.extract_strided_slice %425 {offsets = [17, 0], sizes = [64, 1], strides = [1, 1]} : vector<84x1xf32> to vector<64x1xf32>
    %c17_270 = arith.constant 17 : index
    %c0_271 = arith.constant 0 : index
    %530 = vector.load %arg2[%c17_270, %c0_271] : memref<21x16xf32, #tpu.memory_space<vmem>>, vector<1x16xf32>
    %531 = vector.broadcast %529 : vector<64x1xf32> to vector<64x16xf32>
    %532 = vector.broadcast %530 : vector<1x16xf32> to vector<64x16xf32>
    %533 = arith.mulf %531, %532 : vector<64x16xf32>
    %534 = arith.addf %528, %533 : vector<64x16xf32>
    %535 = vector.extract_strided_slice %425 {offsets = [18, 0], sizes = [64, 1], strides = [1, 1]} : vector<84x1xf32> to vector<64x1xf32>
    %c18_272 = arith.constant 18 : index
    %c0_273 = arith.constant 0 : index
    %536 = vector.load %arg2[%c18_272, %c0_273] : memref<21x16xf32, #tpu.memory_space<vmem>>, vector<1x16xf32>
    %537 = vector.broadcast %535 : vector<64x1xf32> to vector<64x16xf32>
    %538 = vector.broadcast %536 : vector<1x16xf32> to vector<64x16xf32>
    %539 = arith.mulf %537, %538 : vector<64x16xf32>
    %540 = arith.addf %534, %539 : vector<64x16xf32>
    %541 = vector.extract_strided_slice %425 {offsets = [19, 0], sizes = [64, 1], strides = [1, 1]} : vector<84x1xf32> to vector<64x1xf32>
    %c19_274 = arith.constant 19 : index
    %c0_275 = arith.constant 0 : index
    %542 = vector.load %arg2[%c19_274, %c0_275] : memref<21x16xf32, #tpu.memory_space<vmem>>, vector<1x16xf32>
    %543 = vector.broadcast %541 : vector<64x1xf32> to vector<64x16xf32>
    %544 = vector.broadcast %542 : vector<1x16xf32> to vector<64x16xf32>
    %545 = arith.mulf %543, %544 : vector<64x16xf32>
    %546 = arith.addf %540, %545 : vector<64x16xf32>
    %547 = vector.extract_strided_slice %425 {offsets = [20, 0], sizes = [64, 1], strides = [1, 1]} : vector<84x1xf32> to vector<64x1xf32>
    %c20_276 = arith.constant 20 : index
    %c0_277 = arith.constant 0 : index
    %548 = vector.load %arg2[%c20_276, %c0_277] : memref<21x16xf32, #tpu.memory_space<vmem>>, vector<1x16xf32>
    %549 = vector.broadcast %547 : vector<64x1xf32> to vector<64x16xf32>
    %550 = vector.broadcast %548 : vector<1x16xf32> to vector<64x16xf32>
    %551 = arith.mulf %549, %550 : vector<64x16xf32>
    %552 = arith.addf %546, %551 : vector<64x16xf32>
    %cst_278 = arith.constant dense<0.000000e+00> : vector<64x16xf32>
    %553 = tpu.matmul %15, %552, %cst_278 {dimension_numbers = #tpu.dot_dimension_numbers<[1], [0], [0], [1], [0, 0, 1, 1], [], []>} : vector<64x64xf32>, vector<64x16xf32>, vector<64x16xf32> -> vector<64x16xf32>
    %554 = vector.extract_strided_slice %553 {offsets = [0, 0], sizes = [32, 16], strides = [1, 1]} : vector<64x16xf32> to vector<32x16xf32>
    %555 = vector.extract_strided_slice %553 {offsets = [32, 0], sizes = [32, 16], strides = [1, 1]} : vector<64x16xf32> to vector<32x16xf32>
    %556 = arith.maximumf %554, %555 : vector<32x16xf32>
    %557 = vector.broadcast %48 : vector<1x16xf32> to vector<32x16xf32>
    %558 = arith.addf %556, %557 : vector<32x16xf32>
    %cst_279 = arith.constant 0.000000e+00 : f32
    %559 = vector.broadcast %cst_279 : f32 to vector<32x16xf32>
    %560 = arith.maximumf %558, %559 : vector<32x16xf32>
    %c10_280 = arith.constant 10 : index
    %c0_281 = arith.constant 0 : index
    %561 = vector.load %arg15[%c10_280, %c0_281] : memref<52x16xf32, #tpu.memory_space<vmem>>, vector<32x16xf32>
    tpu.vector_store %arg15[%c10_280, %c0_281], %560 {strides = array<i32>} : memref<52x16xf32, #tpu.memory_space<vmem>>, vector<32x16xf32>,
    %c0_282 = arith.constant 0 : index
    %c0_283 = arith.constant 0 : index
    %562 = vector.load %arg15[%c0_282, %c0_283] : memref<52x16xf32, #tpu.memory_space<vmem>>, vector<52x16xf32>
    %cst_284 = arith.constant 0.000000e+00 : f32
    %563 = vector.broadcast %cst_284 : f32 to vector<32x32xf32>
    %564 = vector.extract_strided_slice %562 {offsets = [0, 0], sizes = [32, 16], strides = [1, 1]} : vector<52x16xf32> to vector<32x16xf32>
    %c0_285 = arith.constant 0 : index
    %c0_286 = arith.constant 0 : index
    %c0_287 = arith.constant 0 : index
    %565 = vector.load %arg4[%c0_285, %c0_286, %c0_287] : memref<21x16x32xf32, #tpu.memory_space<vmem>>, vector<1x16x32xf32>
    %566 = vector.shape_cast %565 : vector<1x16x32xf32> to vector<16x32xf32>
    %cst_288 = arith.constant dense<0.000000e+00> : vector<32x32xf32>
    %567 = tpu.matmul %564, %566, %cst_288 {dimension_numbers = #tpu.dot_dimension_numbers<[1], [0], [0], [1], [0, 0, 1, 1], [], []>} : vector<32x16xf32>, vector<16x32xf32>, vector<32x32xf32> -> vector<32x32xf32>
    %568 = arith.addf %563, %567 : vector<32x32xf32>
    %569 = vector.extract_strided_slice %562 {offsets = [1, 0], sizes = [32, 16], strides = [1, 1]} : vector<52x16xf32> to vector<32x16xf32>
    %c1_289 = arith.constant 1 : index
    %c0_290 = arith.constant 0 : index
    %c0_291 = arith.constant 0 : index
    %570 = vector.load %arg4[%c1_289, %c0_290, %c0_291] : memref<21x16x32xf32, #tpu.memory_space<vmem>>, vector<1x16x32xf32>
    %571 = vector.shape_cast %570 : vector<1x16x32xf32> to vector<16x32xf32>
    %cst_292 = arith.constant dense<0.000000e+00> : vector<32x32xf32>
    %572 = tpu.matmul %569, %571, %cst_292 {dimension_numbers = #tpu.dot_dimension_numbers<[1], [0], [0], [1], [0, 0, 1, 1], [], []>} : vector<32x16xf32>, vector<16x32xf32>, vector<32x32xf32> -> vector<32x32xf32>
    %573 = arith.addf %568, %572 : vector<32x32xf32>
    %574 = vector.extract_strided_slice %562 {offsets = [2, 0], sizes = [32, 16], strides = [1, 1]} : vector<52x16xf32> to vector<32x16xf32>
    %c2_293 = arith.constant 2 : index
    %c0_294 = arith.constant 0 : index
    %c0_295 = arith.constant 0 : index
    %575 = vector.load %arg4[%c2_293, %c0_294, %c0_295] : memref<21x16x32xf32, #tpu.memory_space<vmem>>, vector<1x16x32xf32>
    %576 = vector.shape_cast %575 : vector<1x16x32xf32> to vector<16x32xf32>
    %cst_296 = arith.constant dense<0.000000e+00> : vector<32x32xf32>
    %577 = tpu.matmul %574, %576, %cst_296 {dimension_numbers = #tpu.dot_dimension_numbers<[1], [0], [0], [1], [0, 0, 1, 1], [], []>} : vector<32x16xf32>, vector<16x32xf32>, vector<32x32xf32> -> vector<32x32xf32>
    %578 = arith.addf %573, %577 : vector<32x32xf32>
    %579 = vector.extract_strided_slice %562 {offsets = [3, 0], sizes = [32, 16], strides = [1, 1]} : vector<52x16xf32> to vector<32x16xf32>
    %c3_297 = arith.constant 3 : index
    %c0_298 = arith.constant 0 : index
    %c0_299 = arith.constant 0 : index
    %580 = vector.load %arg4[%c3_297, %c0_298, %c0_299] : memref<21x16x32xf32, #tpu.memory_space<vmem>>, vector<1x16x32xf32>
    %581 = vector.shape_cast %580 : vector<1x16x32xf32> to vector<16x32xf32>
    %cst_300 = arith.constant dense<0.000000e+00> : vector<32x32xf32>
    %582 = tpu.matmul %579, %581, %cst_300 {dimension_numbers = #tpu.dot_dimension_numbers<[1], [0], [0], [1], [0, 0, 1, 1], [], []>} : vector<32x16xf32>, vector<16x32xf32>, vector<32x32xf32> -> vector<32x32xf32>
    %583 = arith.addf %578, %582 : vector<32x32xf32>
    %584 = vector.extract_strided_slice %562 {offsets = [4, 0], sizes = [32, 16], strides = [1, 1]} : vector<52x16xf32> to vector<32x16xf32>
    %c4_301 = arith.constant 4 : index
    %c0_302 = arith.constant 0 : index
    %c0_303 = arith.constant 0 : index
    %585 = vector.load %arg4[%c4_301, %c0_302, %c0_303] : memref<21x16x32xf32, #tpu.memory_space<vmem>>, vector<1x16x32xf32>
    %586 = vector.shape_cast %585 : vector<1x16x32xf32> to vector<16x32xf32>
    %cst_304 = arith.constant dense<0.000000e+00> : vector<32x32xf32>
    %587 = tpu.matmul %584, %586, %cst_304 {dimension_numbers = #tpu.dot_dimension_numbers<[1], [0], [0], [1], [0, 0, 1, 1], [], []>} : vector<32x16xf32>, vector<16x32xf32>, vector<32x32xf32> -> vector<32x32xf32>
    %588 = arith.addf %583, %587 : vector<32x32xf32>
    %589 = vector.extract_strided_slice %562 {offsets = [5, 0], sizes = [32, 16], strides = [1, 1]} : vector<52x16xf32> to vector<32x16xf32>
    %c5_305 = arith.constant 5 : index
    %c0_306 = arith.constant 0 : index
    %c0_307 = arith.constant 0 : index
    %590 = vector.load %arg4[%c5_305, %c0_306, %c0_307] : memref<21x16x32xf32, #tpu.memory_space<vmem>>, vector<1x16x32xf32>
    %591 = vector.shape_cast %590 : vector<1x16x32xf32> to vector<16x32xf32>
    %cst_308 = arith.constant dense<0.000000e+00> : vector<32x32xf32>
    %592 = tpu.matmul %589, %591, %cst_308 {dimension_numbers = #tpu.dot_dimension_numbers<[1], [0], [0], [1], [0, 0, 1, 1], [], []>} : vector<32x16xf32>, vector<16x32xf32>, vector<32x32xf32> -> vector<32x32xf32>
    %593 = arith.addf %588, %592 : vector<32x32xf32>
    %594 = vector.extract_strided_slice %562 {offsets = [6, 0], sizes = [32, 16], strides = [1, 1]} : vector<52x16xf32> to vector<32x16xf32>
    %c6_309 = arith.constant 6 : index
    %c0_310 = arith.constant 0 : index
    %c0_311 = arith.constant 0 : index
    %595 = vector.load %arg4[%c6_309, %c0_310, %c0_311] : memref<21x16x32xf32, #tpu.memory_space<vmem>>, vector<1x16x32xf32>
    %596 = vector.shape_cast %595 : vector<1x16x32xf32> to vector<16x32xf32>
    %cst_312 = arith.constant dense<0.000000e+00> : vector<32x32xf32>
    %597 = tpu.matmul %594, %596, %cst_312 {dimension_numbers = #tpu.dot_dimension_numbers<[1], [0], [0], [1], [0, 0, 1, 1], [], []>} : vector<32x16xf32>, vector<16x32xf32>, vector<32x32xf32> -> vector<32x32xf32>
    %598 = arith.addf %593, %597 : vector<32x32xf32>
    %599 = vector.extract_strided_slice %562 {offsets = [7, 0], sizes = [32, 16], strides = [1, 1]} : vector<52x16xf32> to vector<32x16xf32>
    %c7_313 = arith.constant 7 : index
    %c0_314 = arith.constant 0 : index
    %c0_315 = arith.constant 0 : index
    %600 = vector.load %arg4[%c7_313, %c0_314, %c0_315] : memref<21x16x32xf32, #tpu.memory_space<vmem>>, vector<1x16x32xf32>
    %601 = vector.shape_cast %600 : vector<1x16x32xf32> to vector<16x32xf32>
    %cst_316 = arith.constant dense<0.000000e+00> : vector<32x32xf32>
    %602 = tpu.matmul %599, %601, %cst_316 {dimension_numbers = #tpu.dot_dimension_numbers<[1], [0], [0], [1], [0, 0, 1, 1], [], []>} : vector<32x16xf32>, vector<16x32xf32>, vector<32x32xf32> -> vector<32x32xf32>
    %603 = arith.addf %598, %602 : vector<32x32xf32>
    %604 = vector.extract_strided_slice %562 {offsets = [8, 0], sizes = [32, 16], strides = [1, 1]} : vector<52x16xf32> to vector<32x16xf32>
    %c8_317 = arith.constant 8 : index
    %c0_318 = arith.constant 0 : index
    %c0_319 = arith.constant 0 : index
    %605 = vector.load %arg4[%c8_317, %c0_318, %c0_319] : memref<21x16x32xf32, #tpu.memory_space<vmem>>, vector<1x16x32xf32>
    %606 = vector.shape_cast %605 : vector<1x16x32xf32> to vector<16x32xf32>
    %cst_320 = arith.constant dense<0.000000e+00> : vector<32x32xf32>
    %607 = tpu.matmul %604, %606, %cst_320 {dimension_numbers = #tpu.dot_dimension_numbers<[1], [0], [0], [1], [0, 0, 1, 1], [], []>} : vector<32x16xf32>, vector<16x32xf32>, vector<32x32xf32> -> vector<32x32xf32>
    %608 = arith.addf %603, %607 : vector<32x32xf32>
    %609 = vector.extract_strided_slice %562 {offsets = [9, 0], sizes = [32, 16], strides = [1, 1]} : vector<52x16xf32> to vector<32x16xf32>
    %c9_321 = arith.constant 9 : index
    %c0_322 = arith.constant 0 : index
    %c0_323 = arith.constant 0 : index
    %610 = vector.load %arg4[%c9_321, %c0_322, %c0_323] : memref<21x16x32xf32, #tpu.memory_space<vmem>>, vector<1x16x32xf32>
    %611 = vector.shape_cast %610 : vector<1x16x32xf32> to vector<16x32xf32>
    %cst_324 = arith.constant dense<0.000000e+00> : vector<32x32xf32>
    %612 = tpu.matmul %609, %611, %cst_324 {dimension_numbers = #tpu.dot_dimension_numbers<[1], [0], [0], [1], [0, 0, 1, 1], [], []>} : vector<32x16xf32>, vector<16x32xf32>, vector<32x32xf32> -> vector<32x32xf32>
    %613 = arith.addf %608, %612 : vector<32x32xf32>
    %614 = vector.extract_strided_slice %562 {offsets = [10, 0], sizes = [32, 16], strides = [1, 1]} : vector<52x16xf32> to vector<32x16xf32>
    %c10_325 = arith.constant 10 : index
    %c0_326 = arith.constant 0 : index
    %c0_327 = arith.constant 0 : index
    %615 = vector.load %arg4[%c10_325, %c0_326, %c0_327] : memref<21x16x32xf32, #tpu.memory_space<vmem>>, vector<1x16x32xf32>
    %616 = vector.shape_cast %615 : vector<1x16x32xf32> to vector<16x32xf32>
    %cst_328 = arith.constant dense<0.000000e+00> : vector<32x32xf32>
    %617 = tpu.matmul %614, %616, %cst_328 {dimension_numbers = #tpu.dot_dimension_numbers<[1], [0], [0], [1], [0, 0, 1, 1], [], []>} : vector<32x16xf32>, vector<16x32xf32>, vector<32x32xf32> -> vector<32x32xf32>
    %618 = arith.addf %613, %617 : vector<32x32xf32>
    %619 = vector.extract_strided_slice %562 {offsets = [11, 0], sizes = [32, 16], strides = [1, 1]} : vector<52x16xf32> to vector<32x16xf32>
    %c11_329 = arith.constant 11 : index
    %c0_330 = arith.constant 0 : index
    %c0_331 = arith.constant 0 : index
    %620 = vector.load %arg4[%c11_329, %c0_330, %c0_331] : memref<21x16x32xf32, #tpu.memory_space<vmem>>, vector<1x16x32xf32>
    %621 = vector.shape_cast %620 : vector<1x16x32xf32> to vector<16x32xf32>
    %cst_332 = arith.constant dense<0.000000e+00> : vector<32x32xf32>
    %622 = tpu.matmul %619, %621, %cst_332 {dimension_numbers = #tpu.dot_dimension_numbers<[1], [0], [0], [1], [0, 0, 1, 1], [], []>} : vector<32x16xf32>, vector<16x32xf32>, vector<32x32xf32> -> vector<32x32xf32>
    %623 = arith.addf %618, %622 : vector<32x32xf32>
    %624 = vector.extract_strided_slice %562 {offsets = [12, 0], sizes = [32, 16], strides = [1, 1]} : vector<52x16xf32> to vector<32x16xf32>
    %c12_333 = arith.constant 12 : index
    %c0_334 = arith.constant 0 : index
    %c0_335 = arith.constant 0 : index
    %625 = vector.load %arg4[%c12_333, %c0_334, %c0_335] : memref<21x16x32xf32, #tpu.memory_space<vmem>>, vector<1x16x32xf32>
    %626 = vector.shape_cast %625 : vector<1x16x32xf32> to vector<16x32xf32>
    %cst_336 = arith.constant dense<0.000000e+00> : vector<32x32xf32>
    %627 = tpu.matmul %624, %626, %cst_336 {dimension_numbers = #tpu.dot_dimension_numbers<[1], [0], [0], [1], [0, 0, 1, 1], [], []>} : vector<32x16xf32>, vector<16x32xf32>, vector<32x32xf32> -> vector<32x32xf32>
    %628 = arith.addf %623, %627 : vector<32x32xf32>
    %629 = vector.extract_strided_slice %562 {offsets = [13, 0], sizes = [32, 16], strides = [1, 1]} : vector<52x16xf32> to vector<32x16xf32>
    %c13_337 = arith.constant 13 : index
    %c0_338 = arith.constant 0 : index
    %c0_339 = arith.constant 0 : index
    %630 = vector.load %arg4[%c13_337, %c0_338, %c0_339] : memref<21x16x32xf32, #tpu.memory_space<vmem>>, vector<1x16x32xf32>
    %631 = vector.shape_cast %630 : vector<1x16x32xf32> to vector<16x32xf32>
    %cst_340 = arith.constant dense<0.000000e+00> : vector<32x32xf32>
    %632 = tpu.matmul %629, %631, %cst_340 {dimension_numbers = #tpu.dot_dimension_numbers<[1], [0], [0], [1], [0, 0, 1, 1], [], []>} : vector<32x16xf32>, vector<16x32xf32>, vector<32x32xf32> -> vector<32x32xf32>
    %633 = arith.addf %628, %632 : vector<32x32xf32>
    %634 = vector.extract_strided_slice %562 {offsets = [14, 0], sizes = [32, 16], strides = [1, 1]} : vector<52x16xf32> to vector<32x16xf32>
    %c14_341 = arith.constant 14 : index
    %c0_342 = arith.constant 0 : index
    %c0_343 = arith.constant 0 : index
    %635 = vector.load %arg4[%c14_341, %c0_342, %c0_343] : memref<21x16x32xf32, #tpu.memory_space<vmem>>, vector<1x16x32xf32>
    %636 = vector.shape_cast %635 : vector<1x16x32xf32> to vector<16x32xf32>
    %cst_344 = arith.constant dense<0.000000e+00> : vector<32x32xf32>
    %637 = tpu.matmul %634, %636, %cst_344 {dimension_numbers = #tpu.dot_dimension_numbers<[1], [0], [0], [1], [0, 0, 1, 1], [], []>} : vector<32x16xf32>, vector<16x32xf32>, vector<32x32xf32> -> vector<32x32xf32>
    %638 = arith.addf %633, %637 : vector<32x32xf32>
    %639 = vector.extract_strided_slice %562 {offsets = [15, 0], sizes = [32, 16], strides = [1, 1]} : vector<52x16xf32> to vector<32x16xf32>
    %c15_345 = arith.constant 15 : index
    %c0_346 = arith.constant 0 : index
    %c0_347 = arith.constant 0 : index
    %640 = vector.load %arg4[%c15_345, %c0_346, %c0_347] : memref<21x16x32xf32, #tpu.memory_space<vmem>>, vector<1x16x32xf32>
    %641 = vector.shape_cast %640 : vector<1x16x32xf32> to vector<16x32xf32>
    %cst_348 = arith.constant dense<0.000000e+00> : vector<32x32xf32>
    %642 = tpu.matmul %639, %641, %cst_348 {dimension_numbers = #tpu.dot_dimension_numbers<[1], [0], [0], [1], [0, 0, 1, 1], [], []>} : vector<32x16xf32>, vector<16x32xf32>, vector<32x32xf32> -> vector<32x32xf32>
    %643 = arith.addf %638, %642 : vector<32x32xf32>
    %644 = vector.extract_strided_slice %562 {offsets = [16, 0], sizes = [32, 16], strides = [1, 1]} : vector<52x16xf32> to vector<32x16xf32>
    %c16_349 = arith.constant 16 : index
    %c0_350 = arith.constant 0 : index
    %c0_351 = arith.constant 0 : index
    %645 = vector.load %arg4[%c16_349, %c0_350, %c0_351] : memref<21x16x32xf32, #tpu.memory_space<vmem>>, vector<1x16x32xf32>
    %646 = vector.shape_cast %645 : vector<1x16x32xf32> to vector<16x32xf32>
    %cst_352 = arith.constant dense<0.000000e+00> : vector<32x32xf32>
    %647 = tpu.matmul %644, %646, %cst_352 {dimension_numbers = #tpu.dot_dimension_numbers<[1], [0], [0], [1], [0, 0, 1, 1], [], []>} : vector<32x16xf32>, vector<16x32xf32>, vector<32x32xf32> -> vector<32x32xf32>
    %648 = arith.addf %643, %647 : vector<32x32xf32>
    %649 = vector.extract_strided_slice %562 {offsets = [17, 0], sizes = [32, 16], strides = [1, 1]} : vector<52x16xf32> to vector<32x16xf32>
    %c17_353 = arith.constant 17 : index
    %c0_354 = arith.constant 0 : index
    %c0_355 = arith.constant 0 : index
    %650 = vector.load %arg4[%c17_353, %c0_354, %c0_355] : memref<21x16x32xf32, #tpu.memory_space<vmem>>, vector<1x16x32xf32>
    %651 = vector.shape_cast %650 : vector<1x16x32xf32> to vector<16x32xf32>
    %cst_356 = arith.constant dense<0.000000e+00> : vector<32x32xf32>
    %652 = tpu.matmul %649, %651, %cst_356 {dimension_numbers = #tpu.dot_dimension_numbers<[1], [0], [0], [1], [0, 0, 1, 1], [], []>} : vector<32x16xf32>, vector<16x32xf32>, vector<32x32xf32> -> vector<32x32xf32>
    %653 = arith.addf %648, %652 : vector<32x32xf32>
    %654 = vector.extract_strided_slice %562 {offsets = [18, 0], sizes = [32, 16], strides = [1, 1]} : vector<52x16xf32> to vector<32x16xf32>
    %c18_357 = arith.constant 18 : index
    %c0_358 = arith.constant 0 : index
    %c0_359 = arith.constant 0 : index
    %655 = vector.load %arg4[%c18_357, %c0_358, %c0_359] : memref<21x16x32xf32, #tpu.memory_space<vmem>>, vector<1x16x32xf32>
    %656 = vector.shape_cast %655 : vector<1x16x32xf32> to vector<16x32xf32>
    %cst_360 = arith.constant dense<0.000000e+00> : vector<32x32xf32>
    %657 = tpu.matmul %654, %656, %cst_360 {dimension_numbers = #tpu.dot_dimension_numbers<[1], [0], [0], [1], [0, 0, 1, 1], [], []>} : vector<32x16xf32>, vector<16x32xf32>, vector<32x32xf32> -> vector<32x32xf32>
    %658 = arith.addf %653, %657 : vector<32x32xf32>
    %659 = vector.extract_strided_slice %562 {offsets = [19, 0], sizes = [32, 16], strides = [1, 1]} : vector<52x16xf32> to vector<32x16xf32>
    %c19_361 = arith.constant 19 : index
    %c0_362 = arith.constant 0 : index
    %c0_363 = arith.constant 0 : index
    %660 = vector.load %arg4[%c19_361, %c0_362, %c0_363] : memref<21x16x32xf32, #tpu.memory_space<vmem>>, vector<1x16x32xf32>
    %661 = vector.shape_cast %660 : vector<1x16x32xf32> to vector<16x32xf32>
    %cst_364 = arith.constant dense<0.000000e+00> : vector<32x32xf32>
    %662 = tpu.matmul %659, %661, %cst_364 {dimension_numbers = #tpu.dot_dimension_numbers<[1], [0], [0], [1], [0, 0, 1, 1], [], []>} : vector<32x16xf32>, vector<16x32xf32>, vector<32x32xf32> -> vector<32x32xf32>
    %663 = arith.addf %658, %662 : vector<32x32xf32>
    %664 = vector.extract_strided_slice %562 {offsets = [20, 0], sizes = [32, 16], strides = [1, 1]} : vector<52x16xf32> to vector<32x16xf32>
    %c20_365 = arith.constant 20 : index
    %c0_366 = arith.constant 0 : index
    %c0_367 = arith.constant 0 : index
    %665 = vector.load %arg4[%c20_365, %c0_366, %c0_367] : memref<21x16x32xf32, #tpu.memory_space<vmem>>, vector<1x16x32xf32>
    %666 = vector.shape_cast %665 : vector<1x16x32xf32> to vector<16x32xf32>
    %cst_368 = arith.constant dense<0.000000e+00> : vector<32x32xf32>
    %667 = tpu.matmul %664, %666, %cst_368 {dimension_numbers = #tpu.dot_dimension_numbers<[1], [0], [0], [1], [0, 0, 1, 1], [], []>} : vector<32x16xf32>, vector<16x32xf32>, vector<32x32xf32> -> vector<32x32xf32>
    %668 = arith.addf %663, %667 : vector<32x32xf32>
    %cst_369 = arith.constant dense<0.000000e+00> : vector<32x32xf32>
    %669 = tpu.matmul %31, %668, %cst_369 {dimension_numbers = #tpu.dot_dimension_numbers<[1], [0], [0], [1], [0, 0, 1, 1], [], []>} : vector<32x32xf32>, vector<32x32xf32>, vector<32x32xf32> -> vector<32x32xf32>
    %670 = vector.extract_strided_slice %669 {offsets = [0, 0], sizes = [16, 32], strides = [1, 1]} : vector<32x32xf32> to vector<16x32xf32>
    %671 = vector.extract_strided_slice %669 {offsets = [16, 0], sizes = [16, 32], strides = [1, 1]} : vector<32x32xf32> to vector<16x32xf32>
    %672 = arith.maximumf %670, %671 : vector<16x32xf32>
    %673 = vector.broadcast %49 : vector<1x32xf32> to vector<16x32xf32>
    %674 = arith.addf %672, %673 : vector<16x32xf32>
    %cst_370 = arith.constant 0.000000e+00 : f32
    %675 = vector.broadcast %cst_370 : f32 to vector<16x32xf32>
    %676 = arith.maximumf %674, %675 : vector<16x32xf32>
    %c10_371 = arith.constant 10 : index
    %c0_372 = arith.constant 0 : index
    %677 = vector.load %arg16[%c10_371, %c0_372] : memref<36x32xf32, #tpu.memory_space<vmem>>, vector<16x32xf32>
    tpu.vector_store %arg16[%c10_371, %c0_372], %676 {strides = array<i32>} : memref<36x32xf32, #tpu.memory_space<vmem>>, vector<16x32xf32>,
    %c0_373 = arith.constant 0 : index
    %c0_374 = arith.constant 0 : index
    %678 = vector.load %arg16[%c0_373, %c0_374] : memref<36x32xf32, #tpu.memory_space<vmem>>, vector<36x32xf32>
    %cst_375 = arith.constant 0.000000e+00 : f32
    %679 = vector.broadcast %cst_375 : f32 to vector<16x64xf32>
    %680 = vector.extract_strided_slice %678 {offsets = [0, 0], sizes = [16, 32], strides = [1, 1]} : vector<36x32xf32> to vector<16x32xf32>
    %c0_376 = arith.constant 0 : index
    %c0_377 = arith.constant 0 : index
    %c0_378 = arith.constant 0 : index
    %681 = vector.load %arg6[%c0_376, %c0_377, %c0_378] : memref<21x32x64xf32, #tpu.memory_space<vmem>>, vector<1x32x64xf32>
    %682 = vector.shape_cast %681 : vector<1x32x64xf32> to vector<32x64xf32>
    %cst_379 = arith.constant dense<0.000000e+00> : vector<16x64xf32>
    %683 = tpu.matmul %680, %682, %cst_379 {dimension_numbers = #tpu.dot_dimension_numbers<[1], [0], [0], [1], [0, 0, 1, 1], [], []>} : vector<16x32xf32>, vector<32x64xf32>, vector<16x64xf32> -> vector<16x64xf32>
    %684 = arith.addf %679, %683 : vector<16x64xf32>
    %685 = vector.extract_strided_slice %678 {offsets = [1, 0], sizes = [16, 32], strides = [1, 1]} : vector<36x32xf32> to vector<16x32xf32>
    %c1_380 = arith.constant 1 : index
    %c0_381 = arith.constant 0 : index
    %c0_382 = arith.constant 0 : index
    %686 = vector.load %arg6[%c1_380, %c0_381, %c0_382] : memref<21x32x64xf32, #tpu.memory_space<vmem>>, vector<1x32x64xf32>
    %687 = vector.shape_cast %686 : vector<1x32x64xf32> to vector<32x64xf32>
    %cst_383 = arith.constant dense<0.000000e+00> : vector<16x64xf32>
    %688 = tpu.matmul %685, %687, %cst_383 {dimension_numbers = #tpu.dot_dimension_numbers<[1], [0], [0], [1], [0, 0, 1, 1], [], []>} : vector<16x32xf32>, vector<32x64xf32>, vector<16x64xf32> -> vector<16x64xf32>
    %689 = arith.addf %684, %688 : vector<16x64xf32>
    %690 = vector.extract_strided_slice %678 {offsets = [2, 0], sizes = [16, 32], strides = [1, 1]} : vector<36x32xf32> to vector<16x32xf32>
    %c2_384 = arith.constant 2 : index
    %c0_385 = arith.constant 0 : index
    %c0_386 = arith.constant 0 : index
    %691 = vector.load %arg6[%c2_384, %c0_385, %c0_386] : memref<21x32x64xf32, #tpu.memory_space<vmem>>, vector<1x32x64xf32>
    %692 = vector.shape_cast %691 : vector<1x32x64xf32> to vector<32x64xf32>
    %cst_387 = arith.constant dense<0.000000e+00> : vector<16x64xf32>
    %693 = tpu.matmul %690, %692, %cst_387 {dimension_numbers = #tpu.dot_dimension_numbers<[1], [0], [0], [1], [0, 0, 1, 1], [], []>} : vector<16x32xf32>, vector<32x64xf32>, vector<16x64xf32> -> vector<16x64xf32>
    %694 = arith.addf %689, %693 : vector<16x64xf32>
    %695 = vector.extract_strided_slice %678 {offsets = [3, 0], sizes = [16, 32], strides = [1, 1]} : vector<36x32xf32> to vector<16x32xf32>
    %c3_388 = arith.constant 3 : index
    %c0_389 = arith.constant 0 : index
    %c0_390 = arith.constant 0 : index
    %696 = vector.load %arg6[%c3_388, %c0_389, %c0_390] : memref<21x32x64xf32, #tpu.memory_space<vmem>>, vector<1x32x64xf32>
    %697 = vector.shape_cast %696 : vector<1x32x64xf32> to vector<32x64xf32>
    %cst_391 = arith.constant dense<0.000000e+00> : vector<16x64xf32>
    %698 = tpu.matmul %695, %697, %cst_391 {dimension_numbers = #tpu.dot_dimension_numbers<[1], [0], [0], [1], [0, 0, 1, 1], [], []>} : vector<16x32xf32>, vector<32x64xf32>, vector<16x64xf32> -> vector<16x64xf32>
    %699 = arith.addf %694, %698 : vector<16x64xf32>
    %700 = vector.extract_strided_slice %678 {offsets = [4, 0], sizes = [16, 32], strides = [1, 1]} : vector<36x32xf32> to vector<16x32xf32>
    %c4_392 = arith.constant 4 : index
    %c0_393 = arith.constant 0 : index
    %c0_394 = arith.constant 0 : index
    %701 = vector.load %arg6[%c4_392, %c0_393, %c0_394] : memref<21x32x64xf32, #tpu.memory_space<vmem>>, vector<1x32x64xf32>
    %702 = vector.shape_cast %701 : vector<1x32x64xf32> to vector<32x64xf32>
    %cst_395 = arith.constant dense<0.000000e+00> : vector<16x64xf32>
    %703 = tpu.matmul %700, %702, %cst_395 {dimension_numbers = #tpu.dot_dimension_numbers<[1], [0], [0], [1], [0, 0, 1, 1], [], []>} : vector<16x32xf32>, vector<32x64xf32>, vector<16x64xf32> -> vector<16x64xf32>
    %704 = arith.addf %699, %703 : vector<16x64xf32>
    %705 = vector.extract_strided_slice %678 {offsets = [5, 0], sizes = [16, 32], strides = [1, 1]} : vector<36x32xf32> to vector<16x32xf32>
    %c5_396 = arith.constant 5 : index
    %c0_397 = arith.constant 0 : index
    %c0_398 = arith.constant 0 : index
    %706 = vector.load %arg6[%c5_396, %c0_397, %c0_398] : memref<21x32x64xf32, #tpu.memory_space<vmem>>, vector<1x32x64xf32>
    %707 = vector.shape_cast %706 : vector<1x32x64xf32> to vector<32x64xf32>
    %cst_399 = arith.constant dense<0.000000e+00> : vector<16x64xf32>
    %708 = tpu.matmul %705, %707, %cst_399 {dimension_numbers = #tpu.dot_dimension_numbers<[1], [0], [0], [1], [0, 0, 1, 1], [], []>} : vector<16x32xf32>, vector<32x64xf32>, vector<16x64xf32> -> vector<16x64xf32>
    %709 = arith.addf %704, %708 : vector<16x64xf32>
    %710 = vector.extract_strided_slice %678 {offsets = [6, 0], sizes = [16, 32], strides = [1, 1]} : vector<36x32xf32> to vector<16x32xf32>
    %c6_400 = arith.constant 6 : index
    %c0_401 = arith.constant 0 : index
    %c0_402 = arith.constant 0 : index
    %711 = vector.load %arg6[%c6_400, %c0_401, %c0_402] : memref<21x32x64xf32, #tpu.memory_space<vmem>>, vector<1x32x64xf32>
    %712 = vector.shape_cast %711 : vector<1x32x64xf32> to vector<32x64xf32>
    %cst_403 = arith.constant dense<0.000000e+00> : vector<16x64xf32>
    %713 = tpu.matmul %710, %712, %cst_403 {dimension_numbers = #tpu.dot_dimension_numbers<[1], [0], [0], [1], [0, 0, 1, 1], [], []>} : vector<16x32xf32>, vector<32x64xf32>, vector<16x64xf32> -> vector<16x64xf32>
    %714 = arith.addf %709, %713 : vector<16x64xf32>
    %715 = vector.extract_strided_slice %678 {offsets = [7, 0], sizes = [16, 32], strides = [1, 1]} : vector<36x32xf32> to vector<16x32xf32>
    %c7_404 = arith.constant 7 : index
    %c0_405 = arith.constant 0 : index
    %c0_406 = arith.constant 0 : index
    %716 = vector.load %arg6[%c7_404, %c0_405, %c0_406] : memref<21x32x64xf32, #tpu.memory_space<vmem>>, vector<1x32x64xf32>
    %717 = vector.shape_cast %716 : vector<1x32x64xf32> to vector<32x64xf32>
    %cst_407 = arith.constant dense<0.000000e+00> : vector<16x64xf32>
    %718 = tpu.matmul %715, %717, %cst_407 {dimension_numbers = #tpu.dot_dimension_numbers<[1], [0], [0], [1], [0, 0, 1, 1], [], []>} : vector<16x32xf32>, vector<32x64xf32>, vector<16x64xf32> -> vector<16x64xf32>
    %719 = arith.addf %714, %718 : vector<16x64xf32>
    %720 = vector.extract_strided_slice %678 {offsets = [8, 0], sizes = [16, 32], strides = [1, 1]} : vector<36x32xf32> to vector<16x32xf32>
    %c8_408 = arith.constant 8 : index
    %c0_409 = arith.constant 0 : index
    %c0_410 = arith.constant 0 : index
    %721 = vector.load %arg6[%c8_408, %c0_409, %c0_410] : memref<21x32x64xf32, #tpu.memory_space<vmem>>, vector<1x32x64xf32>
    %722 = vector.shape_cast %721 : vector<1x32x64xf32> to vector<32x64xf32>
    %cst_411 = arith.constant dense<0.000000e+00> : vector<16x64xf32>
    %723 = tpu.matmul %720, %722, %cst_411 {dimension_numbers = #tpu.dot_dimension_numbers<[1], [0], [0], [1], [0, 0, 1, 1], [], []>} : vector<16x32xf32>, vector<32x64xf32>, vector<16x64xf32> -> vector<16x64xf32>
    %724 = arith.addf %719, %723 : vector<16x64xf32>
    %725 = vector.extract_strided_slice %678 {offsets = [9, 0], sizes = [16, 32], strides = [1, 1]} : vector<36x32xf32> to vector<16x32xf32>
    %c9_412 = arith.constant 9 : index
    %c0_413 = arith.constant 0 : index
    %c0_414 = arith.constant 0 : index
    %726 = vector.load %arg6[%c9_412, %c0_413, %c0_414] : memref<21x32x64xf32, #tpu.memory_space<vmem>>, vector<1x32x64xf32>
    %727 = vector.shape_cast %726 : vector<1x32x64xf32> to vector<32x64xf32>
    %cst_415 = arith.constant dense<0.000000e+00> : vector<16x64xf32>
    %728 = tpu.matmul %725, %727, %cst_415 {dimension_numbers = #tpu.dot_dimension_numbers<[1], [0], [0], [1], [0, 0, 1, 1], [], []>} : vector<16x32xf32>, vector<32x64xf32>, vector<16x64xf32> -> vector<16x64xf32>
    %729 = arith.addf %724, %728 : vector<16x64xf32>
    %730 = vector.extract_strided_slice %678 {offsets = [10, 0], sizes = [16, 32], strides = [1, 1]} : vector<36x32xf32> to vector<16x32xf32>
    %c10_416 = arith.constant 10 : index
    %c0_417 = arith.constant 0 : index
    %c0_418 = arith.constant 0 : index
    %731 = vector.load %arg6[%c10_416, %c0_417, %c0_418] : memref<21x32x64xf32, #tpu.memory_space<vmem>>, vector<1x32x64xf32>
    %732 = vector.shape_cast %731 : vector<1x32x64xf32> to vector<32x64xf32>
    %cst_419 = arith.constant dense<0.000000e+00> : vector<16x64xf32>
    %733 = tpu.matmul %730, %732, %cst_419 {dimension_numbers = #tpu.dot_dimension_numbers<[1], [0], [0], [1], [0, 0, 1, 1], [], []>} : vector<16x32xf32>, vector<32x64xf32>, vector<16x64xf32> -> vector<16x64xf32>
    %734 = arith.addf %729, %733 : vector<16x64xf32>
    %735 = vector.extract_strided_slice %678 {offsets = [11, 0], sizes = [16, 32], strides = [1, 1]} : vector<36x32xf32> to vector<16x32xf32>
    %c11_420 = arith.constant 11 : index
    %c0_421 = arith.constant 0 : index
    %c0_422 = arith.constant 0 : index
    %736 = vector.load %arg6[%c11_420, %c0_421, %c0_422] : memref<21x32x64xf32, #tpu.memory_space<vmem>>, vector<1x32x64xf32>
    %737 = vector.shape_cast %736 : vector<1x32x64xf32> to vector<32x64xf32>
    %cst_423 = arith.constant dense<0.000000e+00> : vector<16x64xf32>
    %738 = tpu.matmul %735, %737, %cst_423 {dimension_numbers = #tpu.dot_dimension_numbers<[1], [0], [0], [1], [0, 0, 1, 1], [], []>} : vector<16x32xf32>, vector<32x64xf32>, vector<16x64xf32> -> vector<16x64xf32>
    %739 = arith.addf %734, %738 : vector<16x64xf32>
    %740 = vector.extract_strided_slice %678 {offsets = [12, 0], sizes = [16, 32], strides = [1, 1]} : vector<36x32xf32> to vector<16x32xf32>
    %c12_424 = arith.constant 12 : index
    %c0_425 = arith.constant 0 : index
    %c0_426 = arith.constant 0 : index
    %741 = vector.load %arg6[%c12_424, %c0_425, %c0_426] : memref<21x32x64xf32, #tpu.memory_space<vmem>>, vector<1x32x64xf32>
    %742 = vector.shape_cast %741 : vector<1x32x64xf32> to vector<32x64xf32>
    %cst_427 = arith.constant dense<0.000000e+00> : vector<16x64xf32>
    %743 = tpu.matmul %740, %742, %cst_427 {dimension_numbers = #tpu.dot_dimension_numbers<[1], [0], [0], [1], [0, 0, 1, 1], [], []>} : vector<16x32xf32>, vector<32x64xf32>, vector<16x64xf32> -> vector<16x64xf32>
    %744 = arith.addf %739, %743 : vector<16x64xf32>
    %745 = vector.extract_strided_slice %678 {offsets = [13, 0], sizes = [16, 32], strides = [1, 1]} : vector<36x32xf32> to vector<16x32xf32>
    %c13_428 = arith.constant 13 : index
    %c0_429 = arith.constant 0 : index
    %c0_430 = arith.constant 0 : index
    %746 = vector.load %arg6[%c13_428, %c0_429, %c0_430] : memref<21x32x64xf32, #tpu.memory_space<vmem>>, vector<1x32x64xf32>
    %747 = vector.shape_cast %746 : vector<1x32x64xf32> to vector<32x64xf32>
    %cst_431 = arith.constant dense<0.000000e+00> : vector<16x64xf32>
    %748 = tpu.matmul %745, %747, %cst_431 {dimension_numbers = #tpu.dot_dimension_numbers<[1], [0], [0], [1], [0, 0, 1, 1], [], []>} : vector<16x32xf32>, vector<32x64xf32>, vector<16x64xf32> -> vector<16x64xf32>
    %749 = arith.addf %744, %748 : vector<16x64xf32>
    %750 = vector.extract_strided_slice %678 {offsets = [14, 0], sizes = [16, 32], strides = [1, 1]} : vector<36x32xf32> to vector<16x32xf32>
    %c14_432 = arith.constant 14 : index
    %c0_433 = arith.constant 0 : index
    %c0_434 = arith.constant 0 : index
    %751 = vector.load %arg6[%c14_432, %c0_433, %c0_434] : memref<21x32x64xf32, #tpu.memory_space<vmem>>, vector<1x32x64xf32>
    %752 = vector.shape_cast %751 : vector<1x32x64xf32> to vector<32x64xf32>
    %cst_435 = arith.constant dense<0.000000e+00> : vector<16x64xf32>
    %753 = tpu.matmul %750, %752, %cst_435 {dimension_numbers = #tpu.dot_dimension_numbers<[1], [0], [0], [1], [0, 0, 1, 1], [], []>} : vector<16x32xf32>, vector<32x64xf32>, vector<16x64xf32> -> vector<16x64xf32>
    %754 = arith.addf %749, %753 : vector<16x64xf32>
    %755 = vector.extract_strided_slice %678 {offsets = [15, 0], sizes = [16, 32], strides = [1, 1]} : vector<36x32xf32> to vector<16x32xf32>
    %c15_436 = arith.constant 15 : index
    %c0_437 = arith.constant 0 : index
    %c0_438 = arith.constant 0 : index
    %756 = vector.load %arg6[%c15_436, %c0_437, %c0_438] : memref<21x32x64xf32, #tpu.memory_space<vmem>>, vector<1x32x64xf32>
    %757 = vector.shape_cast %756 : vector<1x32x64xf32> to vector<32x64xf32>
    %cst_439 = arith.constant dense<0.000000e+00> : vector<16x64xf32>
    %758 = tpu.matmul %755, %757, %cst_439 {dimension_numbers = #tpu.dot_dimension_numbers<[1], [0], [0], [1], [0, 0, 1, 1], [], []>} : vector<16x32xf32>, vector<32x64xf32>, vector<16x64xf32> -> vector<16x64xf32>
    %759 = arith.addf %754, %758 : vector<16x64xf32>
    %760 = vector.extract_strided_slice %678 {offsets = [16, 0], sizes = [16, 32], strides = [1, 1]} : vector<36x32xf32> to vector<16x32xf32>
    %c16_440 = arith.constant 16 : index
    %c0_441 = arith.constant 0 : index
    %c0_442 = arith.constant 0 : index
    %761 = vector.load %arg6[%c16_440, %c0_441, %c0_442] : memref<21x32x64xf32, #tpu.memory_space<vmem>>, vector<1x32x64xf32>
    %762 = vector.shape_cast %761 : vector<1x32x64xf32> to vector<32x64xf32>
    %cst_443 = arith.constant dense<0.000000e+00> : vector<16x64xf32>
    %763 = tpu.matmul %760, %762, %cst_443 {dimension_numbers = #tpu.dot_dimension_numbers<[1], [0], [0], [1], [0, 0, 1, 1], [], []>} : vector<16x32xf32>, vector<32x64xf32>, vector<16x64xf32> -> vector<16x64xf32>
    %764 = arith.addf %759, %763 : vector<16x64xf32>
    %765 = vector.extract_strided_slice %678 {offsets = [17, 0], sizes = [16, 32], strides = [1, 1]} : vector<36x32xf32> to vector<16x32xf32>
    %c17_444 = arith.constant 17 : index
    %c0_445 = arith.constant 0 : index
    %c0_446 = arith.constant 0 : index
    %766 = vector.load %arg6[%c17_444, %c0_445, %c0_446] : memref<21x32x64xf32, #tpu.memory_space<vmem>>, vector<1x32x64xf32>
    %767 = vector.shape_cast %766 : vector<1x32x64xf32> to vector<32x64xf32>
    %cst_447 = arith.constant dense<0.000000e+00> : vector<16x64xf32>
    %768 = tpu.matmul %765, %767, %cst_447 {dimension_numbers = #tpu.dot_dimension_numbers<[1], [0], [0], [1], [0, 0, 1, 1], [], []>} : vector<16x32xf32>, vector<32x64xf32>, vector<16x64xf32> -> vector<16x64xf32>
    %769 = arith.addf %764, %768 : vector<16x64xf32>
    %770 = vector.extract_strided_slice %678 {offsets = [18, 0], sizes = [16, 32], strides = [1, 1]} : vector<36x32xf32> to vector<16x32xf32>
    %c18_448 = arith.constant 18 : index
    %c0_449 = arith.constant 0 : index
    %c0_450 = arith.constant 0 : index
    %771 = vector.load %arg6[%c18_448, %c0_449, %c0_450] : memref<21x32x64xf32, #tpu.memory_space<vmem>>, vector<1x32x64xf32>
    %772 = vector.shape_cast %771 : vector<1x32x64xf32> to vector<32x64xf32>
    %cst_451 = arith.constant dense<0.000000e+00> : vector<16x64xf32>
    %773 = tpu.matmul %770, %772, %cst_451 {dimension_numbers = #tpu.dot_dimension_numbers<[1], [0], [0], [1], [0, 0, 1, 1], [], []>} : vector<16x32xf32>, vector<32x64xf32>, vector<16x64xf32> -> vector<16x64xf32>
    %774 = arith.addf %769, %773 : vector<16x64xf32>
    %775 = vector.extract_strided_slice %678 {offsets = [19, 0], sizes = [16, 32], strides = [1, 1]} : vector<36x32xf32> to vector<16x32xf32>
    %c19_452 = arith.constant 19 : index
    %c0_453 = arith.constant 0 : index
    %c0_454 = arith.constant 0 : index
    %776 = vector.load %arg6[%c19_452, %c0_453, %c0_454] : memref<21x32x64xf32, #tpu.memory_space<vmem>>, vector<1x32x64xf32>
    %777 = vector.shape_cast %776 : vector<1x32x64xf32> to vector<32x64xf32>
    %cst_455 = arith.constant dense<0.000000e+00> : vector<16x64xf32>
    %778 = tpu.matmul %775, %777, %cst_455 {dimension_numbers = #tpu.dot_dimension_numbers<[1], [0], [0], [1], [0, 0, 1, 1], [], []>} : vector<16x32xf32>, vector<32x64xf32>, vector<16x64xf32> -> vector<16x64xf32>
    %779 = arith.addf %774, %778 : vector<16x64xf32>
    %780 = vector.extract_strided_slice %678 {offsets = [20, 0], sizes = [16, 32], strides = [1, 1]} : vector<36x32xf32> to vector<16x32xf32>
    %c20_456 = arith.constant 20 : index
    %c0_457 = arith.constant 0 : index
    %c0_458 = arith.constant 0 : index
    %781 = vector.load %arg6[%c20_456, %c0_457, %c0_458] : memref<21x32x64xf32, #tpu.memory_space<vmem>>, vector<1x32x64xf32>
    %782 = vector.shape_cast %781 : vector<1x32x64xf32> to vector<32x64xf32>
    %cst_459 = arith.constant dense<0.000000e+00> : vector<16x64xf32>
    %783 = tpu.matmul %780, %782, %cst_459 {dimension_numbers = #tpu.dot_dimension_numbers<[1], [0], [0], [1], [0, 0, 1, 1], [], []>} : vector<16x32xf32>, vector<32x64xf32>, vector<16x64xf32> -> vector<16x64xf32>
    %784 = arith.addf %779, %783 : vector<16x64xf32>
    %cst_460 = arith.constant dense<0.000000e+00> : vector<16x64xf32>
    %785 = tpu.matmul %47, %784, %cst_460 {dimension_numbers = #tpu.dot_dimension_numbers<[1], [0], [0], [1], [0, 0, 1, 1], [], []>} : vector<16x16xf32>, vector<16x64xf32>, vector<16x64xf32> -> vector<16x64xf32>
    %786 = vector.extract_strided_slice %785 {offsets = [0, 0], sizes = [8, 64], strides = [1, 1]} : vector<16x64xf32> to vector<8x64xf32>
    %787 = vector.extract_strided_slice %785 {offsets = [8, 0], sizes = [8, 64], strides = [1, 1]} : vector<16x64xf32> to vector<8x64xf32>
    %788 = arith.maximumf %786, %787 : vector<8x64xf32>
    %789 = vector.broadcast %50 : vector<1x64xf32> to vector<8x64xf32>
    %790 = arith.addf %788, %789 : vector<8x64xf32>
    %cst_461 = arith.constant 0.000000e+00 : f32
    %791 = vector.broadcast %cst_461 : f32 to vector<8x64xf32>
    %792 = arith.maximumf %790, %791 : vector<8x64xf32>
    %c0_462 = arith.constant 0 : index
    %c0_463 = arith.constant 0 : index
    %793 = vector.load %arg9[%c0_462, %c0_463] : memref<1x128xf32, #tpu.memory_space<vmem>>, vector<1x128xf32>
    %794 = vector.extract_strided_slice %423 {offsets = [0, 0], sizes = [1, 64], strides = [1, 1]} : vector<8x64xf32> to vector<1x64xf32>
    %c0_464 = arith.constant 0 : index
    %c0_465 = arith.constant 0 : index
    %795 = vector.load %arg8[%c0_464, %c0_465] : memref<1024x128xf32, #tpu.memory_space<vmem>>, vector<64x128xf32>
    %cst_466 = arith.constant dense<0.000000e+00> : vector<1x128xf32>
    %796 = tpu.matmul %794, %795, %cst_466 {dimension_numbers = #tpu.dot_dimension_numbers<[1], [0], [0], [1], [0, 0, 1, 1], [], []>} : vector<1x64xf32>, vector<64x128xf32>, vector<1x128xf32> -> vector<1x128xf32>
    %797 = arith.addf %793, %796 : vector<1x128xf32>
    %798 = vector.extract_strided_slice %423 {offsets = [1, 0], sizes = [1, 64], strides = [1, 1]} : vector<8x64xf32> to vector<1x64xf32>
    %c64 = arith.constant 64 : index
    %c0_467 = arith.constant 0 : index
    %799 = vector.load %arg8[%c64, %c0_467] : memref<1024x128xf32, #tpu.memory_space<vmem>>, vector<64x128xf32>
    %cst_468 = arith.constant dense<0.000000e+00> : vector<1x128xf32>
    %800 = tpu.matmul %798, %799, %cst_468 {dimension_numbers = #tpu.dot_dimension_numbers<[1], [0], [0], [1], [0, 0, 1, 1], [], []>} : vector<1x64xf32>, vector<64x128xf32>, vector<1x128xf32> -> vector<1x128xf32>
    %801 = arith.addf %797, %800 : vector<1x128xf32>
    %802 = vector.extract_strided_slice %423 {offsets = [2, 0], sizes = [1, 64], strides = [1, 1]} : vector<8x64xf32> to vector<1x64xf32>
    %c128 = arith.constant 128 : index
    %c0_469 = arith.constant 0 : index
    %803 = vector.load %arg8[%c128, %c0_469] : memref<1024x128xf32, #tpu.memory_space<vmem>>, vector<64x128xf32>
    %cst_470 = arith.constant dense<0.000000e+00> : vector<1x128xf32>
    %804 = tpu.matmul %802, %803, %cst_470 {dimension_numbers = #tpu.dot_dimension_numbers<[1], [0], [0], [1], [0, 0, 1, 1], [], []>} : vector<1x64xf32>, vector<64x128xf32>, vector<1x128xf32> -> vector<1x128xf32>
    %805 = arith.addf %801, %804 : vector<1x128xf32>
    %806 = vector.extract_strided_slice %423 {offsets = [3, 0], sizes = [1, 64], strides = [1, 1]} : vector<8x64xf32> to vector<1x64xf32>
    %c192 = arith.constant 192 : index
    %c0_471 = arith.constant 0 : index
    %807 = vector.load %arg8[%c192, %c0_471] : memref<1024x128xf32, #tpu.memory_space<vmem>>, vector<64x128xf32>
    %cst_472 = arith.constant dense<0.000000e+00> : vector<1x128xf32>
    %808 = tpu.matmul %806, %807, %cst_472 {dimension_numbers = #tpu.dot_dimension_numbers<[1], [0], [0], [1], [0, 0, 1, 1], [], []>} : vector<1x64xf32>, vector<64x128xf32>, vector<1x128xf32> -> vector<1x128xf32>
    %809 = arith.addf %805, %808 : vector<1x128xf32>
    %810 = vector.extract_strided_slice %423 {offsets = [4, 0], sizes = [1, 64], strides = [1, 1]} : vector<8x64xf32> to vector<1x64xf32>
    %c256 = arith.constant 256 : index
    %c0_473 = arith.constant 0 : index
    %811 = vector.load %arg8[%c256, %c0_473] : memref<1024x128xf32, #tpu.memory_space<vmem>>, vector<64x128xf32>
    %cst_474 = arith.constant dense<0.000000e+00> : vector<1x128xf32>
    %812 = tpu.matmul %810, %811, %cst_474 {dimension_numbers = #tpu.dot_dimension_numbers<[1], [0], [0], [1], [0, 0, 1, 1], [], []>} : vector<1x64xf32>, vector<64x128xf32>, vector<1x128xf32> -> vector<1x128xf32>
    %813 = arith.addf %809, %812 : vector<1x128xf32>
    %814 = vector.extract_strided_slice %423 {offsets = [5, 0], sizes = [1, 64], strides = [1, 1]} : vector<8x64xf32> to vector<1x64xf32>
    %c320 = arith.constant 320 : index
    %c0_475 = arith.constant 0 : index
    %815 = vector.load %arg8[%c320, %c0_475] : memref<1024x128xf32, #tpu.memory_space<vmem>>, vector<64x128xf32>
    %cst_476 = arith.constant dense<0.000000e+00> : vector<1x128xf32>
    %816 = tpu.matmul %814, %815, %cst_476 {dimension_numbers = #tpu.dot_dimension_numbers<[1], [0], [0], [1], [0, 0, 1, 1], [], []>} : vector<1x64xf32>, vector<64x128xf32>, vector<1x128xf32> -> vector<1x128xf32>
    %817 = arith.addf %813, %816 : vector<1x128xf32>
    %818 = vector.extract_strided_slice %423 {offsets = [6, 0], sizes = [1, 64], strides = [1, 1]} : vector<8x64xf32> to vector<1x64xf32>
    %c384 = arith.constant 384 : index
    %c0_477 = arith.constant 0 : index
    %819 = vector.load %arg8[%c384, %c0_477] : memref<1024x128xf32, #tpu.memory_space<vmem>>, vector<64x128xf32>
    %cst_478 = arith.constant dense<0.000000e+00> : vector<1x128xf32>
    %820 = tpu.matmul %818, %819, %cst_478 {dimension_numbers = #tpu.dot_dimension_numbers<[1], [0], [0], [1], [0, 0, 1, 1], [], []>} : vector<1x64xf32>, vector<64x128xf32>, vector<1x128xf32> -> vector<1x128xf32>
    %821 = arith.addf %817, %820 : vector<1x128xf32>
    %822 = vector.extract_strided_slice %423 {offsets = [7, 0], sizes = [1, 64], strides = [1, 1]} : vector<8x64xf32> to vector<1x64xf32>
    %c448 = arith.constant 448 : index
    %c0_479 = arith.constant 0 : index
    %823 = vector.load %arg8[%c448, %c0_479] : memref<1024x128xf32, #tpu.memory_space<vmem>>, vector<64x128xf32>
    %cst_480 = arith.constant dense<0.000000e+00> : vector<1x128xf32>
    %824 = tpu.matmul %822, %823, %cst_480 {dimension_numbers = #tpu.dot_dimension_numbers<[1], [0], [0], [1], [0, 0, 1, 1], [], []>} : vector<1x64xf32>, vector<64x128xf32>, vector<1x128xf32> -> vector<1x128xf32>
    %825 = arith.addf %821, %824 : vector<1x128xf32>
    %826 = vector.extract_strided_slice %792 {offsets = [0, 0], sizes = [1, 64], strides = [1, 1]} : vector<8x64xf32> to vector<1x64xf32>
    %c512 = arith.constant 512 : index
    %c0_481 = arith.constant 0 : index
    %827 = vector.load %arg8[%c512, %c0_481] : memref<1024x128xf32, #tpu.memory_space<vmem>>, vector<64x128xf32>
    %cst_482 = arith.constant dense<0.000000e+00> : vector<1x128xf32>
    %828 = tpu.matmul %826, %827, %cst_482 {dimension_numbers = #tpu.dot_dimension_numbers<[1], [0], [0], [1], [0, 0, 1, 1], [], []>} : vector<1x64xf32>, vector<64x128xf32>, vector<1x128xf32> -> vector<1x128xf32>
    %829 = arith.addf %825, %828 : vector<1x128xf32>
    %830 = vector.extract_strided_slice %792 {offsets = [1, 0], sizes = [1, 64], strides = [1, 1]} : vector<8x64xf32> to vector<1x64xf32>
    %c576 = arith.constant 576 : index
    %c0_483 = arith.constant 0 : index
    %831 = vector.load %arg8[%c576, %c0_483] : memref<1024x128xf32, #tpu.memory_space<vmem>>, vector<64x128xf32>
    %cst_484 = arith.constant dense<0.000000e+00> : vector<1x128xf32>
    %832 = tpu.matmul %830, %831, %cst_484 {dimension_numbers = #tpu.dot_dimension_numbers<[1], [0], [0], [1], [0, 0, 1, 1], [], []>} : vector<1x64xf32>, vector<64x128xf32>, vector<1x128xf32> -> vector<1x128xf32>
    %833 = arith.addf %829, %832 : vector<1x128xf32>
    %834 = vector.extract_strided_slice %792 {offsets = [2, 0], sizes = [1, 64], strides = [1, 1]} : vector<8x64xf32> to vector<1x64xf32>
    %c640 = arith.constant 640 : index
    %c0_485 = arith.constant 0 : index
    %835 = vector.load %arg8[%c640, %c0_485] : memref<1024x128xf32, #tpu.memory_space<vmem>>, vector<64x128xf32>
    %cst_486 = arith.constant dense<0.000000e+00> : vector<1x128xf32>
    %836 = tpu.matmul %834, %835, %cst_486 {dimension_numbers = #tpu.dot_dimension_numbers<[1], [0], [0], [1], [0, 0, 1, 1], [], []>} : vector<1x64xf32>, vector<64x128xf32>, vector<1x128xf32> -> vector<1x128xf32>
    %837 = arith.addf %833, %836 : vector<1x128xf32>
    %838 = vector.extract_strided_slice %792 {offsets = [3, 0], sizes = [1, 64], strides = [1, 1]} : vector<8x64xf32> to vector<1x64xf32>
    %c704 = arith.constant 704 : index
    %c0_487 = arith.constant 0 : index
    %839 = vector.load %arg8[%c704, %c0_487] : memref<1024x128xf32, #tpu.memory_space<vmem>>, vector<64x128xf32>
    %cst_488 = arith.constant dense<0.000000e+00> : vector<1x128xf32>
    %840 = tpu.matmul %838, %839, %cst_488 {dimension_numbers = #tpu.dot_dimension_numbers<[1], [0], [0], [1], [0, 0, 1, 1], [], []>} : vector<1x64xf32>, vector<64x128xf32>, vector<1x128xf32> -> vector<1x128xf32>
    %841 = arith.addf %837, %840 : vector<1x128xf32>
    %842 = vector.extract_strided_slice %792 {offsets = [4, 0], sizes = [1, 64], strides = [1, 1]} : vector<8x64xf32> to vector<1x64xf32>
    %c768 = arith.constant 768 : index
    %c0_489 = arith.constant 0 : index
    %843 = vector.load %arg8[%c768, %c0_489] : memref<1024x128xf32, #tpu.memory_space<vmem>>, vector<64x128xf32>
    %cst_490 = arith.constant dense<0.000000e+00> : vector<1x128xf32>
    %844 = tpu.matmul %842, %843, %cst_490 {dimension_numbers = #tpu.dot_dimension_numbers<[1], [0], [0], [1], [0, 0, 1, 1], [], []>} : vector<1x64xf32>, vector<64x128xf32>, vector<1x128xf32> -> vector<1x128xf32>
    %845 = arith.addf %841, %844 : vector<1x128xf32>
    %846 = vector.extract_strided_slice %792 {offsets = [5, 0], sizes = [1, 64], strides = [1, 1]} : vector<8x64xf32> to vector<1x64xf32>
    %c832 = arith.constant 832 : index
    %c0_491 = arith.constant 0 : index
    %847 = vector.load %arg8[%c832, %c0_491] : memref<1024x128xf32, #tpu.memory_space<vmem>>, vector<64x128xf32>
    %cst_492 = arith.constant dense<0.000000e+00> : vector<1x128xf32>
    %848 = tpu.matmul %846, %847, %cst_492 {dimension_numbers = #tpu.dot_dimension_numbers<[1], [0], [0], [1], [0, 0, 1, 1], [], []>} : vector<1x64xf32>, vector<64x128xf32>, vector<1x128xf32> -> vector<1x128xf32>
    %849 = arith.addf %845, %848 : vector<1x128xf32>
    %850 = vector.extract_strided_slice %792 {offsets = [6, 0], sizes = [1, 64], strides = [1, 1]} : vector<8x64xf32> to vector<1x64xf32>
    %c896 = arith.constant 896 : index
    %c0_493 = arith.constant 0 : index
    %851 = vector.load %arg8[%c896, %c0_493] : memref<1024x128xf32, #tpu.memory_space<vmem>>, vector<64x128xf32>
    %cst_494 = arith.constant dense<0.000000e+00> : vector<1x128xf32>
    %852 = tpu.matmul %850, %851, %cst_494 {dimension_numbers = #tpu.dot_dimension_numbers<[1], [0], [0], [1], [0, 0, 1, 1], [], []>} : vector<1x64xf32>, vector<64x128xf32>, vector<1x128xf32> -> vector<1x128xf32>
    %853 = arith.addf %849, %852 : vector<1x128xf32>
    %854 = vector.extract_strided_slice %792 {offsets = [7, 0], sizes = [1, 64], strides = [1, 1]} : vector<8x64xf32> to vector<1x64xf32>
    %c960 = arith.constant 960 : index
    %c0_495 = arith.constant 0 : index
    %855 = vector.load %arg8[%c960, %c0_495] : memref<1024x128xf32, #tpu.memory_space<vmem>>, vector<64x128xf32>
    %cst_496 = arith.constant dense<0.000000e+00> : vector<1x128xf32>
    %856 = tpu.matmul %854, %855, %cst_496 {dimension_numbers = #tpu.dot_dimension_numbers<[1], [0], [0], [1], [0, 0, 1, 1], [], []>} : vector<1x64xf32>, vector<64x128xf32>, vector<1x128xf32> -> vector<1x128xf32>
    %857 = arith.addf %853, %856 : vector<1x128xf32>
    %cst_497 = arith.constant 0.000000e+00 : f32
    %858 = vector.broadcast %cst_497 : f32 to vector<1x128xf32>
    %859 = arith.maximumf %857, %858 : vector<1x128xf32>
    %c0_498 = arith.constant 0 : index
    %c0_499 = arith.constant 0 : index
    %860 = vector.load %arg10[%c0_498, %c0_499] : memref<128x64xf32, #tpu.memory_space<vmem>>, vector<128x64xf32>
    %cst_500 = arith.constant dense<0.000000e+00> : vector<1x64xf32>
    %861 = tpu.matmul %859, %860, %cst_500 {dimension_numbers = #tpu.dot_dimension_numbers<[1], [0], [0], [1], [0, 0, 1, 1], [], []>} : vector<1x128xf32>, vector<128x64xf32>, vector<1x64xf32> -> vector<1x64xf32>
    %c0_501 = arith.constant 0 : index
    %c0_502 = arith.constant 0 : index
    %862 = vector.load %arg11[%c0_501, %c0_502] : memref<1x64xf32, #tpu.memory_space<vmem>>, vector<1x64xf32>
    %863 = arith.addf %861, %862 : vector<1x64xf32>
    %cst_503 = arith.constant 0.000000e+00 : f32
    %864 = vector.broadcast %cst_503 : f32 to vector<1x64xf32>
    %865 = arith.maximumf %863, %864 : vector<1x64xf32>
    %c0_504 = arith.constant 0 : index
    %c0_505 = arith.constant 0 : index
    %866 = vector.load %arg12[%c0_504, %c0_505] : memref<64x27xf32, #tpu.memory_space<vmem>>, vector<64x27xf32>
    %cst_506 = arith.constant dense<0.000000e+00> : vector<1x27xf32>
    %867 = tpu.matmul %865, %866, %cst_506 {dimension_numbers = #tpu.dot_dimension_numbers<[1], [0], [0], [1], [0, 0, 1, 1], [], []>} : vector<1x64xf32>, vector<64x27xf32>, vector<1x27xf32> -> vector<1x27xf32>
    %c0_507 = arith.constant 0 : index
    %c0_508 = arith.constant 0 : index
    %868 = vector.load %arg13[%c0_507, %c0_508] : memref<1x27xf32, #tpu.memory_space<vmem>>, vector<1x27xf32>
    %869 = arith.addf %867, %868 : vector<1x27xf32>
    %c0_509 = arith.constant 0 : index
    %c0_510 = arith.constant 0 : index
    %c0_511 = arith.constant 0 : index
    %870 = vector.load %arg14[%c0_509, %c0_510, %c0_511] : memref<1x1x27xf32, #tpu.memory_space<vmem>>, vector<1x1x27xf32>
    %871 = vector.shape_cast %870 : vector<1x1x27xf32> to vector<1x27xf32>
    %872 = vector.shape_cast %869 : vector<1x27xf32> to vector<1x1x27xf32>
    tpu.vector_store %arg14[%c0_509, %c0_510, %c0_511], %872 {strides = array<i32>} : memref<1x1x27xf32, #tpu.memory_space<vmem>>, vector<1x1x27xf32>,
    return
  }
  func.func @transform_0(%arg0: i32) -> (i32, i32, i32, i32) {
    %c0_i32 = arith.constant 0 : i32
    %c0_i32_0 = arith.constant 0 : i32
    %c0_i32_1 = arith.constant 0 : i32
    %c0_i32_2 = arith.constant 0 : i32
    return %arg0, %c0_i32, %c0_i32_0, %c0_i32_1 : i32, i32, i32, i32
  }
  func.func @transform_1(%arg0: i32) -> (i32, i32) {
    %c0_i32 = arith.constant 0 : i32
    %c0_i32_0 = arith.constant 0 : i32
    %c0_i32_1 = arith.constant 0 : i32
    return %c0_i32, %c0_i32_0 : i32, i32
  }
  func.func @transform_2(%arg0: i32) -> (i32, i32) {
    %c0_i32 = arith.constant 0 : i32
    %c0_i32_0 = arith.constant 0 : i32
    %c0_i32_1 = arith.constant 0 : i32
    return %c0_i32, %c0_i32_0 : i32, i32
  }
  func.func @transform_3(%arg0: i32) -> (i32, i32, i32) {
    %c0_i32 = arith.constant 0 : i32
    %c0_i32_0 = arith.constant 0 : i32
    %c0_i32_1 = arith.constant 0 : i32
    %c0_i32_2 = arith.constant 0 : i32
    return %c0_i32, %c0_i32_0, %c0_i32_1 : i32, i32, i32
  }
  func.func @transform_4(%arg0: i32) -> (i32, i32) {
    %c0_i32 = arith.constant 0 : i32
    %c0_i32_0 = arith.constant 0 : i32
    %c0_i32_1 = arith.constant 0 : i32
    return %c0_i32, %c0_i32_0 : i32, i32
  }
  func.func @transform_5(%arg0: i32) -> (i32, i32, i32) {
    %c0_i32 = arith.constant 0 : i32
    %c0_i32_0 = arith.constant 0 : i32
    %c0_i32_1 = arith.constant 0 : i32
    %c0_i32_2 = arith.constant 0 : i32
    return %c0_i32, %c0_i32_0, %c0_i32_1 : i32, i32, i32
  }
  func.func @transform_6(%arg0: i32) -> (i32, i32) {
    %c0_i32 = arith.constant 0 : i32
    %c0_i32_0 = arith.constant 0 : i32
    %c0_i32_1 = arith.constant 0 : i32
    return %c0_i32, %c0_i32_0 : i32, i32
  }
  func.func @transform_7(%arg0: i32) -> (i32, i32) {
    %c0_i32 = arith.constant 0 : i32
    %c0_i32_0 = arith.constant 0 : i32
    %c0_i32_1 = arith.constant 0 : i32
    return %c0_i32, %c0_i32_0 : i32, i32
  }
  func.func @transform_8(%arg0: i32) -> (i32, i32) {
    %c0_i32 = arith.constant 0 : i32
    %c0_i32_0 = arith.constant 0 : i32
    %c0_i32_1 = arith.constant 0 : i32
    return %c0_i32, %c0_i32_0 : i32, i32
  }
  func.func @transform_9(%arg0: i32) -> (i32, i32) {
    %c0_i32 = arith.constant 0 : i32
    %c0_i32_0 = arith.constant 0 : i32
    %c0_i32_1 = arith.constant 0 : i32
    return %c0_i32, %c0_i32_0 : i32, i32
  }
  func.func @transform_10(%arg0: i32) -> (i32, i32) {
    %c0_i32 = arith.constant 0 : i32
    %c0_i32_0 = arith.constant 0 : i32
    %c0_i32_1 = arith.constant 0 : i32
    return %c0_i32, %c0_i32_0 : i32, i32
  }
  func.func @transform_11(%arg0: i32) -> (i32, i32) {
    %c0_i32 = arith.constant 0 : i32
    %c0_i32_0 = arith.constant 0 : i32
    %c0_i32_1 = arith.constant 0 : i32
    return %c0_i32, %c0_i32_0 : i32, i32
  }
  func.func @transform_12(%arg0: i32) -> (i32, i32) {
    %c0_i32 = arith.constant 0 : i32
    %c0_i32_0 = arith.constant 0 : i32
    %c0_i32_1 = arith.constant 0 : i32
    return %c0_i32, %c0_i32_0 : i32, i32
  }
  func.func @transform_13(%arg0: i32) -> (i32, i32, i32) {
    %c0_i32 = arith.constant 0 : i32
    %c0_i32_0 = arith.constant 0 : i32
    %c0_i32_1 = arith.constant 0 : i32
    return %arg0, %c0_i32, %c0_i32_0 : i32, i32, i32
  }
}

</mosaic_0001>

<bundles_post_ra>
// kernel: cnn1_forward.1
= control target key start
LH: loop header
LB: loop body
LE: loop exit
PB: predicated region body
PF: predicated region fallthrough
CT: control target
= control target key end

     0   :  { %s13852_s0 = inlined_call_operand.vmem [shape: f32[2,2,84,1], index: 0, kind: input, shape index: {}]   ;;  %s13853_s1 = inlined_call_operand.vmem [shape: f32[21,16], index: 1, kind: input, shape index: {}]   ;;  %s13854_s2 = inlined_call_operand.vmem [shape: f32[1,16], index: 2, kind: input, shape index: {}]   ;;  %s13855_s3 = inlined_call_operand.vmem [shape: f32[21,16,32], index: 3, kind: input, shape index: {}]   ;;  %s13856_s4 = inlined_call_operand.vmem [shape: f32[1,32], index: 4, kind: input, shape index: {}]   ;;  %s13857_s5 = inlined_call_operand.vmem [shape: f32[21,32,64], index: 5, kind: input, shape index: {}]   ;;  %s13858_s6 = inlined_call_operand.vmem [shape: f32[1,64], index: 6, kind: input, shape index: {}]   ;;  %s13859_s7 = inlined_call_operand.vmem [shape: f32[1024,128], index: 7, kind: input, shape index: {}]   ;;  %s13860_s8 = inlined_call_operand.vmem [shape: f32[1,128], index: 8, kind: input, shape index: {}]   ;;  %s13861_s9 = inlined_call_operand.vmem [shape: f32[128,64], index: 9, kind: input, shape index: {}]   ;;  %s13862_s10 = inlined_call_operand.vmem [shape: f32[1,64], index: 10, kind: input, shape index: {}]   ;;  %s13863_s11 = inlined_call_operand.vmem [shape: f32[64,27], index: 11, kind: input, shape index: {}]   ;;  %s13864_s12 = inlined_call_operand.vmem [shape: f32[1,27], index: 12, kind: input, shape index: {}]   ;;  %s13865_s13 = inlined_call_operand.hbm [shape: f32[2,1,27], index: 13, kind: output, shape index: {}]  }
   0x1   :  { %14080 = sst [smem:[#allocation47_spill]] %s13852_s0 }
   0x2   :  { %14081 = sst [smem:[#allocation48_spill]] %s13853_s1 }
   0x3   :  { %14082 = sst [smem:[#allocation49_spill]] %s13854_s2 }
   0x4   :  { %14083 = sst [smem:[#allocation50_spill]] %s13855_s3 }
   0x5   :  { %18 = vsyncpa [#allocation5], 0 }
   0x6   :  { %20 = vsyncpa [#allocation5 + $0x1], 0  ;;  %s7852_s25 = smov 0   ;;  %s7854_s26 = smov 0  }
   0x7   :  { %s7856_s27 = smov 0   ;;  %s7858_s28 = smov 0  }
   0x8 LB: > { %s7873_s29 = sadd.s32 4294967295, %s7778_s28   ;;  %s7014_s30 = sadd.s32 4294967294, %s7778_s28   ;;  %s7778_s28 = sphi %s7858_s28, %s14595_s28   ;;  %s7774_s27 = sphi %s7856_s27, %s14594_s27   ;;  %s7770_s26 = sphi %s7854_s26, %s14593_s26   ;;  %s7766_s25 = sphi %s7852_s25, %s14592_s25  }
   0x9   : > { %s7877_s14 = sadd.s32 1, %s7778_s28   ;;  %s311_s15 = sadd.s32 1, %s7774_s27 }
   0xa   : > { %s308_s16 = ssub.s32 %s7778_s28, %s7877_s14  ;;  %p321_p0 = scmp.ne.s32.totalorder %s7774_s27, %s7770_s26 }
   0xb   : > { %p309_p1 = scmp.eq.s32.totalorder %s308_s16, 0  ;;  %p322_p2 = scmp.eq.s32.totalorder %s7873_s29, 1 }
   0xc   : > { %p327_p3 = scmp.ne.s32.totalorder %s7770_s26, %s7766_s25  ;;  %p328_p4 = scmp.eq.s32.totalorder %s7014_s30, 1 }
   0xd   : > { %s7888_s17 = scalar_select %p309_p1, %s7774_s27, %s311_s15  }
   0xe   : > { %p7890_p5 = por %p322_p2, %p321_p0  ;;  %p7894_p6 = por %p328_p4, %p327_p3 }
   0xf   : > { %p7017_p7 = scmp.ge.s32.totalorder %s7778_s28, 1  ;;  %p390_p8 = scmp.lt.s32.totalorder %s7778_s28, 3 }
  0x11   : > { %p391_p9 = pnand %p7017_p7, %p390_p8 }
  0x13   : > { %394 = sbr.rel (%p391_p9) target bundleno = 2603 (0xa2b), region = 72 }
  0x18   : > { %p433_p10 = scmp.lt.s32.totalorder %s7873_s29, 1  ;;  %v7780_v0 = vmov 0   ;;  %s14086_s0 = sld [smem:[#allocation47_spill]]  ;;  %vm674_vm0 = vcmask 1046528   ;;  %vm728_vm1 = vcmask 1045504   ;;  %vm782_vm2 = vcmask 1044480  }
  0x19   : > { %7640 = vset.pattern.permute.xlu2 %v7780_v0  ;;  %7639 = vset.pattern.permute.xlu1 %v7780_v0  ;;  %s14088_s1 = sld [smem:[#allocation48_spill]]  ;;  %vm836_vm3 = vcmask 1043456   ;;  %vm890_vm4 = vcmask 1042432   ;;  %vm944_vm5 = vcmask 1041408   ;;  %vm998_vm6 = vcmask 1040384   ;;  %s6955_s30 = scalar_lea.hbm %s13865_s13, %s7873_s29 }
  0x1a   : > { %7638 = vset.pattern.permute.xlu0 %v7780_v0  ;;  %s434_s20 = scalar_select %p433_p10, %s7873_s29, 1  ;;  %vm1661_vm8 = vcmask 523264  }
  0x1b   : > { %s14275_s3 = sld [smem:[#allocation50_spill]] }
  0x1c   : > { %s7596_s21 = smul.u32 176, %s434_s20  ;;  %s14276_s2 = sld [smem:[#allocation49_spill]] }
  0x1e   : > { %s7905_s24 = scalar_lea.vmem %s14086_s0, %s7596_s21  ;;  %s6959_s21 = sshll.u32 %s6955_s30, 4  ;;  %s6960_s21 = int_to_ptr.hbm [resolvable:$true] %s6959_s21 }
  0x1f   : > { %v587_v1 = vld [vmem:[%s7905_s24 + $0x38] sm:$0xff]  ;;  %v586_v2 = vld [vmem:[%s7905_s24 + $0x30] sm:$0xff]  ;;  %v584_v3 = vld [vmem:[%s7905_s24 + $0x20] sm:$0xff]  ;;  %s7730_s23 = sshra.s32 %s6960_s21, 4  ;;  %s7731_s23 = int_to_ptr.hbm [resolvable:$true] %s7730_s23 }
  0x20   : > { %629 = vperm.xlu0 %7638, %v587_v1   ;;  %624 = vperm.xlu1 %7639, %v586_v2   ;;  %v588_v4 = vld [vmem:[%s7905_s24 + $0x40] sm:$0xff]  ;;  %v585_v5 = vld [vmem:[%s7905_s24 + $0x28] sm:$0xff]  ;;  %v583_v6 = vld [vmem:[%s7905_s24 + $0x18] sm:$0xff]  ;;  %p7737_p0 = scmp.lt.s32.totalorder %s7731_s23, %s13865_s13 }
  0x21   : > { %614 = vperm.xlu2 %7640, %v584_v3   ;;  %v582_v7 = vld [vmem:[%s7905_s24 + $0x10] sm:$0xff]  ;;  %v581_v8 = vld [vmem:[%s7905_s24 + $0x8] sm:$0xff]  ;;  %v580_v9 = vld [vmem:[%s7905_s24] sm:$0xff] }
  0x22   : > { %v589_v10 = vld [vmem:[%s7905_s24 + $0x48] sm:$0xff]  ;;  %v590_v11 = vld [vmem:[%s7905_s24 + $0x50] sm:$0xf]  ;;  %v7312_v13 = vld [vmem:[%s7905_s24 + $0x98] sm:$0xff] }
  0x23   : > { %v7311_v12 = vld [vmem:[%s7905_s24 + $0x90] sm:$0xff]  ;;  %v7310_v14 = vld [vmem:[%s7905_s24 + $0x88] sm:$0xff]  ;;  %v7309_v15 = vld [vmem:[%s7905_s24 + $0x80] sm:$0xff] }
  0x24   : > { %v7308_v16 = vld [vmem:[%s7905_s24 + $0x78] sm:$0xff]  ;;  %v7307_v17 = vld [vmem:[%s7905_s24 + $0x70] sm:$0xff]  ;;  %v7306_v18 = vld [vmem:[%s7905_s24 + $0x68] sm:$0xff] }
  0x25   : > { %v7305_v19 = vld [vmem:[%s7905_s24 + $0x60] sm:$0xff]  ;;  %v7304_v20 = vld [vmem:[%s7905_s24 + $0x58] sm:$0xff]  ;;  %v7314_v22 = vld [vmem:[%s7905_s24 + $0xa8] sm:$0xf] }
  0x26   : > { %v7313_v21 = vld [vmem:[%s7905_s24 + $0xa0] sm:$0xff]  ;;  %s7736_s24 = scalar_lea.hbm %s13865_s13, 2 }
  0x27   : > { %v7934_v24 = vld [vmem:[%s14088_s1 + $0x1] ss:$0 sm:$0xff]  ;;  %v7939_v25 = vld [vmem:[%s14088_s1 + $0x2] ss:$0 sm:$0xff]  ;;  %v7954_v30 = vld [vmem:[%s14088_s1] ss:$0 sm:$0xff] }
  0x28   : > { %652 = vperm.xlu0 %7638, %v588_v4   ;;  %619 = vperm.xlu1 %7639, %v585_v5   ;;  %v7959_v31 = vld [vmem:[%s14088_s1 + $0x3] ss:$0 sm:$0xff]  ;;  %v7971_v36 = vld [vmem:[%s14088_s1 + $0x4] ss:$0 sm:$0xff]  ;;  %v7981_v41 = vld [vmem:[%s14088_s1 + $0x5] ss:$0 sm:$0xff] }
  0x29   : > { %609 = vperm.xlu2 %7640, %v583_v6   ;;  %v7993_v45 = vld [vmem:[%s14088_s1 + $0x6] ss:$0 sm:$0xff]  ;;  %v8009_v52 = vld [vmem:[%s14088_s1 + $0x7] ss:$0 sm:$0xff]  ;;  %v8041_v4 = vld [vmem:[%s14088_s1 + $0x9] ss:$0 sm:$0xff] }
  0x2a   : > { %14090 = vst [vmem:[#allocation9_spill] sm:$0xff] %v8041_v4 }
  0x30   : > { %604 = vperm.xlu0 %7638, %v582_v7   ;;  %599 = vperm.xlu1 %7639, %v581_v8  }
  0x31   : > { %594 = vperm.xlu2 %7640, %v580_v9  }
  0x38   : > { %1053 = vperm.xlu0 %7638, %v589_v10   ;;  %1447 = vperm.xlu1 %7639, %v590_v11   ;;  %v8056_v11 = vld [vmem:[%s14088_s1 + $0xa] ss:$0 sm:$0xff] }
  0x39   : > { %3569 = vperm.xlu2 %7640, %v7311_v12   ;;  %14091 = vst [vmem:[#allocation10_spill] sm:$0xff] %v8056_v11 }
  0x40   : > { %3592 = vperm.xlu0 %7638, %v7312_v13   ;;  %3564 = vperm.xlu1 %7639, %v7310_v14  }
  0x41   : > { %3559 = vperm.xlu2 %7640, %v7309_v15  }
  0x48   : > { %3554 = vperm.xlu0 %7638, %v7308_v16   ;;  %3549 = vperm.xlu1 %7639, %v7307_v17   ;;  %v8069_v17 = vld [vmem:[%s14088_s1 + $0xb] ss:$0 sm:$0xff] }
  0x49   : > { %3544 = vperm.xlu2 %7640, %v7306_v18   ;;  %14092 = vst [vmem:[#allocation11_spill] sm:$0xff] %v8069_v17 }
  0x50   : > { %3539 = vperm.xlu0 %7638, %v7305_v19   ;;  %3534 = vperm.xlu1 %7639, %v7304_v20   ;;  %v8074_v19 = vld [vmem:[%s14088_s1 + $0x8] ss:$0 sm:$0xff] }
  0x51   : > { %3986 = vperm.xlu2 %7640, %v7313_v21   ;;  %14093 = vst [vmem:[#allocation12_spill] sm:$0xff] %v8074_v19 }
  0x58   : > { %4380 = vperm.xlu0 %7638, %v7314_v22  }
  0x92   : > { %v7929_v23 = vpop.permute.xlu0 %629  ;;  %v8011_v53 = vpop.permute.xlu1 %624 }
  0x93   : > { %14087 = vst [vmem:[#allocation7_spill] sm:$0xff] %v7929_v23  ;;  %v7943_v26 = vmul.f32 %v7934_v24, %v7929_v23  ;;  %v7964_v34 = vmul.f32 %v7939_v25, %v7929_v23  ;;  %v640_v35 = vmul.f32 %v7954_v30, %v7929_v23  ;;  %v7986_v43 = vmul.f32 %v7959_v31, %v7929_v23 }
  0x94   : > { %v8002_v49 = vmul.f32 %v7971_v36, %v7929_v23  ;;  %v8016_v56 = vmul.f32 %v7981_v41, %v7929_v23  ;;  %v8022_v58 = vmul.f32 %v7993_v45, %v7929_v23  ;;  %v8036_v3 = vmul.f32 %v8009_v52, %v7929_v23 }
  0x95   : > { %v688_v32 = vrot.slane %v7943_v26, 1  ;;  %v742_v42 = vrot.slane %v7964_v34, 2  ;;  %v796_v54 = vrot.slane %v7986_v43, 3  ;;  %v8282_v34 = vmul.f32 %v8009_v52, %v8011_v53 }
  0x96   : > { %v13876_v60 = vrot.slane %v8002_v49, 4  ;;  %v13875_v1 = vrot.slane %v8016_v56, 5  ;;  %v13874_v8 = vrot.slane %v8022_v58, 6  ;;  %v13873_v15 = vrot.slane %v8036_v3, 7 }
  0x9a   : > { %v7945_v27 = vpop.permute.xlu0 %652  ;;  %v8076_v21 = vpop.permute.xlu1 %619 }
  0x9b   : > { %v664_v28 = vmul.f32 %v7934_v24, %v7945_v27  ;;  %v718_v29 = vmul.f32 %v7939_v25, %v7945_v27  ;;  %v772_v39 = vmul.f32 %v7959_v31, %v7945_v27  ;;  %v826_v44 = vmul.f32 %v7971_v36, %v7945_v27  ;;  %14094 = vst [vmem:[#allocation13_spill] sm:$0xff] %v8076_v21 }
  0x9c   : > { %v880_v50 = vmul.f32 %v7981_v41, %v7945_v27  ;;  %v934_v57 = vmul.f32 %v7993_v45, %v7945_v27  ;;  %v988_v62 = vmul.f32 %v8009_v52, %v7945_v27  ;;  %v8051_v10 = vmul.f32 %v8041_v4, %v7945_v27 }
  0x9d   : > { %v690_v33 = vrot.slane %v664_v28, 1  ;;  %v744_v38 = vrot.slane %v718_v29, 2  ;;  %v798_v48 = vrot.slane %v772_v39, 3  ;;  %v852_v55 = vrot.slane %v826_v44, 4 }
  0x9e   : > { %v906_v61 = vrot.slane %v880_v50, 5  ;;  %v960_v2 = vrot.slane %v934_v57, 6  ;;  %v1014_v9 = vrot.slane %v988_v62, 7  ;;  %v13872_v28 = vrot.slane %v8051_v10, 1 }
  0x9f   : > { %v691_v37 = vsel %vm674_vm0, %v688_v32, %v690_v33  ;;  %v745_v47 = vsel %vm728_vm1, %v742_v42, %v744_v38  ;;  %v799_v59 = vsel %vm782_vm2, %v796_v54, %v798_v48  ;;  %v853_v0 = vsel %vm836_vm3, %v13876_v60, %v852_v55  ;;  %v8093_v38 = vld [vmem:[%s14088_s1 + $0xc] ss:$0 sm:$0xff] }
  0xa0   : > { %v707_v40 = vadd.f32 %v691_v37, %v640_v35  ;;  %v907_v7 = vsel %vm890_vm4, %v13875_v1, %v906_v61  ;;  %v961_v14 = vsel %vm944_vm5, %v13874_v8, %v960_v2  ;;  %v1015_v22 = vsel %vm998_vm6, %v13873_v15, %v1014_v9 }
  0xa1   : > { %v8084_v29 = vmul.f32 %v8056_v11, %v7945_v27  ;;  %v1041_v37 = vmul.f32 %v8074_v19, %v7945_v27  ;;  %v8100_v44 = vmul.f32 %v8069_v17, %v7945_v27  ;;  %v8107_v57 = vmul.f32 %v8093_v38, %v7945_v27 }
  0xa2   : > { %v7995_v46 = vpop.permute.xlu0 %604  ;;  %v761_v51 = vadd.f32 %v745_v47, %v707_v40 }
  0xa3   : > { %14089 = vst [vmem:[#allocation8_spill] sm:$0xff] %v7995_v46  ;;  %v13871_v50 = vrot.slane %v8084_v29, 2  ;;  %v13870_v62 = vrot.slane %v8100_v44, 3  ;;  %v13869_v9 = vrot.slane %v8107_v57, 4 }
  0xa4   : > { %v815_v63 = vadd.f32 %v799_v59, %v761_v51  ;;  %v8112_v59 = vld [vmem:[%s14088_s1 + $0xd] ss:$0 sm:$0xff] }
  0xa6   : > { %v869_v6 = vadd.f32 %v853_v0, %v815_v63 }
  0xa8   : > { %v923_v12 = vadd.f32 %v907_v7, %v869_v6 }
  0xaa   : > { %v8043_v5 = vpop.permute.xlu0 %1053  ;;  %v977_v18 = vadd.f32 %v961_v14, %v923_v12  ;;  %v8126_v12 = vmul.f32 %v8112_v59, %v7945_v27  ;;  %v8133_v14 = vpop.permute.xlu1 %599 }
  0xab   : > { %v1065_v13 = vmul.f32 %v8041_v4, %v8043_v5  ;;  %v1118_v16 = vmul.f32 %v8056_v11, %v8043_v5  ;;  %v1171_v33 = vmul.f32 %v8069_v17, %v8043_v5  ;;  %v1224_v48 = vmul.f32 %v8093_v38, %v8043_v5  ;;  %14095 = vst [vmem:[#allocation14_spill] sm:$0xff] %v8133_v14 }
  0xac   : > { %v1031_v35 = vadd.f32 %v1015_v22, %v977_v18  ;;  %v1277_v2 = vmul.f32 %v8112_v59, %v8043_v5  ;;  %v14110_v14 = vrot.slane %v8084_v29, 2 }
  0xad   : > { %v1090_v20 = vrot.slane %v1065_v13, 1  ;;  %v1143_v40 = vrot.slane %v1118_v16, 2  ;;  %v1196_v51 = vrot.slane %v1171_v33, 3  ;;  %v1249_v0 = vrot.slane %v1224_v48, 4  ;;  %v8131_v13 = vld [vmem:[%s14088_s1 + $0xe] ss:$0 sm:$0xff] }
  0xae   : > { %v1049_v47 = vadd.f32 %v1041_v37, %v1031_v35  ;;  %v1302_v18 = vrot.slane %v1277_v2, 5  ;;  %v13868_v33 = vrot.slane %v8126_v12, 5  ;;  %v8143_v35 = vmul.f32 %v8131_v13, %v7945_v27  ;;  %v8148_v37 = vld [vmem:[%s14088_s1 + $0xf] ss:$0 sm:$0xff] }
  0xaf   : > { %v1091_v39 = vsel %vm674_vm0, %v13872_v28, %v1090_v20  ;;  %v1144_v61 = vsel %vm728_vm1, %v13871_v50, %v1143_v40  ;;  %v1197_v6 = vsel %vm782_vm2, %v13870_v62, %v1196_v51  ;;  %v1250_v16 = vsel %vm836_vm3, %v13869_v9, %v1249_v0 }
  0xb0   : > { %v1107_v55 = vadd.f32 %v1091_v39, %v1049_v47  ;;  %v1330_v20 = vmul.f32 %v8131_v13, %v8043_v5  ;;  %v1303_v39 = vsel %vm890_vm4, %v13868_v33, %v1302_v18  ;;  %v1383_v47 = vmul.f32 %v8148_v37, %v8043_v5 }
  0xb1   : > { %v13867_v51 = vrot.slane %v8143_v35, 6 }
  0xb2   : > { %v1160_v63 = vadd.f32 %v1144_v61, %v1107_v55  ;;  %v1355_v40 = vrot.slane %v1330_v20, 6  ;;  %v8158_v55 = vmul.f32 %v8148_v37, %v7945_v27  ;;  %v1448_v0 = vpop.permute.xlu1 %1447 }
  0xb4   : > { %v1213_v7 = vadd.f32 %v1197_v6, %v1160_v63  ;;  %v1356_v61 = vsel %vm944_vm5, %v13867_v51, %v1355_v40  ;;  %v1408_v63 = vrot.slane %v1383_v47, 7  ;;  %v8166_v6 = vld [vmem:[%s14088_s1 + $0x11] ss:$0 sm:$0xff]  ;;  %v8185_v40 = vld [vmem:[%s14088_s1 + $0x10] ss:$0 sm:$0xff] }
  0xb5   : > { %14096 = vst [vmem:[#allocation15_spill] sm:$0xff] %v8166_v6  ;;  %v1459_v18 = vmul.f32 %v8166_v6, %v1448_v0  ;;  %v8190_v47 = vld [vmem:[%s14088_s1 + $0x13] ss:$0 sm:$0xff] }
  0xb6   : > { %v1266_v22 = vadd.f32 %v1250_v16, %v1213_v7  ;;  %v13866_v7 = vrot.slane %v8158_v55, 7  ;;  %v8172_v16 = vld [vmem:[%s14088_s1 + $0x12] ss:$0 sm:$0xff]  ;;  %14098 = vst [vmem:[#allocation17_spill] sm:$0xff] %v8185_v40  ;;  %v8208_v33 = vmul.f32 %v8190_v47, %v8043_v5 }
  0xb7   : > { %14097 = vst [vmem:[#allocation16_spill] sm:$0xff] %v8172_v16 }
  0xb8   : > { %v1319_v48 = vadd.f32 %v1303_v39, %v1266_v22  ;;  %v1409_v20 = vsel %vm998_vm6, %v13866_v7, %v1408_v63  ;;  %v8180_v22 = vmul.f32 %v8166_v6, %v8043_v5  ;;  %v1435_v63 = vmul.f32 %v8185_v40, %v8043_v5 }
  0xb9   : > { %v1565_v7 = vmul.f32 %v8190_v47, %v1448_v0  ;;  %v13879_v1 = vrot.slane %v8208_v33, 3 }
  0xba   : > { %v1372_v2 = vadd.f32 %v1356_v61, %v1319_v48  ;;  %v1512_v48 = vmul.f32 %v8172_v16, %v1448_v0  ;;  %v8195_v61 = vmul.f32 %v8172_v16, %v8043_v5  ;;  %v13877_v51 = vrot.slane %v8180_v22, 1 }
  0xbb   : > { %v1590_v8 = vrot.slane %v1565_v7, 3 }
  0xbc   : > { %v1425_v39 = vadd.f32 %v1409_v20, %v1372_v2  ;;  %v8202_v2 = vld [vmem:[%s14088_s1 + $0x14] ss:$0 sm:$0xff]  ;;  %v1484_v20 = vrot.slane %v1459_v18, 1  ;;  %v1537_v62 = vrot.slane %v1512_v48, 2  ;;  %v13880_v28 = vrot.slane %v8195_v61, 2 }
  0xbd   : > { %v1618_v50 = vmul.f32 %v8202_v2, %v1448_v0  ;;  %v8214_v15 = vmul.f32 %v8202_v2, %v8043_v5  ;;  %v1591_v5 = vsel %vm782_vm2, %v13879_v1, %v1590_v8  ;;  %v8241_v8 = vmul.f32 %v7939_v25, %v8011_v53 }
  0xbe   : > { %v1443_v9 = vadd.f32 %v1435_v63, %v1425_v39  ;;  %v1485_v18 = vsel %vm674_vm0, %v13877_v51, %v1484_v20  ;;  %v1538_v39 = vsel %vm728_vm1, %v13880_v28, %v1537_v62  ;;  %v8234_v62 = vmul.f32 %v7934_v24, %v8011_v53 }
  0xbf   : > { %v13878_v0 = vrot.slane %v8214_v15, 4  ;;  %v1643_v48 = vrot.slane %v1618_v50, 4  ;;  %v14100_v28 = vrot.slane %v8002_v49, 4  ;;  %v14102_v49 = vrot.slane %v8022_v58, 6 }
  0xc0   : > { %v1501_v60 = vadd.f32 %v1485_v18, %v1443_v9  ;;  %v8230_v9 = vpop.permute.xlu2 %614  ;;  %v13883_v50 = vrot.slane %v8234_v62, 1  ;;  %v8245_v18 = vmul.f32 %v7959_v31, %v8011_v53 }
  0xc1   : > { %v1644_v20 = vsel %vm836_vm3, %v13878_v0, %v1643_v48  ;;  %v13881_v48 = vrot.slane %v8241_v8, 2 }
  0xc2   : > { %v1554_v63 = vadd.f32 %v1538_v39, %v1501_v60  ;;  %v639_v60 = vmul.f32 %v7954_v30, %v8011_v53  ;;  %v689_v39 = vsel %vm674_vm0, %v13883_v50, %v688_v32  ;;  %v8272_v32 = vmul.f32 %v7993_v45, %v8011_v53 }
  0xc3   : > { %v743_v26 = vsel %vm728_vm1, %v13881_v48, %v742_v42 }
  0xc4   : > { %v1607_v7 = vadd.f32 %v1591_v5, %v1554_v63  ;;  %v8259_v63 = vmul.f32 %v7981_v41, %v8011_v53 }
  0xc6   : > { %v1660_v51 = vadd.f32 %v1644_v20, %v1607_v7  ;;  %v706_v7 = vadd.f32 %v689_v39, %v639_v60  ;;  %v13882_v20 = vrot.slane %v8245_v18, 3  ;;  %v13885_v39 = vrot.slane %v8259_v63, 5 }
  0xc8   : > { %1694 = vmatpush.msra.mxu0 %v1660_v51  ;;  %v8249_v51 = vmul.f32 %v7971_v36, %v8011_v53  ;;  %v8261_v5 = vpop.permute.xlu2 %609  ;;  %v760_v1 = vadd.f32 %v743_v26, %v706_v7  ;;  %v797_v60 = vsel %vm782_vm2, %v13882_v20, %v796_v54  ;;  %v13884_v7 = vrot.slane %v8272_v32, 6 }
  0xc9   : > { %14099 = vst [vmem:[#allocation18_spill] sm:$0xff] %v8261_v5  ;;  %v14101_v26 = vrot.slane %v8016_v56, 5  ;;  %v13887_v20 = vrot.slane %v8282_v34, 7  ;;  %v8307_v56 = vmul.f32 %v8056_v11, %v7929_v23  ;;  %v8414_v5 = vmul.f32 %v8166_v6, %v7945_v27 }
  0xca   : > { %v13886_v0 = vrot.slane %v8249_v51, 4  ;;  %v814_v42 = vadd.f32 %v797_v60, %v760_v1  ;;  %v8298_v1 = vmul.f32 %v8041_v4, %v7929_v23  ;;  %v8433_v6 = vmul.f32 %v7993_v45, %v8076_v21 }
  0xcb   : > { %v905_v54 = vsel %vm890_vm4, %v13885_v39, %v14101_v26  ;;  %v14105_v26 = vrot.slane %v8036_v3, 7  ;;  %v8339_v3 = vmul.f32 %v8112_v59, %v7929_v23  ;;  %v14111_v46 = vrot.slane %v8307_v56, 2 }
  0xcc   : > { %v851_v48 = vsel %vm836_vm3, %v13886_v0, %v14100_v28  ;;  %v959_v28 = vsel %vm944_vm5, %v13884_v7, %v14102_v49  ;;  %v14109_v0 = vrot.slane %v8051_v10, 1  ;;  %v14114_v39 = vrot.slane %v8107_v57, 4 }
  0xcd   : > { %v868_v43 = vadd.f32 %v851_v48, %v814_v42  ;;  %v8311_v48 = vmul.f32 %v8069_v17, %v7929_v23  ;;  %v8391_v57 = vmul.f32 %v7971_v36, %v8076_v21 }
  0xcf   : > { %v922_v50 = vadd.f32 %v905_v54, %v868_v43  ;;  %v8317_v43 = vmul.f32 %v8093_v38, %v7929_v23  ;;  %v1013_v54 = vsel %vm998_vm6, %v13887_v20, %v14105_v26  ;;  %v8343_v26 = vmul.f32 %v8131_v13, %v7929_v23 }
  0xd0   : > { %v8313_v60 = vpop.permute.xlu2 %594 }
  0xd1   : > { %14103 = vst [vmem:[#allocation19_spill] sm:$0xff] %v8313_v60  ;;  %v976_v42 = vadd.f32 %v959_v28, %v922_v50  ;;  %v8321_v58 = vmul.f32 %v7954_v30, %v8313_v60  ;;  %v8330_v49 = vmul.f32 %v7934_v24, %v8313_v60  ;;  %v1040_v50 = vmul.f32 %v8074_v19, %v7929_v23 }
  0xd2   : > { %v13894_v28 = vrot.slane %v8298_v1, 1 }
  0xd3   : > { %14104 = vst [vmem:[#allocation20_spill] sm:$0xff] %v8321_v58  ;;  %v1030_v7 = vadd.f32 %v1013_v54, %v976_v42  ;;  %v8347_v42 = vmul.f32 %v7939_v25, %v8313_v60  ;;  %v8351_v54 = vmul.f32 %v7959_v31, %v8313_v60  ;;  %v14113_v60 = vrot.slane %v8311_v48, 3 }
  0xd4   : > { %14106 = vst [vmem:[#allocation21_spill] sm:$0xff] %v8330_v49  ;;  %v1089_v58 = vsel %vm674_vm0, %v13894_v28, %v14109_v0  ;;  %v1142_v49 = vsel %vm728_vm1, %v14111_v46, %v14110_v14  ;;  %v14115_v0 = vrot.slane %v8317_v43, 4  ;;  %v8380_v46 = vmul.f32 %v7939_v25, %v8076_v21 }
  0xd5   : > { %14107 = vst [vmem:[#allocation22_spill] sm:$0xff] %v8347_v42  ;;  %v1048_v20 = vadd.f32 %v1040_v50, %v1030_v7  ;;  %v14112_v42 = vrot.slane %v8100_v44, 3  ;;  %v8371_v50 = vmul.f32 %v7934_v24, %v8076_v21  ;;  %v8384_v44 = vmul.f32 %v7959_v31, %v8076_v21 }
  0xd6   : > { %14108 = vst [vmem:[#allocation23_spill] sm:$0xff] %v8351_v54  ;;  %v1248_v29 = vsel %vm836_vm3, %v14115_v0, %v14114_v39  ;;  %v8395_v39 = vmul.f32 %v8148_v37, %v7929_v23  ;;  %v1434_v28 = vmul.f32 %v8185_v40, %v7945_v27  ;;  %v8418_v0 = vmul.f32 %v8172_v16, %v7945_v27 }
  0xd7   : > { %v1195_v7 = vsel %vm782_vm2, %v14113_v60, %v14112_v42  ;;  %v1106_v10 = vadd.f32 %v1089_v58, %v1048_v20  ;;  %v13899_v20 = vrot.slane %v8371_v50, 1  ;;  %v638_v42 = vmul.f32 %v7954_v30, %v8076_v21 }
  0xd8   : > { %v14116_v60 = vrot.slane %v8234_v62, 1  ;;  %v14117_v40 = vrot.slane %v8126_v12, 5  ;;  %v14120_v23 = vrot.slane %v8380_v46, 2  ;;  %v14122_v12 = vrot.slane %v8343_v26, 6 }
  0xd9   : > { %v1159_v58 = vadd.f32 %v1142_v49, %v1106_v10  ;;  %v8410_v10 = vmul.f32 %v7981_v41, %v8076_v21  ;;  %v14119_v49 = vrot.slane %v8241_v8, 2 }
  0xda   : > { %v687_v14 = vsel %vm674_vm0, %v13899_v20, %v14116_v60  ;;  %v14118_v60 = vrot.slane %v8339_v3, 5 }
  0xdb   : > { %v1212_v54 = vadd.f32 %v1195_v7, %v1159_v58  ;;  %v705_v62 = vadd.f32 %v687_v14, %v638_v42  ;;  %v741_v7 = vsel %vm728_vm1, %v14120_v23, %v14119_v49  ;;  %v14121_v14 = vrot.slane %v8143_v35, 6 }
  0xdc   : > { %v1301_v20 = vsel %vm890_vm4, %v14118_v60, %v14117_v40  ;;  %v8443_v60 = vmul.f32 %v8190_v47, %v7945_v27  ;;  %v14123_v23 = vrot.slane %v8245_v18, 3  ;;  %v14124_v49 = vrot.slane %v8384_v44, 3 }
  0xdd   : > { %v1265_v16 = vadd.f32 %v1248_v29, %v1212_v54  ;;  %v1354_v42 = vsel %vm944_vm5, %v14122_v12, %v14121_v14  ;;  %v759_v8 = vadd.f32 %v741_v7, %v705_v62  ;;  %v13906_v54 = vrot.slane %v8410_v10, 5 }
  0xde   : > { %v795_v58 = vsel %vm782_vm2, %v14124_v49, %v14123_v23  ;;  %v8453_v35 = vmul.f32 %v8009_v52, %v8076_v21  ;;  %v14125_v12 = vrot.slane %v8249_v51, 4  ;;  %v14126_v18 = vrot.slane %v8391_v57, 4 }
  0xdf   : > { %v1318_v29 = vadd.f32 %v1301_v20, %v1265_v16  ;;  %v813_v7 = vadd.f32 %v795_v58, %v759_v8  ;;  %v8465_v49 = vmul.f32 %v8041_v4, %v8011_v53  ;;  %v8469_v16 = vmul.f32 %v8056_v11, %v8011_v53 }
  0xe0   : > { %v849_v40 = vsel %vm836_vm3, %v14126_v18, %v14125_v12  ;;  %v14127_v62 = vrot.slane %v8158_v55, 7  ;;  %v14128_v58 = vrot.slane %v8395_v39, 7  ;;  %v8478_v8 = vmul.f32 %v8202_v2, %v7945_v27 }
  0xe1   : > { %v1371_v20 = vadd.f32 %v1354_v42, %v1318_v29  ;;  %v867_v12 = vadd.f32 %v849_v40, %v813_v7  ;;  %v13907_v18 = vrot.slane %v8443_v60, 3  ;;  %v14129_v23 = vrot.slane %v8259_v63, 5 }
  0xe2   : > { %v1407_v51 = vsel %vm998_vm6, %v14128_v58, %v14127_v62  ;;  %v8489_v55 = vmul.f32 %v8069_v17, %v8011_v53  ;;  %v14130_v62 = vrot.slane %v8180_v22, 1  ;;  %v14131_v27 = vrot.slane %v8414_v5, 1 }
  0xe3   : > { %v903_v14 = vsel %vm890_vm4, %v13906_v54, %v14129_v23  ;;  %v1424_v29 = vadd.f32 %v1407_v51, %v1371_v20  ;;  %v8498_v63 = vmul.f32 %v8093_v38, %v8011_v53  ;;  %v14132_v23 = vrot.slane %v8195_v61, 2 }
  0xe4   : > { %v1483_v40 = vsel %vm674_vm0, %v14131_v27, %v14130_v62  ;;  %v921_v7 = vadd.f32 %v903_v14, %v867_v12  ;;  %v14133_v58 = vrot.slane %v8418_v0, 2  ;;  %v14134_v42 = vrot.slane %v8272_v32, 6 }
  0xe5   : > { %v14135_v20 = vrot.slane %v8433_v6, 6  ;;  %v13908_v51 = vrot.slane %v8465_v49, 1  ;;  %v1442_v12 = vadd.f32 %v1434_v28, %v1424_v29  ;;  %v13911_v62 = vrot.slane %v8478_v8, 4 }
  0xe6   : > { %v1536_v54 = vsel %vm728_vm1, %v14133_v58, %v14132_v23  ;;  %v8515_v61 = vmul.f32 %v8112_v59, %v8011_v53  ;;  %v14136_v23 = vrot.slane %v8208_v33, 3  ;;  %v14138_v58 = vrot.slane %v8453_v35, 7 }
  0xe7   : > { %v957_v22 = vsel %vm944_vm5, %v14135_v20, %v14134_v42  ;;  %v14137_v42 = vrot.slane %v8282_v34, 7  ;;  %v13909_v28 = vrot.slane %v8489_v55, 3  ;;  %v8530_v29 = vmul.f32 %v8131_v13, %v8011_v53 }
  0xe8   : > { %v975_v27 = vadd.f32 %v957_v22, %v921_v7  ;;  %v1589_v32 = vsel %vm782_vm2, %v13907_v18, %v14136_v23  ;;  %v1500_v7 = vadd.f32 %v1483_v40, %v1442_v12  ;;  %v1039_v33 = vmul.f32 %v8074_v19, %v8011_v53 }
  0xe9   : > { %v1011_v20 = vsel %vm998_vm6, %v14138_v58, %v14137_v42  ;;  %v13910_v14 = vrot.slane %v8498_v63, 4  ;;  %v14139_v23 = vrot.slane %v8214_v15, 4  ;;  %v14140_v42 = vrot.slane %v8298_v1, 1 }
  0xea   : > { %v1029_v22 = vadd.f32 %v1011_v20, %v975_v27  ;;  %v14141_v40 = vrot.slane %v8307_v56, 2  ;;  %v14142_v12 = vrot.slane %v8469_v16, 2  ;;  %v8552_v20 = vmul.f32 %v7934_v24, %v8230_v9 }
  0xeb   : > { %v1642_v34 = vsel %vm836_vm3, %v13911_v62, %v14139_v23  ;;  %v1087_v58 = vsel %vm674_vm0, %v13908_v51, %v14140_v42  ;;  %v1553_v15 = vadd.f32 %v1536_v54, %v1500_v7  ;;  %v13914_v23 = vrot.slane %v8515_v61, 5 }
  0xec   : > { %v1140_v27 = vsel %vm728_vm1, %v14142_v12, %v14141_v40  ;;  %v1047_v18 = vadd.f32 %v1039_v33, %v1029_v22  ;;  %v8557_v1 = vmul.f32 %v7939_v25, %v8230_v9  ;;  %v14143_v42 = vrot.slane %v8311_v48, 3 }
  0xed   : > { %v13913_v40 = vrot.slane %v8530_v29, 6  ;;  %v13912_v12 = vrot.slane %v8552_v20, 1  ;;  %v8568_v54 = vmul.f32 %v7959_v31, %v8230_v9  ;;  %v1606_v7 = vadd.f32 %v1589_v32, %v1553_v15 }
  0xee   : > { %v1193_v56 = vsel %vm782_vm2, %v13909_v28, %v14143_v42  ;;  %v1105_v22 = vadd.f32 %v1087_v58, %v1047_v18  ;;  %v14144_v33 = vrot.slane %v8317_v43, 4  ;;  %v637_v51 = vmul.f32 %v7954_v30, %v8230_v9 }
  0xef   : > { %v8579_v42 = vmul.f32 %v8148_v37, %v8011_v53  ;;  %v14145_v28 = vrot.slane %v8371_v50, 1  ;;  %v13915_v18 = vrot.slane %v8557_v1, 2  ;;  %v8589_v43 = vmul.f32 %v7971_v36, %v8230_v9 }
  0xf0   : > { %v1246_v48 = vsel %vm836_vm3, %v13910_v14, %v14144_v33  ;;  %v1659_v58 = vadd.f32 %v1642_v34, %v1606_v7  ;;  %v1158_v15 = vadd.f32 %v1140_v27, %v1105_v22  ;;  %v14146_v33 = vrot.slane %v8339_v3, 5  ;;  %v14149_v7 = vld [vmem:[#allocation7_spill] sm:$0xff] }
  0xf1   : > { %v685_v32 = vsel %vm674_vm0, %v13912_v12, %v14145_v28  ;;  %v14147_v50 = vrot.slane %v8343_v26, 6  ;;  %v14148_v12 = vrot.slane %v8380_v46, 2  ;;  %v13916_v27 = vrot.slane %v8568_v54, 3  ;;  %v14150_v26 = vld [vmem:[#allocation17_spill] sm:$0xff] }
  0xf2   : > { %v1299_v14 = vsel %vm890_vm4, %v13914_v23, %v14146_v33  ;;  %v704_v62 = vadd.f32 %v685_v32, %v637_v51  ;;  %v8609_v3 = vmul.f32 %v7981_v41, %v8230_v9  ;;  %1695 = vmatpush.msra.mxu0 %v1659_v58  ;;  %v1211_v51 = vadd.f32 %v1193_v56, %v1158_v15  ;;  %v14151_v32 = vld [vmem:[#allocation15_spill] sm:$0xff]  ;;  %v14153_v15 = vld [vmem:[#allocation16_spill] sm:$0xff] }
  0xf3   : > { %v1352_v28 = vsel %vm944_vm5, %v13913_v40, %v14147_v50  ;;  %v739_v34 = vsel %vm728_vm1, %v13915_v18, %v14148_v12  ;;  %v1433_v22 = vmul.f32 %v14150_v26, %v14149_v7  ;;  %v8615_v33 = vmul.f32 %v14151_v32, %v14149_v7 }
  0xf4   : > { %v758_v46 = vadd.f32 %v739_v34, %v704_v62  ;;  %v14152_v12 = vrot.slane %v8384_v44, 3  ;;  %v13917_v23 = vrot.slane %v8589_v43, 4  ;;  %v8626_v56 = vmul.f32 %v7993_v45, %v8230_v9 }
  0xf5   : > { %v1264_v58 = vadd.f32 %v1246_v48, %v1211_v51  ;;  %v8630_v18 = vmul.f32 %v14153_v15, %v14149_v7  ;;  %v8634_v62 = vmul.f32 %v8190_v47, %v14149_v7  ;;  %v14154_v34 = vrot.slane %v8391_v57, 4 }
  0xf6   : > { %v793_v40 = vsel %vm782_vm2, %v13916_v27, %v14152_v12  ;;  %v13920_v27 = vrot.slane %v8609_v3, 5  ;;  %v8644_v48 = vmul.f32 %v8009_v52, %v8230_v9  ;;  %v8648_v51 = vmul.f32 %v8041_v4, %v8076_v21 }
  0xf7   : > { %v812_v44 = vadd.f32 %v793_v40, %v758_v46  ;;  %v847_v12 = vsel %vm836_vm3, %v13917_v23, %v14154_v34  ;;  %v1317_v50 = vadd.f32 %v1299_v14, %v1264_v58  ;;  %v8653_v57 = vmul.f32 %v8202_v2, %v14149_v7 }
  0xf8   : > { %v14155_v46 = vrot.slane %v8410_v10, 5  ;;  %v13925_v23 = vrot.slane %v8626_v56, 6  ;;  %v8663_v4 = vmul.f32 %v8056_v11, %v8076_v21  ;;  %v8667_v14 = vmul.f32 %v8069_v17, %v8076_v21 }
  0xf9   : > { %v866_v40 = vadd.f32 %v847_v12, %v812_v44  ;;  %v1370_v58 = vadd.f32 %v1352_v28, %v1317_v50  ;;  %v14156_v7 = vrot.slane %v8395_v39, 7  ;;  %v14157_v44 = vrot.slane %v8579_v42, 7 }
  0xfa   : > { %v901_v34 = vsel %vm890_vm4, %v13920_v27, %v14155_v46  ;;  %v13927_v12 = vrot.slane %v8630_v18, 2  ;;  %v13930_v27 = vrot.slane %v8634_v62, 3  ;;  %v14158_v26 = vrot.slane %v8433_v6, 6 }
  0xfb   : > { %v1405_v10 = vsel %vm998_vm6, %v14157_v44, %v14156_v7  ;;  %v920_v46 = vadd.f32 %v901_v34, %v866_v40  ;;  %v13926_v17 = vrot.slane %v8644_v48, 7  ;;  %v8685_v7 = vmul.f32 %v8093_v38, %v8076_v21 }
  0xfc   : > { %v955_v11 = vsel %vm944_vm5, %v13925_v23, %v14158_v26  ;;  %v1423_v39 = vadd.f32 %v1405_v10, %v1370_v58  ;;  %v8689_v40 = vmul.f32 %v8112_v59, %v8076_v21  ;;  %v14159_v34 = vrot.slane %v8453_v35, 7 }
  0xfd   : > { %v974_v50 = vadd.f32 %v955_v11, %v920_v46  ;;  %v13929_v44 = vrot.slane %v8663_v4, 2  ;;  %v13928_v11 = vrot.slane %v8667_v14, 3  ;;  %v14160_v10 = vrot.slane %v8414_v5, 1 }
  0xfe   : > { %v1009_v26 = vsel %vm998_vm6, %v13926_v17, %v14159_v34  ;;  %v1441_v58 = vadd.f32 %v1433_v22, %v1423_v39  ;;  %v14161_v46 = vrot.slane %v8615_v33, 1  ;;  %v1038_v6 = vmul.f32 %v8074_v19, %v8076_v21 }
  0xff   : > { %v1028_v28 = vadd.f32 %v1009_v26, %v974_v50  ;;  %v14162_v35 = vrot.slane %v8418_v0, 2  ;;  %v14163_v17 = vrot.slane %v8443_v60, 3  ;;  %v14164_v22 = vrot.slane %v8478_v8, 4 }
 0x100   : > { %v1481_v23 = vsel %vm674_vm0, %v14161_v46, %v14160_v10  ;;  %v14165_v39 = vrot.slane %v8653_v57, 4  ;;  %v14166_v26 = vrot.slane %v8465_v49, 1  ;;  %v14167_v0 = vrot.slane %v8648_v51, 1 }
 0x101   : > { %v1534_v34 = vsel %vm728_vm1, %v13927_v12, %v14162_v35  ;;  %v1587_v5 = vsel %vm782_vm2, %v13930_v27, %v14163_v17  ;;  %v1499_v46 = vadd.f32 %v1481_v23, %v1441_v58  ;;  %v1046_v35 = vadd.f32 %v1038_v6, %v1028_v28  ;;  %v14170_v28 = vld [vmem:[#allocation18_spill] sm:$0xff] }
 0x102   : > { %v1640_v50 = vsel %vm836_vm3, %v14165_v39, %v14164_v22  ;;  %v1085_v10 = vsel %vm674_vm0, %v14167_v0, %v14166_v26  ;;  %v14168_v17 = vrot.slane %v8469_v16, 2  ;;  %v14169_v22 = vrot.slane %v8489_v55, 3 }
 0x103   : > { %v8740_v23 = vmul.f32 %v8131_v13, %v8076_v21  ;;  %v8744_v6 = vmul.f32 %v7934_v24, %v14170_v28  ;;  %v1552_v58 = vadd.f32 %v1534_v34, %v1499_v46  ;;  %v1104_v16 = vadd.f32 %v1085_v10, %v1046_v35 }
 0x104   : > { %v1138_v8 = vsel %vm728_vm1, %v13929_v44, %v14168_v17  ;;  %v1191_v49 = vsel %vm782_vm2, %v13928_v11, %v14169_v22  ;;  %v636_v39 = vmul.f32 %v7954_v30, %v14170_v28  ;;  %v8750_v55 = vmul.f32 %v7939_v25, %v14170_v28 }
 0x105   : > { %v13933_v26 = vrot.slane %v8744_v6, 1  ;;  %v8755_v0 = vmul.f32 %v7959_v31, %v14170_v28  ;;  %v8759_v17 = vmul.f32 %v7971_v36, %v14170_v28  ;;  %v8763_v34 = vmul.f32 %v7981_v41, %v14170_v28 }
 0x106   : > { %v1605_v10 = vadd.f32 %v1587_v5, %v1552_v58  ;;  %v1157_v46 = vadd.f32 %v1138_v8, %v1104_v16  ;;  %v8767_v35 = vmul.f32 %v8148_v37, %v8076_v21  ;;  %v13936_v22 = vrot.slane %v8750_v55, 2 }
 0x107   : > { %v14171_v11 = vrot.slane %v8552_v20, 1  ;;  %v8779_v5 = vmul.f32 %v7993_v45, %v14170_v28  ;;  %v14172_v60 = vrot.slane %v8557_v1, 2  ;;  %v14173_v21 = vrot.slane %v8498_v63, 4 }
 0x108   : > { %v1658_v8 = vadd.f32 %v1640_v50, %v1605_v10  ;;  %v1210_v58 = vadd.f32 %v1191_v49, %v1157_v46  ;;  %v13935_v12 = vrot.slane %v8740_v23, 6  ;;  %v14175_v27 = vrot.slane %v8568_v54, 3 }
 0x109   : > { %v683_v44 = vsel %vm674_vm0, %v13933_v26, %v14171_v11  ;;  %v737_v20 = vsel %vm728_vm1, %v13936_v22, %v14172_v60  ;;  %v14174_v11 = vrot.slane %v8685_v7, 4  ;;  %v14176_v50 = vrot.slane %v8755_v0, 3  ;;  %v14188_v22 = vld [vmem:[#allocation9_spill] sm:$0xff] }
 0x10a   : > { %v703_v16 = vadd.f32 %v683_v44, %v636_v39  ;;  %v13934_v1 = vrot.slane %v8763_v34, 5  ;;  %1696 = vmatpush.msra.mxu0 %v1658_v8  ;;  %v14177_v60 = vrot.slane %v8515_v61, 5  ;;  %v14178_v63 = vrot.slane %v8689_v40, 5 }
 0x10b   : > { %v1244_v26 = vsel %vm836_vm3, %v14174_v11, %v14173_v21  ;;  %v791_v44 = vsel %vm782_vm2, %v14176_v50, %v14175_v27  ;;  %v8805_v21 = vmul.f32 %v8009_v52, %v14170_v28  ;;  %v13937_v54 = vrot.slane %v8767_v35, 7 }
 0x10c   : > { %v1263_v49 = vadd.f32 %v1244_v26, %v1210_v58  ;;  %v1297_v39 = vsel %vm890_vm4, %v14178_v63, %v14177_v60  ;;  %v757_v10 = vadd.f32 %v737_v20, %v703_v16  ;;  %v8810_v27 = vmul.f32 %v14151_v32, %v8011_v53 }
 0x10d   : > { %v14179_v46 = vrot.slane %v8589_v43, 4  ;;  %v14180_v26 = vrot.slane %v8759_v17, 4  ;;  %v13938_v8 = vrot.slane %v8779_v5, 6  ;;  %v8820_v16 = vmul.f32 %v14153_v15, %v8011_v53 }
 0x10e   : > { %v1316_v58 = vadd.f32 %v1297_v39, %v1263_v49  ;;  %v8824_v20 = vmul.f32 %v8190_v47, %v8011_v53  ;;  %v811_v11 = vadd.f32 %v791_v44, %v757_v10  ;;  %v14181_v50 = vrot.slane %v8530_v29, 6 }
 0x10f   : > { %v845_v61 = vsel %vm836_vm3, %v14180_v26, %v14179_v46  ;;  %v8833_v60 = vmul.f32 %v8202_v2, %v8011_v53  ;;  %v14182_v49 = vrot.slane %v8609_v3, 5  ;;  %v14183_v46 = vld [vmem:[#allocation19_spill] sm:$0xff]  ;;  %v8862_v39 = vmul.f32 %v14188_v22, %v8230_v9 }
 0x110   : > { %v1350_v43 = vsel %vm944_vm5, %v13935_v12, %v14181_v50  ;;  %v8843_v44 = vmul.f32 %v7971_v36, %v14183_v46  ;;  %v8847_v29 = vmul.f32 %v7981_v41, %v14183_v46  ;;  %v865_v26 = vadd.f32 %v845_v61, %v811_v11  ;;  %v14189_v61 = vld [vmem:[#allocation17_spill] sm:$0xff] }
 0x111   : > { %v899_v63 = vsel %vm890_vm4, %v13934_v1, %v14182_v49  ;;  %v1369_v10 = vadd.f32 %v1350_v43, %v1316_v58  ;;  %v14186_v50 = vrot.slane %v8579_v42, 7  ;;  %v14187_v1 = vrot.slane %v8626_v56, 6 }
 0x112   : > { %14184 = vst [vmem:[#allocation7_spill] sm:$0xff] %v8843_v44  ;;  %v1432_v42 = vmul.f32 %v14189_v61, %v8011_v53  ;;  %v919_v43 = vadd.f32 %v899_v63, %v865_v26  ;;  %v14190_v56 = vrot.slane %v8644_v48, 7  ;;  %v14191_v49 = vrot.slane %v8805_v21, 7  ;;  %v14192_v53 = vld [vmem:[#allocation10_spill] sm:$0xff]  ;;  %v14193_v63 = vld [vmem:[#allocation11_spill] sm:$0xff] }
 0x113   : > { %14185 = vst [vmem:[#allocation15_spill] sm:$0xff] %v8847_v29  ;;  %v1403_v3 = vsel %vm998_vm6, %v13937_v54, %v14186_v50  ;;  %v953_v12 = vsel %vm944_vm5, %v13938_v8, %v14187_v1  ;;  %v1037_v8 = vmul.f32 %v8074_v19, %v8230_v9  ;;  %v8878_v29 = vmul.f32 %v14192_v53, %v8230_v9 }
 0x114   : > { %v1422_v58 = vadd.f32 %v1403_v3, %v1369_v10  ;;  %v1007_v1 = vsel %vm998_vm6, %v14191_v49, %v14190_v56  ;;  %v973_v3 = vadd.f32 %v953_v12, %v919_v43  ;;  %v8882_v26 = vmul.f32 %v14193_v63, %v8230_v9 }
 0x115   : > { %v8886_v48 = vmul.f32 %v7993_v45, %v14183_v46  ;;  %v14195_v54 = vrot.slane %v8615_v33, 1  ;;  %v14196_v49 = vrot.slane %v8810_v27, 1  ;;  %v8901_v50 = vmul.f32 %v8009_v52, %v14183_v46 }
 0x116   : > { %v1440_v10 = vadd.f32 %v1432_v42, %v1422_v58  ;;  %v8896_v58 = vmul.f32 %v8093_v38, %v8230_v9  ;;  %v14198_v33 = vrot.slane %v8630_v18, 2  ;;  %v14199_v44 = vrot.slane %v8820_v16, 2 }
 0x117   : > { %14194 = vst [vmem:[#allocation16_spill] sm:$0xff] %v8886_v48  ;;  %v1479_v56 = vsel %vm674_vm0, %v14196_v49, %v14195_v54  ;;  %v1027_v48 = vadd.f32 %v1007_v1, %v973_v3  ;;  %v14200_v49 = vrot.slane %v8634_v62, 3  ;;  %v14201_v12 = vrot.slane %v8824_v20, 3 }
 0x118   : > { %v1498_v11 = vadd.f32 %v1479_v56, %v1440_v10  ;;  %v1532_v54 = vsel %vm728_vm1, %v14199_v44, %v14198_v33  ;;  %v14202_v43 = vrot.slane %v8653_v57, 4  ;;  %v14203_v42 = vrot.slane %v8833_v60, 4  ;;  %v14206_v33 = vld [vmem:[#allocation8_spill] sm:$0xff] }
 0x119   : > { %v1585_v19 = vsel %vm782_vm2, %v14201_v12, %v14200_v49  ;;  %v14204_v1 = vrot.slane %v8648_v51, 1  ;;  %v14205_v18 = vrot.slane %v8862_v39, 1  ;;  %v1045_v44 = vadd.f32 %v1037_v8, %v1027_v48 }
 0x11a   : > { %v1638_v46 = vsel %vm836_vm3, %v14203_v42, %v14202_v43  ;;  %v1551_v3 = vadd.f32 %v1532_v54, %v1498_v11  ;;  %v1133_v62 = vrot.slane %v8878_v29, 2  ;;  %v13941_v56 = vrot.slane %v8882_v26, 3 }
 0x11b   : > { %v1083_v10 = vsel %vm674_vm0, %v14205_v18, %v14204_v1  ;;  %v13944_v12 = vrot.slane %v8896_v58, 4  ;;  %v8928_v57 = vmul.f32 %v8112_v59, %v8230_v9  ;;  %v8932_v42 = vmul.f32 %v7934_v24, %v14206_v33 }
 0x11c   : > { %v8936_v51 = vmul.f32 %v7939_v25, %v14206_v33  ;;  %v1604_v11 = vadd.f32 %v1585_v19, %v1551_v3  ;;  %v1103_v8 = vadd.f32 %v1083_v10, %v1045_v44  ;;  %v14207_v48 = vrot.slane %v8663_v4, 2 }
 0x11d   : > { %v8945_v54 = vmul.f32 %v7959_v31, %v14206_v33  ;;  %v14208_v49 = vrot.slane %v8667_v14, 3  ;;  %v13942_v25 = vrot.slane %v8932_v42, 1  ;;  %v8956_v4 = vmul.f32 %v7971_v36, %v14206_v33 }
 0x11e   : > { %v1136_v43 = vsel %vm728_vm1, %v1133_v62, %v14207_v48  ;;  %v13946_v19 = vrot.slane %v8936_v51, 2  ;;  %v1657_v18 = vadd.f32 %v1638_v46, %v1604_v11  ;;  %v8960_v3 = vmul.f32 %v8131_v13, %v8230_v9 }
 0x11f   : > { %v1189_v1 = vsel %vm782_vm2, %v13941_v56, %v14208_v49  ;;  %v1156_v10 = vadd.f32 %v1136_v43, %v1103_v8  ;;  %v635_v14 = vmul.f32 %v7954_v30, %v14206_v33  ;;  %v13943_v44 = vrot.slane %v8928_v57, 5 }
 0x120   : > { %v14209_v48 = vrot.slane %v8744_v6, 1  ;;  %v13945_v56 = vrot.slane %v8945_v54, 3  ;;  %v8973_v46 = vmul.f32 %v7981_v41, %v14206_v33  ;;  %1697 = vmatpush.msra.mxu0 %v1657_v18  ;;  %v14210_v8 = vrot.slane %v8685_v7, 4 }
 0x121   : > { %v1209_v11 = vadd.f32 %v1189_v1, %v1156_v10  ;;  %v8982_v6 = vmul.f32 %v8148_v37, %v8230_v9  ;;  %v14212_v18 = vrot.slane %v8750_v55, 2  ;;  %v840_v1 = vrot.slane %v8956_v4, 4 }
 0x122   : > { %v681_v49 = vsel %vm674_vm0, %v13942_v25, %v14209_v48  ;;  %v1242_v30 = vsel %vm836_vm3, %v13944_v12, %v14210_v8  ;;  %v14211_v48 = vrot.slane %v8689_v40, 5  ;;  %v8997_v10 = vmul.f32 %v7993_v45, %v14206_v33  ;;  %v14213_v40 = vld [vmem:[#allocation13_spill] sm:$0xff] }
 0x123   : > { %v702_v43 = vadd.f32 %v681_v49, %v635_v14  ;;  %v735_v7 = vsel %vm728_vm1, %v13946_v19, %v14212_v18  ;;  %v1262_v8 = vadd.f32 %v1242_v30, %v1209_v11  ;;  %v13947_v14 = vrot.slane %v8960_v3, 6 }
 0x124   : > { %v1295_v25 = vsel %vm890_vm4, %v13943_v44, %v14211_v48  ;;  %v9002_v49 = vmul.f32 %v14151_v32, %v14213_v40  ;;  %v9006_v55 = vmul.f32 %v14153_v15, %v14213_v40  ;;  %v14214_v18 = vrot.slane %v8755_v0, 3 }
 0x125   : > { %v756_v48 = vadd.f32 %v735_v7, %v702_v43  ;;  %v13949_v45 = vrot.slane %v8973_v46, 5  ;;  %v9016_v11 = vmul.f32 %v8009_v52, %v14206_v33  ;;  %v1315_v30 = vadd.f32 %v1295_v25, %v1262_v8 }
 0x126   : > { %v789_v44 = vsel %vm782_vm2, %v13945_v56, %v14214_v18  ;;  %v13948_v12 = vrot.slane %v8982_v6, 7  ;;  %v9021_v43 = vmul.f32 %v8190_v47, %v14213_v40  ;;  %v14215_v0 = vrot.slane %v8740_v23, 6 }
 0x127   : > { %v810_v7 = vadd.f32 %v789_v44, %v756_v48  ;;  %v9030_v56 = vmul.f32 %v8202_v2, %v14213_v40  ;;  %v14216_v52 = vrot.slane %v8759_v17, 4  ;;  %v948_v8 = vrot.slane %v8997_v10, 6 }
 0x128   : > { %v1348_v18 = vsel %vm944_vm5, %v13947_v14, %v14215_v0  ;;  %v14217_v44 = vrot.slane %v8767_v35, 7  ;;  %v13950_v48 = vrot.slane %v9002_v49, 1  ;;  %v14218_v14 = vrot.slane %v8763_v34, 5 }
 0x129   : > { %v843_v25 = vsel %vm836_vm3, %v840_v1, %v14216_v52  ;;  %v1368_v19 = vadd.f32 %v1348_v18, %v1315_v30  ;;  %v13951_v52 = vrot.slane %v9016_v11, 7  ;;  %v9052_v30 = vmul.f32 %v14188_v22, %v14170_v28 }
 0x12a   : > { %v1401_v23 = vsel %vm998_vm6, %v13948_v12, %v14217_v44  ;;  %v864_v0 = vadd.f32 %v843_v25, %v810_v7  ;;  %v897_v17 = vsel %vm890_vm4, %v13949_v45, %v14218_v14  ;;  %v9056_v35 = vmul.f32 %v14192_v53, %v14170_v28 }
 0x12b   : > { %v1421_v18 = vadd.f32 %v1401_v23, %v1368_v19  ;;  %v1431_v7 = vmul.f32 %v14189_v61, %v14213_v40  ;;  %v1527_v34 = vrot.slane %v9006_v55, 2  ;;  %v13954_v44 = vrot.slane %v9021_v43, 3  ;;  %v14220_v19 = vld [vmem:[#allocation22_spill] sm:$0xff] }
 0x12c   : > { %v918_v25 = vadd.f32 %v897_v17, %v864_v0  ;;  %v13952_v14 = vrot.slane %v9030_v56, 4  ;;  %v14219_v12 = vrot.slane %v8779_v5, 6  ;;  %v9070_v53 = vmul.f32 %v14193_v63, %v14170_v28 }
 0x12d   : > { %v1439_v40 = vadd.f32 %v1431_v7, %v1421_v18  ;;  %v9075_v0 = vmul.f32 %v8093_v38, %v14170_v28  ;;  %v14221_v17 = vrot.slane %v8810_v27, 1  ;;  %v1078_v23 = vrot.slane %v9052_v30, 1 }
 0x12e   : > { %v951_v22 = vsel %vm944_vm5, %v948_v8, %v14219_v12  ;;  %v14222_v12 = vrot.slane %v8805_v21, 7  ;;  %v13953_v18 = vrot.slane %v9056_v35, 2  ;;  %v14225_v21 = vrot.slane %v8824_v20, 3 }
 0x12f   : > { %v972_v45 = vadd.f32 %v951_v22, %v918_v25  ;;  %v1477_v5 = vsel %vm674_vm0, %v13950_v48, %v14221_v17  ;;  %v14223_v25 = vrot.slane %v8820_v16, 2  ;;  %v14224_v17 = vld [vmem:[#allocation12_spill] sm:$0xff]  ;;  %v13956_v20 = vrot.slane %v9075_v0, 4 }
 0x130   : > { %v1005_v63 = vsel %vm998_vm6, %v13951_v52, %v14222_v12  ;;  %v1497_v7 = vadd.f32 %v1477_v5, %v1439_v40  ;;  %v1036_v48 = vmul.f32 %v14224_v17, %v14170_v28  ;;  %v1583_v12 = vsel %vm782_vm2, %v13954_v44, %v14225_v21 }
 0x131   : > { %v1530_v27 = vsel %vm728_vm1, %v1527_v34, %v14223_v25  ;;  %v1026_v22 = vadd.f32 %v1005_v63, %v972_v45  ;;  %v14226_v52 = vrot.slane %v8833_v60, 4  ;;  %v13955_v40 = vrot.slane %v9070_v53, 3  ;;  %v14227_v25 = vld [vmem:[#allocation14_spill] sm:$0xff] }
 0x132   : > { %v9109_v45 = vmul.f32 %v8112_v59, %v14170_v28  ;;  %v1550_v5 = vadd.f32 %v1530_v27, %v1497_v7  ;;  %v9114_v17 = vmul.f32 %v7934_v24, %v14227_v25  ;;  %v14228_v60 = vrot.slane %v8862_v39, 1 }
 0x133   : > { %v1636_v16 = vsel %vm836_vm3, %v13952_v14, %v14226_v52  ;;  %v1044_v63 = vadd.f32 %v1036_v48, %v1026_v22  ;;  %v1134_v21 = vsel %vm728_vm1, %v13953_v18, %v1133_v62  ;;  %v7685_v48 = vld [vmem:[%s14088_s1 + $0x2] ss:$0 sm:$0xff]  ;;  %v9134_v24 = vmul.f32 %v7959_v31, %v14227_v25 }
 0x134   : > { %v1081_v52 = vsel %vm674_vm0, %v1078_v23, %v14228_v60  ;;  %v9130_v7 = vmul.f32 %v7685_v48, %v14227_v25  ;;  %v1603_v39 = vadd.f32 %v1583_v12, %v1550_v5  ;;  %v676_v22 = vrot.slane %v9114_v17, 1  ;;  %v7686_v60 = vld [vmem:[%s14088_s1] ss:$0 sm:$0xff] }
 0x135   : > { %v1102_v27 = vadd.f32 %v1081_v52, %v1044_v63  ;;  %v9139_v29 = vmul.f32 %v7971_v36, %v14227_v25  ;;  %v9143_v62 = vmul.f32 %v8131_v13, %v14170_v28  ;;  %v634_v48 = vmul.f32 %v7686_v60, %v14227_v25 }
 0x136   : > { %v730_v31 = vrot.slane %v9130_v7, 2  ;;  %v9152_v12 = vmul.f32 %v7981_v41, %v14227_v25  ;;  %v1656_v5 = vadd.f32 %v1636_v16, %v1603_v39  ;;  %v14229_v36 = vrot.slane %v8932_v42, 1 }
 0x137   : > { %v1155_v63 = vadd.f32 %v1134_v21, %v1102_v27  ;;  %v784_v14 = vrot.slane %v9134_v24, 3  ;;  %v14230_v18 = vrot.slane %v8882_v26, 3  ;;  %v13958_v44 = vrot.slane %v9109_v45, 5 }
 0x138   : > { %v679_v52 = vsel %vm674_vm0, %v676_v22, %v14229_v36  ;;  %v9168_v41 = vmul.f32 %v8148_v37, %v14170_v28  ;;  %1698 = vmatpush.msra.mxu0 %v1656_v5  ;;  %v14231_v21 = vrot.slane %v8936_v51, 2  ;;  %v13959_v26 = vrot.slane %v9139_v29, 4  ;;  %v14232_v36 = vld [vmem:[#allocation23_spill] sm:$0xff] }
 0x139   : > { %v1187_v60 = vsel %vm782_vm2, %v13955_v40, %v14230_v18  ;;  %v701_v16 = vadd.f32 %v679_v52, %v634_v48  ;;  %v7687_v18 = vld [vmem:[%s14088_s1 + $0x6] ss:$0 sm:$0xff]  ;;  %v14233_v48 = vrot.slane %v8896_v58, 4  ;;  %v13957_v5 = vrot.slane %v9143_v62, 6  ;;  %v7688_v58 = vld [vmem:[%s14088_s1 + $0x7] ss:$0 sm:$0xff] }
 0x13a   : > { %v1208_v42 = vadd.f32 %v1187_v60, %v1155_v63  ;;  %v733_v39 = vsel %vm728_vm1, %v730_v31, %v14231_v21  ;;  %v9180_v27 = vmul.f32 %v7687_v18, %v14227_v25  ;;  %v14234_v60 = vrot.slane %v8945_v54, 3 }
 0x13b   : > { %v1240_v51 = vsel %vm836_vm3, %v13956_v20, %v14233_v48  ;;  %v755_v63 = vadd.f32 %v733_v39, %v701_v16  ;;  %v13963_v18 = vrot.slane %v9152_v12, 5  ;;  %v9199_v40 = vmul.f32 %v7688_v58, %v14227_v25  ;;  %v14235_v48 = vld [vmem:[#allocation7_spill] sm:$0xff] }
 0x13c   : > { %v1261_v52 = vadd.f32 %v1240_v51, %v1208_v42  ;;  %v787_v21 = vsel %vm782_vm2, %v784_v14, %v14234_v60  ;;  %v14236_v16 = vrot.slane %v8928_v57, 5  ;;  %v13960_v42 = vrot.slane %v9168_v41, 7 }
 0x13d   : > { %v809_v39 = vadd.f32 %v787_v21, %v755_v63  ;;  %v9210_v60 = vmul.f32 %v14151_v32, %v8230_v9  ;;  %v841_v58 = vsel %vm836_vm3, %v13959_v26, %v840_v1  ;;  %v13961_v57 = vrot.slane %v9180_v27, 6 }
 0x13e   : > { %v1293_v54 = vsel %vm890_vm4, %v13958_v44, %v14236_v16  ;;  %v14237_v20 = vrot.slane %v8960_v3, 6  ;;  %v9225_v63 = vmul.f32 %v14153_v15, %v8230_v9  ;;  %v14238_v1 = vrot.slane %v8973_v46, 5  ;;  %v14239_v44 = vld [vmem:[#allocation15_spill] sm:$0xff] }
 0x13f   : > { %v1314_v51 = vadd.f32 %v1293_v54, %v1261_v52  ;;  %v9229_v52 = vmul.f32 %v8190_v47, %v8230_v9  ;;  %v863_v4 = vadd.f32 %v841_v58, %v809_v39  ;;  %v13962_v54 = vrot.slane %v9199_v40, 7 }
 0x140   : > { %v1346_v16 = vsel %vm944_vm5, %v13957_v5, %v14237_v20  ;;  %v895_v3 = vsel %vm890_vm4, %v13963_v18, %v14238_v1  ;;  %v7689_v20 = vld [vmem:[%s14088_s1 + $0x9] ss:$0 sm:$0xff]  ;;  %v891_v26 = vrot.slane %v14239_v44, 5  ;;  %v14240_v39 = vrot.slane %v8982_v6, 7  ;;  %v7690_v6 = vld [vmem:[%s14088_s1 + $0xa] ss:$0 sm:$0xff] }
 0x141   : > { %v1367_v21 = vadd.f32 %v1346_v16, %v1314_v51  ;;  %v9241_v5 = vmul.f32 %v7689_v20, %v14206_v33  ;;  %v1430_v51 = vmul.f32 %v14189_v61, %v8230_v9  ;;  %v917_v58 = vadd.f32 %v895_v3, %v863_v4  ;;  %v14243_v18 = vld [vmem:[#allocation21_spill] sm:$0xff] }
 0x142   : > { %v1399_v46 = vsel %vm998_vm6, %v13960_v42, %v14240_v39  ;;  %v9253_v1 = vmul.f32 %v8202_v2, %v8230_v9  ;;  %v949_v44 = vsel %vm944_vm5, %v13961_v57, %v948_v8  ;;  %v9264_v39 = vmul.f32 %v7690_v6, %v14206_v33 }
 0x143   : > { %v1420_v16 = vadd.f32 %v1399_v46, %v1367_v21  ;;  %v13964_v61 = vrot.slane %v9210_v60, 1  ;;  %v1525_v4 = vrot.slane %v9225_v63, 2  ;;  %v1578_v2 = vrot.slane %v9229_v52, 3  ;;  %v7691_v46 = vld [vmem:[%s14088_s1 + $0xb] ss:$0 sm:$0xff] }
 0x144   : > { %v971_v9 = vadd.f32 %v949_v44, %v917_v58  ;;  %v14241_v10 = vrot.slane %v9016_v11, 7  ;;  %v1076_v3 = vrot.slane %v9241_v5, 1  ;;  %v9279_v42 = vmul.f32 %v7691_v46, %v14206_v33  ;;  %v7692_v58 = vld [vmem:[%s14088_s1 + $0x8] ss:$0 sm:$0xff]  ;;  %v7699_v52 = vld [vmem:[%s14088_s1 + $0x11] ss:$0 sm:$0xff] }
 0x145   : > { %v1438_v21 = vadd.f32 %v1430_v51, %v1420_v16  ;;  %v14242_v57 = vrot.slane %v9002_v49, 1  ;;  %v1035_v16 = vmul.f32 %v7692_v58, %v14206_v33  ;;  %v9292_v44 = vmul.f32 %v8093_v38, %v14206_v33 }
 0x146   : > { %v1003_v8 = vsel %vm998_vm6, %v13962_v54, %v14241_v10  ;;  %v1129_v49 = vrot.slane %v9264_v39, 2  ;;  %v9308_v38 = vmul.f32 %v8112_v59, %v14206_v33  ;;  %v1079_v17 = vsel %vm674_vm0, %v1076_v3, %v1078_v23 }
 0x147   : > { %v1475_v51 = vsel %vm674_vm0, %v13964_v61, %v14242_v57  ;;  %v1025_v11 = vadd.f32 %v1003_v8, %v971_v9  ;;  %v14244_v57 = vrot.slane %v14243_v18, 1  ;;  %v1528_v8 = vsel %vm728_vm1, %v1525_v4, %v1527_v34 }
 0x148   : > { %v1496_v10 = vadd.f32 %v1475_v51, %v1438_v21  ;;  %v14245_v21 = vld [vmem:[#allocation20_spill] sm:$0xff]  ;;  %v1182_v55 = vrot.slane %v9279_v42, 3  ;;  %v14246_v34 = vrot.slane %v14220_v19, 2  ;;  %v14247_v59 = vrot.slane %v9021_v43, 3 }
 0x149   : > { %v677_v9 = vsel %vm674_vm0, %v14244_v57, %v676_v22  ;;  %v1043_v61 = vadd.f32 %v1035_v16, %v1025_v11  ;;  %v1235_v30 = vrot.slane %v9292_v44, 4  ;;  %v14248_v23 = vrot.slane %v9056_v35, 2 }
 0x14a   : > { %v700_v51 = vadd.f32 %v677_v9, %v14245_v21  ;;  %v1549_v54 = vadd.f32 %v1528_v8, %v1496_v10  ;;  %v731_v22 = vsel %vm728_vm1, %v14246_v34, %v730_v31  ;;  %v1581_v18 = vsel %vm782_vm2, %v1578_v2, %v14247_v59 }
 0x14b   : > { %v1101_v11 = vadd.f32 %v1079_v17, %v1043_v61  ;;  %v1132_v7 = vsel %vm728_vm1, %v1129_v49, %v14248_v23  ;;  %v9335_v19 = vmul.f32 %v8131_v13, %v14206_v33  ;;  %v14249_v43 = vrot.slane %v14232_v36, 3  ;;  %v14255_v17 = vld [vmem:[#allocation16_spill] sm:$0xff] }
 0x14c   : > { %v754_v16 = vadd.f32 %v731_v22, %v700_v51  ;;  %v1602_v10 = vadd.f32 %v1581_v18, %v1549_v54  ;;  %v14250_v61 = vrot.slane %v9030_v56, 4  ;;  %v14251_v54 = vrot.slane %v9253_v1, 4 }
 0x14d   : > { %v785_v31 = vsel %vm782_vm2, %v14249_v43, %v784_v14  ;;  %v1154_v57 = vadd.f32 %v1132_v7, %v1101_v11  ;;  %v1288_v9 = vrot.slane %v9308_v38, 5  ;;  %v14252_v13 = vrot.slane %v9070_v53, 3  ;;  %v7700_v38 = vld [vmem:[%s14088_s1 + $0x12] ss:$0 sm:$0xff] }
 0x14e   : > { %v1634_v35 = vsel %vm836_vm3, %v14251_v54, %v14250_v61  ;;  %v808_v8 = vadd.f32 %v785_v31, %v754_v16  ;;  %v9355_v14 = vmul.f32 %v8148_v37, %v14206_v33  ;;  %v14253_v56 = vrot.slane %v9139_v29, 4 }
 0x14f   : > { %v1655_v21 = vadd.f32 %v1634_v35, %v1602_v10  ;;  %v1185_v24 = vsel %vm782_vm2, %v1182_v55, %v14252_v13  ;;  %v14254_v36 = vrot.slane %v14235_v48, 4  ;;  %v945_v34 = vrot.slane %v14255_v17, 6 }
 0x150   : > { %v1207_v22 = vadd.f32 %v1185_v24, %v1154_v57  ;;  %v14256_v53 = vrot.slane %v9075_v0, 4  ;;  %v1341_v37 = vrot.slane %v9335_v19, 6  ;;  %v14257_v11 = vrot.slane %v9152_v12, 5 }
 0x151   : > { %v839_v51 = vsel %vm836_vm3, %v14254_v36, %v14253_v56  ;;  %1699 = vmatpush.msra.mxu0 %v1655_v21  ;;  %v1057_v48 = vmul.f32 %v7689_v20, %v14227_v25  ;;  %v999_v16 = vrot.slane %v8901_v50, 7  ;;  %v14258_v23 = vrot.slane %v9109_v45, 5 }
 0x152   : > { %v862_v59 = vadd.f32 %v839_v51, %v808_v8  ;;  %v1238_v18 = vsel %vm836_vm3, %v1235_v30, %v14256_v53  ;;  %v893_v29 = vsel %vm890_vm4, %v891_v26, %v14257_v11  ;;  %v1394_v43 = vrot.slane %v9355_v14, 7  ;;  %v7695_v51 = vld [vmem:[%s14088_s1 + $0x14] ss:$0 sm:$0xff] }
 0x153   : > { %v1260_v10 = vadd.f32 %v1238_v18, %v1207_v22  ;;  %v1291_v0 = vsel %vm890_vm4, %v1288_v9, %v14258_v23  ;;  %v9382_v31 = vmul.f32 %v14151_v32, %v14170_v28  ;;  %v14259_v12 = vrot.slane %v9180_v27, 6  ;;  %v7696_v18 = vld [vmem:[%s14088_s1 + $0xd] ss:$0 sm:$0xff]  ;;  %v7697_v23 = vld [vmem:[%s14088_s1 + $0xe] ss:$0 sm:$0xff] }
 0x154   : > { %v916_v7 = vadd.f32 %v893_v29, %v862_v59  ;;  %v1110_v50 = vmul.f32 %v7690_v6, %v14227_v25  ;;  %v9390_v45 = vmul.f32 %v14153_v15, %v14170_v28  ;;  %v14260_v54 = vrot.slane %v9143_v62, 6 }
 0x155   : > { %v947_v26 = vsel %vm944_vm5, %v945_v34, %v14259_v12  ;;  %v1313_v20 = vadd.f32 %v1291_v0, %v1260_v10  ;;  %v14261_v32 = vrot.slane %v9199_v40, 7  ;;  %v1075_v57 = vrot.slane %v1057_v48, 1 }
 0x156   : > { %v970_v61 = vadd.f32 %v947_v26, %v916_v7  ;;  %v1344_v35 = vsel %vm944_vm5, %v1341_v37, %v14260_v54  ;;  %v1163_v8 = vmul.f32 %v7691_v46, %v14227_v25  ;;  %v9403_v21 = vmul.f32 %v8190_v47, %v14170_v28  ;;  %v7693_v46 = vld [vmem:[%s14088_s1 + $0xc] ss:$0 sm:$0xff]  ;;  %v7698_v26 = vld [vmem:[%s14088_s1 + $0xf] ss:$0 sm:$0xff] }
 0x157   : > { %v1001_v27 = vsel %vm998_vm6, %v999_v16, %v14261_v32  ;;  %v1366_v6 = vadd.f32 %v1344_v35, %v1313_v20  ;;  %v1034_v13 = vmul.f32 %v7692_v58, %v14227_v25  ;;  %v14262_v62 = vrot.slane %v9168_v41, 7  ;;  %v7694_v58 = vld [vmem:[%s14088_s1 + $0x10] ss:$0 sm:$0xff] }
 0x158   : > { %v1024_v15 = vadd.f32 %v1001_v27, %v970_v61  ;;  %v1470_v40 = vrot.slane %v9382_v31, 1  ;;  %v1128_v56 = vrot.slane %v1110_v50, 2  ;;  %v1216_v36 = vmul.f32 %v7693_v46, %v14227_v25 }
 0x159   : > { %v1397_v24 = vsel %vm998_vm6, %v1394_v43, %v14262_v62  ;;  %v1429_v41 = vmul.f32 %v7694_v58, %v14170_v28  ;;  %v9424_v17 = vmul.f32 %v7695_v51, %v14170_v28  ;;  %v1523_v22 = vrot.slane %v9390_v45, 2 }
 0x15a   : > { %v1419_v47 = vadd.f32 %v1397_v24, %v1366_v6  ;;  %v1042_v34 = vadd.f32 %v1034_v13, %v1024_v15  ;;  %v1077_v59 = vsel %vm674_vm0, %v1075_v57, %v1076_v3  ;;  %v1181_v53 = vrot.slane %v1163_v8, 3 }
 0x15b   : > { %v1269_v11 = vmul.f32 %v7696_v18, %v14227_v25  ;;  %v1576_v48 = vrot.slane %v9403_v21, 3  ;;  %v14263_v28 = vrot.slane %v9210_v60, 1  ;;  %v1130_v5 = vsel %vm728_vm1, %v1128_v56, %v1129_v49  ;;  %v7701_v21 = vld [vmem:[%s14088_s1 + $0x13] ss:$0 sm:$0xff] }
 0x15c   : > { %v1437_v29 = vadd.f32 %v1429_v41, %v1419_v47  ;;  %v1100_v16 = vadd.f32 %v1077_v59, %v1042_v34  ;;  %v1234_v3 = vrot.slane %v1216_v36, 4  ;;  %v1322_v0 = vmul.f32 %v7697_v23, %v14227_v25 }
 0x15d   : > { %v1473_v10 = vsel %vm674_vm0, %v1470_v40, %v14263_v28  ;;  %v1629_v31 = vrot.slane %v9424_v17, 4  ;;  %v1526_v60 = vsel %vm728_vm1, %v1523_v22, %v1525_v4  ;;  %v1183_v39 = vsel %vm782_vm2, %v1181_v53, %v1182_v55 }
 0x15e   : > { %v1495_v7 = vadd.f32 %v1473_v10, %v1437_v29  ;;  %v1153_v12 = vadd.f32 %v1130_v5, %v1100_v16  ;;  %v1287_v49 = vrot.slane %v1269_v11, 5  ;;  %v1375_v50 = vmul.f32 %v7698_v26, %v14227_v25 }
 0x15f   : > { %v1579_v61 = vsel %vm782_vm2, %v1576_v48, %v1578_v2  ;;  %v1236_v63 = vsel %vm836_vm3, %v1234_v3, %v1235_v30  ;;  %v1340_v42 = vrot.slane %v1322_v0, 6  ;;  %v14264_v55 = vrot.slane %v9253_v1, 4 }
 0x160   : > { %v1548_v20 = vadd.f32 %v1526_v60, %v1495_v7  ;;  %v1206_v45 = vadd.f32 %v1183_v39, %v1153_v12  ;;  %v1289_v25 = vsel %vm890_vm4, %v1287_v49, %v1288_v9  ;;  %v1393_v32 = vrot.slane %v1375_v50, 7 }
 0x161   : > { %v1632_v54 = vsel %vm836_vm3, %v1629_v31, %v14264_v55  ;;  %v1451_v2 = vmul.f32 %v7699_v52, %v14206_v33  ;;  %v438_v44 = vlaneseq  ;;  %v1342_v1 = vsel %vm944_vm5, %v1340_v42, %v1341_v37  ;;  %v7053_v52 = vld [vmem:[%s14275_s3 + $0x18] sm:$0xff] }
 0x162   : > { %v1601_v4 = vadd.f32 %v1579_v61, %v1548_v20  ;;  %v1259_v35 = vadd.f32 %v1236_v63, %v1206_v45  ;;  %v1504_v9 = vmul.f32 %v7700_v38, %v14206_v33  ;;  %v1395_v8 = vsel %vm998_vm6, %v1393_v32, %v1394_v43  ;;  %1794 = vmatpush.msra.mxu1 %v7053_v52 }
 0x163   : > { %v1469_v6 = vrot.slane %v1451_v2, 1  ;;  %v1557_v19 = vmul.f32 %v7701_v21, %v14206_v33  ;;  %v439_v37 = vshrl.u32 %v438_v44, 7  ;;  %v1428_v13 = vmul.f32 %v7694_v58, %v14206_v33  ;;  %7594 = vmatpush.msra.mxu3 %v7053_v52 }
 0x164   : > { %v1654_v30 = vadd.f32 %v1632_v54, %v1601_v4  ;;  %v1312_v27 = vadd.f32 %v1289_v25, %v1259_v35  ;;  %v1522_v62 = vrot.slane %v1504_v9, 2  ;;  %v1610_v24 = vmul.f32 %v7695_v51, %v14206_v33  ;;  %v1754_v54 = vld [vmem:[%s14275_s3 + $0x8] sm:$0xff]  ;;  %v1753_v35 = vld [vmem:[%s14275_s3] sm:$0xff]  ;;  %v7104_v9 = vld [vmem:[%s14275_s3 + $0x90] sm:$0xff] }
 0x165   : > { %v1471_v46 = vsel %vm674_vm0, %v1469_v6, %v1470_v40  ;;  %v1575_v14 = vrot.slane %v1557_v19, 3  ;;  %v9489_v36 = vand.u32 127, %v438_v44  ;;  %v457_v43 = vmul.u32 2, %v439_v37  ;;  %1831 = vmatpush.msra.mxu2 %v1754_v54  ;;  %v7052_v44 = vld [vmem:[%s14275_s3 + $0x10] sm:$0xff]  ;;  %v7093_v54 = vld [vmem:[%s14275_s3 + $0x78] sm:$0xff] }
 0x166   : > { %1700 = vmatpush.msra.mxu0 %v1654_v30  ;;  %v1365_v57 = vadd.f32 %v1342_v1, %v1312_v27  ;;  %v1524_v41 = vsel %vm728_vm1, %v1522_v62, %v1523_v22  ;;  %v1628_v17 = vrot.slane %v1610_v24, 4  ;;  %v440_v58 = vadd.s32 8, %v439_v37  ;;  %v7105_v30 = vld [vmem:[%s14275_s3 + $0x98] sm:$0xff]  ;;  %1795 = vmatpush.msra.mxu1 %v7052_v44  ;;  %v561_v1 = vld [vmem:[%s14276_s2] sm:$0x1] }
 0x167   : > { %14265 = vst [vmem:[#allocation18_spill] sm:$0xff] %v9489_v36  ;;  %v1577_v59 = vsel %vm782_vm2, %v1575_v14, %v1576_v48  ;;  %vm495_vm7 = vcmp.eq.s32.totalorder %v9489_v36, %v457_v43  ;;  %v13965_v18 = vmov 0.0   ;;  %v441_v22 = vadd.s32 16, %v439_v37  ;;  %1832 = vmatpush.msra.mxu2 %v1753_v35  ;;  %7595 = vmatpush.msra.mxu3 %v7052_v44  ;;  %v7092_v35 = vld [vmem:[%s14275_s3 + $0x70] sm:$0xff] }
 0x168   : > { %v1418_v15 = vadd.f32 %v1395_v8, %v1365_v57  ;;  %v1630_v33 = vsel %vm836_vm3, %v1628_v17, %v1629_v31  ;;  %v9496_v40 = vsel %vm495_vm7, 1.0, %v13965_v18  ;;  %v458_v11 = vmul.u32 2, %v440_v58  ;;  %v7069_v57 = vld [vmem:[%s14275_s3 + $0x38] sm:$0xff]  ;;  %v7068_v8 = vld [vmem:[%s14275_s3 + $0x30] sm:$0xff]  ;;  %v7062_v17 = vld [vmem:[%s14275_s3 + $0x20] sm:$0xff] }
 0x169   : > { %14266 = vst [vmem:[#allocation19_spill] sm:$0xff] %v9496_v40  ;;  %v459_v48 = vmul.u32 2, %v441_v22  ;;  %v9507_v16 = vadd.s32 24, %v439_v37  ;;  %v444_v5 = vadd.s32 40, %v439_v37  ;;  %v483_v23 = vadd.s32 1, %v457_v43  ;;  %1933 = vmatpush.msrb.mxu1 %v7069_v57  ;;  %v7129_v22 = vld [vmem:[%s14275_s3 + $0xd8] sm:$0xff] }
 0x16a   : > { %v1436_v56 = vadd.f32 %v1428_v13, %v1418_v15  ;;  %vm496_vm9 = vcmp.eq.s32.totalorder %v9489_v36, %v458_v11  ;;  %v445_v31 = vadd.s32 48, %v439_v37  ;;  %v446_v26 = vadd.s32 56, %v439_v37  ;;  %v7075_v37 = vld [vmem:[%s14275_s3 + $0x48] sm:$0xff]  ;;  %v7074_v15 = vld [vmem:[%s14275_s3 + $0x40] sm:$0xff] }
 0x16b   : > { %v9502_v29 = vsel %vm496_vm9, 1.0, %v13965_v18  ;;  %vm497_vm10 = vcmp.eq.s32.totalorder %v9489_v36, %v459_v48  ;;  %14268 = vst [vmem:[#allocation17_spill] sm:$0xff] %v9507_v16  ;;  %v460_v10 = vmul.u32 2, %v9507_v16  ;;  %v7023_v0 = vadd.s32 4294967264, %v444_v5  ;;  %1934 = vmatpush.msrb.mxu1 %v7068_v8  ;;  %1986 = vmatpush.msrb.mxu2 %v7075_v37 }
 0x16c   : > { %v1494_v47 = vadd.f32 %v1471_v46, %v1436_v56  ;;  %14267 = vst [vmem:[#allocation9_spill] sm:$0xff] %v9502_v29  ;;  %v9510_v28 = vsel %vm497_vm10, 1.0, %v13965_v18  ;;  %vm499_vm12 = vcmp.eq.s32.totalorder %v9489_v36, %v483_v23  ;;  %v7024_v39 = vadd.s32 4294967264, %v445_v31  ;;  %v7063_v46 = vld [vmem:[%s14275_s3 + $0x28] sm:$0xff] }
 0x16d   : > { %14269 = vst [vmem:[#allocation10_spill] sm:$0xff] %v9510_v28  ;;  %vm498_vm11 = vcmp.eq.s32.totalorder %v9489_v36, %v460_v10  ;;  %v476_v7 = vmul.u32 2, %v7023_v0  ;;  %v9523_v12 = vsel %vm499_vm12, 1.0, %v13965_v18  ;;  %v7025_v45 = vadd.s32 4294967264, %v446_v26  ;;  %1987 = vmatpush.msrb.mxu2 %v7074_v15  ;;  %1880 = vmatpush.msrb.mxu3 %v7063_v46  ;;  %v7128_v10 = vld [vmem:[%s14275_s3 + $0xd0] sm:$0xff]  ;;  %v7087_v26 = vld [vmem:[%s14275_s3 + $0x68] sm:$0xff] }
 0x16e   : > { %v1547_v34 = vadd.f32 %v1524_v41, %v1494_v47  ;;  %v9517_v3 = vsel %vm498_vm11, 1.0, %v13965_v18  ;;  %14271 = vst [vmem:[#allocation8_spill] sm:$0xff] %v9523_v12  ;;  %v477_v49 = vmul.u32 2, %v7024_v39  ;;  %vm564_vm7 = vcmask 130048  }
 0x16f   : > { %14270 = vst [vmem:[#allocation11_spill] sm:$0xff] %v9517_v3  ;;  %v484_v60 = vadd.s32 1, %v476_v7  ;;  %v478_v61 = vmul.u32 2, %v7025_v45  ;;  %v9579_v38 = vperm.slane %v561_v1, 0  ;;  %1881 = vmatpush.msrb.mxu3 %v7062_v17  ;;  %vm571_vm9 = vcmask 125952  }
 0x170   : > { %v1600_v53 = vadd.f32 %v1577_v59, %v1547_v34  ;;  %v485_v20 = vadd.s32 1, %v477_v49  ;;  %566 = vst.msk [vmem:[#allocation2 + $0x8] sm:$0xff] %vm564_vm7, %v13965_v18  ;;  %vm573_vm10 = vcmask 261120   ;;  %vm578_vm12 = vcmask 257024  }
 0x171   : > { %vm500_vm13 = vcmp.eq.s32.totalorder %v9489_v36, %v484_v60  ;;  %v486_v42 = vadd.s32 1, %v478_v61  ;;  %567 = vst.msk [vmem:[#allocation2 + $0x10] sm:$0xff] %vm564_vm7, %v13965_v18 }
 0x172   : > { %v1653_v51 = vadd.f32 %v1630_v33, %v1600_v53  ;;  %v9529_v50 = vsel %vm500_vm13, 1.0, %v13965_v18  ;;  %vm501_vm14 = vcmp.eq.s32.totalorder %v9489_v36, %v485_v20  ;;  %565 = vst.msk [vmem:[#allocation2] sm:$0xff] %vm564_vm7, %v13965_v18  ;;  %v7086_v20 = vld [vmem:[%s14275_s3 + $0x60] sm:$0xff] }
 0x173   : > { %14272 = vst [vmem:[#allocation13_spill] sm:$0xff] %v9529_v50  ;;  %v9535_v63 = vsel %vm501_vm14, 1.0, %v13965_v18  ;;  %vm502_vm15 = vcmp.eq.s32.totalorder %v9489_v36, %v486_v42 }
 0x174   : > { %1701 = vmatpush.msra.mxu0 %v1653_v51  ;;  %14273 = vst [vmem:[#allocation22_spill] sm:$0xff] %v9535_v63  ;;  %v9541_v4 = vsel %vm502_vm15, 1.0, %v13965_v18 }
 0x175   : > { %7044 = vmatmul.msk.f32.vlgmr.msra.gmra.mxu0 %vm1661_vm8, %v9496_v40  ;;  %14274 = vst [vmem:[#allocation12_spill] sm:$0xff] %v9541_v4 }
 0x176   : > { %568 = vst.msk [vmem:[#allocation2 + $0x18] sm:$0xff] %vm564_vm7, %v13965_v18  ;;  %2224 = vmatpush.msrb.mxu0 %v7105_v30 }
 0x177   : > { %569 = vst.msk [vmem:[#allocation2 + $0x20] sm:$0xff] %vm564_vm7, %v13965_v18 }
 0x178   : > { %570 = vst.msk [vmem:[#allocation2 + $0x28] sm:$0xff] %vm564_vm7, %v13965_v18  ;;  %2225 = vmatpush.msrb.mxu0 %v7104_v9 }
 0x179   : > { %v9563_v32 = vld [vmem:[#allocation2] sm:$0xff]  ;;  %14277 = vst [vmem:[#allocation14_spill] sm:$0xff] %v9579_v38 }
 0x17a   : > { %7058 = vmatmul.msk.f32.vlgmr.msra.gmra.mxu2 %vm564_vm7, %v9563_v32  ;;  %v1763_v43 = vrot.slane %v9563_v32, 1  ;;  %572 = vst.msk [vmem:[#allocation2 + $0x30] sm:$0xf] %vm571_vm9, %v13965_v18  ;;  %2384 = vmatpush.msra.mxu0 %v7129_v22  ;;  %v1902_v31 = vrot.slane %v9563_v32, 3  ;;  %v1955_v42 = vrot.slane %v9563_v32, 4 }
 0x17b   : > { %2145 = vmatpush.msra.mxu2 %v7093_v54  ;;  %v7111_v54 = vld [vmem:[%s14275_s3 + $0xa8] sm:$0xff] }
 0x17c   : > { %2385 = vmatpush.msra.mxu0 %v7128_v10 }
 0x17d   : > { %7045 = vmatmul.msk.f32.gmra.mxu0 %vm1661_vm8, %v9502_v29  ;;  %2146 = vmatpush.msra.mxu2 %v7092_v35  ;;  %v7110_v35 = vld [vmem:[%s14275_s3 + $0xa0] sm:$0xff] }
 0x181   : > { %v9667_v44 = vld [vmem:[#allocation2 + $0x30] sm:$0xf] }
 0x182   : > { %v2565_v57 = vrot.slane %v9667_v44, 2  ;;  %v2605_v8 = vrot.slane %v9667_v44, 3 }
 0x185   : > { %7046 = vmatmul.msk.f32.gmra.mxu0 %vm1661_vm8, %v9510_v28 }
 0x18d   : > { %7047 = vmatmul.msk.f32.gmra.mxu0 %vm1661_vm8, %v9517_v3 }
 0x195   : > { %7048 = vmatmul.msk.f32.gmra.mxu0 %vm1661_vm8, %v9523_v12 }
 0x19d   : > { %7049 = vmatmul.msk.f32.gmra.mxu0 %vm1661_vm8, %v9529_v50 }
 0x1a5   : > { %7050 = vmatmul.msk.f32.gmra.mxu0 %vm1661_vm8, %v9535_v63 }
 0x1ad   : > { %7051 = vmatmul.msk.f32.gmra.mxu0 %vm1661_vm8, %v9541_v4 }
 0x1f2   : > { %v1703_v55 = vpop.f32.mrf.mxu0 }
 0x1fa   : > { %v1706_v25 = vpop.f32.mrf.mxu0 }
 0x202   : > { %v1709_v2 = vpop.f32.mrf.mxu0 }
 0x20a   : > { %v1712_v27 = vpop.f32.mrf.mxu0 }
 0x212   : > { %v1715_v6 = vpop.f32.mrf.mxu0 }
 0x213   : > { %v1727_v21 = vmax.f32 %v1703_v55, %v1715_v6 }
 0x215   : > { %v1734_v19 = vadd.f32 %v9579_v38, %v1727_v21  ;;  %v2645_v21 = vrot.slane %v9667_v44, 4 }
 0x217   : > { %v1738_v13 = vmax.f32 %v1734_v19, 0.0  ;;  %v7081_v19 = vld [vmem:[%s14275_s3 + $0x58] sm:$0xff] }
 0x219   : > { %1742 = vst.msk [vmem:[#allocation2 + $0xa] sm:$0xff] %vm564_vm7, %v1738_v13  ;;  %v1849_v13 = vrot.slane %v9563_v32, 2 }
 0x21a   : > { %v1718_v62 = vpop.f32.mrf.mxu0 }
 0x21b   : > { %v1728_v24 = vmax.f32 %v1706_v25, %v1718_v62 }
 0x21d   : > { %v1735_v56 = vadd.f32 %v9579_v38, %v1728_v24 }
 0x21f   : > { %v1739_v14 = vmax.f32 %v1735_v56, 0.0 }
 0x220   : > { %v9603_v47 = vld [vmem:[#allocation2 + $0x8] sm:$0xff] }
 0x221   : > { %1743 = vst.msk [vmem:[#allocation2 + $0x12] sm:$0xff] %vm564_vm7, %v1739_v14  ;;  %7059 = vmatmul.msk.f32.gmra.mxu2 %vm564_vm7, %v9603_v47  ;;  %v1764_v41 = vrot.slane %v9603_v47, 1  ;;  %v1903_v60 = vrot.slane %v9603_v47, 3  ;;  %v1956_v55 = vrot.slane %v9603_v47, 4  ;;  %v1850_v24 = vrot.slane %v9603_v47, 2 }
 0x222   : > { %v1721_v34 = vpop.f32.mrf.mxu0 }
 0x223   : > { %v1729_v59 = vmax.f32 %v1709_v2, %v1721_v34  ;;  %v1765_v58 = vsel %vm674_vm0, %v1763_v43, %v1764_v41  ;;  %v1904_v61 = vsel %vm782_vm2, %v1902_v31, %v1903_v60  ;;  %v1957_v52 = vsel %vm836_vm3, %v1955_v42, %v1956_v55  ;;  %v7080_v34 = vld [vmem:[%s14275_s3 + $0x50] sm:$0xff] }
 0x224   : > { %7054 = vmatmul.msk.f32.vlgmr.msra.gmra.mxu1 %vm564_vm7, %v1765_v58  ;;  %v7152_v31 = vld [vmem:[%s14275_s3 + $0x110] sm:$0xff] }
 0x225   : > { %v1736_v53 = vadd.f32 %v9579_v38, %v1729_v59  ;;  %2092 = vmatpush.msra.mxu1 %v7087_v26  ;;  %v1851_v59 = vsel %vm728_vm1, %v1849_v13, %v1850_v24 }
 0x227   : > { %v1740_v33 = vmax.f32 %v1736_v53, 0.0  ;;  %2093 = vmatpush.msra.mxu1 %v7086_v20  ;;  %v2061_v20 = vrot.slane %v9563_v32, 6 }
 0x228   : > { %v9615_v51 = vld [vmem:[#allocation2 + $0x10] sm:$0xff] }
 0x229   : > { %1744 = vst.msk [vmem:[#allocation2 + $0x1a] sm:$0xff] %vm564_vm7, %v1740_v33  ;;  %7060 = vmatmul.msk.f32.gmra.mxu2 %vm564_vm7, %v9615_v51  ;;  %v1766_v11 = vrot.slane %v9615_v51, 1  ;;  %v1905_v25 = vrot.slane %v9615_v51, 3  ;;  %v1958_v6 = vrot.slane %v9615_v51, 4  ;;  %v2011_v10 = vrot.slane %v9615_v51, 5 }
 0x22a   : > { %v1724_v48 = vpop.f32.mrf.mxu0  ;;  %v2064_v13 = vrot.slane %v9615_v51, 6 }
 0x22b   : > { %v1730_v5 = vmax.f32 %v1712_v27, %v1724_v48  ;;  %v1767_v23 = vsel %vm674_vm0, %v1764_v41, %v1766_v11  ;;  %v9677_v9 = vsel %vm782_vm2, %v1903_v60, %v1905_v25  ;;  %v9709_v43 = vsel %vm836_vm3, %v1956_v55, %v1958_v6 }
 0x22c   : > { %7055 = vmatmul.msk.f32.gmra.mxu1 %vm564_vm7, %v1767_v23  ;;  %7106 = vmatmul.msk.f32.vlgmr.msrb.gmra.mxu0 %vm564_vm7, %v1767_v23  ;;  %v2009_v23 = vrot.slane %v9603_v47, 5 }
 0x22d   : > { %v1737_v0 = vadd.f32 %v9579_v38, %v1730_v5  ;;  %v7153_v5 = vld [vmem:[%s14275_s3 + $0x118] sm:$0xff] }
 0x22e   : > { %2543 = vmatpush.msrb.mxu0 %v7153_v5  ;;  %v2012_v60 = vsel %vm890_vm4, %v2009_v23, %v2011_v10  ;;  %v2008_v5 = vrot.slane %v9563_v32, 5 }
 0x22f   : > { %v1741_v7 = vmax.f32 %v1737_v0, 0.0 }
 0x230   : > { %v9634_v39 = vld [vmem:[#allocation2 + $0x18] sm:$0xff]  ;;  %2544 = vmatpush.msrb.mxu0 %v7152_v31 }
 0x231   : > { %1745 = vst.msk [vmem:[#allocation2 + $0x22] sm:$0xff] %vm564_vm7, %v1741_v7  ;;  %7061 = vmatmul.msk.f32.gmra.mxu2 %vm564_vm7, %v9634_v39  ;;  %v1768_v49 = vrot.slane %v9634_v39, 1  ;;  %v1907_v56 = vrot.slane %v9634_v39, 3  ;;  %v1960_v33 = vrot.slane %v9634_v39, 4  ;;  %v1854_v26 = vrot.slane %v9634_v39, 2 }
 0x232   : > { %v2013_v55 = vrot.slane %v9634_v39, 5  ;;  %v2066_v31 = vrot.slane %v9634_v39, 6 }
 0x233   : > { %v9647_v45 = vsel %vm674_vm0, %v1766_v11, %v1768_v49  ;;  %v9724_v58 = vsel %vm782_vm2, %v1905_v25, %v1907_v56  ;;  %v1852_v11 = vrot.slane %v9615_v51, 2  ;;  %v9740_v48 = vsel %vm836_vm3, %v1958_v6, %v1960_v33  ;;  %v7117_v6 = vld [vmem:[%s14275_s3 + $0xb8] sm:$0xff] }
 0x234   : > { %7056 = vmatmul.msk.f32.vlgmr.msra.gmra.mxu3 %vm564_vm7, %v9647_v45  ;;  %7070 = vmatmul.msk.f32.vlgmr.msrb.gmra.mxu1 %vm564_vm7, %v1904_v61  ;;  %v2062_v61 = vrot.slane %v9603_v47, 6 }
 0x235   : > { %7107 = vmatmul.msk.f32.gmra.mxu0 %vm564_vm7, %v9647_v45  ;;  %2039 = vmatpush.msra.mxu3 %v7081_v19  ;;  %v9750_v0 = vsel %vm728_vm1, %v1850_v24, %v1852_v11  ;;  %v9785_v25 = vsel %vm728_vm1, %v1852_v11, %v1854_v26  ;;  %v2117_v11 = vrot.slane %v9615_v51, 7 }
 0x236   : > { %2264 = vmatpush.msrb.mxu1 %v7111_v54  ;;  %v2067_v54 = vsel %vm944_vm5, %v2064_v13, %v2066_v31 }
 0x237   : > { %2040 = vmatpush.msra.mxu3 %v7080_v34 }
 0x238   : > { %v9665_v2 = vld [vmem:[#allocation2 + $0x20] sm:$0xff]  ;;  %v9671_v27 = vld [vmem:[#allocation2 + $0x28] sm:$0xff]  ;;  %2265 = vmatpush.msrb.mxu1 %v7110_v35  ;;  %v2119_v35 = vrot.slane %v9634_v39, 7 }
 0x239   : > { %7076 = vmatmul.msk.f32.vlgmr.msrb.gmra.mxu2 %vm564_vm7, %v1957_v52  ;;  %v1770_v30 = vrot.slane %v9665_v2, 1  ;;  %v2246_v37 = vrot.slane %v9671_v27, 2  ;;  %v2286_v15 = vrot.slane %v9671_v27, 3  ;;  %v2326_v62 = vrot.slane %v9671_v27, 4 }
 0x23a   : > { %v2206_v41 = vrot.slane %v9671_v27, 1  ;;  %v1909_v22 = vrot.slane %v9665_v2, 3  ;;  %v2063_v52 = vsel %vm944_vm5, %v2061_v20, %v2062_v61  ;;  %2304 = vmatpush.msrb.mxu2 %v7117_v6  ;;  %v1856_v19 = vrot.slane %v9665_v2, 2 }
 0x23b   : > { %v9674_v1 = vsel %vm674_vm0, %v1768_v49, %v1770_v30  ;;  %v9701_v46 = vsel %vm728_vm1, %v2246_v37, %v2565_v57  ;;  %v9706_v14 = vsel %vm782_vm2, %v2286_v15, %v2605_v8  ;;  %v9715_v17 = vsel %vm836_vm3, %v2326_v62, %v2645_v21  ;;  %v7116_v21 = vld [vmem:[%s14275_s3 + $0xb0] sm:$0xff] }
 0x23c   : > { %7057 = vmatmul.msk.f32.gmra.mxu3 %vm564_vm7, %v9674_v1  ;;  %7071 = vmatmul.msk.f32.gmra.mxu1 %vm564_vm7, %v9677_v9  ;;  %v9732_v53 = vsel %vm674_vm0, %v1770_v30, %v2206_v41  ;;  %v9755_v7 = vsel %vm782_vm2, %v1907_v56, %v1909_v22  ;;  %v1962_v49 = vrot.slane %v9665_v2, 4  ;;  %v2014_v30 = vsel %vm890_vm4, %v2011_v10, %v2013_v55  ;;  %v7099_v10 = vld [vmem:[%s14275_s3 + $0x88] sm:$0xff] }
 0x23d   : > { %7108 = vmatmul.msk.f32.gmra.mxu0 %vm564_vm7, %v9674_v1  ;;  %v2114_v57 = vrot.slane %v9563_v32, 7  ;;  %v2115_v8 = vrot.slane %v9603_v47, 7  ;;  %v2015_v56 = vrot.slane %v9665_v2, 5  ;;  %2305 = vmatpush.msrb.mxu2 %v7116_v21  ;;  %v9809_v34 = vsel %vm728_vm1, %v1854_v26, %v1856_v19  ;;  %v7135_v21 = vld [vmem:[%s14275_s3 + $0xe8] sm:$0xff] }
 0x23e   : > { %v9773_v42 = vsel %vm836_vm3, %v1960_v33, %v1962_v49  ;;  %v2366_v20 = vrot.slane %v9671_v27, 5 }
 0x23f   : > { %v2116_v24 = vsel %vm998_vm6, %v2114_v57, %v2115_v8  ;;  %v2016_v33 = vsel %vm890_vm4, %v2013_v55, %v2015_v56  ;;  %v2118_v26 = vsel %vm998_vm6, %v2115_v8, %v2117_v11  ;;  %v2010_v55 = vsel %vm890_vm4, %v2008_v5, %v2009_v23 }
 0x240   : > { %v2367_v32 = vsel %vm890_vm4, %v2015_v56, %v2366_v20  ;;  %v2120_v57 = vsel %vm998_vm6, %v2117_v11, %v2119_v35  ;;  %v2121_v8 = vrot.slane %v9665_v2, 7 }
 0x241   : > { %7077 = vmatmul.msk.f32.gmra.mxu2 %vm564_vm7, %v9709_v43 }
 0x242   : > { %v2122_v6 = vsel %vm998_vm6, %v2119_v35, %v2121_v8 }
 0x244   : > { %7064 = vmatmul.msk.f32.vlgmr.msrb.gmra.mxu3 %vm564_vm7, %v1851_v59  ;;  %7072 = vmatmul.msk.f32.gmra.mxu1 %vm564_vm7, %v9724_v58  ;;  %v9812_v59 = vsel %vm944_vm5, %v2062_v61, %v2064_v13  ;;  %v7098_v61 = vld [vmem:[%s14275_s3 + $0x80] sm:$0xff]  ;;  %v7140_v13 = vld [vmem:[%s14275_s3 + $0xf0] sm:$0xff] }
 0x245   : > { %7109 = vmatmul.msk.f32.gmra.mxu0 %vm564_vm7, %v9732_v53  ;;  %2183 = vmatpush.msrb.mxu3 %v7099_v10 }
 0x247   : > { %2184 = vmatpush.msrb.mxu3 %v7098_v61 }
 0x249   : > { %7078 = vmatmul.msk.f32.gmra.mxu2 %vm564_vm7, %v9740_v48 }
 0x24c   : > { %7065 = vmatmul.msk.f32.gmra.mxu3 %vm564_vm7, %v9750_v0  ;;  %7073 = vmatmul.msk.f32.gmra.mxu1 %vm564_vm7, %v9755_v7 }
 0x24d   : > { %7130 = vmatmul.msk.f32.vlgmr.msra.gmra.mxu0 %vm564_vm7, %v2012_v60 }
 0x251   : > { %7079 = vmatmul.msk.f32.gmra.mxu2 %vm564_vm7, %v9773_v42 }
 0x254   : > { %7066 = vmatmul.msk.f32.gmra.mxu3 %vm564_vm7, %v9785_v25  ;;  %7088 = vmatmul.msk.f32.vlgmr.msra.gmra.mxu1 %vm564_vm7, %v2063_v52  ;;  %v2068_v52 = vrot.slane %v9665_v2, 6 }
 0x255   : > { %7131 = vmatmul.msk.f32.gmra.mxu0 %vm564_vm7, %v2014_v30  ;;  %2424 = vmatpush.msra.mxu1 %v7135_v21 }
 0x256   : > { %v2069_v23 = vsel %vm944_vm5, %v2066_v31, %v2068_v52 }
 0x259   : > { %7094 = vmatmul.msk.f32.vlgmr.msra.gmra.mxu2 %vm564_vm7, %v2116_v24  ;;  %v7146_v24 = vld [vmem:[%s14275_s3 + $0x100] sm:$0xff] }
 0x25c   : > { %7067 = vmatmul.msk.f32.gmra.mxu3 %vm564_vm7, %v9809_v34  ;;  %7089 = vmatmul.msk.f32.gmra.mxu1 %vm564_vm7, %v9812_v59 }
 0x25d   : > { %7132 = vmatmul.msk.f32.gmra.mxu0 %vm564_vm7, %v2016_v33 }
 0x261   : > { %7095 = vmatmul.msk.f32.gmra.mxu2 %vm564_vm7, %v2118_v26 }
 0x264   : > { %7082 = vmatmul.msk.f32.vlgmr.msra.gmra.mxu3 %vm564_vm7, %v2010_v55  ;;  %7090 = vmatmul.msk.f32.gmra.mxu1 %vm564_vm7, %v2067_v54  ;;  %v2327_v55 = vsel %vm836_vm3, %v1962_v49, %v2326_v62  ;;  %v7170_v62 = vld [vmem:[%s14275_s3 + $0x140] sm:$0xff] }
 0x265   : > { %7133 = vmatmul.msk.f32.gmra.mxu0 %vm564_vm7, %v2367_v32 }
 0x269   : > { %7096 = vmatmul.msk.f32.gmra.mxu2 %vm564_vm7, %v2120_v57 }
 0x26c   : > { %7083 = vmatmul.msk.f32.gmra.mxu3 %vm564_vm7, %v2012_v60  ;;  %7091 = vmatmul.msk.f32.gmra.mxu1 %vm564_vm7, %v2069_v23  ;;  %v7134_v60 = vld [vmem:[%s14275_s3 + $0xe0] sm:$0xff] }
 0x26d   : > { %7154 = vmatmul.msk.f32.vlgmr.msrb.gmra.mxu0 %vm564_vm7, %v9647_v45  ;;  %v7141_v45 = vld [vmem:[%s14275_s3 + $0xf8] sm:$0xff]  ;;  %2425 = vmatpush.msra.mxu1 %v7134_v60 }
 0x26e   : > { %2464 = vmatpush.msra.mxu2 %v7141_v45 }
 0x270   : > { %2465 = vmatpush.msra.mxu2 %v7140_v13 }
 0x271   : > { %7097 = vmatmul.msk.f32.gmra.mxu2 %vm564_vm7, %v2122_v6 }
 0x274   : > { %7084 = vmatmul.msk.f32.gmra.mxu3 %vm564_vm7, %v2014_v30  ;;  %7112 = vmatmul.msk.f32.vlgmr.msrb.gmra.mxu1 %vm564_vm7, %v9750_v0  ;;  %v7123_v0 = vld [vmem:[%s14275_s3 + $0xc8] sm:$0xff]  ;;  %v9928_v30 = vpop.f32.mrf.mxu2 }
 0x275   : > { %7155 = vmatmul.msk.f32.gmra.mxu0 %vm564_vm7, %v9674_v1  ;;  %2344 = vmatpush.msra.mxu3 %v7123_v0  ;;  %v2525_v1 = vrot.slane %v9667_v44, 1  ;;  %v2247_v44 = vsel %vm728_vm1, %v1856_v19, %v2246_v37  ;;  %v7158_v37 = vld [vmem:[%s14275_s3 + $0x120] sm:$0xff]  ;;  %v7147_v19 = vld [vmem:[%s14275_s3 + $0x108] sm:$0xff] }
 0x279   : > { %7118 = vmatmul.msk.f32.vlgmr.msrb.gmra.mxu2 %vm564_vm7, %v9677_v9  ;;  %v7122_v9 = vld [vmem:[%s14275_s3 + $0xc0] sm:$0xff] }
 0x27a   : > { %2345 = vmatpush.msra.mxu3 %v7122_v9 }
 0x27c   : > { %7085 = vmatmul.msk.f32.gmra.mxu3 %vm564_vm7, %v2016_v33  ;;  %7113 = vmatmul.msk.f32.gmra.mxu1 %vm564_vm7, %v9785_v25  ;;  %v2406_v33 = vrot.slane %v9671_v27, 6 }
 0x27d   : > { %7156 = vmatmul.msk.f32.gmra.mxu0 %vm564_vm7, %v9732_v53  ;;  %v2526_v53 = vsel %vm674_vm0, %v2206_v41, %v2525_v1  ;;  %v7159_v41 = vld [vmem:[%s14275_s3 + $0x128] sm:$0xff] }
 0x27e   : > { %2583 = vmatpush.msrb.mxu1 %v7159_v41  ;;  %v2407_v11 = vsel %vm944_vm5, %v2068_v52, %v2406_v33 }
 0x280   : > { %2584 = vmatpush.msrb.mxu1 %v7158_v37 }
 0x281   : > { %7119 = vmatmul.msk.f32.gmra.mxu2 %vm564_vm7, %v9724_v58 }
 0x284   : > { %7100 = vmatmul.msk.f32.vlgmr.msrb.gmra.mxu3 %vm564_vm7, %v9603_v47  ;;  %7114 = vmatmul.msk.f32.gmra.mxu1 %vm564_vm7, %v9809_v34  ;;  %v2287_v47 = vsel %vm782_vm2, %v1909_v22, %v2286_v15  ;;  %v7165_v15 = vld [vmem:[%s14275_s3 + $0x138] sm:$0xff]  ;;  %v7164_v22 = vld [vmem:[%s14275_s3 + $0x130] sm:$0xff] }
 0x285   : > { %7157 = vmatmul.msk.f32.gmra.mxu0 %vm564_vm7, %v2526_v53  ;;  %2623 = vmatpush.msrb.mxu2 %v7165_v15 }
 0x286   : > { %2502 = vmatpush.msrb.mxu3 %v7147_v19 }
 0x287   : > { %2624 = vmatpush.msrb.mxu2 %v7164_v22 }
 0x288   : > { %2503 = vmatpush.msrb.mxu3 %v7146_v24 }
 0x289   : > { %7120 = vmatmul.msk.f32.gmra.mxu2 %vm564_vm7, %v9755_v7 }
 0x28c   : > { %7101 = vmatmul.msk.f32.gmra.mxu3 %vm564_vm7, %v9615_v51  ;;  %7115 = vmatmul.msk.f32.gmra.mxu1 %vm564_vm7, %v2247_v44 }
 0x291   : > { %7121 = vmatmul.msk.f32.gmra.mxu2 %vm564_vm7, %v2287_v47 }
 0x294   : > { %7102 = vmatmul.msk.f32.gmra.mxu3 %vm564_vm7, %v9634_v39  ;;  %7136 = vmatmul.msk.f32.vlgmr.msra.gmra.mxu1 %vm564_vm7, %v9812_v59 }
 0x299   : > { %7142 = vmatmul.msk.f32.vlgmr.msra.gmra.mxu2 %vm564_vm7, %v2118_v26 }
 0x29c   : > { %7103 = vmatmul.msk.f32.gmra.mxu3 %vm564_vm7, %v9665_v2  ;;  %7137 = vmatmul.msk.f32.gmra.mxu1 %vm564_vm7, %v2067_v54 }
 0x2a1   : > { %7143 = vmatmul.msk.f32.gmra.mxu2 %vm564_vm7, %v2120_v57  ;;  %v9945_v59 = vpop.f32.mrf.mxu1 }
 0x2a4   : > { %v9940_v56 = vpop.f32.mrf.mxu2  ;;  %7124 = vmatmul.msk.f32.vlgmr.msra.gmra.mxu3 %vm564_vm7, %v9709_v43  ;;  %7138 = vmatmul.msk.f32.gmra.mxu1 %vm564_vm7, %v2069_v23  ;;  %v2446_v43 = vrot.slane %v9671_v27, 7 }
 0x2a6   : > { %v2447_v5 = vsel %vm998_vm6, %v2121_v8, %v2446_v43 }
 0x2a9   : > { %7144 = vmatmul.msk.f32.gmra.mxu2 %vm564_vm7, %v2122_v6  ;;  %v9961_v31 = vpop.f32.mrf.mxu1  ;;  %v10039_v1 = vpop.f32.mrf.mxu0 }
 0x2aa   : > { %v1838_v16 = vadd.f32 %v9940_v56, %v9961_v31 }
 0x2ac   : > { %v9952_v10 = vpop.f32.mrf.mxu2  ;;  %7125 = vmatmul.msk.f32.gmra.mxu3 %vm564_vm7, %v9740_v48  ;;  %7139 = vmatmul.msk.f32.gmra.mxu1 %vm564_vm7, %v2407_v11 }
 0x2b1   : > { %7145 = vmatmul.msk.f32.gmra.mxu2 %vm564_vm7, %v2447_v5  ;;  %v9974_v61 = vpop.f32.mrf.mxu1 }
 0x2b4   : > { %7126 = vmatmul.msk.f32.gmra.mxu3 %vm564_vm7, %v9773_v42  ;;  %7160 = vmatmul.msk.f32.vlgmr.msrb.gmra.mxu1 %vm564_vm7, %v9785_v25  ;;  %v9968_v26 = vpop.f32.mrf.mxu2  ;;  %v7171_v25 = vld [vmem:[%s14275_s3 + $0x148] sm:$0xff] }
 0x2b5   : > { %2663 = vmatpush.msra.mxu3 %v7171_v25 }
 0x2b7   : > { %v9970_v20 = vpop.f32.mrf.mxu3  ;;  %2664 = vmatpush.msra.mxu3 %v7170_v62 }
 0x2b8   : > { %v1841_v36 = vadd.f32 %v9952_v10, %v9970_v20 }
 0x2b9   : > { %7166 = vmatmul.msk.f32.vlgmr.msrb.gmra.mxu2 %vm564_vm7, %v9724_v58  ;;  %v9999_v49 = vpop.f32.mrf.mxu1 }
 0x2bc   : > { %7127 = vmatmul.msk.f32.gmra.mxu3 %vm564_vm7, %v2327_v55  ;;  %7161 = vmatmul.msk.f32.gmra.mxu1 %vm564_vm7, %v9809_v34  ;;  %v9987_v54 = vpop.f32.mrf.mxu2 }
 0x2bf   : > { %v9989_v58 = vpop.f32.mrf.mxu3 }
 0x2c0   : > { %v1844_v3 = vadd.f32 %v9968_v26, %v9989_v58 }
 0x2c1   : > { %7167 = vmatmul.msk.f32.gmra.mxu2 %vm564_vm7, %v9755_v7  ;;  %v10010_v7 = vpop.f32.mrf.mxu1 }
 0x2c4   : > { %7148 = vmatmul.msk.f32.vlgmr.msrb.gmra.mxu3 %vm564_vm7, %v9615_v51  ;;  %7162 = vmatmul.msk.f32.gmra.mxu1 %vm564_vm7, %v2247_v44  ;;  %v10003_v32 = vpop.f32.mrf.mxu2 }
 0x2c7   : > { %v10001_v34 = vpop.f32.mrf.mxu3 }
 0x2c9   : > { %7168 = vmatmul.msk.f32.gmra.mxu2 %vm564_vm7, %v2287_v47  ;;  %v1945_v57 = vpop.f32.mrf.mxu1  ;;  %v10047_v47 = vpop.f32.mrf.mxu0 }
 0x2cc   : > { %7149 = vmatmul.msk.f32.gmra.mxu3 %vm564_vm7, %v9634_v39  ;;  %7163 = vmatmul.msk.f32.gmra.mxu1 %vm564_vm7, %v9701_v46  ;;  %v10014_v51 = vpop.f32.mrf.mxu2 }
 0x2cf   : > { %v1886_v35 = vpop.f32.mrf.mxu3 }
 0x2d1   : > { %7169 = vmatmul.msk.f32.gmra.mxu2 %vm564_vm7, %v9706_v14  ;;  %v10020_v8 = vpop.f32.mrf.mxu1 }
 0x2d4   : > { %7150 = vmatmul.msk.f32.gmra.mxu3 %vm564_vm7, %v9665_v2  ;;  %v1998_v39 = vpop.f32.mrf.mxu2 }
 0x2d7   : > { %v1889_v52 = vpop.f32.mrf.mxu3 }
 0x2d8   : > { %v1897_v40 = vadd.f32 %v1889_v52, %v1841_v36 }
 0x2d9   : > { %v10030_v2 = vpop.f32.mrf.mxu1 }
 0x2da   : > { %v1950_v10 = vadd.f32 %v10010_v7, %v1897_v40 }
 0x2dc   : > { %7151 = vmatmul.msk.f32.gmra.mxu3 %vm564_vm7, %v9671_v27  ;;  %v10024_v46 = vpop.f32.mrf.mxu2  ;;  %v2003_v56 = vadd.f32 %v10014_v51, %v1950_v10 }
 0x2df   : > { %v1892_v23 = vpop.f32.mrf.mxu3 }
 0x2e0   : > { %v1898_v12 = vadd.f32 %v1892_v23, %v1844_v3 }
 0x2e1   : > { %v2101_v27 = vpop.f32.mrf.mxu1 }
 0x2e4   : > { %7172 = vmatmul.msk.f32.vlgmr.msra.gmra.mxu3 %vm564_vm7, %v9740_v48  ;;  %v10032_v21 = vpop.f32.mrf.mxu2 }
 0x2e7   : > { %v10026_v14 = vpop.f32.mrf.mxu3 }
 0x2e9   : > { %v2104_v13 = vpop.f32.mrf.mxu1 }
 0x2ec   : > { %7173 = vmatmul.msk.f32.gmra.mxu3 %vm564_vm7, %v9773_v42  ;;  %v10035_v45 = vpop.f32.mrf.mxu2 }
 0x2ef   : > { %v2045_v6 = vpop.f32.mrf.mxu3 }
 0x2f1   : > { %v10043_v9 = vpop.f32.mrf.mxu1 }
 0x2f4   : > { %7174 = vmatmul.msk.f32.gmra.mxu3 %vm564_vm7, %v2327_v55  ;;  %v2157_v0 = vpop.f32.mrf.mxu2 }
 0x2f7   : > { %v2048_v60 = vpop.f32.mrf.mxu3 }
 0x2f9   : > { %v10049_v41 = vpop.f32.mrf.mxu1 }
 0x2fc   : > { %7175 = vmatmul.msk.f32.gmra.mxu3 %vm564_vm7, %v9715_v17  ;;  %v10045_v53 = vpop.f32.mrf.mxu2  ;;  %v2233_v17 = vpop.f32.mrf.mxu0 }
 0x2ff   : > { %v2051_v48 = vpop.f32.mrf.mxu3 }
 0x301   : > { %v10053_v22 = vpop.f32.mrf.mxu1 }
 0x304   : > { %v10051_v15 = vpop.f32.mrf.mxu2  ;;  %v2236_v33 = vpop.f32.mrf.mxu0 }
 0x307   : > { %v10041_v42 = vpop.f32.mrf.mxu3 }
 0x309   : > { %v2276_v43 = vpop.f32.mrf.mxu1 }
 0x30c   : > { %v10055_v24 = vpop.f32.mrf.mxu2  ;;  %v10061_v55 = vpop.f32.mrf.mxu0 }
 0x30d   : > { %14278 = vst [vmem:[#allocation23_spill] sm:$0xff] %v10061_v55 }
 0x30f   : > { %v2189_v44 = vpop.f32.mrf.mxu3 }
 0x311   : > { %v10065_v62 = vpop.f32.mrf.mxu1 }
 0x312   : > { %14279 = vst [vmem:[#allocation7_spill] sm:$0xff] %v10065_v62  ;;  %v1896_v62 = vadd.f32 %v1886_v35, %v1838_v16 }
 0x314   : > { %v10059_v5 = vpop.f32.mrf.mxu2  ;;  %v10071_v4 = vpop.f32.mrf.mxu0  ;;  %v1949_v3 = vadd.f32 %v9999_v49, %v1896_v62 }
 0x317   : > { %v2192_v37 = vpop.f32.mrf.mxu3 }
 0x319   : > { %v10073_v63 = vpop.f32.mrf.mxu1 }
 0x31a   : > { %14281 = vst [vmem:[#allocation21_spill] sm:$0xff] %v10073_v63  ;;  %v1951_v63 = vadd.f32 %v1945_v57, %v1898_v12  ;;  %v2002_v12 = vadd.f32 %v10003_v32, %v1949_v3 }
 0x31c   : > { %v10067_v18 = vpop.f32.mrf.mxu2  ;;  %v10081_v29 = vpop.f32.mrf.mxu0  ;;  %v2004_v20 = vadd.f32 %v1998_v39, %v1951_v63 }
 0x31d   : > { %14280 = vst [vmem:[#allocation15_spill] sm:$0xff] %v10067_v18  ;;  %v1835_v18 = vadd.f32 %v9928_v30, %v9945_v59  ;;  %v2056_v59 = vadd.f32 %v2048_v60, %v2003_v56 }
 0x31e   : > { %v2057_v30 = vadd.f32 %v2051_v48, %v2004_v20 }
 0x31f   : > { %v2195_v19 = vpop.f32.mrf.mxu3  ;;  %v1895_v58 = vadd.f32 %v10001_v34, %v1835_v18  ;;  %v2055_v34 = vadd.f32 %v2045_v6, %v2002_v12  ;;  %v2109_v49 = vadd.f32 %v2101_v27, %v2056_v59  ;;  %v14285_v12 = vld [vmem:[#allocation7_spill] sm:$0xff] }
 0x320   : > { %v2110_v40 = vadd.f32 %v2104_v13, %v2057_v30 }
 0x321   : > { %v10087_v55 = vpop.f32.mrf.mxu1  ;;  %v1948_v36 = vadd.f32 %v9974_v61, %v1895_v58  ;;  %v2108_v35 = vadd.f32 %v10030_v2, %v2055_v34  ;;  %v2162_v57 = vadd.f32 %v10035_v45, %v2109_v49 }
 0x322   : > { %v2163_v61 = vadd.f32 %v2157_v0, %v2110_v40 }
 0x323   : > { %v2001_v18 = vadd.f32 %v9987_v54, %v1948_v36  ;;  %v2161_v48 = vadd.f32 %v10032_v21, %v2108_v35  ;;  %v2200_v54 = vadd.f32 %v2192_v37, %v2162_v57  ;;  %v14282_v36 = vmov 0.0  }
 0x324   : > { %v10077_v28 = vpop.f32.mrf.mxu2  ;;  %v2396_v16 = vpop.f32.mrf.mxu0  ;;  %v2201_v32 = vadd.f32 %v2195_v19, %v2163_v61  ;;  %574 = vst.msk [vmem:[#allocation3] sm:$0xff] %vm573_vm10, %v14282_v36  ;;  %v14286_v49 = vld [vmem:[#allocation15_spill] sm:$0xff] }
 0x325   : > { %v2054_v63 = vadd.f32 %v10026_v14, %v2001_v18  ;;  %v2199_v13 = vadd.f32 %v2189_v44, %v2161_v48  ;;  %v2241_v2 = vadd.f32 %v2233_v17, %v2200_v54  ;;  %575 = vst.msk [vmem:[#allocation3 + $0x8] sm:$0xff] %vm573_vm10, %v14282_v36 }
 0x326   : > { %v2242_v62 = vadd.f32 %v2236_v33, %v2201_v32  ;;  %576 = vst.msk [vmem:[#allocation3 + $0x10] sm:$0xff] %vm573_vm10, %v14282_v36 }
 0x327   : > { %v10057_v11 = vpop.f32.mrf.mxu3  ;;  %v2107_v51 = vadd.f32 %v10020_v8, %v2054_v63  ;;  %v2240_v0 = vadd.f32 %v10047_v47, %v2199_v13  ;;  %v2281_v19 = vadd.f32 %v10053_v22, %v2241_v2  ;;  %577 = vst.msk [vmem:[#allocation3 + $0x18] sm:$0xff] %vm573_vm10, %v14282_v36 }
 0x328   : > { %v2282_v58 = vadd.f32 %v2276_v43, %v2242_v62 }
 0x329   : > { %v2436_v7 = vpop.f32.mrf.mxu1  ;;  %v2160_v6 = vadd.f32 %v10024_v46, %v2107_v51  ;;  %v2280_v21 = vadd.f32 %v10049_v41, %v2240_v0  ;;  %v2321_v37 = vadd.f32 %v10055_v24, %v2281_v19  ;;  %v14283_v24 = vld [vmem:[#allocation23_spill] sm:$0xff] }
 0x32a   : > { %v2322_v46 = vadd.f32 %v10059_v5, %v2282_v58  ;;  %v14287_v19 = vld [vmem:[#allocation19_spill] sm:$0xff] }
 0x32b   : > { %v2198_v27 = vadd.f32 %v10041_v42, %v2160_v6  ;;  %v2320_v47 = vadd.f32 %v10051_v15, %v2280_v21  ;;  %v14289_v21 = vld [vmem:[#allocation9_spill] sm:$0xff] }
 0x32c   : > { %v10094_v23 = vpop.f32.mrf.mxu2  ;;  %v2546_v39 = vpop.f32.mrf.mxu0 }
 0x32d   : > { %v2239_v45 = vadd.f32 %v10039_v1, %v2198_v27 }
 0x32f   : > { %v10063_v25 = vpop.f32.mrf.mxu3  ;;  %v2279_v44 = vadd.f32 %v10043_v9, %v2239_v45 }
 0x330   : > { %v2360_v22 = vadd.f32 %v10063_v25, %v2320_v47 }
 0x331   : > { %v2586_v14 = vpop.f32.mrf.mxu1  ;;  %v2319_v1 = vadd.f32 %v10045_v53, %v2279_v44  ;;  %v14290_v44 = vld [vmem:[#allocation8_spill] sm:$0xff] }
 0x333   : > { %v2359_v9 = vadd.f32 %v10057_v11, %v2319_v1  ;;  %v10169_v1 = vld [vmem:[%s14088_s1 + $0x2] ss:$0 sm:$0xff] }
 0x334   : > { %v2476_v52 = vpop.f32.mrf.mxu2  ;;  %v2549_v3 = vpop.f32.mrf.mxu0 }
 0x335   : > { %v2399_v5 = vadd.f32 %v14283_v24, %v2359_v9  ;;  %v10185_v9 = vld [vmem:[%s14088_s1 + $0x4] ss:$0 sm:$0xff]  ;;  %v10205_v24 = vld [vmem:[%s14088_s1 + $0x7] ss:$0 sm:$0xff] }
 0x337   : > { %v10069_v38 = vpop.f32.mrf.mxu3  ;;  %v2439_v59 = vadd.f32 %v14285_v12, %v2399_v5 }
 0x338   : > { %v2361_v33 = vadd.f32 %v10069_v38, %v2321_v37  ;;  %v2400_v38 = vadd.f32 %v10071_v4, %v2360_v22  ;;  %v10147_v37 = vpop.permute.xlu2 %3569 }
 0x339   : > { %v2589_v17 = vpop.f32.mrf.mxu1  ;;  %v2479_v35 = vadd.f32 %v14286_v49, %v2439_v59 }
 0x33c   : > { %v2626_v8 = vpop.f32.mrf.mxu2  ;;  %v2552_v15 = vpop.f32.mrf.mxu0 }
 0x33f   : > { %v2356_v50 = vpop.f32.mrf.mxu3 }
 0x340   : > { %v2362_v42 = vadd.f32 %v2356_v50, %v2322_v46  ;;  %v2401_v50 = vadd.f32 %v10081_v29, %v2361_v33  ;;  %v14284_v29 = vld [vmem:[#allocation21_spill] sm:$0xff]  ;;  %v10157_v47 = vpop.permute.xlu2 %3559  ;;  %v10162_v33 = vld [vmem:[%s14088_s1 + $0x1] ss:$0 sm:$0xff] }
 0x341   : > { %v2592_v11 = vpop.f32.mrf.mxu1  ;;  %v2440_v30 = vadd.f32 %v14284_v29, %v2400_v38  ;;  %14294 = vst [vmem:[#allocation23_spill] sm:$0xff] %v10157_v47  ;;  %v10173_v22 = vmul.f32 %v10162_v33, %v10147_v37 }
 0x342   : > { %v2402_v20 = vadd.f32 %v2396_v16, %v2362_v42  ;;  %v2441_v25 = vadd.f32 %v10087_v55, %v2401_v50  ;;  %14295 = vst [vmem:[#allocation21_spill] sm:$0xff] %v10162_v33  ;;  %v10190_v50 = vld [vmem:[%s14088_s1 + $0x5] ss:$0 sm:$0xff] }
 0x343   : > { %v2480_v4 = vadd.f32 %v10077_v28, %v2440_v30  ;;  %v10229_v12 = vmul.f32 %v10190_v50, %v10147_v37 }
 0x344   : > { %v2629_v41 = vpop.f32.mrf.mxu2  ;;  %v2442_v53 = vadd.f32 %v2436_v7, %v2402_v20  ;;  %v2481_v18 = vadd.f32 %v10094_v23, %v2441_v25  ;;  %v2555_v63 = vpop.f32.mrf.mxu0  ;;  %v13984_v25 = vrot.slane %v10173_v22, 1 }
 0x345   : > { %v10175_v20 = vpop.permute.xlu1 %3564 }
 0x346   : > { %v2482_v16 = vadd.f32 %v2476_v52, %v2442_v53  ;;  %14296 = vst [vmem:[#allocation7_spill] sm:$0xff] %v10175_v20  ;;  %v10200_v53 = vld [vmem:[%s14088_s1] ss:$0 sm:$0xff] }
 0x347   : > { %v10089_v26 = vpop.f32.mrf.mxu3  ;;  %14297 = vst [vmem:[#allocation15_spill] sm:$0xff] %v10200_v53 }
 0x348   : > { %v2517_v57 = vadd.f32 %v10089_v26, %v2479_v35  ;;  %v10218_v29 = vpop.permute.xlu2 %3544 }
 0x349   : > { %v2595_v52 = vpop.f32.mrf.mxu1  ;;  %v10250_v49 = vmul.f32 %v10169_v1, %v10218_v29 }
 0x34a   : > { %v2558_v6 = vadd.f32 %v2546_v39, %v2517_v57  ;;  %v14288_v39 = vld [vmem:[#allocation17_spill] sm:$0xff] }
 0x34b   : > { %14298 = vst [vmem:[#allocation17_spill] sm:$0xff] %v10218_v29 }
 0x34c   : > { %v2632_v40 = vpop.f32.mrf.mxu2 }
 0x34f   : > { %v10099_v31 = vpop.f32.mrf.mxu3 }
 0x350   : > { %v2518_v61 = vadd.f32 %v10099_v31, %v2480_v4 }
 0x352   : > { %v2559_v48 = vadd.f32 %v2549_v3, %v2518_v61  ;;  %v7036_v3 = vadd.s32 4294967280, %v14288_v39 }
 0x354   : > { %v2635_v13 = vpop.f32.mrf.mxu2  ;;  %v2599_v62 = vadd.f32 %v2589_v17, %v2559_v48  ;;  %v10155_v17 = vpop.permute.xlu0 %3592 }
 0x355   : > { %14293 = vst [vmem:[#allocation16_spill] sm:$0xff] %v10155_v17  ;;  %v3657_v5 = vmul.f32 %v10169_v1, %v10155_v17  ;;  %v10262_v48 = vpop.permute.xlu1 %3549 }
 0x356   : > { %v2639_v58 = vadd.f32 %v2629_v41, %v2599_v62  ;;  %v10180_v41 = vld [vmem:[%s14088_s1 + $0x3] ss:$0 sm:$0xff]  ;;  %14300 = vst [vmem:[#allocation24_spill] sm:$0xff] %v10262_v48  ;;  %v10280_v62 = vld [vmem:[%s14088_s1 + $0x9] ss:$0 sm:$0xff] }
 0x357   : > { %v2511_v60 = vpop.f32.mrf.mxu3  ;;  %v3710_v4 = vmul.f32 %v10180_v41, %v10155_v17  ;;  %v10304_v39 = vmul.f32 %v10280_v62, %v10218_v29 }
 0x358   : > { %v2519_v7 = vadd.f32 %v2511_v60, %v2481_v18  ;;  %v2598_v60 = vadd.f32 %v2586_v14, %v2558_v6  ;;  %v528_v14 = vmul.u32 2, %v7036_v3  ;;  %v3580_v18 = vmul.f32 %v10200_v53, %v10147_v37 }
 0x359   : > { %v10270_v6 = vmul.f32 %v10185_v9, %v10218_v29  ;;  %14306 = vst [vmem:[#allocation30_spill] sm:$0xff] %v10304_v39  ;;  %v10308_v3 = vmul.f32 %v10162_v33, %v10175_v20 }
 0x35a   : > { %v2560_v32 = vadd.f32 %v2552_v15, %v2519_v7  ;;  %v2638_v31 = vadd.f32 %v2626_v8, %v2598_v60  ;;  %v531_v46 = vadd.s32 1, %v528_v14  ;;  %v14291_v8 = vld [vmem:[#allocation18_spill] sm:$0xff]  ;;  %v10195_v15 = vld [vmem:[%s14088_s1 + $0x6] ss:$0 sm:$0xff]  ;;  %v3763_v60 = vmul.f32 %v10185_v9, %v10155_v17 }
 0x35b   : > { %v10233_v59 = vmul.f32 %v10195_v15, %v10147_v37  ;;  %14301 = vst [vmem:[#allocation25_spill] sm:$0xff] %v10270_v6  ;;  %v10312_v14 = vmul.f32 %v10169_v1, %v10262_v48 }
 0x35c   : > { %v2600_v23 = vadd.f32 %v2592_v11, %v2560_v32  ;;  %vm539_vm11 = vcmp.eq.s32.totalorder %v14291_v8, %v531_v46  ;;  %v10212_v11 = vmul.f32 %v10169_v1, %v10147_v37 }
 0x35d   : > { %v10151_v42 = vsel %vm539_vm11, 1.0, %v14282_v36  ;;  %14307 = vst [vmem:[#allocation31_spill] sm:$0xff] %v10312_v14 }
 0x35e   : > { %v2640_v2 = vadd.f32 %v2632_v40, %v2600_v23  ;;  %14292 = vst [vmem:[#allocation20_spill] sm:$0xff] %v10151_v42  ;;  %v3682_v40 = vrot.slane %v3657_v5, 2  ;;  %v13983_v7 = vrot.slane %v10212_v11, 2  ;;  %v10274_v23 = vmul.f32 %v10190_v50, %v10218_v29 }
 0x35f   : > { %v2514_v10 = vpop.f32.mrf.mxu3  ;;  %v3788_v5 = vrot.slane %v3763_v60, 4  ;;  %v10339_v60 = vmul.f32 %v10280_v62, %v10155_v17 }
 0x360   : > { %v2520_v34 = vadd.f32 %v2514_v10, %v2482_v16  ;;  %v10225_v16 = vmul.f32 %v10185_v9, %v10147_v37  ;;  %14302 = vst [vmem:[#allocation26_spill] sm:$0xff] %v10274_v23 }
 0x362   : > { %v2561_v55 = vadd.f32 %v2555_v63, %v2520_v34  ;;  %v10239_v34 = vmul.f32 %v10205_v24, %v10147_v37  ;;  %v10246_v63 = vmul.f32 %v10162_v33, %v10218_v29  ;;  %v13986_v57 = vrot.slane %v10225_v16, 4 }
 0x364   : > { %v2601_v54 = vadd.f32 %v2595_v52, %v2561_v55  ;;  %v10253_v55 = vpop.permute.xlu0 %3554 }
 0x365   : > { %14299 = vst [vmem:[#allocation18_spill] sm:$0xff] %v10253_v55 }
 0x366   : > { %v2641_v27 = vadd.f32 %v2635_v13, %v2601_v54  ;;  %v10266_v54 = vmul.f32 %v10200_v53, %v10218_v29  ;;  %v10382_v13 = vmul.f32 %v10169_v1, %v10175_v20 }
 0x367   : > { %v2666_v43 = vpop.f32.mrf.mxu3 }
 0x368   : > { %v2678_v26 = vadd.f32 %v2666_v43, %v2638_v31  ;;  %v3604_v43 = vmul.f32 %v10162_v33, %v10155_v17 }
 0x36a   : > { %v3629_v38 = vrot.slane %v3604_v43, 1  ;;  %v3816_v43 = vmul.f32 %v10190_v50, %v10155_v17 }
 0x36c   : > { %v3630_v30 = vsel %vm674_vm0, %v13984_v25, %v3629_v38  ;;  %v10320_v38 = vmul.f32 %v10180_v41, %v10262_v48 }
 0x36d   : > { %v3646_v35 = vadd.f32 %v3630_v30, %v3580_v18  ;;  %v3869_v30 = vmul.f32 %v10195_v15, %v10155_v17 }
 0x36e   : > { %14308 = vst [vmem:[#allocation32_spill] sm:$0xff] %v10320_v38 }
 0x36f   : > { %v2669_v56 = vpop.f32.mrf.mxu3  ;;  %v3894_v46 = vrot.slane %v3869_v30, 6 }
 0x370   : > { %v2679_v45 = vadd.f32 %v2669_v56, %v2639_v58  ;;  %v10216_v56 = vmul.f32 %v10180_v41, %v10147_v37  ;;  %v3789_v58 = vsel %vm836_vm3, %v13986_v57, %v3788_v5  ;;  %v14312_v57 = vrot.slane %v10308_v3, 1 }
 0x372   : > { %v13982_v61 = vrot.slane %v10216_v56, 3 }
 0x377   : > { %v2672_v51 = vpop.f32.mrf.mxu3 }
 0x378   : > { %v2680_v10 = vadd.f32 %v2672_v51, %v2640_v2  ;;  %v10257_v51 = vmul.f32 %v10180_v41, %v10218_v29  ;;  %v3683_v2 = vsel %vm728_vm1, %v13983_v7, %v3682_v40  ;;  %v10330_v40 = vld [vmem:[%s14088_s1 + $0x8] ss:$0 sm:$0xff]  ;;  %v3841_v7 = vrot.slane %v3816_v43, 5  ;;  %v10370_v43 = vld [vmem:[%s14088_s1 + $0xc] ss:$0 sm:$0xff] }
 0x379   : > { %v3699_v31 = vadd.f32 %v3683_v2, %v3646_v35  ;;  %v10335_v35 = vmul.f32 %v10205_v24, %v10155_v17  ;;  %v10344_v2 = vld [vmem:[%s14088_s1 + $0xa] ss:$0 sm:$0xff]  ;;  %v10353_v52 = vmul.f32 %v10330_v40, %v10155_v17  ;;  %v10397_v5 = vmul.f32 %v10370_v43, %v10155_v17 }
 0x37a   : > { %v10357_v32 = vmul.f32 %v10344_v2, %v10155_v17  ;;  %v14316_v36 = vrot.slane %v10257_v51, 3 }
 0x37b   : > { %v3947_v30 = vrot.slane %v10335_v35, 7 }
 0x37f   : > { %v2675_v28 = vpop.f32.mrf.mxu3 }
 0x380   : > { %v2681_v0 = vadd.f32 %v2675_v28, %v2641_v27  ;;  %v10284_v27 = vmul.f32 %v10195_v15, %v10218_v29  ;;  %v3735_v28 = vrot.slane %v3710_v4, 3  ;;  %v14311_v4 = vrot.slane %v10173_v22, 1 }
 0x381   : > { %v14315_v22 = vrot.slane %v10320_v38, 3 }
 0x382   : > { %2706 = vmatpush.msra.mxu0 %v2681_v0  ;;  %14303 = vst [vmem:[#allocation27_spill] sm:$0xff] %v10284_v27  ;;  %v13988_v0 = vrot.slane %v10246_v63, 1  ;;  %v3736_v18 = vsel %vm782_vm2, %v13982_v61, %v3735_v28 }
 0x383   : > { %v3752_v28 = vadd.f32 %v3736_v18, %v3699_v31  ;;  %v10362_v31 = vld [vmem:[%s14088_s1 + $0xb] ss:$0 sm:$0xff]  ;;  %v10364_v18 = vpop.permute.xlu0 %3539 }
 0x384   : > { %2707 = vmatpush.msra.mxu0 %v2680_v10  ;;  %v10295_v10 = vmul.f32 %v10205_v24, %v10218_v29  ;;  %14309 = vst [vmem:[#allocation33_spill] sm:$0xff] %v10364_v18  ;;  %v10388_v61 = vmul.f32 %v10362_v31, %v10155_v17  ;;  %v14318_v29 = vrot.slane %v10229_v12, 5 }
 0x385   : > { %v3805_v25 = vadd.f32 %v3789_v58, %v3752_v28  ;;  %v3628_v58 = vsel %vm674_vm0, %v14312_v57, %v14311_v4  ;;  %v10410_v28 = vmul.f32 %v10162_v33, %v10364_v18  ;;  %v10425_v57 = vsel %vm782_vm2, %v14316_v36, %v14315_v22  ;;  %v10430_v4 = vld [vmem:[%s14088_s1 + $0xe] ss:$0 sm:$0xff]  ;;  %v10445_v22 = vld [vmem:[%s14088_s1 + $0xf] ss:$0 sm:$0xff] }
 0x386   : > { %2708 = vmatpush.msra.mxu0 %v2679_v45  ;;  %14304 = vst [vmem:[#allocation28_spill] sm:$0xff] %v10295_v10  ;;  %v10299_v45 = vmul.f32 %v10162_v33, %v10262_v48  ;;  %v10460_v36 = vmul.f32 %v10180_v41, %v10364_v18 }
 0x387   : > { %14317 = vst [vmem:[#allocation35_spill] sm:$0xff] %v10425_v57 }
 0x388   : > { %2709 = vmatpush.msra.mxu0 %v2678_v26  ;;  %14305 = vst [vmem:[#allocation29_spill] sm:$0xff] %v10299_v45  ;;  %v13987_v8 = vrot.slane %v10299_v45, 1  ;;  %v10375_v26 = vld [vmem:[%s14088_s1 + $0xd] ss:$0 sm:$0xff]  ;;  %v10481_v45 = vmul.f32 %v10185_v9, %v10175_v20 }
 0x389   : > { %7176 = vmatmul.msk.f32.vlgmr.msra.gmra.mxu0 %vm573_vm10, %v14287_v19  ;;  %v10401_v35 = vmul.f32 %v10375_v26, %v10155_v17  ;;  %v3579_v19 = vmul.f32 %v10200_v53, %v10175_v20  ;;  %14320 = vst [vmem:[#allocation37_spill] sm:$0xff] %v10445_v22 }
 0x38a   : > { %14326 = vst [vmem:[#allocation40_spill] sm:$0xff] %v10481_v45 }
 0x38b   : > { %14310 = vst [vmem:[#allocation34_spill] sm:$0xff] %v10401_v35  ;;  %v10524_v35 = vmul.f32 %v10190_v50, %v10175_v20 }
 0x391   : > { %7177 = vmatmul.msk.f32.gmra.mxu0 %vm573_vm10, %v14289_v21  ;;  %v10438_v21 = vmul.f32 %v10180_v41, %v10175_v20 }
 0x393   : > { %14319 = vst [vmem:[#allocation36_spill] sm:$0xff] %v10438_v21  ;;  %v14333_v39 = vrot.slane %v10438_v21, 3  ;;  %v14340_v21 = vrot.slane %v10460_v36, 3 }
 0x399   : > { %7178 = vmatmul.msk.f32.gmra.mxu0 %vm573_vm10, %v14290_v44 }
 0x3a1   : > { %7179 = vmatmul.msk.f32.gmra.mxu0 %vm573_vm10, %v10151_v42  ;;  %v3620_v42 = vsel %vm674_vm0, %v13988_v0, %v13987_v8  ;;  %v14313_v8 = vrot.slane %v10312_v14, 2  ;;  %v14314_v0 = vrot.slane %v10250_v49, 2  ;;  %v3645_v14 = vadd.f32 %v3628_v58, %v3579_v19 }
 0x3a2   : > { %v3641_v38 = vadd.f32 %v3620_v42, %v10266_v54  ;;  %v10455_v42 = vmul.f32 %v10430_v4, %v10155_v17  ;;  %v3615_v54 = vrot.slane %v10410_v28, 1  ;;  %v10464_v19 = vmul.f32 %v10185_v9, %v10364_v18 }
 0x3a3   : > { %v3673_v44 = vsel %vm728_vm1, %v14314_v0, %v14313_v8  ;;  %v3842_v0 = vsel %vm890_vm4, %v14318_v29, %v3841_v7  ;;  %v10449_v29 = vmul.f32 %v10169_v1, %v10364_v18  ;;  %v14323_v58 = vrot.slane %v10233_v59, 6 }
 0x3a4   : > { %v3858_v57 = vadd.f32 %v3842_v0, %v3805_v25  ;;  %14321 = vst [vmem:[#allocation38_spill] sm:$0xff] %v10455_v42  ;;  %v10468_v25 = vmul.f32 %v10445_v22, %v10155_v17  ;;  %v14324_v8 = vrot.slane %v10212_v11, 2  ;;  %v14325_v28 = vrot.slane %v10382_v13, 2 }
 0x3a5   : > { %v3895_v0 = vsel %vm944_vm5, %v14323_v58, %v3894_v46  ;;  %v3574_v17 = vmul.f32 %v10200_v53, %v10364_v18  ;;  %v10485_v55 = vadd.f32 %v3673_v44, %v3641_v38  ;;  %v10487_v46 = vpop.permute.xlu2 %3986  ;;  %v10496_v58 = vmul.f32 %v10195_v15, %v10364_v18  ;;  %v10502_v44 = vpop.permute.xlu1 %3534 }
 0x3a6   : > { %14322 = vst [vmem:[#allocation39_spill] sm:$0xff] %v10468_v25  ;;  %v3681_v7 = vsel %vm728_vm1, %v14325_v28, %v14324_v8  ;;  %v3911_v25 = vadd.f32 %v3895_v0, %v3858_v57  ;;  %v10492_v8 = vmul.f32 %v10190_v50, %v10364_v18  ;;  %v10500_v28 = vmul.f32 %v10205_v24, %v10364_v18 }
 0x3a7   : > { %14327 = vst [vmem:[#allocation41_spill] sm:$0xff] %v10485_v55  ;;  %v3698_v22 = vadd.f32 %v3681_v7, %v3645_v14  ;;  %v10508_v57 = vmul.f32 %v10330_v40, %v10364_v18  ;;  %v14330_v7 = vrot.slane %v10246_v63, 1  ;;  %v14331_v11 = vrot.slane %v10239_v34, 7 }
 0x3a8   : > { %14328 = vst [vmem:[#allocation42_spill] sm:$0xff] %v10500_v28  ;;  %v14332_v55 = vrot.slane %v10216_v56, 3  ;;  %v3596_v63 = vmul.f32 %v10162_v33, %v10502_v44  ;;  %v3573_v38 = vmul.f32 %v10200_v53, %v10502_v44  ;;  %v10551_v56 = vmul.f32 %v10195_v15, %v10175_v20 }
 0x3a9   : > { %14329 = vst [vmem:[#allocation43_spill] sm:$0xff] %v10508_v57  ;;  %v3618_v0 = vsel %vm674_vm0, %v3615_v54, %v14330_v7  ;;  %v3948_v48 = vsel %vm998_vm6, %v14331_v11, %v3947_v30  ;;  %v3998_v57 = vmul.f32 %v10280_v62, %v10487_v46  ;;  %v14339_v11 = vrot.slane %v10257_v51, 3 }
 0x3aa   : > { %v3734_v14 = vsel %vm782_vm2, %v14333_v39, %v14332_v55  ;;  %v3964_v7 = vadd.f32 %v3948_v48, %v3911_v25  ;;  %v10535_v39 = vmul.f32 %v10280_v62, %v10364_v18  ;;  %v3640_v42 = vadd.f32 %v3618_v0, %v3574_v17 }
 0x3ab   : > { %v3751_v30 = vadd.f32 %v3734_v14, %v3698_v22  ;;  %v3649_v48 = vmul.f32 %v10169_v1, %v10502_v44  ;;  %v3702_v22 = vmul.f32 %v10180_v41, %v10502_v44  ;;  %v14334_v25 = vrot.slane %v10225_v16, 4 }
 0x3ac   : > { %v14335_v14 = vrot.slane %v10481_v45, 4  ;;  %v10555_v17 = vmul.f32 %v10162_v33, %v10157_v47  ;;  %v3614_v0 = vrot.slane %v3596_v63, 1  ;;  %v3982_v18 = vadd.f32 %v10353_v52, %v3964_v7 }
 0x3ad   : > { %v4023_v28 = vrot.slane %v3998_v57, 1  ;;  %v14337_v45 = vrot.slane %v10250_v49, 2  ;;  %v3724_v33 = vsel %vm782_vm2, %v14340_v21, %v14339_v11  ;;  %v4051_v63 = vmul.f32 %v10344_v2, %v10487_v46 }
 0x3ae   : > { %v3787_v55 = vsel %vm836_vm3, %v14335_v14, %v14334_v25  ;;  %14336 = vst [vmem:[#allocation44_spill] sm:$0xff] %v10555_v17  ;;  %v14338_v25 = vrot.slane %v10449_v29, 2  ;;  %v3667_v52 = vrot.slane %v3649_v48, 2  ;;  %v3755_v7 = vmul.f32 %v10185_v9, %v10502_v44 }
 0x3af   : > { %v3804_v10 = vadd.f32 %v3787_v55, %v3751_v30  ;;  %v14341_v49 = vrot.slane %v10339_v60, 1  ;;  %v14343_v51 = vrot.slane %v10524_v35, 5  ;;  %v10584_v11 = vmul.f32 %v10205_v24, %v10175_v20 }
 0x3b0   : > { %v3671_v14 = vsel %vm728_vm1, %v14338_v25, %v14337_v45  ;;  %v14342_v45 = vrot.slane %v10229_v12, 5  ;;  %v3616_v48 = vsel %vm674_vm0, %v3614_v0, %v3615_v54  ;;  %v3720_v25 = vrot.slane %v3702_v22, 3 }
 0x3b1   : > { %v3693_v57 = vadd.f32 %v3671_v14, %v3640_v42  ;;  %v4024_v30 = vsel %vm674_vm0, %v14341_v49, %v4023_v28  ;;  %v14017_v42 = vrot.slane %v10555_v17, 1  ;;  %v4076_v28 = vrot.slane %v4051_v63, 2 }
 0x3b2   : > { %v3840_v55 = vsel %vm890_vm4, %v14343_v51, %v14342_v45  ;;  %v4040_v14 = vadd.f32 %v4024_v30, %v3982_v18  ;;  %v4104_v12 = vmul.f32 %v10362_v31, %v10487_v46  ;;  %v14344_v49 = vrot.slane %v10308_v3, 1 }
 0x3b3   : > { %v3857_v16 = vadd.f32 %v3840_v55, %v3804_v10  ;;  %v10597_v51 = vmul.f32 %v10169_v1, %v10157_v47  ;;  %v3773_v21 = vrot.slane %v3755_v7, 4  ;;  %v14345_v54 = vrot.slane %v10270_v6, 4 }
 0x3b4   : > { %v3626_v45 = vsel %vm674_vm0, %v14017_v42, %v14344_v49  ;;  %v14346_v18 = vrot.slane %v10464_v19, 4  ;;  %v10606_v22 = vmul.f32 %v10190_v50, %v10502_v44  ;;  %v3578_v3 = vmul.f32 %v10200_v53, %v10157_v47 }
 0x3b5   : > { %v3639_v0 = vadd.f32 %v3616_v48, %v3573_v38  ;;  %v14347_v63 = vrot.slane %v10357_v32, 2  ;;  %v14348_v7 = vrot.slane %v10233_v59, 6  ;;  %v14349_v55 = vrot.slane %v10551_v56, 6 }
 0x3b6   : > { %v3777_v10 = vsel %vm836_vm3, %v14346_v18, %v14345_v54  ;;  %v14024_v54 = vrot.slane %v10584_v11, 7  ;;  %v14350_v18 = vrot.slane %v10274_v23, 5  ;;  %v14351_v42 = vrot.slane %v10492_v8, 5  ;;  %v14399_v23 = vld [vmem:[#allocation43_spill] sm:$0xff] }
 0x3b7   : > { %v4077_v30 = vsel %vm728_vm1, %v14347_v63, %v4076_v28  ;;  %v3893_v49 = vsel %vm944_vm5, %v14349_v55, %v14348_v7  ;;  %v3644_v53 = vadd.f32 %v3626_v45, %v3578_v3  ;;  %v4129_v17 = vrot.slane %v4104_v12, 3 }
 0x3b8   : > { %v10624_v6 = vsel %vm890_vm4, %v14351_v42, %v14350_v18  ;;  %v4093_v38 = vadd.f32 %v4077_v30, %v4040_v14  ;;  %v3910_v48 = vadd.f32 %v3893_v49, %v3857_v16  ;;  %v4157_v59 = vmul.f32 %v10370_v43, %v10487_v46 }
 0x3b9   : > { %v14023_v28 = vrot.slane %v10597_v51, 2  ;;  %v10631_v63 = vmul.f32 %v10180_v41, %v10157_v47  ;;  %v14352_v7 = vrot.slane %v10449_v29, 2  ;;  %v14353_v42 = vrot.slane %v10460_v36, 3 }
 0x3ba   : > { %v3746_v16 = vadd.f32 %v3724_v33, %v3693_v57  ;;  %v14354_v12 = vrot.slane %v10464_v19, 4  ;;  %v14355_v30 = vrot.slane %v10388_v61, 3  ;;  %v14356_v18 = vrot.slane %v10239_v34, 7 }
 0x3bb   : > { %v3669_v55 = vsel %vm728_vm1, %v3667_v52, %v14352_v7  ;;  %v3722_v14 = vsel %vm782_vm2, %v3720_v25, %v14353_v42  ;;  %v14357_v36 = vrot.slane %v10382_v13, 2  ;;  %v4210_v52 = vmul.f32 %v10375_v26, %v10487_v46 }
 0x3bc   : > { %v3775_v45 = vsel %vm836_vm3, %v3773_v21, %v14354_v12  ;;  %v3692_v3 = vadd.f32 %v3669_v55, %v3639_v0  ;;  %v4130_v49 = vsel %vm782_vm2, %v14355_v30, %v4129_v17  ;;  %v3946_v29 = vsel %vm998_vm6, %v14024_v54, %v14356_v18  ;;  %v14361_v30 = vld [vmem:[#allocation36_spill] sm:$0xff] }
 0x3bd   : > { %v3679_v33 = vsel %vm728_vm1, %v14023_v28, %v14357_v36  ;;  %v4146_v19 = vadd.f32 %v4130_v49, %v4093_v38  ;;  %v3963_v57 = vadd.f32 %v3946_v29, %v3910_v48  ;;  %v4182_v25 = vrot.slane %v4157_v59, 4 }
 0x3be   : > { %v3697_v21 = vadd.f32 %v3679_v33, %v3644_v53  ;;  %v10659_v34 = vmul.f32 %v10280_v62, %v10147_v37  ;;  %v14022_v17 = vrot.slane %v10631_v63, 3  ;;  %v10664_v13 = vmul.f32 %v10185_v9, %v10157_v47 }
 0x3bf   : > { %v3826_v0 = vrot.slane %v10606_v22, 5  ;;  %v3861_v38 = vmul.f32 %v10195_v15, %v10502_v44  ;;  %v14358_v7 = vrot.slane %v10284_v27, 6  ;;  %v14359_v53 = vrot.slane %v10496_v58, 6 }
 0x3c0   : > { %v3973_v59 = vmul.f32 %v10330_v40, %v10147_v37  ;;  %v3745_v55 = vadd.f32 %v3722_v14, %v3692_v3  ;;  %v14360_v42 = vrot.slane %v10397_v5, 4  ;;  %v4263_v22 = vmul.f32 %v10430_v4, %v10487_v46 }
 0x3c1   : > { %v10674_v48 = vsel %vm944_vm5, %v14359_v53, %v14358_v7  ;;  %v14362_v49 = vrot.slane %v14361_v30, 3  ;;  %v4235_v36 = vrot.slane %v4210_v52, 5  ;;  %v14025_v53 = vrot.slane %v10659_v34, 1 }
 0x3c2   : > { %v4183_v12 = vsel %vm836_vm3, %v14360_v42, %v4182_v25  ;;  %v3981_v33 = vadd.f32 %v3973_v59, %v3963_v57  ;;  %v10691_v14 = vmul.f32 %v10344_v2, %v10147_v37  ;;  %v10696_v25 = vmul.f32 %v10190_v50, %v10157_v47  ;;  %v14366_v57 = vld [vmem:[#allocation42_spill] sm:$0xff] }
 0x3c3   : > { %v3732_v18 = vsel %vm782_vm2, %v14022_v17, %v14362_v49  ;;  %v4199_v29 = vadd.f32 %v4183_v12, %v4146_v19  ;;  %v3799_v42 = vadd.f32 %v3777_v10, %v3746_v16  ;;  %v3914_v30 = vmul.f32 %v10205_v24, %v10502_v44  ;;  %v14364_v19 = vld [vmem:[#allocation28_spill] sm:$0xff]  ;;  %v14369_v12 = vld [vmem:[#allocation38_spill] sm:$0xff] }
 0x3c4   : > { %v3750_v7 = vadd.f32 %v3732_v18, %v3697_v21  ;;  %14363 = vst [vmem:[#allocation36_spill] sm:$0xff] %v10696_v25  ;;  %v14365_v52 = vrot.slane %v14364_v19, 7  ;;  %v14367_v21 = vrot.slane %v14366_v57, 7  ;;  %v3798_v18 = vadd.f32 %v3775_v45, %v3745_v55  ;;  %v14370_v17 = vld [vmem:[#allocation34_spill] sm:$0xff]  ;;  %v14373_v10 = vld [vmem:[#allocation40_spill] sm:$0xff] }
 0x3c5   : > { %v14371_v28 = vrot.slane %v14370_v17, 5  ;;  %v14372_v3 = vrot.slane %v10339_v60, 1  ;;  %v14374_v16 = vrot.slane %v14373_v10, 4  ;;  %v14375_v19 = vrot.slane %v10664_v13, 4 }
 0x3c6   : > { %v10705_v59 = vsel %vm998_vm6, %v14367_v21, %v14365_v52  ;;  %v14027_v55 = vrot.slane %v10691_v14, 2  ;;  %v14026_v60 = vrot.slane %v10696_v25, 5 }
 0x3c7   : > { %14368 = vst [vmem:[#allocation42_spill] sm:$0xff] %v10705_v59  ;;  %v4236_v54 = vsel %vm890_vm4, %v14371_v28, %v4235_v36  ;;  %v4022_v44 = vsel %vm674_vm0, %v14025_v53, %v14372_v3  ;;  %v3785_v52 = vsel %vm836_vm3, %v14375_v19, %v14374_v16  ;;  %v4288_v59 = vrot.slane %v4263_v22, 6  ;;  %v14378_v22 = vld [vmem:[#allocation30_spill] sm:$0xff] }
 0x3c8   : > { %v4252_v21 = vadd.f32 %v4236_v54, %v4199_v29  ;;  %v4039_v49 = vadd.f32 %v4022_v44, %v3981_v33  ;;  %v3803_v45 = vadd.f32 %v3785_v52, %v3750_v7  ;;  %v10724_v28 = vmul.f32 %v10362_v31, %v10147_v37  ;;  %v14381_v44 = vld [vmem:[#allocation37_spill] sm:$0xff] }
 0x3c9   : > { %v10729_v36 = vmul.f32 %v10195_v15, %v10157_v47  ;;  %v14377_v3 = vrot.slane %v10492_v8, 5  ;;  %v3879_v54 = vrot.slane %v3861_v38, 6  ;;  %v14379_v29 = vrot.slane %v14378_v22, 1 }
 0x3ca   : > { %v14380_v33 = vrot.slane %v10535_v39, 1  ;;  %v4316_v10 = vmul.f32 %v14381_v44, %v10487_v46  ;;  %v14382_v52 = vrot.slane %v14369_v12, 6  ;;  %v14383_v8 = vrot.slane %v10357_v32, 2  ;;  %v10760_v32 = vld [vmem:[%s14088_s1 + $0x11] ss:$0 sm:$0xff] }
 0x3cb   : > { %14376 = vst [vmem:[#allocation38_spill] sm:$0xff] %v10729_v36  ;;  %v3828_v19 = vsel %vm890_vm4, %v3826_v0, %v14377_v3  ;;  %v14384_v38 = vrot.slane %v10524_v35, 5  ;;  %v14385_v3 = vld [vmem:[#allocation39_spill] sm:$0xff]  ;;  %v10765_v35 = vmul.f32 %v10370_v43, %v10147_v37 }
 0x3cc   : > { %v10739_v7 = vsel %vm674_vm0, %v14380_v33, %v14379_v29  ;;  %v3851_v16 = vadd.f32 %v3828_v19, %v3798_v18  ;;  %v4289_v53 = vsel %vm944_vm5, %v14382_v52, %v4288_v59  ;;  %v4075_v0 = vsel %vm728_vm1, %v14027_v55, %v14383_v8  ;;  %v4381_v33 = vpop.permute.xlu0 %4380 }
 0x3cd   : > { %v3838_v39 = vsel %vm890_vm4, %v14026_v60, %v14384_v38  ;;  %v4305_v18 = vadd.f32 %v4289_v53, %v4252_v21  ;;  %v4092_v19 = vadd.f32 %v4075_v0, %v4039_v49  ;;  %v14031_v59 = vrot.slane %v10724_v28, 3 }
 0x3ce   : > { %v3856_v22 = vadd.f32 %v3838_v39, %v3803_v45  ;;  %v14028_v52 = vrot.slane %v10729_v36, 6  ;;  %v10770_v8 = vmul.f32 %v10205_v24, %v10157_v47  ;;  %v3852_v53 = vadd.f32 %v10624_v6, %v3799_v42  ;;  %v10795_v42 = vld [vmem:[%s14088_s1 + $0x12] ss:$0 sm:$0xff] }
 0x3cf   : > { %v14387_v49 = vrot.slane %v10496_v58, 6  ;;  %v3932_v45 = vrot.slane %v3914_v30, 7  ;;  %v4341_v0 = vrot.slane %v4316_v10, 7  ;;  %v4392_v39 = vmul.f32 %v10760_v32, %v4381_v33  ;;  %v10790_v58 = vld [vmem:[%s14088_s1 + $0x10] ss:$0 sm:$0xff] }
 0x3d0   : > { %14386 = vst [vmem:[#allocation34_spill] sm:$0xff] %v10770_v8  ;;  %v14388_v60 = vrot.slane %v10388_v61, 3  ;;  %v14389_v29 = vrot.slane %v10551_v56, 6  ;;  %v14390_v61 = vrot.slane %v14385_v3, 7  ;;  %v10802_v56 = vmul.f32 %v10760_v32, %v10487_v46 }
 0x3d1   : > { %v3881_v21 = vsel %vm944_vm5, %v3879_v54, %v14387_v49  ;;  %v14030_v49 = vrot.slane %v10770_v8, 7  ;;  %v10878_v8 = vmul.f32 %v14381_v44, %v10147_v37 }
 0x3d2   : > { %v3904_v38 = vadd.f32 %v3881_v21, %v3851_v16  ;;  %v4128_v55 = vsel %vm782_vm2, %v14031_v59, %v14388_v60  ;;  %v3891_v6 = vsel %vm944_vm5, %v14028_v52, %v14389_v29  ;;  %v4342_v30 = vsel %vm998_vm6, %v14390_v61, %v4341_v0 }
 0x3d3   : > { %v4145_v60 = vadd.f32 %v4128_v55, %v4092_v19  ;;  %v3909_v54 = vadd.f32 %v3891_v6, %v3856_v22  ;;  %v4358_v10 = vadd.f32 %v4342_v30, %v4305_v18  ;;  %v14029_v16 = vrot.slane %v10765_v35, 4  ;;  %v10822_v18 = vld [vmem:[%s14088_s1 + $0x13] ss:$0 sm:$0xff] }
 0x3d4   : > { %v10807_v29 = vmul.f32 %v10375_v26, %v10147_v37  ;;  %v10811_v21 = vadd.f32 %v10674_v48, %v3852_v53  ;;  %v14392_v0 = vrot.slane %v14366_v57, 7  ;;  %v4368_v55 = vmul.f32 %v10790_v58, %v10487_v46 }
 0x3d5   : > { %v4445_v22 = vmul.f32 %v10795_v42, %v4381_v33  ;;  %v4417_v19 = vrot.slane %v4392_v39, 1  ;;  %v14393_v6 = vrot.slane %v10397_v5, 4  ;;  %v14394_v57 = vrot.slane %v10584_v11, 7 }
 0x3d6   : > { %14391 = vst [vmem:[#allocation40_spill] sm:$0xff] %v10811_v21  ;;  %v3934_v61 = vsel %vm998_vm6, %v3932_v45, %v14392_v0  ;;  %v10836_v45 = vmul.f32 %v10280_v62, %v10175_v20  ;;  %v10840_v39 = vmul.f32 %v10430_v4, %v10147_v37  ;;  %v4376_v52 = vadd.f32 %v4368_v55, %v4358_v10 }
 0x3d7   : > { %v4181_v48 = vsel %vm836_vm3, %v14029_v16, %v14393_v6  ;;  %v3944_v53 = vsel %vm998_vm6, %v14030_v49, %v14394_v57  ;;  %v3957_v30 = vadd.f32 %v3934_v61, %v3904_v38  ;;  %v14034_v6 = vrot.slane %v10802_v56, 1  ;;  %v10848_v57 = vld [vmem:[%s14088_s1 + $0x14] ss:$0 sm:$0xff] }
 0x3d8   : > { %14395 = vst [vmem:[#allocation37_spill] sm:$0xff] %v10836_v45  ;;  %v4198_v0 = vadd.f32 %v4181_v48, %v4145_v60  ;;  %v3962_v5 = vadd.f32 %v3944_v53, %v3909_v54  ;;  %v4498_v11 = vmul.f32 %v10822_v18, %v4381_v33  ;;  %v14036_v16 = vrot.slane %v10807_v29, 5 }
 0x3d9   : > { %14396 = vst [vmem:[#allocation39_spill] sm:$0xff] %v10848_v57  ;;  %v10852_v38 = vmul.f32 %v10795_v42, %v10487_v46  ;;  %v4470_v60 = vrot.slane %v4445_v22, 2  ;;  %v10856_v54 = vmul.f32 %v10822_v18, %v10487_v46  ;;  %v3972_v10 = vmul.f32 %v10330_v40, %v10175_v20 }
 0x3da   : > { %v4418_v61 = vsel %vm674_vm0, %v14034_v6, %v4417_v19  ;;  %v14397_v55 = vrot.slane %v14370_v17, 5  ;;  %v10871_v22 = vmul.f32 %v10344_v2, %v10175_v20  ;;  %v4551_v49 = vmul.f32 %v10848_v57, %v4381_v33 }
 0x3db   : > { %v14037_v21 = vrot.slane %v10840_v39, 6  ;;  %v3980_v27 = vadd.f32 %v3972_v10, %v3962_v5  ;;  %v3975_v19 = vadd.f32 %v14399_v23, %v3957_v30  ;;  %v4434_v6 = vadd.f32 %v4418_v61, %v4376_v52 }
 0x3dc   : > { %v4234_v48 = vsel %vm890_vm4, %v14036_v16, %v14397_v55  ;;  %14398 = vst [vmem:[#allocation45_spill] sm:$0xff] %v10871_v22  ;;  %v4523_v17 = vrot.slane %v4498_v11, 3  ;;  %v4468_v55 = vrot.slane %v10852_v38, 2  ;;  %v4521_v16 = vrot.slane %v10856_v54, 3  ;;  %v14405_v38 = vld [vmem:[#allocation21_spill] sm:$0xff] }
 0x3dd   : > { %v4251_v59 = vadd.f32 %v4234_v48, %v4198_v0  ;;  %v10884_v53 = vmul.f32 %v10848_v57, %v10487_v46  ;;  %v14400_v33 = vrot.slane %v14369_v12, 6  ;;  %v14401_v52 = vrot.slane %v10659_v34, 1  ;;  %v14404_v46 = vld [vmem:[#allocation18_spill] sm:$0xff] }
 0x3de   : > { %v14402_v30 = vrot.slane %v10836_v45, 1  ;;  %v10899_v11 = vmul.f32 %v10362_v31, %v10175_v20  ;;  %v10903_v54 = vmul.f32 %v14405_v38, %v14404_v46  ;;  %v4471_v12 = vsel %vm728_vm1, %v4468_v55, %v4470_v60 }
 0x3df   : > { %v4287_v23 = vsel %vm944_vm5, %v14037_v21, %v14400_v33  ;;  %v4576_v10 = vrot.slane %v4551_v49, 4  ;;  %v4487_v34 = vadd.f32 %v4471_v12, %v4434_v6  ;;  %v4524_v33 = vsel %vm782_vm2, %v4521_v16, %v4523_v17 }
 0x3e0   : > { %v4020_v0 = vsel %vm674_vm0, %v14402_v30, %v14401_v52  ;;  %14403 = vst [vmem:[#allocation43_spill] sm:$0xff] %v10899_v11  ;;  %v4304_v61 = vadd.f32 %v4287_v23, %v4251_v59  ;;  %v14041_v52 = vrot.slane %v10878_v8, 7  ;;  %v14406_v30 = vld [vmem:[#allocation16_spill] sm:$0xff]  ;;  %v4574_v5 = vrot.slane %v10884_v53, 4 }
 0x3e1   : > { %v4038_v48 = vadd.f32 %v4020_v0, %v3980_v27  ;;  %v10910_v21 = vmul.f32 %v10760_v32, %v14406_v30  ;;  %v10915_v38 = vmul.f32 %v10795_v42, %v14406_v30  ;;  %v10919_v49 = vmul.f32 %v10822_v18, %v14406_v30 }
 0x3e2   : > { %v10923_v27 = vmul.f32 %v10370_v43, %v10175_v20  ;;  %v14407_v59 = vrot.slane %v14385_v3, 7  ;;  %v14408_v60 = vrot.slane %v10691_v14, 2  ;;  %v14409_v53 = vrot.slane %v10871_v22, 2 }
 0x3e3   : > { %v14042_v23 = vrot.slane %v10899_v11, 3  ;;  %v14052_v0 = vrot.slane %v10903_v54, 1  ;;  %v4577_v12 = vsel %vm836_vm3, %v4574_v5, %v4576_v10  ;;  %v10940_v3 = vmul.f32 %v10848_v57, %v14406_v30 }
 0x3e4   : > { %v4340_v6 = vsel %vm998_vm6, %v14041_v52, %v14407_v59  ;;  %v4073_v17 = vsel %vm728_vm1, %v14409_v53, %v14408_v60  ;;  %v4540_v25 = vadd.f32 %v4524_v33, %v4487_v34  ;;  %v4367_v14 = vmul.f32 %v10790_v58, %v14406_v30  ;;  %v2741_v34 = vld [vmem:[%s13857_s5 + $0x10] sm:$0xff] }
 0x3e5   : > { %v4357_v45 = vadd.f32 %v4340_v6, %v4304_v61  ;;  %v4091_v36 = vadd.f32 %v4073_v17, %v4038_v48  ;;  %v10947_v60 = vmul.f32 %v10169_v1, %v14404_v46  ;;  %v10954_v6 = vmul.f32 %v10375_v26, %v10175_v20  ;;  %v2742_v48 = vld [vmem:[%s13857_s5 + $0x18] sm:$0xff]  ;;  %v14411_v52 = vld [vmem:[#allocation44_spill] sm:$0xff] }
 0x3e6   : > { %v14410_v1 = vrot.slane %v10724_v28, 3  ;;  %v10969_v30 = vmul.f32 %v10430_v4, %v10175_v20  ;;  %v10973_v17 = vmul.f32 %v14381_v44, %v10175_v20  ;;  %v14412_v61 = vrot.slane %v14411_v52, 1  ;;  %2799 = vmatpush.msra.mxu2 %v2742_v48  ;;  %v2740_v20 = vld [vmem:[%s13857_s5 + $0x8] sm:$0xff]  ;;  %v2739_v48 = vld [vmem:[%s13857_s5] sm:$0xff] }
 0x3e7   : > { %v4375_v28 = vadd.f32 %v4367_v14, %v4357_v45  ;;  %v14049_v53 = vrot.slane %v10940_v3, 4  ;;  %v10984_v11 = vadd.f32 %v10739_v7, %v3975_v19  ;;  %v10989_v52 = vadd.f32 %v4577_v12, %v4540_v25 }
 0x3e8   : > { %v4126_v33 = vsel %vm782_vm2, %v14042_v23, %v14410_v1  ;;  %v3624_v10 = vsel %vm674_vm0, %v14052_v0, %v14412_v61  ;;  %v14413_v1 = vld [vmem:[#allocation15_spill] sm:$0xff]  ;;  %v14048_v22 = vrot.slane %v10947_v60, 2  ;;  %v10994_v45 = vmul.f32 %v10180_v41, %v14404_v46  ;;  %2800 = vmatpush.msra.mxu2 %v2741_v34 }
 0x3e9   : > { %v4144_v59 = vadd.f32 %v4126_v33, %v4091_v36  ;;  %v3577_v23 = vmul.f32 %v14413_v1, %v14404_v46  ;;  %14414 = vst [vmem:[#allocation18_spill] sm:$0xff] %v10984_v11  ;;  %v14416_v36 = vrot.slane %v10802_v56, 1  ;;  %v14417_v14 = vrot.slane %v10910_v21, 1  ;;  %v7189_v0 = vld [vmem:[%s13857_s5 + $0x48] sm:$0xff]  ;;  %v14436_v11 = vld [vmem:[#allocation29_spill] sm:$0xff] }
 0x3ea   : > { %14415 = vst [vmem:[#allocation21_spill] sm:$0xff] %v10989_v52  ;;  %v14418_v19 = vrot.slane %v10915_v38, 2  ;;  %v14047_v25 = vrot.slane %v10954_v6, 5  ;;  %v14419_v41 = vrot.slane %v10919_v49, 3  ;;  %v14420_v56 = vrot.slane %v10765_v35, 4  ;;  %2801 = vmatpush.msra.mxu2 %v2740_v20 }
 0x3eb   : > { %v4416_v7 = vsel %vm674_vm0, %v14417_v14, %v14416_v36  ;;  %v3643_v12 = vadd.f32 %v3624_v10, %v3577_v23  ;;  %v14421_v33 = vrot.slane %v10923_v27, 4  ;;  %v14050_v14 = vrot.slane %v10973_v17, 7  ;;  %v11020_v23 = vld [vmem:[#allocation3] sm:$0xff] }
 0x3ec   : > { %v4469_v61 = vsel %vm728_vm1, %v14418_v19, %v4468_v55  ;;  %v11011_v34 = vsel %vm782_vm2, %v14419_v41, %v4521_v16  ;;  %v14051_v55 = vrot.slane %v10969_v30, 6  ;;  %14422 = vst [vmem:[#allocation16_spill] sm:$0xff] %v11020_v23  ;;  %v4433_v10 = vadd.f32 %v4416_v7, %v4375_v28  ;;  %2802 = vmatpush.msra.mxu2 %v2739_v48  ;;  %v7191_v48 = vld [vmem:[%s13857_s5 + $0x58] sm:$0xff] }
 0x3ed   : > { %v4179_v36 = vsel %vm836_vm3, %v14421_v33, %v14420_v56  ;;  %v11025_v19 = vsel %vm836_vm3, %v14049_v53, %v4574_v5  ;;  %v11029_v35 = vmul.f32 %v10760_v32, %v10147_v37  ;;  %v11033_v41 = vmul.f32 %v10795_v42, %v10147_v37  ;;  %7186 = vmatmul.msk.f32.vlgmr.msra.gmra.mxu2 %vm573_vm10, %v11020_v23 }
 0x3ee   : > { %v4197_v16 = vadd.f32 %v4179_v36, %v4144_v59  ;;  %v14423_v56 = vrot.slane %v10597_v51, 2  ;;  %v11043_v5 = vmul.f32 %v10185_v9, %v14404_v46  ;;  %v14424_v59 = vrot.slane %v10807_v29, 5  ;;  %v7183_v29 = vld [vmem:[%s13857_s5 + $0x38] sm:$0xff]  ;;  %2836 = vmatpush.msrb.mxu3 %v7191_v48  ;;  %v7181_v48 = vld [vmem:[%s13857_s5 + $0x28] sm:$0xff] }
 0x3ef   : > { %v11052_v51 = vmul.f32 %v10790_v58, %v10147_v37  ;;  %v11056_v33 = vmul.f32 %v10822_v18, %v10147_v37  ;;  %v11087_v53 = vmul.f32 %v10190_v50, %v14404_v46  ;;  %2772 = vmatpush.msra.mxu1 %v7183_v29  ;;  %v11103_v29 = vmul.f32 %v10195_v15, %v14404_v46 }
 0x3f0   : > { %v3677_v20 = vsel %vm728_vm1, %v14048_v22, %v14423_v56  ;;  %v4232_v7 = vsel %vm890_vm4, %v14047_v25, %v14424_v59  ;;  %v7197_v56 = vld [vmem:[%s13857_s5 + $0x78] sm:$0xff]  ;;  %v14425_v59 = vrot.slane %v10840_v39, 6  ;;  %v11083_v22 = vmul.f32 %v10848_v57, %v10147_v37  ;;  %v7196_v37 = vld [vmem:[%s13857_s5 + $0x70] sm:$0xff] }
 0x3f1   : > { %v3696_v36 = vadd.f32 %v3677_v20, %v3643_v12  ;;  %v14426_v20 = vrot.slane %v10878_v8, 7  ;;  %v7182_v8 = vld [vmem:[%s13857_s5 + $0x30] sm:$0xff]  ;;  %2875 = vmatpush.msrb.mxu0 %v7197_v56  ;;  %v11120_v56 = vmul.f32 %v10205_v24, %v14404_v46  ;;  %v14429_v28 = vrot.slane %v10910_v21, 1  ;;  %v7188_v21 = vld [vmem:[%s13857_s5 + $0x40] sm:$0xff] }
 0x3f2   : > { %v4285_v12 = vsel %vm944_vm5, %v14051_v55, %v14425_v59  ;;  %v7190_v59 = vld [vmem:[%s13857_s5 + $0x50] sm:$0xff]  ;;  %2773 = vmatpush.msra.mxu1 %v7182_v8  ;;  %v7195_v55 = vld [vmem:[%s13857_s5 + $0x68] sm:$0xff]  ;;  %v11138_v8 = vmul.f32 %v10330_v40, %v10157_v47  ;;  %v14437_v23 = vrot.slane %v14436_v11, 1 }
 0x3f3   : > { %v11079_v25 = vsel %vm998_vm6, %v14050_v14, %v14426_v20  ;;  %v4486_v20 = vadd.f32 %v4469_v61, %v4433_v10  ;;  %v4250_v14 = vadd.f32 %v4232_v7, %v4197_v16  ;;  %v14427_v61 = vrot.slane %v10631_v63, 3  ;;  %2837 = vmatpush.msrb.mxu3 %v7190_v59  ;;  %v7209_v63 = vld [vmem:[%s13857_s5 + $0xb8] sm:$0xff]  ;;  %2876 = vmatpush.msrb.mxu0 %v7196_v37  ;;  %v7180_v59 = vld [vmem:[%s13857_s5 + $0x20] sm:$0xff] }
 0x3f4   : > { %v14428_v10 = vrot.slane %v10994_v45, 3  ;;  %2953 = vmatpush.msrb.mxu2 %v7209_v63  ;;  %v14435_v7 = vrot.slane %v10903_v54, 1  ;;  %2774 = vmatpush.msra.mxu1 %v7181_v48  ;;  %v14056_v63 = vrot.slane %v11103_v29, 6  ;;  %v14438_v54 = vld [vmem:[#allocation24_spill] sm:$0xff] }
 0x3f5   : > { %2838 = vmatpush.msrb.mxu3 %v7189_v0  ;;  %v4303_v37 = vadd.f32 %v4285_v12, %v4250_v14  ;;  %v3576_v11 = vmul.f32 %v14413_v1, %v14438_v54  ;;  %2877 = vmatpush.msrb.mxu0 %v7195_v55  ;;  %v14439_v0 = vrot.slane %v10664_v13, 4  ;;  %v7206_v13 = vld [vmem:[%s13857_s5 + $0xa0] sm:$0xff]  ;;  %v11192_v55 = vmul.f32 %v10362_v31, %v10157_v47 }
 0x3f6   : > { %v3730_v16 = vsel %vm782_vm2, %v14428_v10, %v14427_v61  ;;  %v14430_v61 = vrot.slane %v11029_v35, 1  ;;  %2775 = vmatpush.msra.mxu1 %v7180_v59  ;;  %v14441_v12 = vrot.slane %v10919_v49, 3  ;;  %v14444_v59 = vrot.slane %v10940_v3, 4 }
 0x3f7   : > { %v3749_v52 = vadd.f32 %v3730_v16, %v3696_v36  ;;  %v14432_v36 = vrot.slane %v10915_v38, 2  ;;  %v14433_v16 = vrot.slane %v11033_v41, 2  ;;  %v7194_v38 = vld [vmem:[%s13857_s5 + $0x60] sm:$0xff]  ;;  %2839 = vmatpush.msrb.mxu3 %v7188_v21  ;;  %v14445_v21 = vrot.slane %v11083_v22, 4 }
 0x3f8   : > { %v11133_v10 = vsel %vm674_vm0, %v14430_v61, %v14429_v28  ;;  %v7208_v28 = vld [vmem:[%s13857_s5 + $0xb0] sm:$0xff]  ;;  %2878 = vmatpush.msrb.mxu0 %v7194_v38  ;;  %v11218_v38 = vadd.f32 %v11079_v25, %v4303_v37  ;;  %v14450_v3 = vrot.slane %v11087_v53, 5  ;;  %v14455_v37 = vrot.slane %v10947_v60, 2  ;;  %v7215_v60 = vld [vmem:[%s13857_s5 + $0xd8] sm:$0xff] }
 0x3f9   : > { %14431 = vst [vmem:[#allocation44_spill] sm:$0xff] %v11133_v10  ;;  %v11154_v61 = vsel %vm728_vm1, %v14433_v16, %v14432_v36  ;;  %v3622_v10 = vsel %vm674_vm0, %v14437_v23, %v14435_v7  ;;  %v7207_v36 = vld [vmem:[%s13857_s5 + $0xa8] sm:$0xff]  ;;  %v4539_v16 = vadd.f32 %v11011_v34, %v4486_v20  ;;  %2954 = vmatpush.msrb.mxu2 %v7208_v28  ;;  %v14440_v23 = vrot.slane %v11043_v5, 4 }
 0x3fa   : > { %14434 = vst [vmem:[#allocation15_spill] sm:$0xff] %v11154_v61  ;;  %v14055_v7 = vrot.slane %v11120_v56, 7  ;;  %v11181_v61 = vmul.f32 %v10280_v62, %v10157_v47  ;;  %v11185_v34 = vmul.f32 %v10344_v2, %v10157_v47  ;;  %v3642_v14 = vadd.f32 %v3622_v10, %v3576_v11  ;;  %2992 = vmatpush.msra.mxu3 %v7215_v60 }
 0x3fb   : > { %v3783_v48 = vsel %vm836_vm3, %v14440_v23, %v14439_v0  ;;  %2955 = vmatpush.msrb.mxu2 %v7207_v36  ;;  %v14442_v20 = vrot.slane %v11056_v33, 3  ;;  %v11210_v0 = vmul.f32 %v10370_v43, %v10157_v47  ;;  %v11215_v49 = vadd.f32 %v11025_v19, %v4539_v16  ;;  %v14448_v36 = vld [vmem:[#allocation36_spill] sm:$0xff]  ;;  %v14456_v16 = vld [vmem:[#allocation31_spill] sm:$0xff] }
 0x3fc   : > { %v3802_v1 = vadd.f32 %v3783_v48, %v3749_v52  ;;  %v11206_v52 = vsel %vm836_vm3, %v14445_v21, %v14444_v59  ;;  %v14449_v11 = vrot.slane %v14448_v36, 5  ;;  %v14451_v48 = vld [vmem:[#allocation38_spill] sm:$0xff]  ;;  %v14059_v19 = vrot.slane %v11181_v61, 1 }
 0x3fd   : > { %v11199_v28 = vsel %vm782_vm2, %v14442_v20, %v14441_v12  ;;  %14446 = vst [vmem:[#allocation24_spill] sm:$0xff] %v11206_v52  ;;  %v14452_v12 = vrot.slane %v14451_v48, 6  ;;  %2956 = vmatpush.msrb.mxu2 %v7206_v13  ;;  %v14453_v59 = vld [vmem:[#allocation34_spill] sm:$0xff]  ;;  %v14457_v36 = vrot.slane %v14456_v16, 2  ;;  %v14060_v13 = vrot.slane %v11185_v34, 2  ;;  %v7202_v16 = vld [vmem:[%s13857_s5 + $0x90] sm:$0xff] }
 0x3fe   : > { %14443 = vst [vmem:[#allocation29_spill] sm:$0xff] %v11199_v28  ;;  %v3836_v23 = vsel %vm890_vm4, %v14450_v3, %v14449_v11  ;;  %v14454_v21 = vrot.slane %v14453_v59, 7  ;;  %v11243_v3 = vmul.f32 %v10185_v9, %v14438_v54  ;;  %v14465_v28 = vrot.slane %v11192_v55, 3 }
 0x3ff   : > { %14447 = vst [vmem:[#allocation46_spill] sm:$0xff] %v11215_v49  ;;  %v3889_v20 = vsel %vm944_vm5, %v14056_v63, %v14452_v12  ;;  %v3675_v11 = vsel %vm728_vm1, %v14457_v36, %v14455_v37  ;;  %v3855_v48 = vadd.f32 %v3836_v23, %v3802_v1  ;;  %v7221_v37 = vld [vmem:[%s13857_s5 + $0xf8] sm:$0xff]  ;;  %v11259_v1 = vmul.f32 %v10375_v26, %v10157_v47  ;;  %v7214_v36 = vld [vmem:[%s13857_s5 + $0xd0] sm:$0xff]  ;;  %v14463_v49 = vld [vmem:[#allocation43_spill] sm:$0xff] }
 0x400   : > { %v3942_v25 = vsel %vm998_vm6, %v14055_v7, %v14454_v21  ;;  %v3695_v59 = vadd.f32 %v3675_v11, %v3642_v14  ;;  %v7203_v21 = vld [vmem:[%s13857_s5 + $0x98] sm:$0xff]  ;;  %v11263_v14 = vmul.f32 %v10430_v4, %v10157_v47  ;;  %v11267_v23 = vmul.f32 %v14381_v44, %v10157_v47  ;;  %v7220_v11 = vld [vmem:[%s13857_s5 + $0xf0] sm:$0xff]  ;;  %3031 = vmatpush.msra.mxu0 %v7221_v37 }
 0x401   : > { %2914 = vmatpush.msrb.mxu1 %v7203_v21  ;;  %v14458_v7 = vld [vmem:[#allocation37_spill] sm:$0xff]  ;;  %v14464_v52 = vrot.slane %v14463_v49, 3  ;;  %v14471_v49 = vld [vmem:[#allocation32_spill] sm:$0xff]  ;;  %2993 = vmatpush.msra.mxu3 %v7214_v36  ;;  %v3908_v37 = vadd.f32 %v3889_v20, %v3855_v48  ;;  %v14476_v48 = vrot.slane %v11243_v3, 4 }
 0x402   : > { %v14459_v63 = vrot.slane %v14458_v7, 1  ;;  %v14460_v21 = vld [vmem:[#allocation45_spill] sm:$0xff]  ;;  %v14467_v7 = vrot.slane %v10923_v27, 4  ;;  %v11322_v27 = vld [vmem:[%s13856_s4] ss:$0 sm:$0xff]  ;;  %3032 = vmatpush.msra.mxu0 %v7220_v11 }
 0x403   : > { %v14461_v60 = vrot.slane %v14460_v21, 2  ;;  %v11297_v47 = vsel %vm782_vm2, %v14465_v28, %v14464_v52  ;;  %v14468_v21 = vrot.slane %v11210_v0, 4  ;;  %v11317_v52 = vmul.f32 %v10190_v50, %v14438_v54  ;;  %2915 = vmatpush.msrb.mxu1 %v7202_v16  ;;  %v7219_v50 = vld [vmem:[%s13857_s5 + $0xe8] sm:$0xff]  ;;  %v7233_v16 = vld [vmem:[%s13857_s5 + $0x138] sm:$0xff]  ;;  %v7200_v11 = vld [vmem:[%s13857_s5 + $0x80] sm:$0xff] }
 0x404   : > { %v11283_v9 = vsel %vm674_vm0, %v14059_v19, %v14459_v63  ;;  %14466 = vst [vmem:[#allocation38_spill] sm:$0xff] %v11297_v47  ;;  %v7201_v63 = vld [vmem:[%s13857_s5 + $0x88] sm:$0xff]  ;;  %3033 = vmatpush.msra.mxu0 %v7219_v50  ;;  %3098 = vmatpush.msra.mxu2 %v7233_v16 }
 0x405   : > { %v11290_v12 = vsel %vm728_vm1, %v14060_v13, %v14461_v60  ;;  %v11307_v19 = vsel %vm836_vm3, %v14468_v21, %v14467_v7  ;;  %v14470_v60 = vrot.slane %v10994_v45, 3  ;;  %v14472_v13 = vrot.slane %v14471_v49, 3  ;;  %v14473_v7 = vld [vmem:[#allocation7_spill] sm:$0xff]  ;;  %2916 = vmatpush.msrb.mxu1 %v7201_v63 }
 0x406   : > { %v11089_v39 = vpop.f32.mrf.mxu0  ;;  %14462 = vst [vmem:[#allocation36_spill] sm:$0xff] %v11290_v12  ;;  %v11326_v45 = vmul.f32 %v10760_v32, %v14473_v7  ;;  %v7218_v49 = vld [vmem:[%s13857_s5 + $0xe0] sm:$0xff]  ;;  %v11359_v20 = vmul.f32 %v10790_v58, %v14473_v7  ;;  %v11363_v63 = vmul.f32 %v10848_v57, %v14473_v7  ;;  %v14477_v57 = vrot.slane %v10954_v6, 5 }
 0x407   : > { %14469 = vst [vmem:[#allocation34_spill] sm:$0xff] %v11307_v19  ;;  %v3728_v12 = vsel %vm782_vm2, %v14472_v13, %v14470_v60  ;;  %v7213_v13 = vld [vmem:[%s13857_s5 + $0xc8] sm:$0xff]  ;;  %v7212_v60 = vld [vmem:[%s13857_s5 + $0xc0] sm:$0xff]  ;;  %v14475_v19 = vrot.slane %v11043_v5, 4  ;;  %2917 = vmatpush.msrb.mxu1 %v7200_v11  ;;  %3034 = vmatpush.msra.mxu0 %v7218_v49  ;;  %v11413_v11 = vmul.f32 %v10344_v2, %v14404_v46  ;;  %v14482_v2 = vrot.slane %v10973_v17, 7 }
 0x408   : > { %v3748_v21 = vadd.f32 %v3728_v12, %v3695_v59  ;;  %v11341_v12 = vmul.f32 %v10795_v42, %v14473_v7  ;;  %v11345_v59 = vmul.f32 %v10822_v18, %v14473_v7  ;;  %2994 = vmatpush.msra.mxu3 %v7213_v13  ;;  %14474 = vst [vmem:[#allocation31_spill] sm:$0xff] %v11359_v20  ;;  %v3831_v20 = vrot.slane %v11317_v52, 5  ;;  %v7227_v52 = vld [vmem:[%s13857_s5 + $0x118] sm:$0xff] }
 0x409   : > { %v11367_v13 = vmul.f32 %v10195_v15, %v14438_v54  ;;  %v3781_v47 = vsel %vm836_vm3, %v14476_v48, %v14475_v19  ;;  %v11378_v7 = vmul.f32 %v10205_v24, %v14438_v54  ;;  %v3961_v15 = vadd.f32 %v3942_v25, %v3908_v37  ;;  %v7232_v24 = vld [vmem:[%s13857_s5 + $0x130] sm:$0xff]  ;;  %v7231_v25 = vld [vmem:[%s13857_s5 + $0x128] sm:$0xff] }
 0x40a   : > { %2995 = vmatpush.msra.mxu3 %v7212_v60  ;;  %v14065_v5 = vrot.slane %v11326_v45, 1  ;;  %v3801_v16 = vadd.f32 %v3781_v47, %v3748_v21  ;;  %v14064_v6 = vrot.slane %v11341_v12, 2  ;;  %v14063_v37 = vrot.slane %v11345_v59, 3  ;;  %3099 = vmatpush.msra.mxu2 %v7232_v24 }
 0x40b   : > { %v4374_v47 = vadd.f32 %v11052_v51, %v11218_v38  ;;  %v14480_v21 = vrot.slane %v11263_v14, 6  ;;  %v14481_v51 = vrot.slane %v11087_v53, 5  ;;  %v3884_v38 = vrot.slane %v11367_v13, 6 }
 0x40c   : > { %v3937_v49 = vrot.slane %v11378_v7, 7  ;;  %3100 = vmatpush.msra.mxu2 %v7231_v25  ;;  %v14484_v53 = vrot.slane %v11029_v35, 1  ;;  %v14485_v25 = vrot.slane %v11033_v41, 2  ;;  %v14489_v41 = vrot.slane %v11083_v22, 4  ;;  %v7224_v7 = vld [vmem:[%s13857_s5 + $0x100] sm:$0xff] }
 0x40d   : > { %v14492_v22 = vrot.slane %v11103_v29, 6  ;;  %v14494_v29 = vrot.slane %v11243_v3, 4  ;;  %v14498_v3 = vrot.slane %v11185_v34, 2 }
 0x40e   : > { %v11212_v10 = vpop.f32.mrf.mxu0  ;;  %v11446_v17 = vsel %vm728_vm1, %v14064_v6, %v14485_v25  ;;  %v14503_v6 = vld [vmem:[#allocation15_spill] sm:$0xff] }
 0x416   : > { %v2717_v36 = vpop.f32.mrf.mxu0 }
 0x417   : > { %v2723_v28 = vmax.f32 %v11089_v39, %v2717_v36  ;;  %v14478_v39 = vrot.slane %v11259_v1, 5  ;;  %v14062_v36 = vrot.slane %v11363_v63, 4 }
 0x419   : > { %v11385_v50 = vsel %vm890_vm4, %v14478_v39, %v14477_v57  ;;  %v2728_v19 = vadd.f32 %v11322_v27, %v2723_v28  ;;  %v11399_v57 = vmul.f32 %v10280_v62, %v14404_v46  ;;  %v14479_v28 = vrot.slane %v10969_v30, 6  ;;  %v7230_v62 = vld [vmem:[%s13857_s5 + $0x120] sm:$0xff] }
 0x41a   : > { %v3834_v30 = vsel %vm890_vm4, %v3831_v20, %v14481_v51  ;;  %v3979_v39 = vadd.f32 %v11138_v8, %v3961_v15  ;;  %v14486_v8 = vrot.slane %v11056_v33, 3  ;;  %v14487_v51 = vld [vmem:[#allocation41_spill] sm:$0xff]  ;;  %3101 = vmatpush.msra.mxu2 %v7230_v62  ;;  %v3970_v33 = vmul.f32 %v10330_v40, %v14404_v46 }
 0x41b   : > { %v11408_v48 = vsel %vm944_vm5, %v14480_v21, %v14479_v28  ;;  %v2730_v60 = vmax.f32 %v2728_v19, 0.0  ;;  %v14483_v19 = vrot.slane %v11267_v23, 7  ;;  %v11438_v28 = vsel %vm674_vm0, %v14065_v5, %v14484_v53 }
 0x41c   : > { %v3854_v21 = vadd.f32 %v3834_v30, %v3801_v16  ;;  %v11453_v35 = vsel %vm782_vm2, %v14063_v37, %v14486_v8  ;;  %v14068_v15 = vrot.slane %v11399_v57, 1  ;;  %v14488_v16 = vld [vmem:[#allocation35_spill] sm:$0xff]  ;;  %v11470_v53 = vmul.f32 %v10362_v31, %v14404_v46  ;;  %v14491_v8 = vld [vmem:[#allocation44_spill] sm:$0xff] }
 0x41d   : > { %v11431_v24 = vsel %vm998_vm6, %v14483_v19, %v14482_v2  ;;  %2732 = vst.msk [vmem:[#allocation3 + $0xa] sm:$0xff] %vm573_vm10, %v2730_v60  ;;  %v3747_v30 = vadd.f32 %v14488_v16, %v14487_v51  ;;  %v11463_v2 = vsel %vm836_vm3, %v14062_v36, %v14489_v41  ;;  %v14067_v19 = vrot.slane %v11413_v11, 2 }
 0x41e   : > { %v2720_v60 = vpop.f32.mrf.mxu0  ;;  %14490 = vst [vmem:[#allocation37_spill] sm:$0xff] %v11463_v2  ;;  %v4432_v62 = vadd.f32 %v14491_v8, %v4374_v47  ;;  %v3887_v51 = vsel %vm944_vm5, %v3884_v38, %v14492_v22  ;;  %v14493_v16 = vrot.slane %v11120_v56, 7  ;;  %v11486_v31 = vmul.f32 %v10370_v43, %v14404_v46  ;;  %v14495_v47 = vld [vmem:[#allocation25_spill] sm:$0xff] }
 0x41f   : > { %v2724_v25 = vmax.f32 %v11212_v10, %v2720_v60  ;;  %v3907_v41 = vadd.f32 %v3887_v51, %v3854_v21  ;;  %v11490_v10 = vmul.f32 %v10375_v26, %v14404_v46  ;;  %v14496_v60 = vrot.slane %v14495_v47, 4 }
 0x420   : > { %v3940_v40 = vsel %vm998_vm6, %v3937_v49, %v14493_v16  ;;  %v14497_v22 = vrot.slane %v11181_v61, 1  ;;  %v11507_v43 = vmul.f32 %v10430_v4, %v14404_v46  ;;  %v11514_v51 = vsel %vm728_vm1, %v14067_v19, %v14498_v3 }
 0x421   : > { %v3779_v8 = vsel %vm836_vm3, %v14496_v60, %v14494_v29  ;;  %v2729_v56 = vadd.f32 %v11322_v27, %v2724_v25  ;;  %v14066_v27 = vrot.slane %v11470_v53, 3  ;;  %v11519_v61 = vmul.f32 %v14381_v44, %v14404_v46  ;;  %v14499_v25 = vld [vmem:[#allocation23_spill] sm:$0xff]  ;;  %v14500_v29 = vld [vmem:[#allocation16_spill] sm:$0xff]  ;;  %v14501_v44 = vld [vmem:[#allocation26_spill] sm:$0xff] }
 0x422   : > { %v11503_v21 = vsel %vm674_vm0, %v14068_v15, %v14497_v22  ;;  %v3800_v26 = vadd.f32 %v3779_v8, %v3747_v30  ;;  %v11523_v16 = vmul.f32 %v10790_v58, %v14499_v25  ;;  %v2751_v30 = vrot.slane %v14500_v29, 1 }
 0x423   : > { %v2731_v4 = vmax.f32 %v2729_v56, 0.0  ;;  %v2815_v34 = vrot.slane %v14500_v29, 2  ;;  %v2854_v47 = vrot.slane %v14500_v29, 3  ;;  %v3960_v8 = vadd.f32 %v3940_v40, %v3907_v41 }
 0x424   : > { %v11528_v60 = vld [vmem:[#allocation3 + $0x8] sm:$0xff]  ;;  %v14075_v22 = vrot.slane %v11486_v31, 4  ;;  %v14074_v3 = vrot.slane %v11490_v10, 5  ;;  %v14502_v36 = vrot.slane %v14501_v44, 5  ;;  %v4485_v44 = vadd.f32 %v14503_v6, %v4432_v62  ;;  %v7245_v6 = vld [vmem:[%s13857_s5 + $0x178] sm:$0xff] }
 0x425   : > { %2733 = vst.msk [vmem:[#allocation3 + $0x12] sm:$0xff] %vm573_vm10, %v2731_v4  ;;  %7187 = vmatmul.msk.f32.gmra.mxu2 %vm573_vm10, %v11528_v60  ;;  %v2752_v56 = vrot.slane %v11528_v60, 1  ;;  %v2816_v37 = vrot.slane %v11528_v60, 2  ;;  %v2855_v40 = vrot.slane %v11528_v60, 3  ;;  %v14072_v5 = vrot.slane %v11507_v43, 6 }
 0x426   : > { %v3832_v58 = vsel %vm890_vm4, %v14502_v36, %v3831_v20  ;;  %v4037_v20 = vadd.f32 %v11283_v9, %v3979_v39  ;;  %v14504_v36 = vrot.slane %v11192_v55, 3  ;;  %v7239_v55 = vld [vmem:[%s13857_s5 + $0x158] sm:$0xff]  ;;  %v14071_v39 = vrot.slane %v11519_v61, 7 }
 0x427   : > { %v3853_v41 = vadd.f32 %v3832_v58, %v3800_v26  ;;  %v2753_v26 = vsel %vm674_vm0, %v2751_v30, %v2752_v56  ;;  %v2817_v58 = vsel %vm728_vm1, %v2815_v34, %v2816_v37  ;;  %v2856_v9 = vsel %vm782_vm2, %v2854_v47, %v2855_v40  ;;  %v7226_v34 = vld [vmem:[%s13857_s5 + $0x110] sm:$0xff] }
 0x428   : > { %v11553_v4 = vsel %vm782_vm2, %v14066_v27, %v14504_v36  ;;  %7184 = vmatmul.msk.f32.vlgmr.msra.gmra.mxu1 %vm573_vm10, %v2753_v26  ;;  %7192 = vmatmul.msk.f32.vlgmr.msrb.gmra.mxu3 %vm573_vm10, %v2817_v58  ;;  %v2932_v62 = vrot.slane %v14500_v29, 5  ;;  %v2933_v30 = vrot.slane %v11528_v60, 5  ;;  %v3978_v47 = vadd.f32 %v3970_v33, %v3960_v8  ;;  %v14505_v36 = vld [vmem:[#allocation27_spill] sm:$0xff]  ;;  %v7238_v26 = vld [vmem:[%s13857_s5 + $0x150] sm:$0xff] }
 0x429   : > { %v14506_v27 = vrot.slane %v14505_v36, 6  ;;  %7198 = vmatmul.msk.f32.vlgmr.msrb.gmra.mxu0 %vm573_vm10, %v2856_v9  ;;  %3063 = vmatpush.msra.mxu1 %v7227_v52  ;;  %v7244_v58 = vld [vmem:[%s13857_s5 + $0x170] sm:$0xff]  ;;  %v14507_v15 = vrot.slane %v11210_v0, 4  ;;  %v7225_v8 = vld [vmem:[%s13857_s5 + $0x108] sm:$0xff]  ;;  %v14509_v0 = vrot.slane %v11263_v14, 6  ;;  %v14512_v36 = vrot.slane %v11267_v23, 7 }
 0x42a   : > { %3132 = vmatpush.msrb.mxu3 %v7239_v55  ;;  %3166 = vmatpush.msrb.mxu0 %v7245_v6  ;;  %v7237_v14 = vld [vmem:[%s13857_s5 + $0x148] sm:$0xff]  ;;  %v14510_v9 = vld [vmem:[#allocation29_spill] sm:$0xff] }
 0x42b   : > { %v3885_v19 = vsel %vm944_vm5, %v14506_v27, %v3884_v38  ;;  %v11596_v13 = vsel %vm836_vm3, %v14075_v22, %v14507_v15  ;;  %v14508_v38 = vrot.slane %v11259_v1, 5  ;;  %v11613_v15 = vsel %vm944_vm5, %v14072_v5, %v14509_v0  ;;  %3064 = vmatpush.msra.mxu1 %v7226_v34  ;;  %v7243_v52 = vld [vmem:[%s13857_s5 + $0x168] sm:$0xff]  ;;  %v7257_v23 = vld [vmem:[%s13857_s5 + $0x1b8] sm:$0xff] }
 0x42c   : > { %v3906_v27 = vadd.f32 %v3885_v19, %v3853_v41  ;;  %v11617_v1 = vmul.f32 %v10760_v32, %v14499_v25  ;;  %v7702_v19 = vld [vmem:[%s14088_s1 + $0x9] ss:$0 sm:$0xff]  ;;  %v11632_v55 = vadd.f32 %v14510_v9, %v4485_v44  ;;  %v14511_v32 = vld [vmem:[#allocation36_spill] sm:$0xff]  ;;  %v11644_v34 = vmul.f32 %v10795_v42, %v14499_v25  ;;  %3133 = vmatpush.msrb.mxu3 %v7238_v26 }
 0x42d   : > { %v11603_v33 = vsel %vm890_vm4, %v14074_v3, %v14508_v38  ;;  %v11623_v41 = vmul.f32 %v7702_v19, %v14438_v54  ;;  %v4090_v6 = vadd.f32 %v14511_v32, %v4037_v20  ;;  %v11640_v38 = vsel %vm998_vm6, %v14071_v39, %v14512_v36  ;;  %v11649_v19 = vld [vmem:[#allocation3 + $0x10] sm:$0xff]  ;;  %3167 = vmatpush.msrb.mxu0 %v7244_v58 }
 0x42e   : > { %v2934_v0 = vsel %vm890_vm4, %v2932_v62, %v2933_v30  ;;  %v4036_v44 = vadd.f32 %v11503_v21, %v3978_v47  ;;  %v14513_v20 = vld [vmem:[#allocation28_spill] sm:$0xff]  ;;  %v14073_v62 = vrot.slane %v11649_v19, 1  ;;  %v14070_v32 = vrot.slane %v11649_v19, 2  ;;  %3065 = vmatpush.msra.mxu1 %v7225_v8  ;;  %3134 = vmatpush.msrb.mxu3 %v7237_v14  ;;  %v14516_v8 = vld [vmem:[#allocation42_spill] sm:$0xff] }
 0x42f   : > { %v14514_v9 = vrot.slane %v14513_v20, 7  ;;  %7210 = vmatmul.msk.f32.vlgmr.msrb.gmra.mxu2 %vm573_vm10, %v2934_v0  ;;  %v14069_v26 = vrot.slane %v11649_v19, 3  ;;  %3168 = vmatpush.msrb.mxu0 %v7243_v52  ;;  %v11669_v21 = vmul.f32 %v10822_v18, %v14499_v25  ;;  %v7703_v47 = vld [vmem:[%s14088_s1 + $0xa] ss:$0 sm:$0xff]  ;;  %v7242_v0 = vld [vmem:[%s13857_s5 + $0x160] sm:$0xff] }
 0x430   : > { %v11676_v36 = vmul.f32 %v7703_v47, %v14438_v54  ;;  %v11685_v52 = vsel %vm674_vm0, %v2752_v56, %v14073_v62  ;;  %v11692_v18 = vsel %vm728_vm1, %v2816_v37, %v14070_v32  ;;  %3234 = vmatpush.msrb.mxu2 %v7257_v23  ;;  %v7236_v56 = vld [vmem:[%s13857_s5 + $0x140] sm:$0xff]  ;;  %v7704_v37 = vld [vmem:[%s14088_s1 + $0x8] ss:$0 sm:$0xff]  ;;  %v7256_v23 = vld [vmem:[%s13857_s5 + $0x1b0] sm:$0xff]  ;;  %3066 = vmatpush.msra.mxu1 %v7224_v7 }
 0x431   : > { %v3938_v42 = vsel %vm998_vm6, %v14514_v9, %v3937_v49  ;;  %v4011_v49 = vrot.slane %v11623_v41, 1  ;;  %v11699_v41 = vsel %vm782_vm2, %v2855_v40, %v14069_v26  ;;  %v3969_v20 = vmul.f32 %v7704_v37, %v14438_v54  ;;  %7185 = vmatmul.msk.f32.gmra.mxu1 %vm573_vm10, %v11685_v52  ;;  %7193 = vmatmul.msk.f32.gmra.mxu3 %vm573_vm10, %v11692_v18  ;;  %v14517_v9 = vld [vmem:[#allocation38_spill] sm:$0xff]  ;;  %v14519_v26 = vld [vmem:[#allocation17_spill] sm:$0xff]  ;;  %v7705_v62 = vld [vmem:[%s14088_s1 + $0xb] ss:$0 sm:$0xff] }
 0x432   : > { %v3959_v58 = vadd.f32 %v3938_v42, %v3906_v27  ;;  %v14515_v27 = vld [vmem:[#allocation40_spill] sm:$0xff]  ;;  %v14076_v40 = vrot.slane %v11649_v19, 5  ;;  %v4143_v42 = vadd.f32 %v14517_v9, %v4090_v6  ;;  %v3968_v32 = vmul.f32 %v7704_v37, %v14519_v26  ;;  %7199 = vmatmul.msk.f32.gmra.mxu0 %vm573_vm10, %v11699_v41  ;;  %3135 = vmatpush.msrb.mxu3 %v7236_v56  ;;  %v14521_v56 = vld [vmem:[#allocation33_spill] sm:$0xff] }
 0x433   : > { %v3958_v14 = vadd.f32 %v14516_v8, %v14515_v27  ;;  %v14518_v27 = vld [vmem:[#allocation39_spill] sm:$0xff]  ;;  %v4089_v39 = vadd.f32 %v11514_v51, %v4036_v44  ;;  %v11732_v3 = vmul.f32 %v7705_v62, %v14438_v54  ;;  %3169 = vmatpush.msrb.mxu0 %v7242_v0  ;;  %v4064_v37 = vrot.slane %v11676_v36, 2  ;;  %3235 = vmatpush.msrb.mxu2 %v7256_v23  ;;  %v14522_v23 = vld [vmem:[#allocation34_spill] sm:$0xff] }
 0x434   : > { %v11722_v8 = vmul.f32 %v14518_v27, %v14499_v25  ;;  %v3977_v5 = vadd.f32 %v3969_v20, %v3959_v58  ;;  %v14520_v25 = vrot.slane %v11399_v57, 1  ;;  %v11739_v7 = vmul.f32 %v7703_v47, %v14519_v26  ;;  %v7255_v57 = vld [vmem:[%s13857_s5 + $0x1a8] sm:$0xff]  ;;  %v7254_v20 = vld [vmem:[%s13857_s5 + $0x1a0] sm:$0xff] }
 0x435   : > { %v3976_v9 = vadd.f32 %v3968_v32, %v3958_v14  ;;  %v2893_v51 = vrot.slane %v14500_v29, 4  ;;  %v14077_v44 = vrot.slane %v11528_v60, 4  ;;  %v2971_v58 = vrot.slane %v14500_v29, 6  ;;  %3236 = vmatpush.msrb.mxu2 %v7255_v57  ;;  %v7251_v14 = vld [vmem:[%s13857_s5 + $0x198] sm:$0xff] }
 0x436   : > { %v4014_v6 = vsel %vm674_vm0, %v4011_v49, %v14520_v25  ;;  %v11753_v32 = vsel %vm890_vm4, %v2933_v30, %v14076_v40  ;;  %v3010_v36 = vrot.slane %v14500_v29, 7  ;;  %v4043_v0 = vmul.f32 %v7703_v47, %v14521_v56  ;;  %v7263_v30 = vld [vmem:[%s13857_s5 + $0x1d8] sm:$0xff]  ;;  %v7706_v47 = vld [vmem:[%s14088_s1 + $0xc] ss:$0 sm:$0xff] }
 0x437   : > { %7211 = vmatmul.msk.f32.gmra.mxu2 %vm573_vm10, %v11753_v32  ;;  %v4196_v27 = vadd.f32 %v14522_v23, %v4143_v42  ;;  %v4142_v25 = vadd.f32 %v11553_v4, %v4089_v39  ;;  %v4035_v22 = vadd.f32 %v4014_v6, %v3977_v5  ;;  %v14523_v29 = vrot.slane %v11413_v11, 2  ;;  %v11778_v5 = vld [vmem:[%s14088_s1 + $0xd] ss:$0 sm:$0xff]  ;;  %v14524_v39 = vld [vmem:[#allocation30_spill] sm:$0xff] }
 0x438   : > { %v11773_v42 = vmul.f32 %v7706_v47, %v14438_v54  ;;  %v11782_v4 = vmul.f32 %v11778_v5, %v14438_v54  ;;  %v14525_v11 = vrot.slane %v14524_v39, 1  ;;  %v2895_v57 = vsel %vm836_vm3, %v2893_v51, %v14077_v44  ;;  %3237 = vmatpush.msrb.mxu2 %v7254_v20 }
 0x439   : > { %v4067_v40 = vsel %vm728_vm1, %v4064_v37, %v14523_v29  ;;  %v14526_v23 = vrot.slane %v11528_v60, 6  ;;  %v11800_v39 = vmul.f32 %v7705_v62, %v14519_v26  ;;  %7204 = vmatmul.msk.f32.vlgmr.msrb.gmra.mxu1 %vm573_vm10, %v2895_v57  ;;  %v4249_v57 = vadd.f32 %v11385_v50, %v4196_v27 }
 0x43a   : > { %v4012_v6 = vsel %vm674_vm0, %v14525_v11, %v4011_v49  ;;  %v14527_v49 = vrot.slane %v11528_v60, 7  ;;  %v7269_v11 = vld [vmem:[%s13857_s5 + $0x1f8] sm:$0xff]  ;;  %3200 = vmatpush.msrb.mxu1 %v7251_v14  ;;  %v14529_v50 = vrot.slane %v11732_v3, 3  ;;  %v7249_v14 = vld [vmem:[%s13857_s5 + $0x188] sm:$0xff] }
 0x43b   : > { %v2973_v29 = vsel %vm944_vm5, %v2971_v58, %v14526_v23  ;;  %v4034_v2 = vadd.f32 %v4012_v6, %v3976_v9  ;;  %v7262_v58 = vld [vmem:[%s13857_s5 + $0x1d0] sm:$0xff]  ;;  %v4062_v9 = vrot.slane %v11739_v7, 2  ;;  %v4061_v6 = vrot.slane %v4043_v0, 2 }
 0x43c   : > { %7216 = vmatmul.msk.f32.vlgmr.msra.gmra.mxu3 %vm573_vm10, %v2973_v29  ;;  %v3012_v51 = vsel %vm998_vm6, %v3010_v36, %v14527_v49  ;;  %v4096_v23 = vmul.f32 %v7705_v62, %v14521_v56  ;;  %v7250_v36 = vld [vmem:[%s13857_s5 + $0x190] sm:$0xff]  ;;  %v4088_v29 = vadd.f32 %v4067_v40, %v4035_v22  ;;  %v11823_v49 = vld [vmem:[%s14088_s1 + $0xe] ss:$0 sm:$0xff]  ;;  %v14528_v0 = vrot.slane %v11470_v53, 3 }
 0x43d   : > { %7222 = vmatmul.msk.f32.vlgmr.msra.gmra.mxu0 %vm573_vm10, %v3012_v51  ;;  %3268 = vmatpush.msra.mxu3 %v7263_v30  ;;  %v11827_v7 = vmul.f32 %v11823_v49, %v14438_v54  ;;  %v7261_v62 = vld [vmem:[%s13857_s5 + $0x1c8] sm:$0xff]  ;;  %v4170_v40 = vrot.slane %v11773_v42, 4  ;;  %v4065_v27 = vsel %vm728_vm1, %v4062_v9, %v4064_v37  ;;  %v11840_v30 = vmul.f32 %v7706_v47, %v14519_v26  ;;  %v7268_v53 = vld [vmem:[%s13857_s5 + $0x1f0] sm:$0xff] }
 0x43e   : > { %v4120_v22 = vsel %vm782_vm2, %v14529_v50, %v14528_v0  ;;  %3302 = vmatpush.msra.mxu0 %v7269_v11  ;;  %v4087_v42 = vadd.f32 %v4065_v27, %v4034_v2  ;;  %v4149_v37 = vmul.f32 %v7706_v47, %v14521_v56  ;;  %v7260_v50 = vld [vmem:[%s13857_s5 + $0x1c0] sm:$0xff]  ;;  %3201 = vmatpush.msrb.mxu1 %v7250_v36  ;;  %v4115_v11 = vrot.slane %v11800_v39, 3  ;;  %v11862_v2 = vld [vmem:[#allocation3 + $0x18] sm:$0xff] }
 0x43f   : > { %3269 = vmatpush.msra.mxu3 %v7262_v58  ;;  %v7281_v58 = vld [vmem:[%s13857_s5 + $0x238] sm:$0xff]  ;;  %v4063_v51 = vsel %vm728_vm1, %v4061_v6, %v4062_v9  ;;  %v4114_v44 = vrot.slane %v4096_v23, 3  ;;  %7234 = vmatmul.msk.f32.vlgmr.msra.gmra.mxu2 %vm573_vm10, %v11685_v52  ;;  %v4195_v47 = vadd.f32 %v11596_v13, %v4142_v25  ;;  %v4141_v27 = vadd.f32 %v4120_v22, %v4088_v29  ;;  %v7248_v39 = vld [vmem:[%s13857_s5 + $0x180] sm:$0xff] }
 0x440   : > { %v4223_v36 = vrot.slane %v11782_v4, 5  ;;  %v14530_v0 = vld [vmem:[#allocation18_spill] sm:$0xff]  ;;  %3303 = vmatpush.msra.mxu0 %v7268_v53  ;;  %3202 = vmatpush.msrb.mxu1 %v7249_v14  ;;  %v14531_v9 = vrot.slane %v11486_v31, 4  ;;  %v14532_v6 = vrot.slane %v11732_v3, 3  ;;  %v4168_v13 = vrot.slane %v11840_v30, 4  ;;  %v7267_v30 = vld [vmem:[%s13857_s5 + $0x1e8] sm:$0xff] }
 0x441   : > { %3270 = vmatpush.msra.mxu3 %v7261_v62  ;;  %v4086_v20 = vadd.f32 %v4063_v51, %v14530_v0  ;;  %v11879_v25 = vmul.f32 %v11778_v5, %v14519_v26  ;;  %v14533_v4 = vrot.slane %v11649_v19, 4  ;;  %v14534_v29 = vrot.slane %v11528_v60, 4  ;;  %3369 = vmatpush.msra.mxu2 %v7281_v58  ;;  %v7280_v51 = vld [vmem:[%s13857_s5 + $0x230] sm:$0xff] }
 0x442   : > { %v4173_v52 = vsel %vm836_vm3, %v4170_v40, %v14531_v9  ;;  %v4118_v23 = vsel %vm782_vm2, %v4115_v11, %v14532_v6  ;;  %v14535_v31 = vrot.slane %v11649_v19, 6  ;;  %v14536_v22 = vrot.slane %v11528_v60, 6  ;;  %3203 = vmatpush.msrb.mxu1 %v7248_v39  ;;  %3304 = vmatpush.msra.mxu0 %v7267_v30 }
 0x443   : > { %v11886_v62 = vsel %vm836_vm3, %v14534_v29, %v14533_v4  ;;  %3271 = vmatpush.msra.mxu3 %v7260_v50  ;;  %v4140_v53 = vadd.f32 %v4118_v23, %v4087_v42  ;;  %v4167_v14 = vrot.slane %v4149_v37, 4  ;;  %v14537_v0 = vrot.slane %v11649_v19, 7  ;;  %v7266_v37 = vld [vmem:[%s13857_s5 + $0x1e0] sm:$0xff]  ;;  %v7279_v23 = vld [vmem:[%s13857_s5 + $0x228] sm:$0xff]  ;;  %3370 = vmatpush.msra.mxu2 %v7280_v51 }
 0x444   : > { %v11893_v3 = vsel %vm944_vm5, %v14536_v22, %v14535_v31  ;;  %7205 = vmatmul.msk.f32.gmra.mxu1 %vm573_vm10, %v11886_v62  ;;  %v14538_v50 = vrot.slane %v11528_v60, 7  ;;  %v3082_v58 = vrot.slane %v11862_v2, 1  ;;  %v4116_v6 = vsel %vm782_vm2, %v4114_v44, %v4115_v11  ;;  %v7709_v11 = vld [vmem:[%s14088_s1 + $0xf] ss:$0 sm:$0xff]  ;;  %3305 = vmatpush.msra.mxu0 %v7266_v37 }
 0x445   : > { %7217 = vmatmul.msk.f32.gmra.mxu3 %vm573_vm10, %v11893_v3  ;;  %v4202_v42 = vmul.f32 %v11778_v5, %v14521_v56  ;;  %v4302_v4 = vadd.f32 %v11408_v48, %v4249_v57  ;;  %v4194_v29 = vadd.f32 %v4173_v52, %v4141_v27  ;;  %v4139_v31 = vadd.f32 %v4116_v6, %v4086_v20  ;;  %v7278_v48 = vld [vmem:[%s13857_s5 + $0x220] sm:$0xff] }
 0x446   : > { %v11910_v9 = vsel %vm998_vm6, %v14538_v50, %v14537_v0  ;;  %v4248_v44 = vadd.f32 %v11603_v33, %v4195_v47  ;;  %v4276_v5 = vrot.slane %v11827_v7, 6  ;;  %v11931_v39 = vmul.f32 %v7709_v11, %v14438_v54  ;;  %3371 = vmatpush.msra.mxu2 %v7279_v23  ;;  %v7287_v50 = vld [vmem:[%s13857_s5 + $0x258] sm:$0xff] }
 0x447   : > { %7223 = vmatmul.msk.f32.gmra.mxu0 %vm573_vm10, %v11910_v9  ;;  %v4171_v22 = vsel %vm836_vm3, %v4168_v13, %v4170_v40  ;;  %v14539_v57 = vrot.slane %v11490_v10, 5  ;;  %v4221_v7 = vrot.slane %v11879_v25, 5  ;;  %v4256_v47 = vmul.f32 %v11823_v49, %v14519_v26  ;;  %v14541_v25 = vld [vmem:[#allocation24_spill] sm:$0xff]  ;;  %v7275_v23 = vld [vmem:[%s13857_s5 + $0x218] sm:$0xff] }
 0x448   : > { %v4193_v33 = vadd.f32 %v4171_v22, %v4140_v53  ;;  %v14540_v27 = vrot.slane %v11649_v19, 1  ;;  %v4169_v52 = vsel %vm836_vm3, %v4167_v14, %v4168_v13  ;;  %v4220_v10 = vrot.slane %v4202_v42, 5  ;;  %3372 = vmatpush.msra.mxu2 %v7278_v48  ;;  %v7274_v48 = vld [vmem:[%s13857_s5 + $0x210] sm:$0xff] }
 0x449   : > { %v4226_v20 = vsel %vm890_vm4, %v4223_v36, %v14539_v57  ;;  %v4255_v30 = vmul.f32 %v11823_v49, %v14521_v56  ;;  %v11957_v51 = vadd.f32 %v14541_v25, %v11632_v55  ;;  %v4192_v0 = vadd.f32 %v4169_v52, %v4139_v31  ;;  %v7273_v25 = vld [vmem:[%s13857_s5 + $0x208] sm:$0xff] }
 0x44a   : > { %v11948_v40 = vsel %vm674_vm0, %v14540_v27, %v3082_v58  ;;  %v4247_v53 = vadd.f32 %v4226_v20, %v4194_v29  ;;  %v4355_v13 = vadd.f32 %v11431_v24, %v4302_v4  ;;  %v4407_v14 = vrot.slane %v11617_v1, 1  ;;  %v7293_v24 = vld [vmem:[%s13857_s5 + $0x278] sm:$0xff]  ;;  %v7710_v20 = vld [vmem:[%s14088_s1 + $0x11] ss:$0 sm:$0xff] }
 0x44b   : > { %7235 = vmatmul.msk.f32.gmra.mxu2 %vm573_vm10, %v11948_v40  ;;  %v14542_v49 = vrot.slane %v11507_v43, 6  ;;  %v4224_v42 = vsel %vm890_vm4, %v4221_v7, %v4223_v36  ;;  %v14543_v55 = vmov 0.0   ;;  %v4301_v37 = vadd.f32 %v11613_v15, %v4248_v44  ;;  %v7286_v15 = vld [vmem:[%s13857_s5 + $0x250] sm:$0xff] }
 0x44c   : > { %579 = vst.msk [vmem:[#allocation3 + $0x20] sm:$0xf] %vm578_vm12, %v14543_v55  ;;  %v4329_v4 = vrot.slane %v11931_v39, 7  ;;  %v4246_v29 = vadd.f32 %v4224_v42, %v4193_v33  ;;  %v11978_v43 = vmul.f32 %v7709_v11, %v14519_v26  ;;  %7228 = vmatmul.msk.f32.vlgmr.msra.gmra.mxu1 %vm573_vm10, %v11528_v60  ;;  %v4274_v36 = vrot.slane %v4256_v47, 6 }
 0x44d   : > { %v4279_v6 = vsel %vm944_vm5, %v4276_v5, %v14542_v49  ;;  %7240 = vmatmul.msk.f32.vlgmr.msrb.gmra.mxu3 %vm573_vm10, %v11692_v18  ;;  %v4222_v31 = vsel %vm890_vm4, %v4220_v10, %v4221_v7  ;;  %v4273_v44 = vrot.slane %v4255_v30, 6  ;;  %v4308_v39 = vmul.f32 %v7709_v11, %v14521_v56  ;;  %v7292_v56 = vld [vmem:[%s13857_s5 + $0x270] sm:$0xff]  ;;  %3334 = vmatpush.msra.mxu1 %v7275_v23 }
 0x44e   : > { %3403 = vmatpush.msrb.mxu3 %v7287_v50  ;;  %v14544_v22 = vrot.slane %v11326_v45, 1  ;;  %v4300_v18 = vadd.f32 %v4279_v6, %v4247_v53  ;;  %v4245_v11 = vadd.f32 %v4222_v31, %v4192_v0  ;;  %v14545_v45 = vld [vmem:[#allocation31_spill] sm:$0xff]  ;;  %v12012_v33 = vmul.f32 %v7710_v20, %v14404_v46  ;;  %v7711_v6 = vld [vmem:[%s14088_s1 + $0x10] ss:$0 sm:$0xff]  ;;  %v7712_v23 = vld [vmem:[%s14088_s1 + $0x12] ss:$0 sm:$0xff] }
 0x44f   : > { %7246 = vmatmul.msk.f32.vlgmr.msrb.gmra.mxu0 %vm573_vm10, %v11699_v41  ;;  %v7285_v41 = vld [vmem:[%s13857_s5 + $0x248] sm:$0xff]  ;;  %v4373_v57 = vadd.f32 %v14545_v45, %v4355_v13  ;;  %v4277_v7 = vsel %vm944_vm5, %v4274_v36, %v4276_v5  ;;  %v3116_v47 = vrot.slane %v11862_v2, 2  ;;  %v4354_v27 = vadd.f32 %v11640_v38, %v4301_v37  ;;  %v7284_v0 = vld [vmem:[%s13857_s5 + $0x240] sm:$0xff]  ;;  %3335 = vmatpush.msra.mxu1 %v7274_v48 }
 0x450   : > { %v11996_v60 = vsel %vm674_vm0, %v4407_v14, %v14544_v22  ;;  %3437 = vmatpush.msrb.mxu0 %v7293_v24  ;;  %3404 = vmatpush.msrb.mxu3 %v7286_v15  ;;  %v14546_v52 = vrot.slane %v11519_v61, 7  ;;  %v4299_v30 = vadd.f32 %v4277_v7, %v4246_v29  ;;  %v7291_v53 = vld [vmem:[%s13857_s5 + $0x268] sm:$0xff]  ;;  %v3150_v5 = vrot.slane %v11862_v2, 3 }
 0x451   : > { %v4327_v61 = vrot.slane %v11978_v43, 7  ;;  %v4275_v38 = vsel %vm944_vm5, %v4273_v44, %v4274_v36  ;;  %v4326_v50 = vrot.slane %v4308_v39, 7  ;;  %v4460_v13 = vrot.slane %v11644_v34, 2  ;;  %3336 = vmatpush.msra.mxu1 %v7273_v25  ;;  %v7272_v43 = vld [vmem:[%s13857_s5 + $0x200] sm:$0xff] }
 0x452   : > { %v4332_v10 = vsel %vm998_vm6, %v4329_v4, %v14546_v52  ;;  %3438 = vmatpush.msrb.mxu0 %v7292_v56  ;;  %3405 = vmatpush.msrb.mxu3 %v7285_v41  ;;  %v4363_v42 = vmul.f32 %v7711_v6, %v14404_v46  ;;  %v4298_v55 = vadd.f32 %v4275_v38, %v4245_v11  ;;  %v4513_v37 = vrot.slane %v11669_v21, 3  ;;  %v7290_v39 = vld [vmem:[%s13857_s5 + $0x260] sm:$0xff] }
 0x453   : > { %7258 = vmatmul.msk.f32.vlgmr.msrb.gmra.mxu2 %vm573_vm10, %v11753_v32  ;;  %v4353_v49 = vadd.f32 %v4332_v10, %v4300_v18  ;;  %v12044_v24 = vmul.f32 %v7712_v23, %v14404_v46  ;;  %v4330_v32 = vsel %vm998_vm6, %v4327_v61, %v4329_v4  ;;  %v4385_v29 = vmul.f32 %v7710_v20, %v14438_v54 }
 0x454   : > { %3439 = vmatpush.msrb.mxu0 %v7291_v53  ;;  %v14547_v15 = vrot.slane %v11649_v19, 2  ;;  %3406 = vmatpush.msrb.mxu3 %v7284_v0  ;;  %v4372_v31 = vadd.f32 %v11523_v16, %v4354_v27  ;;  %v4405_v4 = vrot.slane %v12012_v33, 1  ;;  %v4352_v44 = vadd.f32 %v4330_v32, %v4299_v30  ;;  %v7713_v30 = vld [vmem:[%s14088_s1 + $0x13] ss:$0 sm:$0xff] }
 0x455   : > { %7229 = vmatmul.msk.f32.gmra.mxu1 %vm573_vm10, %v11649_v19  ;;  %v14548_v22 = vrot.slane %v11649_v19, 3  ;;  %v3218_v16 = vrot.slane %v11862_v2, 5  ;;  %v4431_v48 = vadd.f32 %v11438_v28, %v4373_v57  ;;  %v4328_v56 = vsel %vm998_vm6, %v4326_v50, %v4327_v61 }
 0x456   : > { %v12056_v36 = vsel %vm728_vm1, %v14547_v15, %v3116_v47  ;;  %v4566_v11 = vrot.slane %v11722_v8, 4  ;;  %v4371_v41 = vadd.f32 %v4363_v42, %v4353_v49  ;;  %v4362_v45 = vmul.f32 %v7711_v6, %v14438_v54  ;;  %3337 = vmatpush.msra.mxu1 %v7272_v43  ;;  %3440 = vmatpush.msrb.mxu0 %v7290_v39  ;;  %v7714_v43 = vld [vmem:[%s14088_s1 + $0x14] ss:$0 sm:$0xff]  ;;  %s431_s1 = sand.u32 1, %s7770_s26  }
 0x457   : > { %7241 = vmatmul.msk.f32.gmra.mxu3 %vm573_vm10, %v12056_v36  ;;  %v12072_v18 = vsel %vm782_vm2, %v14548_v22, %v3150_v5  ;;  %v4351_v33 = vadd.f32 %v4328_v56, %v4298_v55  ;;  %v14549_v7 = vrot.slane %v11341_v12, 2  ;;  %v4403_v52 = vrot.slane %v4385_v29, 1  ;;  %v14553_v39 = vld [vmem:[#allocation21_spill] sm:$0xff]  ;;  %v14554_v56 = vld [vmem:[#allocation46_spill] sm:$0xff]  ;;  %s432_s16 = scalar_lea.vmem [#allocation4], %s431_s1  ;;  %s6947_s22 = scalar_lea.sflag [#allocation5], %s431_s1 }
 0x458   : > { %7247 = vmatmul.msk.f32.gmra.mxu0 %vm573_vm10, %v12072_v18  ;;  %v4438_v28 = vmul.f32 %v7712_v23, %v14438_v54  ;;  %v4384_v57 = vmul.f32 %v7710_v20, %v14519_v26  ;;  %v4430_v10 = vadd.f32 %v11996_v60, %v4372_v31  ;;  %v4492_v25 = vmul.f32 %v7713_v30, %v14404_v46  ;;  %s6957_s20 = sshll.u32 %s432_s16, 4  ;;  %s6958_s20 = int_to_ptr.vmem [resolvable:$true] %s6957_s20 }
 0x459   : > { %v4463_v27 = vsel %vm728_vm1, %v4460_v13, %v14549_v7  ;;  %v4370_v53 = vadd.f32 %v4362_v45, %v4352_v44  ;;  %v4361_v12 = vmul.f32 %v7711_v6, %v14519_v26  ;;  %v14550_v0 = vrot.slane %v11649_v19, 5 }
 0x45a   : > { %v4484_v38 = vadd.f32 %v11446_v17, %v4431_v48  ;;  %v4408_v20 = vsel %vm674_vm0, %v4405_v4, %v4407_v14  ;;  %v4458_v60 = vrot.slane %v12044_v24, 2  ;;  %v14551_v50 = vrot.slane %v11345_v59, 3 }
 0x45b   : > { %v3219_v61 = vsel %vm890_vm4, %v14550_v0, %v3218_v16  ;;  %v4429_v6 = vadd.f32 %v4408_v20, %v4371_v41  ;;  %v12109_v42 = vmul.f32 %v7713_v30, %v14438_v54  ;;  %v4369_v55 = vadd.f32 %v4361_v12, %v4351_v33  ;;  %v7297_v33 = vld [vmem:[%s13857_s5 + $0x288] sm:$0xff] }
 0x45c   : > { %7259 = vmatmul.msk.f32.gmra.mxu2 %vm573_vm10, %v3219_v61  ;;  %v4516_v49 = vsel %vm782_vm2, %v4513_v37, %v14551_v50  ;;  %v4406_v17 = vsel %vm674_vm0, %v4403_v52, %v4405_v4  ;;  %v4456_v1 = vrot.slane %v4438_v28, 2  ;;  %v4402_v32 = vrot.slane %v4384_v57, 1  ;;  %v7299_v4 = vld [vmem:[%s13857_s5 + $0x298] sm:$0xff]  ;;  %v7296_v50 = vld [vmem:[%s13857_s5 + $0x280] sm:$0xff] }
 0x45d   : > { %v4437_v14 = vmul.f32 %v7712_v23, %v14519_v26  ;;  %v4483_v24 = vadd.f32 %v4463_v27, %v4430_v10  ;;  %v14552_v29 = vrot.slane %v11363_v63, 4  ;;  %v4545_v15 = vmul.f32 %v7714_v43, %v14404_v46  ;;  %7252 = vmatmul.msk.f32.vlgmr.msrb.gmra.mxu1 %vm573_vm10, %v11886_v62  ;;  %v14555_v57 = vld [vmem:[#allocation37_spill] sm:$0xff] }
 0x45e   : > { %v4428_v31 = vadd.f32 %v4406_v17, %v4370_v53  ;;  %v4537_v63 = vadd.f32 %v11453_v35, %v4484_v38  ;;  %v4461_v23 = vsel %vm728_vm1, %v4458_v60, %v4460_v13  ;;  %v4511_v44 = vrot.slane %v4492_v25, 3  ;;  %v7298_v35 = vld [vmem:[%s13857_s5 + $0x290] sm:$0xff]  ;;  %3471 = vmatpush.msrb.mxu1 %v7299_v4  ;;  %v2738_v25 = vld [vmem:[#allocation3 + $0x20] sm:$0xf] }
 0x45f   : > { %v4569_v59 = vsel %vm836_vm3, %v4566_v11, %v14552_v29  ;;  %7264 = vmatmul.msk.f32.vlgmr.msra.gmra.mxu3 %vm573_vm10, %v11893_v3  ;;  %v4404_v46 = vsel %vm674_vm0, %v4402_v32, %v4403_v52  ;;  %v4482_v22 = vadd.f32 %v4461_v23, %v4429_v6  ;;  %v4544_v62 = vmul.f32 %v7714_v43, %v14438_v54 }
 0x460   : > { %7270 = vmatmul.msk.f32.vlgmr.msra.gmra.mxu0 %vm573_vm10, %v11910_v9  ;;  %4602 = vmatpush.msra.mxu3 %v14553_v39  ;;  %v4427_v16 = vadd.f32 %v4404_v46, %v4369_v55  ;;  %v4459_v34 = vsel %vm728_vm1, %v4456_v1, %v4458_v60  ;;  %v4509_v3 = vrot.slane %v12109_v42, 3  ;;  %v4455_v13 = vrot.slane %v4437_v14, 2  ;;  %v14565_v39 = vld [vmem:[#allocation22_spill] sm:$0xff] }
 0x461   : > { %v4490_v48 = vmul.f32 %v7713_v30, %v14519_v26  ;;  %v3184_v9 = vrot.slane %v11862_v2, 4  ;;  %v3252_v41 = vrot.slane %v11862_v2, 6  ;;  %v4536_v54 = vadd.f32 %v4516_v49, %v4483_v24  ;;  %3472 = vmatpush.msrb.mxu1 %v7298_v35 }
 0x462   : > { %4603 = vmatpush.msra.mxu3 %v14554_v56  ;;  %v4481_v45 = vadd.f32 %v4459_v34, %v4428_v31  ;;  %v3286_v7 = vrot.slane %v11862_v2, 7  ;;  %v4514_v27 = vsel %vm782_vm2, %v4511_v44, %v4513_v37  ;;  %v4564_v52 = vrot.slane %v4545_v15, 4  ;;  %v14561_v31 = vld [vmem:[#allocation10_spill] sm:$0xff]  ;;  %v14566_v34 = vld [vmem:[#allocation12_spill] sm:$0xff] }
 0x463   : > { %v4457_v28 = vsel %vm728_vm1, %v4455_v13, %v4456_v1  ;;  %v4590_v10 = vadd.f32 %v14555_v57, %v4537_v63  ;;  %v4535_v30 = vadd.f32 %v4514_v27, %v4482_v22  ;;  %v4512_v12 = vsel %vm782_vm2, %v4509_v3, %v4511_v44  ;;  %3473 = vmatpush.msrb.mxu1 %v7297_v33  ;;  %v14564_v63 = vld [vmem:[#allocation13_spill] sm:$0xff] }
 0x464   : > { %4604 = vmatpush.msra.mxu3 %v11957_v51  ;;  %7282 = vmatmul.msk.f32.vlgmr.msra.gmra.mxu2 %vm573_vm10, %v11948_v40  ;;  %v4480_v53 = vadd.f32 %v4457_v28, %v4427_v16  ;;  %v4562_v0 = vrot.slane %v4544_v62, 4  ;;  %v4508_v21 = vrot.slane %v4490_v48, 3  ;;  %v4543_v37 = vmul.f32 %v7714_v43, %v14519_v26 }
 0x465   : > { %v14556_v61 = vrot.slane %v11649_v19, 4  ;;  %v14557_v38 = vrot.slane %v11649_v19, 6  ;;  %v4589_v20 = vadd.f32 %v4569_v59, %v4536_v54  ;;  %v4534_v60 = vadd.f32 %v4512_v12, %v4481_v45  ;;  %3474 = vmatpush.msrb.mxu1 %v7296_v50 }
 0x466   : > { %4605 = vmatpush.msra.mxu3 %v4590_v10  ;;  %v14558_v26 = vrot.slane %v11649_v19, 7  ;;  %v4567_v6 = vsel %vm836_vm3, %v4564_v52, %v4566_v11  ;;  %v3353_v42 = vrot.slane %v2738_v25, 1  ;;  %v4510_v55 = vsel %vm782_vm2, %v4508_v21, %v4509_v3 }
 0x467   : > { %v3185_v51 = vsel %vm836_vm3, %v14556_v61, %v3184_v9  ;;  %v3253_v40 = vsel %vm944_vm5, %v14557_v38, %v3252_v41  ;;  %v4588_v17 = vadd.f32 %v4567_v6, %v4535_v30  ;;  %v4533_v1 = vadd.f32 %v4510_v55, %v4480_v53 }
 0x468   : > { %7253 = vmatmul.msk.f32.gmra.mxu1 %vm573_vm10, %v3185_v51  ;;  %7265 = vmatmul.msk.f32.gmra.mxu3 %vm573_vm10, %v3253_v40  ;;  %v3287_v49 = vsel %vm998_vm6, %v14558_v26, %v3286_v7  ;;  %v4565_v32 = vsel %vm836_vm3, %v4562_v0, %v4564_v52  ;;  %v4561_v14 = vrot.slane %v4543_v37, 4  ;;  %v3354_v8 = vsel %vm674_vm0, %v3082_v58, %v3353_v42 }
 0x469   : > { %7271 = vmatmul.msk.f32.gmra.mxu0 %vm573_vm10, %v3287_v49  ;;  %4606 = vmatpush.msra.mxu3 %v4589_v20  ;;  %v4587_v24 = vadd.f32 %v4565_v32, %v4534_v60  ;;  %v3387_v59 = vrot.slane %v2738_v25, 2  ;;  %v3421_v43 = vrot.slane %v2738_v25, 3 }
 0x46a   : > { %v4563_v11 = vsel %vm836_vm3, %v4561_v14, %v4562_v0 }
 0x46b   : > { %4607 = vmatpush.msra.mxu3 %v4588_v17  ;;  %v4586_v29 = vadd.f32 %v4563_v11, %v4533_v1  ;;  %v3388_v58 = vsel %vm728_vm1, %v3116_v47, %v3387_v59  ;;  %v14560_v47 = vld [vmem:[#allocation9_spill] sm:$0xff] }
 0x46c   : > { %7283 = vmatmul.msk.f32.gmra.mxu2 %vm573_vm10, %v3354_v8 }
 0x46d   : > { %4608 = vmatpush.msra.mxu3 %v4587_v24 }
 0x46f   : > { %4609 = vmatpush.msra.mxu3 %v4586_v29 }
 0x470   : > { %7276 = vmatmul.msk.f32.vlgmr.msra.gmra.mxu1 %vm573_vm10, %v11649_v19  ;;  %7288 = vmatmul.msk.f32.vlgmr.msrb.gmra.mxu3 %vm573_vm10, %v12056_v36  ;;  %v3422_v19 = vsel %vm782_vm2, %v3150_v5, %v3421_v43  ;;  %v14559_v36 = vld [vmem:[#allocation19_spill] sm:$0xff]  ;;  %v14563_v5 = vld [vmem:[#allocation8_spill] sm:$0xff]  ;;  %v2804_v4 = vpop.f32.mrf.mxu2 }
 0x471   : > { %7294 = vmatmul.msk.f32.vlgmr.msrb.gmra.mxu0 %vm573_vm10, %v12072_v18  ;;  %v3455_v18 = vrot.slane %v2738_v25, 4 }
 0x473   : > { %v3456_v15 = vsel %vm836_vm3, %v3184_v9, %v3455_v18 }
 0x478   : > { %7277 = vmatmul.msk.f32.gmra.mxu1 %vm573_vm10, %v11862_v2  ;;  %7289 = vmatmul.msk.f32.gmra.mxu3 %vm573_vm10, %v3388_v58  ;;  %v14562_v2 = vld [vmem:[#allocation11_spill] sm:$0xff] }
 0x479   : > { %7295 = vmatmul.msk.f32.gmra.mxu0 %vm573_vm10, %v3422_v19 }
 0x480   : > { %7300 = vmatmul.msk.f32.vlgmr.msrb.gmra.mxu1 %vm573_vm10, %v3185_v51  ;;  %7315 = vmatmul.msk.f32.vlgmr.msra.gmra.mxu3 %vm1661_vm8, %v14559_v36 }
 0x488   : > { %7301 = vmatmul.msk.f32.gmra.mxu1 %vm573_vm10, %v3456_v15  ;;  %7316 = vmatmul.msk.f32.gmra.mxu3 %vm1661_vm8, %v14560_v47 }
 0x490   : > { %7317 = vmatmul.msk.f32.gmra.mxu3 %vm1661_vm8, %v14561_v31 }
 0x498   : > { %7318 = vmatmul.msk.f32.gmra.mxu3 %vm1661_vm8, %v14562_v2 }
 0x4a0   : > { %7319 = vmatmul.msk.f32.gmra.mxu3 %vm1661_vm8, %v14563_v5 }
 0x4a5   : > { %v2777_v23 = vpop.f32.mrf.mxu1 }
 0x4a6   : > { %v2880_v44 = vpop.f32.mrf.mxu0  ;;  %v2805_v52 = vadd.f32 %v2804_v4, %v2777_v23 }
 0x4a8   : > { %7320 = vmatmul.msk.f32.gmra.mxu3 %vm1661_vm8, %v14564_v63  ;;  %v2807_v46 = vpop.f32.mrf.mxu2 }
 0x4ab   : > { %v2841_v22 = vpop.f32.mrf.mxu3 }
 0x4ac   : > { %v2847_v10 = vadd.f32 %v2841_v22, %v2805_v52 }
 0x4ae   : > { %v2780_v62 = vpop.f32.mrf.mxu1  ;;  %v2886_v0 = vadd.f32 %v2880_v44, %v2847_v10  ;;  %v4659_v10 = vld [vmem:[%s14275_s3 + $0x8] sm:$0xff] }
 0x4af   : > { %v2883_v16 = vpop.f32.mrf.mxu0  ;;  %v2808_v27 = vadd.f32 %v2807_v46, %v2780_v62  ;;  %4735 = vmatpush.msra.mxu1 %v4659_v10 }
 0x4b0   : > { %7321 = vmatmul.msk.f32.gmra.mxu3 %vm1661_vm8, %v14565_v39 }
 0x4b2   : > { %v2958_v35 = vpop.f32.mrf.mxu2 }
 0x4b4   : > { %v2844_v3 = vpop.f32.mrf.mxu3 }
 0x4b5   : > { %v2848_v28 = vadd.f32 %v2844_v3, %v2808_v27 }
 0x4b6   : > { %v2919_v13 = vpop.f32.mrf.mxu1 }
 0x4b7   : > { %v2887_v25 = vadd.f32 %v2883_v16, %v2848_v28  ;;  %v2925_v37 = vadd.f32 %v2919_v13, %v2886_v0  ;;  %v7334_v0 = vld [vmem:[%s14275_s3 + $0x28] sm:$0xff] }
 0x4b8   : > { %7322 = vmatmul.msk.f32.gmra.mxu3 %vm1661_vm8, %v14566_v34 }
 0x4b9   : > { %v2964_v40 = vadd.f32 %v2958_v35, %v2925_v37 }
 0x4ba   : > { %v3036_v48 = vpop.f32.mrf.mxu0  ;;  %v2961_v56 = vpop.f32.mrf.mxu2 }
 0x4bf   : > { %v2997_v9 = vpop.f32.mrf.mxu3 }
 0x4c0   : > { %v3003_v50 = vadd.f32 %v2997_v9, %v2964_v40 }
 0x4c1   : > { %v2922_v41 = vpop.f32.mrf.mxu1 }
 0x4c2   : > { %v3103_v45 = vpop.f32.mrf.mxu2  ;;  %v2926_v21 = vadd.f32 %v2922_v41, %v2887_v25  ;;  %v3042_v6 = vadd.f32 %v3036_v48, %v3003_v50  ;;  %v14567_v50 = vld [vmem:[#allocation14_spill] sm:$0xff] }
 0x4c4   : > { %v3039_v54 = vpop.f32.mrf.mxu0  ;;  %v2965_v61 = vadd.f32 %v2961_v56, %v2926_v21  ;;  %v7358_v21 = vld [vmem:[%s14275_s3 + $0x68] sm:$0xff] }
 0x4c5   : > { %4991 = vmatpush.msrb.mxu3 %v7358_v21 }
 0x4c8   : > { %v3000_v33 = vpop.f32.mrf.mxu3 }
 0x4c9   : > { %v3068_v7 = vpop.f32.mrf.mxu1  ;;  %v3004_v20 = vadd.f32 %v3000_v33, %v2965_v61  ;;  %v7323_v61 = vld [vmem:[%s14275_s3 + $0x10] sm:$0xff] }
 0x4ca   : > { %v3074_v17 = vadd.f32 %v3068_v7, %v3042_v6  ;;  %v7345_v6 = vld [vmem:[%s14275_s3 + $0x40] sm:$0xff] }
 0x4cb   : > { %v3043_v49 = vadd.f32 %v3039_v54, %v3004_v20 }
 0x4cc   : > { %v3171_v57 = vpop.f32.mrf.mxu0  ;;  %v3109_v24 = vadd.f32 %v3103_v45, %v3074_v17 }
 0x4ce   : > { %v3106_v53 = vpop.f32.mrf.mxu2 }
 0x4d0   : > { %v3137_v30 = vpop.f32.mrf.mxu3 }
 0x4d1   : > { %v3143_v29 = vadd.f32 %v3137_v30, %v3109_v24  ;;  %v4658_v30 = vld [vmem:[%s14275_s3] sm:$0xff] }
 0x4d2   : > { %v3071_v12 = vpop.f32.mrf.mxu1  ;;  %4736 = vmatpush.msra.mxu1 %v4658_v30 }
 0x4d3   : > { %v3075_v42 = vadd.f32 %v3071_v12, %v3043_v49  ;;  %v3177_v19 = vadd.f32 %v3171_v57, %v3143_v29  ;;  %v7324_v12 = vld [vmem:[%s14275_s3 + $0x18] sm:$0xff]  ;;  %v7346_v49 = vld [vmem:[%s14275_s3 + $0x48] sm:$0xff] }
 0x4d4   : > { %4698 = vmatpush.msra.mxu0 %v7324_v12  ;;  %4887 = vmatpush.msrb.mxu1 %v7346_v49  ;;  %v7369_v12 = vld [vmem:[%s14275_s3 + $0x80] sm:$0xff] }
 0x4d5   : > { %v3174_v51 = vpop.f32.mrf.mxu0  ;;  %v3110_v14 = vadd.f32 %v3106_v53, %v3075_v42  ;;  %v12229_v53 = vld [vmem:[#allocation2] sm:$0xff] }
 0x4d6   : > { %v3239_v26 = vpop.f32.mrf.mxu2  ;;  %7329 = vmatmul.msk.f32.vlgmr.msra.gmra.mxu1 %vm564_vm7, %v12229_v53  ;;  %4699 = vmatpush.msra.mxu0 %v7323_v61  ;;  %v4667_v24 = vrot.slane %v12229_v53, 1  ;;  %v4856_v10 = vrot.slane %v12229_v53, 4 }
 0x4d7   : > { %4888 = vmatpush.msrb.mxu1 %v7345_v6  ;;  %v4908_v6 = vrot.slane %v12229_v53, 5 }
 0x4da   : > { %v3140_v38 = vpop.f32.mrf.mxu3  ;;  %v3205_v60 = vpop.f32.mrf.mxu1 }
 0x4db   : > { %v3144_v8 = vadd.f32 %v3140_v38, %v3110_v14  ;;  %v3211_v31 = vadd.f32 %v3205_v60, %v3177_v19  ;;  %v7357_v38 = vld [vmem:[%s14275_s3 + $0x60] sm:$0xff]  ;;  %v7352_v19 = vld [vmem:[%s14275_s3 + $0x58] sm:$0xff] }
 0x4dc   : > { %4992 = vmatpush.msrb.mxu3 %v7357_v38 }
 0x4dd   : > { %v3307_v1 = vpop.f32.mrf.mxu0  ;;  %v3178_v43 = vadd.f32 %v3174_v51, %v3144_v8  ;;  %v3245_v23 = vadd.f32 %v3239_v26, %v3211_v31  ;;  %v7333_v51 = vld [vmem:[%s14275_s3 + $0x20] sm:$0xff]  ;;  %v4752_v8 = vrot.slane %v12229_v53, 2  ;;  %v7339_v31 = vld [vmem:[%s14275_s3 + $0x30] sm:$0xff] }
 0x4df   : > { %v3242_v11 = vpop.f32.mrf.mxu2 }
 0x4e2   : > { %v3273_v55 = vpop.f32.mrf.mxu3 }
 0x4e3   : > { %v3279_v39 = vadd.f32 %v3273_v55, %v3245_v23 }
 0x4e5   : > { %v3208_v32 = vpop.f32.mrf.mxu1  ;;  %v3313_v16 = vadd.f32 %v3307_v1, %v3279_v39 }
 0x4e6   : > { %v3212_v18 = vadd.f32 %v3208_v32, %v3178_v43  ;;  %v3310_v15 = vpop.f32.mrf.mxu0  ;;  %v7340_v32 = vld [vmem:[%s14275_s3 + $0x38] sm:$0xff] }
 0x4e7   : > { %v3374_v4 = vpop.f32.mrf.mxu2  ;;  %4835 = vmatpush.msrb.mxu0 %v7340_v32  ;;  %v7363_v32 = vld [vmem:[%s14275_s3 + $0x70] sm:$0xff] }
 0x4e8   : > { %v3246_v2 = vadd.f32 %v3242_v11, %v3212_v18  ;;  %v4960_v11 = vrot.slane %v12229_v53, 6 }
 0x4e9   : > { %4836 = vmatpush.msrb.mxu0 %v7339_v31 }
 0x4eb   : > { %v3276_v59 = vpop.f32.mrf.mxu3 }
 0x4ec   : > { %v3280_v44 = vadd.f32 %v3276_v59, %v3246_v2 }
 0x4ed   : > { %v3339_v58 = vpop.f32.mrf.mxu1 }
 0x4ee   : > { %v3314_v22 = vadd.f32 %v3310_v15, %v3280_v44  ;;  %v3442_v62 = vpop.f32.mrf.mxu0  ;;  %v3345_v3 = vadd.f32 %v3339_v58, %v3313_v16  ;;  %v7382_v15 = vld [vmem:[%s14275_s3 + $0xa8] sm:$0xff]  ;;  %v7351_v44 = vld [vmem:[%s14275_s3 + $0x50] sm:$0xff] }
 0x4ef   : > { %v3377_v13 = vpop.f32.mrf.mxu2  ;;  %5159 = vmatpush.msra.mxu3 %v7382_v15 }
 0x4f0   : > { %v3380_v9 = vadd.f32 %v3374_v4, %v3345_v3 }
 0x4f3   : > { %v3408_v63 = vpop.f32.mrf.mxu3 }
 0x4f4   : > { %v3414_v54 = vadd.f32 %v3408_v63, %v3380_v9 }
 0x4f5   : > { %v3342_v46 = vpop.f32.mrf.mxu1 }
 0x4f6   : > { %v3346_v35 = vadd.f32 %v3342_v46, %v3314_v22  ;;  %v3445_v45 = vpop.f32.mrf.mxu0  ;;  %v3448_v52 = vadd.f32 %v3442_v62, %v3414_v54  ;;  %v7381_v46 = vld [vmem:[%s14275_s3 + $0xa0] sm:$0xff] }
 0x4f7   : > { %5160 = vmatpush.msra.mxu3 %v7381_v46 }
 0x4f8   : > { %v3381_v56 = vadd.f32 %v3377_v13, %v3346_v35 }
 0x4fb   : > { %v3411_v34 = vpop.f32.mrf.mxu3 }
 0x4fc   : > { %v3415_v41 = vadd.f32 %v3411_v34, %v3381_v56 }
 0x4fd   : > { %v3476_v48 = vpop.f32.mrf.mxu1 }
 0x4fe   : > { %v3449_v7 = vadd.f32 %v3445_v45, %v3415_v41  ;;  %v3482_v57 = vadd.f32 %v3476_v48, %v3448_v52 }
 0x503   : > { %v4611_v33 = vpop.f32.mrf.mxu3 }
 0x505   : > { %v3479_v27 = vpop.f32.mrf.mxu1 }
 0x506   : > { %v3483_v28 = vadd.f32 %v3479_v27, %v3449_v7 }
 0x508   : > { %3504 = vmatpush.msrb.mxu2 %v3483_v28 }
 0x50a   : > { %3505 = vmatpush.msrb.mxu2 %v3482_v57 }
 0x50b   : > { %v4614_v25 = vpop.f32.mrf.mxu3  ;;  %7302 = vmatmul.msk.f32.vlgmr.msrb.gmra.mxu2 %vm564_vm7, %v14559_v36 }
 0x50c   : > { %4783 = vmatpush.msra.mxu2 %v7334_v0 }
 0x50e   : > { %4784 = vmatpush.msra.mxu2 %v7333_v51 }
 0x510   : > { %4939 = vmatpush.msrb.mxu2 %v7352_v19 }
 0x512   : > { %4940 = vmatpush.msrb.mxu2 %v7351_v44 }
 0x513   : > { %v4617_v37 = vpop.f32.mrf.mxu3  ;;  %7303 = vmatmul.msk.f32.gmra.mxu2 %vm564_vm7, %v14563_v5 }
 0x51b   : > { %v4620_v40 = vpop.f32.mrf.mxu3 }
 0x523   : > { %v4623_v20 = vpop.f32.mrf.mxu3 }
 0x524   : > { %v4635_v60 = vmax.f32 %v4611_v33, %v4623_v20 }
 0x526   : > { %v4639_v26 = vadd.f32 %v4635_v60, %v14567_v50 }
 0x528   : > { %v4643_v42 = vmax.f32 %v4639_v26, 0.0  ;;  %v4804_v26 = vrot.slane %v12229_v53, 3 }
 0x52a   : > { %4647 = vst.msk [vmem:[#allocation2 + $0xa] sm:$0xff] %vm564_vm7, %v4643_v42 }
 0x52b   : > { %v4626_v55 = vpop.f32.mrf.mxu3 }
 0x52c   : > { %v4636_v17 = vmax.f32 %v4614_v25, %v4626_v55  ;;  %v7370_v25 = vld [vmem:[%s14275_s3 + $0x88] sm:$0xff] }
 0x52d   : > { %5080 = vmatpush.msra.mxu1 %v7370_v25 }
 0x52e   : > { %v4640_v1 = vadd.f32 %v4636_v17, %v14567_v50  ;;  %v7376_v17 = vld [vmem:[%s14275_s3 + $0x98] sm:$0xff] }
 0x52f   : > { %5081 = vmatpush.msra.mxu1 %v7369_v12 }
 0x530   : > { %v4644_v14 = vmax.f32 %v4640_v1, 0.0  ;;  %v7406_v1 = vld [vmem:[%s14275_s3 + $0xe8] sm:$0xff] }
 0x531   : > { %v12268_v29 = vld [vmem:[#allocation2 + $0x8] sm:$0xff] }
 0x532   : > { %4648 = vst.msk [vmem:[#allocation2 + $0x12] sm:$0xff] %vm564_vm7, %v4644_v14  ;;  %7330 = vmatmul.msk.f32.gmra.mxu1 %vm564_vm7, %v12268_v29  ;;  %v4668_v59 = vrot.slane %v12268_v29, 1  ;;  %v4753_v43 = vrot.slane %v12268_v29, 2  ;;  %v4961_v58 = vrot.slane %v12268_v29, 6  ;;  %v4857_v30 = vrot.slane %v12268_v29, 4  ;;  %v7375_v14 = vld [vmem:[%s14275_s3 + $0x90] sm:$0xff] }
 0x533   : > { %v4629_v18 = vpop.f32.mrf.mxu3  ;;  %v4805_v49 = vrot.slane %v12268_v29, 3  ;;  %v4909_v42 = vrot.slane %v12268_v29, 5 }
 0x534   : > { %v4637_v2 = vmax.f32 %v4617_v37, %v4629_v18  ;;  %v4669_v4 = vsel %vm674_vm0, %v4667_v24, %v4668_v59  ;;  %v4754_v63 = vsel %vm728_vm1, %v4752_v8, %v4753_v43  ;;  %v4962_v23 = vsel %vm944_vm5, %v4960_v11, %v4961_v58  ;;  %v7405_v11 = vld [vmem:[%s14275_s3 + $0xe0] sm:$0xff] }
 0x535   : > { %7325 = vmatmul.msk.f32.vlgmr.msra.gmra.mxu0 %vm564_vm7, %v4669_v4  ;;  %7335 = vmatmul.msk.f32.vlgmr.msra.gmra.mxu2 %vm564_vm7, %v4754_v63  ;;  %v4858_v0 = vsel %vm836_vm3, %v4856_v10, %v4857_v30  ;;  %v4806_v24 = vsel %vm782_vm2, %v4804_v26, %v4805_v49  ;;  %v4910_v8 = vsel %vm890_vm4, %v4908_v6, %v4909_v42  ;;  %v7387_v10 = vld [vmem:[%s14275_s3 + $0xb0] sm:$0xff]  ;;  %v7412_v6 = vld [vmem:[%s14275_s3 + $0xf8] sm:$0xff] }
 0x536   : > { %v4641_v39 = vadd.f32 %v4637_v2, %v14567_v50  ;;  %7359 = vmatmul.msk.f32.vlgmr.msrb.gmra.mxu3 %vm564_vm7, %v4962_v23  ;;  %5120 = vmatpush.msra.mxu2 %v7376_v17 }
 0x537   : > { %5315 = vmatpush.msrb.mxu3 %v7406_v1 }
 0x538   : > { %v4645_v22 = vmax.f32 %v4641_v39, 0.0  ;;  %5121 = vmatpush.msra.mxu2 %v7375_v14  ;;  %v7394_v39 = vld [vmem:[%s14275_s3 + $0xc8] sm:$0xff] }
 0x539   : > { %v12298_v62 = vld [vmem:[#allocation2 + $0x10] sm:$0xff]  ;;  %5316 = vmatpush.msrb.mxu3 %v7405_v11  ;;  %v7441_v11 = vld [vmem:[%s14275_s3 + $0x140] sm:$0xff] }
 0x53a   : > { %4649 = vst.msk [vmem:[#allocation2 + $0x1a] sm:$0xff] %vm564_vm7, %v4645_v22  ;;  %7331 = vmatmul.msk.f32.gmra.mxu1 %vm564_vm7, %v12298_v62  ;;  %v4670_v16 = vrot.slane %v12298_v62, 1  ;;  %v4755_v35 = vrot.slane %v12298_v62, 2  ;;  %v4963_v34 = vrot.slane %v12298_v62, 6  ;;  %v4859_v60 = vrot.slane %v12298_v62, 4  ;;  %v7393_v22 = vld [vmem:[%s14275_s3 + $0xc0] sm:$0xff] }
 0x53b   : > { %v4632_v3 = vpop.f32.mrf.mxu3  ;;  %v5015_v25 = vrot.slane %v12298_v62, 7 }
 0x53c   : > { %v4638_v13 = vmax.f32 %v4620_v40, %v4632_v3  ;;  %v12307_v48 = vsel %vm674_vm0, %v4668_v59, %v4670_v16  ;;  %v4756_v56 = vsel %vm728_vm1, %v4753_v43, %v4755_v35  ;;  %v12311_v9 = vsel %vm944_vm5, %v4961_v58, %v4963_v34 }
 0x53d   : > { %7326 = vmatmul.msk.f32.gmra.mxu0 %vm564_vm7, %v12307_v48  ;;  %7336 = vmatmul.msk.f32.gmra.mxu2 %vm564_vm7, %v4756_v56  ;;  %v12387_v55 = vsel %vm836_vm3, %v4857_v30, %v4859_v60  ;;  %v4807_v43 = vrot.slane %v12298_v62, 3  ;;  %v4911_v58 = vrot.slane %v12298_v62, 5  ;;  %v7429_v30 = vld [vmem:[%s14275_s3 + $0x120] sm:$0xff] }
 0x53e   : > { %v4642_v41 = vadd.f32 %v4638_v13, %v14567_v50  ;;  %7360 = vmatmul.msk.f32.gmra.mxu3 %vm564_vm7, %v12311_v9  ;;  %v7364_v50 = vld [vmem:[%s14275_s3 + $0x78] sm:$0xff] }
 0x53f   : > { %5043 = vmatpush.msra.mxu0 %v7364_v50  ;;  %v12420_v18 = vsel %vm782_vm2, %v4805_v49, %v4807_v43  ;;  %v12423_v15 = vsel %vm890_vm4, %v4909_v42, %v4911_v58  ;;  %v7411_v42 = vld [vmem:[%s14275_s3 + $0xf0] sm:$0xff] }
 0x540   : > { %v4646_v54 = vmax.f32 %v4642_v41, 0.0  ;;  %v7388_v41 = vld [vmem:[%s14275_s3 + $0xb8] sm:$0xff] }
 0x541   : > { %v12319_v45 = vld [vmem:[#allocation2 + $0x18] sm:$0xff]  ;;  %5044 = vmatpush.msra.mxu0 %v7363_v32  ;;  %v7442_v32 = vld [vmem:[%s14275_s3 + $0x148] sm:$0xff] }
 0x542   : > { %4650 = vst.msk [vmem:[#allocation2 + $0x22] sm:$0xff] %vm564_vm7, %v4646_v54  ;;  %7332 = vmatmul.msk.f32.gmra.mxu1 %vm564_vm7, %v12319_v45  ;;  %v4672_v33 = vrot.slane %v12319_v45, 1  ;;  %v4757_v7 = vrot.slane %v12319_v45, 2  ;;  %v4965_v27 = vrot.slane %v12319_v45, 6  ;;  %v4861_v59 = vrot.slane %v12319_v45, 4 }
 0x543   : > { %v4809_v2 = vrot.slane %v12319_v45, 3  ;;  %v4913_v4 = vrot.slane %v12319_v45, 5  ;;  %v5012_v54 = vrot.slane %v12229_v53, 7  ;;  %v7399_v53 = vld [vmem:[%s14275_s3 + $0xd0] sm:$0xff] }
 0x544   : > { %v12328_v52 = vsel %vm674_vm0, %v4670_v16, %v4672_v33  ;;  %v12331_v28 = vsel %vm728_vm1, %v4755_v35, %v4757_v7  ;;  %v12334_v57 = vsel %vm944_vm5, %v4963_v34, %v4965_v27  ;;  %v12415_v19 = vsel %vm836_vm3, %v4859_v60, %v4861_v59 }
 0x545   : > { %7327 = vmatmul.msk.f32.gmra.mxu0 %vm564_vm7, %v12328_v52  ;;  %7337 = vmatmul.msk.f32.gmra.mxu2 %vm564_vm7, %v12331_v28  ;;  %v12442_v23 = vsel %vm782_vm2, %v4807_v43, %v4809_v2  ;;  %v12445_v44 = vsel %vm890_vm4, %v4911_v58, %v4913_v4 }
 0x546   : > { %7361 = vmatmul.msk.f32.gmra.mxu3 %vm564_vm7, %v12334_v57 }
 0x549   : > { %v12351_v21 = vld [vmem:[#allocation2 + $0x20] sm:$0xff]  ;;  %v12453_v46 = vld [vmem:[#allocation2 + $0x28] sm:$0xff] }
 0x54a   : > { %7347 = vmatmul.msk.f32.vlgmr.msrb.gmra.mxu1 %vm564_vm7, %v4858_v0  ;;  %v4674_v37 = vrot.slane %v12351_v21, 1  ;;  %v4759_v61 = vrot.slane %v12351_v21, 2  ;;  %v4967_v51 = vrot.slane %v12351_v21, 6  ;;  %v4863_v31 = vrot.slane %v12351_v21, 4  ;;  %v7417_v0 = vld [vmem:[%s14275_s3 + $0x100] sm:$0xff] }
 0x54b   : > { %5237 = vmatpush.msrb.mxu1 %v7394_v39  ;;  %v4811_v16 = vrot.slane %v12351_v21, 3  ;;  %v4915_v35 = vrot.slane %v12351_v21, 5  ;;  %v5141_v34 = vrot.slane %v12453_v46, 2  ;;  %v5102_v60 = vrot.slane %v12453_v46, 1 }
 0x54c   : > { %v12360_v38 = vsel %vm674_vm0, %v4672_v33, %v4674_v37  ;;  %v12365_v40 = vsel %vm728_vm1, %v4757_v7, %v4759_v61  ;;  %v12370_v20 = vsel %vm944_vm5, %v4965_v27, %v4967_v51  ;;  %v12437_v63 = vsel %vm836_vm3, %v4861_v59, %v4863_v31  ;;  %v7400_v7 = vld [vmem:[%s14275_s3 + $0xd8] sm:$0xff]  ;;  %v7430_v27 = vld [vmem:[%s14275_s3 + $0x128] sm:$0xff] }
 0x54d   : > { %7328 = vmatmul.msk.f32.gmra.mxu0 %vm564_vm7, %v12360_v38  ;;  %7338 = vmatmul.msk.f32.gmra.mxu2 %vm564_vm7, %v12365_v40  ;;  %v12469_v3 = vsel %vm782_vm2, %v4809_v2, %v4811_v16  ;;  %v12474_v13 = vsel %vm890_vm4, %v4913_v4, %v4915_v35  ;;  %v5013_v33 = vrot.slane %v12268_v29, 7  ;;  %v5297_v50 = vrot.slane %v12453_v46, 6  ;;  %v7435_v2 = vld [vmem:[%s14275_s3 + $0x130] sm:$0xff] }
 0x54e   : > { %7362 = vmatmul.msk.f32.gmra.mxu3 %vm564_vm7, %v12370_v20  ;;  %5238 = vmatpush.msrb.mxu1 %v7393_v22  ;;  %v12562_v26 = vsel %vm674_vm0, %v4674_v37, %v5102_v60  ;;  %v7424_v37 = vld [vmem:[%s14275_s3 + $0x118] sm:$0xff]  ;;  %v5180_v14 = vrot.slane %v12453_v46, 3 }
 0x54f   : > { %v12521_v12 = vsel %vm998_vm6, %v5013_v33, %v5015_v25  ;;  %v5298_v49 = vsel %vm944_vm5, %v4967_v51, %v5297_v50  ;;  %v7423_v51 = vld [vmem:[%s14275_s3 + $0x110] sm:$0xff] }
 0x550   : > { %v5181_v59 = vsel %vm782_vm2, %v4811_v16, %v5180_v14 }
 0x552   : > { %7348 = vmatmul.msk.f32.gmra.mxu1 %vm564_vm7, %v12387_v55 }
 0x553   : > { %v12616_v1 = vpop.f32.mrf.mxu1 }
 0x555   : > { %7341 = vmatmul.msk.f32.vlgmr.msrb.gmra.mxu0 %vm564_vm7, %v4806_v24  ;;  %7353 = vmatmul.msk.f32.vlgmr.msrb.gmra.mxu2 %vm564_vm7, %v4910_v8  ;;  %v5258_v24 = vrot.slane %v12453_v46, 5 }
 0x556   : > { %7383 = vmatmul.msk.f32.vlgmr.msra.gmra.mxu3 %vm564_vm7, %v4756_v56  ;;  %v12485_v56 = vsel %vm728_vm1, %v4759_v61, %v5141_v34  ;;  %5198 = vmatpush.msrb.mxu0 %v7388_v41  ;;  %v5019_v61 = vrot.slane %v12351_v21, 7 }
 0x557   : > { %5276 = vmatpush.msrb.mxu2 %v7400_v7  ;;  %5470 = vmatpush.msra.mxu3 %v7430_v27  ;;  %v5259_v43 = vsel %vm890_vm4, %v4915_v35, %v5258_v24 }
 0x558   : > { %5199 = vmatpush.msrb.mxu0 %v7387_v10 }
 0x559   : > { %5277 = vmatpush.msrb.mxu2 %v7399_v53  ;;  %5471 = vmatpush.msra.mxu3 %v7429_v30 }
 0x55a   : > { %7349 = vmatmul.msk.f32.gmra.mxu1 %vm564_vm7, %v12415_v19 }
 0x55d   : > { %7342 = vmatmul.msk.f32.gmra.mxu0 %vm564_vm7, %v12420_v18  ;;  %7354 = vmatmul.msk.f32.gmra.mxu2 %vm564_vm7, %v12423_v15 }
 0x55e   : > { %7384 = vmatmul.msk.f32.gmra.mxu3 %vm564_vm7, %v12331_v28 }
 0x562   : > { %7350 = vmatmul.msk.f32.gmra.mxu1 %vm564_vm7, %v12437_v63 }
 0x565   : > { %7343 = vmatmul.msk.f32.gmra.mxu0 %vm564_vm7, %v12442_v23  ;;  %7355 = vmatmul.msk.f32.gmra.mxu2 %vm564_vm7, %v12445_v44 }
 0x566   : > { %7385 = vmatmul.msk.f32.gmra.mxu3 %vm564_vm7, %v12365_v40 }
 0x56a   : > { %7371 = vmatmul.msk.f32.vlgmr.msra.gmra.mxu1 %vm564_vm7, %v12268_v29  ;;  %v5014_v29 = vsel %vm998_vm6, %v5012_v54, %v5013_v33 }
 0x56d   : > { %7344 = vmatmul.msk.f32.gmra.mxu0 %vm564_vm7, %v12469_v3  ;;  %7356 = vmatmul.msk.f32.gmra.mxu2 %vm564_vm7, %v12474_v13 }
 0x56e   : > { %7386 = vmatmul.msk.f32.gmra.mxu3 %vm564_vm7, %v12485_v56 }
 0x572   : > { %7372 = vmatmul.msk.f32.gmra.mxu1 %vm564_vm7, %v12298_v62 }
 0x575   : > { %7365 = vmatmul.msk.f32.vlgmr.msra.gmra.mxu0 %vm564_vm7, %v5014_v29  ;;  %7377 = vmatmul.msk.f32.vlgmr.msra.gmra.mxu2 %vm564_vm7, %v12307_v48  ;;  %v5017_v48 = vrot.slane %v12319_v45, 7 }
 0x576   : > { %7407 = vmatmul.msk.f32.vlgmr.msrb.gmra.mxu3 %vm564_vm7, %v12311_v9  ;;  %5354 = vmatpush.msra.mxu0 %v7412_v6 }
 0x577   : > { %v12533_v9 = vsel %vm998_vm6, %v5015_v25, %v5017_v48  ;;  %5431 = vmatpush.msra.mxu2 %v7424_v37 }
 0x578   : > { %5355 = vmatpush.msra.mxu0 %v7411_v42 }
 0x579   : > { %5432 = vmatpush.msra.mxu2 %v7423_v51 }
 0x57a   : > { %7373 = vmatmul.msk.f32.gmra.mxu1 %vm564_vm7, %v12319_v45 }
 0x57d   : > { %7366 = vmatmul.msk.f32.gmra.mxu0 %vm564_vm7, %v12521_v12  ;;  %7378 = vmatmul.msk.f32.gmra.mxu2 %vm564_vm7, %v12328_v52 }
 0x57e   : > { %7408 = vmatmul.msk.f32.gmra.mxu3 %vm564_vm7, %v12334_v57  ;;  %v7418_v57 = vld [vmem:[%s14275_s3 + $0x108] sm:$0xff] }
 0x57f   : > { %5391 = vmatpush.msra.mxu1 %v7418_v57 }
 0x581   : > { %5392 = vmatpush.msra.mxu1 %v7417_v0 }
 0x582   : > { %7374 = vmatmul.msk.f32.gmra.mxu1 %vm564_vm7, %v12351_v21 }
 0x585   : > { %7367 = vmatmul.msk.f32.gmra.mxu0 %vm564_vm7, %v12533_v9  ;;  %7379 = vmatmul.msk.f32.gmra.mxu2 %vm564_vm7, %v12360_v38 }
 0x586   : > { %7409 = vmatmul.msk.f32.gmra.mxu3 %vm564_vm7, %v12370_v20  ;;  %v12555_v20 = vsel %vm998_vm6, %v5017_v48, %v5019_v61 }
 0x58a   : > { %7395 = vmatmul.msk.f32.vlgmr.msrb.gmra.mxu1 %vm564_vm7, %v12387_v55  ;;  %v5219_v55 = vrot.slane %v12453_v46, 4 }
 0x58b   : > { %5548 = vmatpush.msrb.mxu1 %v7442_v32 }
 0x58d   : > { %7368 = vmatmul.msk.f32.gmra.mxu0 %vm564_vm7, %v12555_v20  ;;  %7380 = vmatmul.msk.f32.gmra.mxu2 %vm564_vm7, %v12562_v26 }
 0x58e   : > { %7410 = vmatmul.msk.f32.gmra.mxu3 %vm564_vm7, %v5298_v49  ;;  %v12610_v17 = vpop.f32.mrf.mxu2  ;;  %5549 = vmatpush.msrb.mxu1 %v7441_v11 }
 0x58f   : > { %14568 = vst [vmem:[#allocation45_spill] sm:$0xff] %v12610_v17 }
 0x592   : > { %7396 = vmatmul.msk.f32.gmra.mxu1 %vm564_vm7, %v12415_v19 }
 0x595   : > { %7389 = vmatmul.msk.f32.vlgmr.msrb.gmra.mxu0 %vm564_vm7, %v12420_v18  ;;  %7401 = vmatmul.msk.f32.vlgmr.msrb.gmra.mxu2 %vm564_vm7, %v12423_v15 }
 0x596   : > { %7431 = vmatmul.msk.f32.vlgmr.msra.gmra.mxu3 %vm564_vm7, %v12331_v28  ;;  %v12606_v28 = vsel %vm836_vm3, %v4863_v31, %v5219_v55  ;;  %v12650_v18 = vpop.f32.mrf.mxu2 }
 0x597   : > { %14569 = vst [vmem:[#allocation43_spill] sm:$0xff] %v12650_v18 }
 0x59a   : > { %7397 = vmatmul.msk.f32.gmra.mxu1 %vm564_vm7, %v12437_v63 }
 0x59d   : > { %7390 = vmatmul.msk.f32.gmra.mxu0 %vm564_vm7, %v12442_v23  ;;  %7402 = vmatmul.msk.f32.gmra.mxu2 %vm564_vm7, %v12445_v44 }
 0x59e   : > { %7432 = vmatmul.msk.f32.gmra.mxu3 %vm564_vm7, %v12365_v40  ;;  %v12620_v40 = vld [vmem:[#allocation2 + $0x30] sm:$0xf] }
 0x59f   : > { %v5452_v8 = vrot.slane %v12620_v40, 2  ;;  %v5530_v29 = vrot.slane %v12620_v40, 4 }
 0x5a1   : > { %v5453_v58 = vsel %vm728_vm1, %v5141_v34, %v5452_v8  ;;  %v5413_v34 = vrot.slane %v12620_v40, 1 }
 0x5a2   : > { %7398 = vmatmul.msk.f32.gmra.mxu1 %vm564_vm7, %v12606_v28 }
 0x5a3   : > { %v5414_v41 = vsel %vm674_vm0, %v5102_v60, %v5413_v34 }
 0x5a5   : > { %7391 = vmatmul.msk.f32.gmra.mxu0 %vm564_vm7, %v12469_v3  ;;  %7403 = vmatmul.msk.f32.gmra.mxu2 %vm564_vm7, %v12474_v13 }
 0x5a6   : > { %7433 = vmatmul.msk.f32.gmra.mxu3 %vm564_vm7, %v12485_v56 }
 0x5aa   : > { %7419 = vmatmul.msk.f32.vlgmr.msra.gmra.mxu1 %vm564_vm7, %v12298_v62  ;;  %v7436_v62 = vld [vmem:[%s14275_s3 + $0x138] sm:$0xff]  ;;  %s7732_s3 = scalar_lea.hbm %s7731_s23, 1 }
 0x5ab   : > { %5509 = vmatpush.msrb.mxu0 %v7436_v62  ;;  %p7733_p11 = scmp.ne.s32.totalorder %s7731_s23, %s7732_s3  ;;  %p7738_p1 = scmp.lt.s32.totalorder %s7736_s24, %s7732_s3 }
 0x5ad   : > { %7392 = vmatmul.msk.f32.gmra.mxu0 %vm564_vm7, %v5181_v59  ;;  %7404 = vmatmul.msk.f32.gmra.mxu2 %vm564_vm7, %v5259_v43  ;;  %p7734_p12 = pnand %p7733_p11, %p7890_p5  ;;  %p7739_p2 = por %p7738_p1, %p7737_p0 }
 0x5ae   : > { %7434 = vmatmul.msk.f32.gmra.mxu3 %vm564_vm7, %v5453_v58  ;;  %5510 = vmatpush.msrb.mxu0 %v7435_v2 }
 0x5af   : > { %v12652_v15 = vpop.f32.mrf.mxu1  ;;  %p7735_p13 = pneg %p7734_p12 }
 0x5b1   : > { %p7740_p3 = pnand %p7739_p2, %p7735_p13 }
 0x5b2   : > { %v12654_v31 = vpop.f32.mrf.mxu0  ;;  %7420 = vmatmul.msk.f32.gmra.mxu1 %vm564_vm7, %v12319_v45 }
 0x5b5   : > { %7413 = vmatmul.msk.f32.vlgmr.msra.gmra.mxu0 %vm564_vm7, %v12521_v12  ;;  %7425 = vmatmul.msk.f32.vlgmr.msra.gmra.mxu2 %vm564_vm7, %v12328_v52 }
 0x5b7   : > { %v12665_v4 = vpop.f32.mrf.mxu1 }
 0x5b8   : > { %v12667_v44 = vpop.f32.mrf.mxu2 }
 0x5b9   : > { %v12711_v7 = vpop.f32.mrf.mxu3 }
 0x5ba   : > { %v12669_v39 = vpop.f32.mrf.mxu0  ;;  %7421 = vmatmul.msk.f32.gmra.mxu1 %vm564_vm7, %v12351_v21 }
 0x5bb   : > { %v4742_v36 = vadd.f32 %v12652_v15, %v12669_v39 }
 0x5bd   : > { %7414 = vmatmul.msk.f32.gmra.mxu0 %vm564_vm7, %v12533_v9  ;;  %7426 = vmatmul.msk.f32.gmra.mxu2 %vm564_vm7, %v12360_v38  ;;  %v5336_v38 = vrot.slane %v12453_v46, 7  ;;  %v5491_v9 = vrot.slane %v12620_v40, 3 }
 0x5bf   : > { %v12677_v45 = vpop.f32.mrf.mxu1  ;;  %v5337_v56 = vsel %vm998_vm6, %v5019_v61, %v5336_v38  ;;  %v5492_v0 = vsel %vm782_vm2, %v5180_v14, %v5491_v9 }
 0x5c0   : > { %v12679_v22 = vpop.f32.mrf.mxu2 }
 0x5c1   : > { %v12727_v53 = vpop.f32.mrf.mxu3 }
 0x5c2   : > { %v12681_v52 = vpop.f32.mrf.mxu0  ;;  %7422 = vmatmul.msk.f32.gmra.mxu1 %vm564_vm7, %v12453_v46 }
 0x5c3   : > { %v4745_v5 = vadd.f32 %v12665_v4, %v12681_v52  ;;  %v4799_v4 = vadd.f32 %v12679_v22, %v4742_v36 }
 0x5c5   : > { %7415 = vmatmul.msk.f32.gmra.mxu0 %vm564_vm7, %v12555_v20  ;;  %7427 = vmatmul.msk.f32.gmra.mxu2 %vm564_vm7, %v12562_v26 }
 0x5c7   : > { %v12689_v16 = vpop.f32.mrf.mxu1 }
 0x5c8   : > { %v12691_v35 = vpop.f32.mrf.mxu2 }
 0x5c9   : > { %v12741_v12 = vpop.f32.mrf.mxu3 }
 0x5ca   : > { %v12695_v13 = vpop.f32.mrf.mxu0  ;;  %7443 = vmatmul.msk.f32.vlgmr.msrb.gmra.mxu1 %vm564_vm7, %v12415_v19 }
 0x5cb   : > { %v4748_v47 = vadd.f32 %v12677_v45, %v12695_v13 }
 0x5cd   : > { %7416 = vmatmul.msk.f32.gmra.mxu0 %vm564_vm7, %v5337_v56  ;;  %7428 = vmatmul.msk.f32.gmra.mxu2 %vm564_vm7, %v5414_v41 }
 0x5cf   : > { %v12707_v54 = vpop.f32.mrf.mxu1 }
 0x5d0   : > { %v12709_v33 = vpop.f32.mrf.mxu2 }
 0x5d1   : > { %v5003_v60 = vpop.f32.mrf.mxu3 }
 0x5d2   : > { %v12713_v27 = vpop.f32.mrf.mxu0  ;;  %7444 = vmatmul.msk.f32.gmra.mxu1 %vm564_vm7, %v12437_v63 }
 0x5d5   : > { %7437 = vmatmul.msk.f32.vlgmr.msrb.gmra.mxu0 %vm564_vm7, %v12442_v23  ;;  %v5531_v23 = vsel %vm836_vm3, %v5219_v55, %v5530_v29 }
 0x5d7   : > { %v12719_v21 = vpop.f32.mrf.mxu1 }
 0x5d8   : > { %v12721_v19 = vpop.f32.mrf.mxu2 }
 0x5d9   : > { %v12758_v6 = vpop.f32.mrf.mxu3 }
 0x5da   : > { %v12723_v10 = vpop.f32.mrf.mxu0  ;;  %7445 = vmatmul.msk.f32.gmra.mxu1 %vm564_vm7, %v12606_v28 }
 0x5db   : > { %v4851_v15 = vadd.f32 %v12723_v10, %v4799_v4 }
 0x5dd   : > { %7438 = vmatmul.msk.f32.gmra.mxu0 %vm564_vm7, %v12469_v3  ;;  %v4903_v13 = vadd.f32 %v12707_v54, %v4851_v15 }
 0x5df   : > { %v12732_v63 = vpop.f32.mrf.mxu1 }
 0x5e0   : > { %v12734_v30 = vpop.f32.mrf.mxu2 }
 0x5e1   : > { %v12764_v55 = vpop.f32.mrf.mxu3 }
 0x5e2   : > { %v4844_v25 = vpop.f32.mrf.mxu0  ;;  %7446 = vmatmul.msk.f32.gmra.mxu1 %vm564_vm7, %v5531_v23 }
 0x5e5   : > { %7439 = vmatmul.msk.f32.gmra.mxu0 %vm564_vm7, %v5181_v59 }
 0x5e7   : > { %v12743_v48 = vpop.f32.mrf.mxu1 }
 0x5e8   : > { %v4948_v3 = vpop.f32.mrf.mxu2 }
 0x5e9   : > { %v12768_v14 = vpop.f32.mrf.mxu3 }
 0x5ea   : > { %v4847_v57 = vpop.f32.mrf.mxu0 }
 0x5ed   : > { %7440 = vmatmul.msk.f32.gmra.mxu0 %vm564_vm7, %v5492_v0 }
 0x5ef   : > { %v12750_v61 = vpop.f32.mrf.mxu1 }
 0x5f0   : > { %v4951_v50 = vpop.f32.mrf.mxu2 }
 0x5f1   : > { %v5171_v43 = vpop.f32.mrf.mxu3 }
 0x5f2   : > { %v12752_v20 = vpop.f32.mrf.mxu0 }
 0x5f7   : > { %v12754_v26 = vpop.f32.mrf.mxu1 }
 0x5f8   : > { %v12756_v49 = vpop.f32.mrf.mxu2 }
 0x5f9   : > { %v12782_v38 = vpop.f32.mrf.mxu3 }
 0x5fa   : > { %v5049_v37 = vpop.f32.mrf.mxu0  ;;  %14571 = vst [vmem:[#allocation7_spill] sm:$0xff] %v12782_v38  ;;  %v4801_v38 = vadd.f32 %v12709_v33, %v4748_v47 }
 0x5ff   : > { %v12760_v42 = vpop.f32.mrf.mxu1 }
 0x600   : > { %v12762_v46 = vpop.f32.mrf.mxu2 }
 0x601   : > { %v12788_v23 = vpop.f32.mrf.mxu3 }
 0x602   : > { %v5052_v51 = vpop.f32.mrf.mxu0  ;;  %14573 = vst [vmem:[#allocation35_spill] sm:$0xff] %v12788_v23 }
 0x607   : > { %v12766_v28 = vpop.f32.mrf.mxu1 }
 0x608   : > { %v5129_v40 = vpop.f32.mrf.mxu2 }
 0x609   : > { %v12796_v18 = vpop.f32.mrf.mxu3 }
 0x60a   : > { %v5055_v32 = vpop.f32.mrf.mxu0  ;;  %14576 = vst [vmem:[#allocation23_spill] sm:$0xff] %v12796_v18  ;;  %v4853_v18 = vadd.f32 %v4847_v57, %v4801_v38 }
 0x60c   : > { %v4905_v39 = vadd.f32 %v12732_v63, %v4853_v18 }
 0x60f   : > { %v12770_v24 = vpop.f32.mrf.mxu1 }
 0x610   : > { %v5132_v8 = vpop.f32.mrf.mxu2 }
 0x611   : > { %v14579_v15 = vld [vmem:[#allocation23_spill] sm:$0xff] }
 0x612   : > { %v12772_v11 = vpop.f32.mrf.mxu0 }
 0x617   : > { %v12774_v59 = vpop.f32.mrf.mxu1 }
 0x618   : > { %v12778_v62 = vpop.f32.mrf.mxu2 }
 0x619   : > { %14570 = vst [vmem:[#allocation32_spill] sm:$0xff] %v12778_v62 }
 0x61a   : > { %v12776_v58 = vpop.f32.mrf.mxu0 }
 0x61f   : > { %v12780_v2 = vpop.f32.mrf.mxu1 }
 0x620   : > { %v12784_v56 = vpop.f32.mrf.mxu2 }
 0x622   : > { %v5207_v34 = vpop.f32.mrf.mxu0 }
 0x627   : > { %v12786_v41 = vpop.f32.mrf.mxu1 }
 0x628   : > { %14572 = vst [vmem:[#allocation41_spill] sm:$0xff] %v12786_v41  ;;  %v12790_v9 = vpop.f32.mrf.mxu2  ;;  %v4800_v41 = vadd.f32 %v12691_v35, %v4745_v5  ;;  %v5327_v35 = vpop.f32.mrf.mxu3 }
 0x62a   : > { %v5210_v29 = vpop.f32.mrf.mxu0  ;;  %v4852_v52 = vadd.f32 %v4844_v25, %v4800_v41 }
 0x62c   : > { %v4904_v47 = vadd.f32 %v12719_v21, %v4852_v52 }
 0x62e   : > { %v4956_v33 = vadd.f32 %v4948_v3, %v4904_v47  ;;  %v14580_v47 = vld [vmem:[#allocation35_spill] sm:$0xff] }
 0x62f   : > { %v12792_v0 = vpop.f32.mrf.mxu1 }
 0x630   : > { %14574 = vst [vmem:[#allocation44_spill] sm:$0xff] %v12792_v0  ;;  %v5288_v23 = vpop.f32.mrf.mxu2  ;;  %v5473_v3 = vpop.f32.mrf.mxu3 }
 0x632   : > { %v12794_v17 = vpop.f32.mrf.mxu0 }
 0x633   : > { %14575 = vst [vmem:[#allocation25_spill] sm:$0xff] %v12794_v17  ;;  %v4739_v17 = vadd.f32 %v12616_v1, %v12654_v31  ;;  %v4955_v31 = vadd.f32 %v12734_v30, %v4903_v13 }
 0x635   : > { %v4798_v45 = vadd.f32 %v12667_v44, %v4739_v17  ;;  %v5007_v18 = vadd.f32 %v12727_v53, %v4955_v31 }
 0x637   : > { %v12806_v62 = vpop.f32.mrf.mxu1  ;;  %v4850_v5 = vadd.f32 %v12713_v27, %v4798_v45  ;;  %v5008_v27 = vadd.f32 %v12741_v12, %v4956_v33  ;;  %v5059_v25 = vadd.f32 %v5049_v37, %v5007_v18  ;;  %v14578_v45 = vld [vmem:[#allocation32_spill] sm:$0xff]  ;;  %v14581_v33 = vld [vmem:[#allocation7_spill] sm:$0xff] }
 0x638   : > { %14577 = vst [vmem:[#allocation16_spill] sm:$0xff] %v12806_v62  ;;  %v4957_v62 = vadd.f32 %v4951_v50, %v4905_v39  ;;  %v12821_v22 = vpop.f32.mrf.mxu2  ;;  %v5476_v4 = vpop.f32.mrf.mxu3  ;;  %v14584_v18 = vld [vmem:[#allocation44_spill] sm:$0xff] }
 0x639   : > { %v4902_v36 = vadd.f32 %v12689_v16, %v4850_v5  ;;  %v5060_v10 = vadd.f32 %v5052_v51, %v5008_v27 }
 0x63a   : > { %v12808_v0 = vpop.f32.mrf.mxu0  ;;  %v5009_v21 = vadd.f32 %v5003_v60, %v4957_v62 }
 0x63b   : > { %v4954_v44 = vadd.f32 %v12721_v19, %v4902_v36  ;;  %v5097_v30 = vadd.f32 %v12754_v26, %v5060_v10  ;;  %v5096_v19 = vadd.f32 %v12750_v61, %v5059_v25 }
 0x63c   : > { %v5061_v63 = vadd.f32 %v5055_v32, %v5009_v21 }
 0x63d   : > { %v5006_v54 = vadd.f32 %v12711_v7, %v4954_v44  ;;  %v5137_v38 = vadd.f32 %v5129_v40, %v5097_v30  ;;  %v5136_v51 = vadd.f32 %v12762_v46, %v5096_v19 }
 0x63e   : > { %v5098_v50 = vadd.f32 %v12760_v42, %v5061_v63 }
 0x63f   : > { %v5403_v17 = vpop.f32.mrf.mxu1  ;;  %v5058_v16 = vadd.f32 %v12752_v20, %v5006_v54  ;;  %v5176_v37 = vadd.f32 %v12768_v14, %v5137_v38  ;;  %v5175_v26 = vadd.f32 %v12764_v55, %v5136_v51  ;;  %v14585_v54 = vld [vmem:[#allocation41_spill] sm:$0xff] }
 0x640   : > { %v5138_v12 = vadd.f32 %v5132_v8, %v5098_v50  ;;  %v5437_v60 = vpop.f32.mrf.mxu2 }
 0x641   : > { %v5095_v53 = vadd.f32 %v12743_v48, %v5058_v16  ;;  %v5215_v41 = vadd.f32 %v5207_v34, %v5176_v37  ;;  %v5214_v40 = vadd.f32 %v12776_v58, %v5175_v26 }
 0x642   : > { %v5363_v1 = vpop.f32.mrf.mxu0  ;;  %v5177_v32 = vadd.f32 %v5171_v43, %v5138_v12 }
 0x643   : > { %v5135_v7 = vadd.f32 %v12756_v49, %v5095_v53  ;;  %v5254_v48 = vadd.f32 %v12774_v59, %v5215_v41  ;;  %v5253_v14 = vadd.f32 %v12770_v24, %v5214_v40  ;;  %v5479_v59 = vpop.f32.mrf.mxu3  ;;  %v12875_v40 = vld [vmem:[#allocation3] sm:$0xff] }
 0x644   : > { %v5216_v42 = vadd.f32 %v5210_v29, %v5177_v32 }
 0x645   : > { %v5174_v61 = vadd.f32 %v12758_v6, %v5135_v7  ;;  %v5293_v43 = vadd.f32 %v12790_v9, %v5254_v48  ;;  %v5292_v6 = vadd.f32 %v12784_v56, %v5253_v14  ;;  %v14583_v56 = vld [vmem:[#allocation16_spill] sm:$0xff]  ;;  %v7462_v48 = vld [vmem:[%s13857_s5 + $0x58] sm:$0xff] }
 0x646   : > { %v5255_v46 = vadd.f32 %v12780_v2, %v5216_v42  ;;  %v14588_v42 = vld [vmem:[#allocation8_spill] sm:$0xff]  ;;  %5704 = vmatpush.msra.mxu1 %v7462_v48 }
 0x647   : > { %v5551_v62 = vpop.f32.mrf.mxu1  ;;  %v5213_v8 = vadd.f32 %v12772_v11, %v5174_v61  ;;  %v5332_v11 = vadd.f32 %v14579_v15, %v5293_v43  ;;  %v5331_v2 = vadd.f32 %v14580_v47, %v5292_v6  ;;  %v5609_v61 = vld [vmem:[%s13857_s5] sm:$0xff]  ;;  %v7461_v14 = vld [vmem:[%s13857_s5 + $0x50] sm:$0xff]  ;;  %v7480_v6 = vld [vmem:[%s13857_s5 + $0xb8] sm:$0xff] }
 0x648   : > { %v5440_v49 = vpop.f32.mrf.mxu2  ;;  %v5294_v55 = vadd.f32 %v5288_v23, %v5255_v46  ;;  %v7468_v46 = vld [vmem:[%s13857_s5 + $0x78] sm:$0xff]  ;;  %v7467_v43 = vld [vmem:[%s13857_s5 + $0x70] sm:$0xff]  ;;  %5705 = vmatpush.msra.mxu1 %v7461_v14  ;;  %v7508_v48 = vld [vmem:[%s13857_s5 + $0x148] sm:$0xff] }
 0x649   : > { %v5252_v29 = vadd.f32 %v12766_v28, %v5213_v8  ;;  %v5371_v39 = vadd.f32 %v5363_v1, %v5332_v11  ;;  %v5370_v9 = vadd.f32 %v12808_v0, %v5331_v2  ;;  %v14582_v28 = vld [vmem:[#allocation25_spill] sm:$0xff]  ;;  %v7465_v11 = vld [vmem:[%s13857_s5 + $0x60] sm:$0xff] }
 0x64a   : > { %v5366_v57 = vpop.f32.mrf.mxu0  ;;  %v5333_v5 = vadd.f32 %v5327_v35, %v5294_v55  ;;  %v7454_v8 = vld [vmem:[%s13857_s5 + $0x38] sm:$0xff]  ;;  %v7452_v55 = vld [vmem:[%s13857_s5 + $0x28] sm:$0xff]  ;;  %v7479_v15 = vld [vmem:[%s13857_s5 + $0xb0] sm:$0xff] }
 0x64b   : > { %v5291_v58 = vadd.f32 %v14578_v45, %v5252_v29  ;;  %v5408_v27 = vadd.f32 %v14583_v56, %v5371_v39  ;;  %v5407_v10 = vadd.f32 %v14584_v18, %v5370_v9  ;;  %5641 = vmatpush.msrb.mxu3 %v7454_v8  ;;  %v7466_v29 = vld [vmem:[%s13857_s5 + $0x68] sm:$0xff]  ;;  %v7451_v45 = vld [vmem:[%s13857_s5 + $0x20] sm:$0xff]  ;;  %v7474_v2 = vld [vmem:[%s13857_s5 + $0x98] sm:$0xff] }
 0x64c   : > { %v5372_v13 = vadd.f32 %v5366_v57, %v5333_v5  ;;  %v5482_v57 = vpop.f32.mrf.mxu3  ;;  %v7478_v5 = vld [vmem:[%s13857_s5 + $0xa8] sm:$0xff]  ;;  %v7486_v39 = vld [vmem:[%s13857_s5 + $0xd8] sm:$0xff]  ;;  %v7491_v9 = vld [vmem:[%s13857_s5 + $0xf0] sm:$0xff] }
 0x64d   : > { %v5330_v24 = vadd.f32 %v14581_v33, %v5291_v58  ;;  %v5448_v35 = vadd.f32 %v5440_v49, %v5408_v27  ;;  %v5447_v1 = vadd.f32 %v5437_v60, %v5407_v10  ;;  %v14586_v60 = vld [vmem:[#allocation19_spill] sm:$0xff]  ;;  %v7473_v33 = vld [vmem:[%s13857_s5 + $0x90] sm:$0xff]  ;;  %v7715_v10 = vld [vmem:[%s13856_s4] ss:$0 sm:$0xff] }
 0x64e   : > { %v5409_v21 = vadd.f32 %v5403_v17, %v5372_v13  ;;  %v7459_v58 = vld [vmem:[%s13857_s5 + $0x40] sm:$0xff]  ;;  %v7492_v13 = vld [vmem:[%s13857_s5 + $0xf8] sm:$0xff]  ;;  %v7496_v8 = vld [vmem:[%s13857_s5 + $0x108] sm:$0xff] }
 0x64f   : > { %v5554_v52 = vpop.f32.mrf.mxu1  ;;  %v5369_v44 = vadd.f32 %v14582_v28, %v5330_v24  ;;  %v5487_v30 = vadd.f32 %v5479_v59, %v5448_v35  ;;  %v5486_v19 = vadd.f32 %v5476_v4, %v5447_v1  ;;  %v5610_v4 = vld [vmem:[%s13857_s5 + $0x8] sm:$0xff]  ;;  %v7477_v59 = vld [vmem:[%s13857_s5 + $0xa0] sm:$0xff]  ;;  %v7485_v24 = vld [vmem:[%s13857_s5 + $0xd0] sm:$0xff] }
 0x650   : > { %v5443_v23 = vpop.f32.mrf.mxu2  ;;  %v7504_v28 = vld [vmem:[%s13857_s5 + $0x138] sm:$0xff]  ;;  %v7471_v56 = vld [vmem:[%s13857_s5 + $0x80] sm:$0xff] }
 0x651   : > { %v5449_v63 = vadd.f32 %v5443_v23, %v5409_v21  ;;  %v5406_v25 = vadd.f32 %v14585_v54, %v5369_v44  ;;  %v7472_v23 = vld [vmem:[%s13857_s5 + $0x88] sm:$0xff]  ;;  %v7483_v27 = vld [vmem:[%s13857_s5 + $0xc0] sm:$0xff]  ;;  %v7528_v14 = vld [vmem:[%s13857_s5 + $0x1b8] sm:$0xff] }
 0x652   : > { %v5512_v20 = vpop.f32.mrf.mxu0  ;;  %v7489_v21 = vld [vmem:[%s13857_s5 + $0xe0] sm:$0xff]  ;;  %v7502_v54 = vld [vmem:[%s13857_s5 + $0x128] sm:$0xff] }
 0x653   : > { %v5446_v16 = vadd.f32 %v12821_v22, %v5406_v25  ;;  %v5488_v0 = vadd.f32 %v5482_v57, %v5449_v63  ;;  %v14587_v22 = vld [vmem:[#allocation9_spill] sm:$0xff]  ;;  %v7501_v1 = vld [vmem:[%s13857_s5 + $0x120] sm:$0xff] }
 0x654   : > { %v7503_v63 = vld [vmem:[%s13857_s5 + $0x130] sm:$0xff] }
 0x655   : > { %v5485_v51 = vadd.f32 %v5473_v3, %v5446_v16  ;;  %v14589_v3 = vld [vmem:[#allocation20_spill] sm:$0xff] }
 0x657   : > { %v5557_v36 = vpop.f32.mrf.mxu1  ;;  %v5524_v37 = vadd.f32 %v5512_v20, %v5485_v51  ;;  %v5612_v20 = vld [vmem:[%s13857_s5 + $0x18] sm:$0xff] }
 0x658   : > { %5668 = vmatpush.msra.mxu0 %v5612_v20 }
 0x659   : > { %v5563_v41 = vadd.f32 %v5551_v62, %v5524_v37  ;;  %v5611_v62 = vld [vmem:[%s13857_s5 + $0x10] sm:$0xff] }
 0x65a   : > { %v5515_v34 = vpop.f32.mrf.mxu0  ;;  %5669 = vmatpush.msra.mxu0 %v5611_v62  ;;  %v7497_v62 = vld [vmem:[%s13857_s5 + $0x110] sm:$0xff] }
 0x65b   : > { %v5525_v7 = vadd.f32 %v5515_v34, %v5486_v19  ;;  %v7460_v34 = vld [vmem:[%s13857_s5 + $0x48] sm:$0xff]  ;;  %v5683_v19 = vrot.slane %v12875_v40, 2 }
 0x65c   : > { %5670 = vmatpush.msra.mxu0 %v5610_v4  ;;  %5706 = vmatpush.msra.mxu1 %v7460_v34  ;;  %v7509_v4 = vld [vmem:[%s13857_s5 + $0x150] sm:$0xff] }
 0x65d   : > { %v5564_v26 = vadd.f32 %v5554_v52, %v5525_v7  ;;  %v7453_v52 = vld [vmem:[%s13857_s5 + $0x30] sm:$0xff] }
 0x65e   : > { %5671 = vmatpush.msra.mxu0 %v5609_v61  ;;  %5642 = vmatpush.msrb.mxu3 %v7453_v52  ;;  %v7515_v61 = vld [vmem:[%s13857_s5 + $0x170] sm:$0xff] }
 0x65f   : > { %v5560_v53 = vpop.f32.mrf.mxu1  ;;  %7457 = vmatmul.msk.f32.vlgmr.msra.gmra.mxu0 %vm573_vm10, %v12875_v40  ;;  %5707 = vmatpush.msra.mxu1 %v7459_v58 }
 0x660   : > { %5818 = vmatpush.msrb.mxu0 %v7480_v6  ;;  %5643 = vmatpush.msrb.mxu3 %v7452_v55 }
 0x661   : > { %5856 = vmatpush.msrb.mxu1 %v7486_v39  ;;  %v5835_v39 = vrot.slane %v12875_v40, 6 }
 0x662   : > { %v5518_v31 = vpop.f32.mrf.mxu0  ;;  %5819 = vmatpush.msrb.mxu0 %v7479_v15  ;;  %5644 = vmatpush.msrb.mxu3 %v7451_v45  ;;  %v7507_v15 = vld [vmem:[%s13857_s5 + $0x140] sm:$0xff] }
 0x663   : > { %v5526_v38 = vadd.f32 %v5518_v31, %v5487_v30  ;;  %5857 = vmatpush.msrb.mxu1 %v7485_v24  ;;  %v7490_v31 = vld [vmem:[%s13857_s5 + $0xe8] sm:$0xff] }
 0x664   : > { %5820 = vmatpush.msrb.mxu0 %v7478_v5  ;;  %5780 = vmatpush.msra.mxu3 %v7474_v2 }
 0x665   : > { %v5565_v32 = vadd.f32 %v5557_v36, %v5526_v38  ;;  %v7484_v36 = vld [vmem:[%s13857_s5 + $0xc8] sm:$0xff]  ;;  %v5721_v38 = vrot.slane %v12875_v40, 3 }
 0x666   : > { %5821 = vmatpush.msrb.mxu0 %v7477_v59  ;;  %5781 = vmatpush.msra.mxu3 %v7473_v33  ;;  %v7527_v59 = vld [vmem:[%s13857_s5 + $0x1b0] sm:$0xff]  ;;  %v7526_v33 = vld [vmem:[%s13857_s5 + $0x1a8] sm:$0xff] }
 0x667   : > { %5858 = vmatpush.msrb.mxu1 %v7484_v36  ;;  %v7525_v36 = vld [vmem:[%s13857_s5 + $0x1a0] sm:$0xff] }
 0x668   : > { %5782 = vmatpush.msra.mxu3 %v7472_v23  ;;  %5959 = vmatpush.msra.mxu0 %v7504_v28 }
 0x669   : > { %5859 = vmatpush.msrb.mxu1 %v7483_v27  ;;  %v7540_v27 = vld [vmem:[%s13857_s5 + $0x1f8] sm:$0xff] }
 0x66a   : > { %v5521_v50 = vpop.f32.mrf.mxu0  ;;  %5783 = vmatpush.msra.mxu3 %v7471_v56  ;;  %5960 = vmatpush.msra.mxu0 %v7503_v63 }
 0x66b   : > { %v5527_v12 = vadd.f32 %v5521_v50, %v5488_v0  ;;  %v5620_v50 = vrot.slane %v12875_v40, 1 }
 0x66c   : > { %5961 = vmatpush.msra.mxu0 %v7502_v54  ;;  %v7520_v54 = vld [vmem:[%s13857_s5 + $0x188] sm:$0xff] }
 0x66d   : > { %v5566_v17 = vadd.f32 %v5560_v53, %v5527_v12 }
 0x66e   : > { %5962 = vmatpush.msra.mxu0 %v7501_v1 }
 0x66f   : > { %5579 = vmatpush.msrb.mxu2 %v5566_v17  ;;  %v7498_v17 = vld [vmem:[%s13857_s5 + $0x118] sm:$0xff] }
 0x671   : > { %5580 = vmatpush.msrb.mxu2 %v5565_v32 }
 0x673   : > { %5581 = vmatpush.msrb.mxu2 %v5564_v26 }
 0x675   : > { %5582 = vmatpush.msrb.mxu2 %v5563_v41  ;;  %v7510_v41 = vld [vmem:[%s13857_s5 + $0x158] sm:$0xff] }
 0x676   : > { %7447 = vmatmul.msk.f32.vlgmr.msrb.gmra.mxu2 %vm573_vm10, %v14586_v60 }
 0x677   : > { %5742 = vmatpush.msra.mxu2 %v7468_v46  ;;  %v7514_v46 = vld [vmem:[%s13857_s5 + $0x168] sm:$0xff] }
 0x679   : > { %5743 = vmatpush.msra.mxu2 %v7467_v43 }
 0x67b   : > { %5744 = vmatpush.msra.mxu2 %v7466_v29  ;;  %v7495_v29 = vld [vmem:[%s13857_s5 + $0x100] sm:$0xff] }
 0x67d   : > { %5745 = vmatpush.msra.mxu2 %v7465_v11  ;;  %v7513_v11 = vld [vmem:[%s13857_s5 + $0x160] sm:$0xff] }
 0x67e   : > { %7448 = vmatmul.msk.f32.gmra.mxu2 %vm573_vm10, %v14587_v22  ;;  %v7516_v22 = vld [vmem:[%s13857_s5 + $0x178] sm:$0xff] }
 0x67f   : > { %5894 = vmatpush.msrb.mxu2 %v7492_v13 }
 0x681   : > { %5895 = vmatpush.msrb.mxu2 %v7491_v9  ;;  %v5873_v9 = vrot.slane %v12875_v40, 7 }
 0x683   : > { %5896 = vmatpush.msrb.mxu2 %v7490_v31 }
 0x685   : > { %5897 = vmatpush.msrb.mxu2 %v7489_v21  ;;  %v7521_v21 = vld [vmem:[%s13857_s5 + $0x190] sm:$0xff] }
 0x686   : > { %7449 = vmatmul.msk.f32.gmra.mxu2 %vm573_vm10, %v14588_v42 }
 0x68e   : > { %7450 = vmatmul.msk.f32.gmra.mxu2 %vm573_vm10, %v14589_v3  ;;  %v5797_v3 = vrot.slane %v12875_v40, 5 }
 0x6f9   : > { %v5584_v49 = vpop.f32.mrf.mxu2 }
 0x701   : > { %v5587_v47 = vpop.f32.mrf.mxu2 }
 0x709   : > { %v5590_v44 = vpop.f32.mrf.mxu2 }
 0x70a   : > { %v5596_v18 = vmax.f32 %v5584_v49, %v5590_v44  ;;  %v7522_v44 = vld [vmem:[%s13857_s5 + $0x198] sm:$0xff] }
 0x70c   : > { %v5598_v35 = vadd.f32 %v7715_v10, %v5596_v18  ;;  %v7533_v18 = vld [vmem:[%s13857_s5 + $0x1d0] sm:$0xff] }
 0x70e   : > { %v5600_v25 = vmax.f32 %v5598_v35, 0.0 }
 0x710   : > { %5602 = vst.msk [vmem:[#allocation3 + $0xa] sm:$0xff] %vm573_vm10, %v5600_v25  ;;  %v7532_v25 = vld [vmem:[%s13857_s5 + $0x1c8] sm:$0xff] }
 0x711   : > { %v5593_v57 = vpop.f32.mrf.mxu2 }
 0x712   : > { %v5597_v16 = vmax.f32 %v5587_v47, %v5593_v57  ;;  %v5759_v47 = vrot.slane %v12875_v40, 4  ;;  %v7534_v40 = vld [vmem:[%s13857_s5 + $0x1d8] sm:$0xff]  ;;  %v7538_v57 = vld [vmem:[%s13857_s5 + $0x1e8] sm:$0xff] }
 0x714   : > { %v5599_v30 = vadd.f32 %v7715_v10, %v5597_v16  ;;  %v7539_v10 = vld [vmem:[%s13857_s5 + $0x1f0] sm:$0xff]  ;;  %v7552_v16 = vld [vmem:[%s13857_s5 + $0x238] sm:$0xff] }
 0x716   : > { %v5601_v0 = vmax.f32 %v5599_v30, 0.0 }
 0x717   : > { %v12982_v12 = vld [vmem:[#allocation3 + $0x8] sm:$0xff] }
 0x718   : > { %5603 = vst.msk [vmem:[#allocation3 + $0x12] sm:$0xff] %vm573_vm10, %v5601_v0  ;;  %7458 = vmatmul.msk.f32.gmra.mxu0 %vm573_vm10, %v12982_v12  ;;  %v5621_v53 = vrot.slane %v12982_v12, 1  ;;  %v5684_v51 = vrot.slane %v12982_v12, 2  ;;  %v5722_v7 = vrot.slane %v12982_v12, 3  ;;  %v5798_v20 = vrot.slane %v12982_v12, 5  ;;  %v7519_v0 = vld [vmem:[%s13857_s5 + $0x180] sm:$0xff] }
 0x719   : > { %v5760_v2 = vrot.slane %v12982_v12, 4  ;;  %v5836_v13 = vrot.slane %v12982_v12, 6  ;;  %v5874_v23 = vrot.slane %v12982_v12, 7 }
 0x71a   : > { %v5622_v37 = vsel %vm674_vm0, %v5620_v50, %v5621_v53  ;;  %v5685_v32 = vsel %vm728_vm1, %v5683_v19, %v5684_v51  ;;  %v5723_v26 = vsel %vm782_vm2, %v5721_v38, %v5722_v7  ;;  %v5799_v49 = vsel %vm890_vm4, %v5797_v3, %v5798_v20  ;;  %v7531_v38 = vld [vmem:[%s13857_s5 + $0x1c0] sm:$0xff]  ;;  %v7557_v3 = vld [vmem:[%s13857_s5 + $0x250] sm:$0xff] }
 0x71b   : > { %7455 = vmatmul.msk.f32.vlgmr.msrb.gmra.mxu3 %vm573_vm10, %v5622_v37  ;;  %7463 = vmatmul.msk.f32.vlgmr.msra.gmra.mxu1 %vm573_vm10, %v5685_v32  ;;  %v5761_v31 = vsel %vm836_vm3, %v5759_v47, %v5760_v2  ;;  %v5837_v28 = vsel %vm944_vm5, %v5835_v39, %v5836_v13  ;;  %v5875_v56 = vsel %vm998_vm6, %v5873_v9, %v5874_v23  ;;  %v7550_v37 = vld [vmem:[%s13857_s5 + $0x228] sm:$0xff]  ;;  %v6365_v9 = vld [vmem:[%s13859_s7 + $0x20] sm:$0xff] }
 0x71c   : > { %7469 = vmatmul.msk.f32.vlgmr.msra.gmra.mxu2 %vm573_vm10, %v5723_v26  ;;  %5925 = vmatpush.msrb.mxu3 %v7498_v17  ;;  %v7551_v17 = vld [vmem:[%s13857_s5 + $0x230] sm:$0xff]  ;;  %v7558_v26 = vld [vmem:[%s13857_s5 + $0x258] sm:$0xff]  ;;  %v6366_v47 = vld [vmem:[%s13859_s7 + $0x28] sm:$0xff] }
 0x71d   : > { %5992 = vmatpush.msra.mxu1 %v7510_v41  ;;  %6025 = vmatpush.msra.mxu2 %v7516_v22  ;;  %v7564_v41 = vld [vmem:[%s13857_s5 + $0x278] sm:$0xff]  ;;  %v7549_v22 = vld [vmem:[%s13857_s5 + $0x220] sm:$0xff] }
 0x71e   : > { %5926 = vmatpush.msrb.mxu3 %v7497_v62  ;;  %v7563_v62 = vld [vmem:[%s13857_s5 + $0x270] sm:$0xff] }
 0x71f   : > { %v13026_v52 = vld [vmem:[#allocation3 + $0x10] sm:$0xff]  ;;  %5993 = vmatpush.msra.mxu1 %v7509_v4  ;;  %6026 = vmatpush.msra.mxu2 %v7515_v61  ;;  %v13125_v30 = vld [vmem:[#allocation3 + $0x18] sm:$0xff] }
 0x720   : > { %7481 = vmatmul.msk.f32.vlgmr.msrb.gmra.mxu0 %vm573_vm10, %v5799_v49  ;;  %v5623_v43 = vrot.slane %v13026_v52, 1  ;;  %v5686_v55 = vrot.slane %v13026_v52, 2  ;;  %v5724_v34 = vrot.slane %v13026_v52, 3  ;;  %5927 = vmatpush.msrb.mxu3 %v7496_v8  ;;  %v5800_v5 = vrot.slane %v13026_v52, 5  ;;  %v7562_v61 = vld [vmem:[%s13857_s5 + $0x268] sm:$0xff]  ;;  %v7545_v8 = vld [vmem:[%s13857_s5 + $0x210] sm:$0xff] }
 0x721   : > { %5994 = vmatpush.msra.mxu1 %v7508_v48  ;;  %6027 = vmatpush.msra.mxu2 %v7514_v46  ;;  %v5762_v35 = vrot.slane %v13026_v52, 4  ;;  %v5838_v63 = vrot.slane %v13026_v52, 6  ;;  %v5876_v1 = vrot.slane %v13026_v52, 7  ;;  %v5976_v4 = vrot.slane %v13125_v30, 2  ;;  %v7555_v46 = vld [vmem:[%s13857_s5 + $0x240] sm:$0xff]  ;;  %v7544_v49 = vld [vmem:[%s13857_s5 + $0x208] sm:$0xff] }
 0x722   : > { %v5624_v6 = vsel %vm674_vm0, %v5621_v53, %v5623_v43  ;;  %v13044_v45 = vsel %vm728_vm1, %v5684_v51, %v5686_v55  ;;  %v13049_v58 = vsel %vm782_vm2, %v5722_v7, %v5724_v34  ;;  %6091 = vmatpush.msrb.mxu0 %v7528_v14  ;;  %5928 = vmatpush.msrb.mxu3 %v7495_v29  ;;  %v7537_v53 = vld [vmem:[%s13857_s5 + $0x1e0] sm:$0xff]  ;;  %v5943_v7 = vrot.slane %v13125_v30, 1 }
 0x723   : > { %7456 = vmatmul.msk.f32.gmra.mxu3 %vm573_vm10, %v5624_v6  ;;  %7464 = vmatmul.msk.f32.gmra.mxu1 %vm573_vm10, %v13044_v45  ;;  %v13076_v24 = vsel %vm890_vm4, %v5798_v20, %v5800_v5  ;;  %v13133_v50 = vsel %vm836_vm3, %v5760_v2, %v5762_v35  ;;  %v13138_v19 = vsel %vm944_vm5, %v5836_v13, %v5838_v63  ;;  %v7546_v20 = vld [vmem:[%s13857_s5 + $0x218] sm:$0xff]  ;;  %v6009_v48 = vrot.slane %v13125_v30, 3  ;;  %v6398_v13 = vld [vmem:[%s13859_s7 + $0x68] sm:$0xff] }
 0x724   : > { %7470 = vmatmul.msk.f32.gmra.mxu2 %vm573_vm10, %v13049_v58  ;;  %5995 = vmatpush.msra.mxu1 %v7507_v15  ;;  %v5877_v51 = vsel %vm998_vm6, %v5874_v23, %v5876_v1  ;;  %v13166_v32 = vsel %vm674_vm0, %v5623_v43, %v5943_v7  ;;  %v13218_v14 = vsel %vm728_vm1, %v5686_v55, %v5976_v4  ;;  %v7561_v43 = vld [vmem:[%s13857_s5 + $0x260] sm:$0xff]  ;;  %v6075_v55 = vrot.slane %v13125_v30, 5  ;;  %v7570_v15 = vld [vmem:[%s13857_s5 + $0x298] sm:$0xff] }
 0x725   : > { %6028 = vmatpush.msra.mxu2 %v7513_v11  ;;  %6092 = vmatpush.msrb.mxu0 %v7527_v59  ;;  %v13232_v29 = vsel %vm782_vm2, %v5724_v34, %v6009_v48  ;;  %v6368_v34 = vld [vmem:[%s13859_s7 + $0x38] sm:$0xff]  ;;  %v6367_v11 = vld [vmem:[%s13859_s7 + $0x30] sm:$0xff]  ;;  %v6042_v2 = vrot.slane %v13125_v30, 4  ;;  %v6108_v39 = vrot.slane %v13125_v30, 6 }
 0x726   : > { %v7569_v59 = vld [vmem:[%s13857_s5 + $0x290] sm:$0xff]  ;;  %v13284_v23 = vld [vmem:[#allocation3 + $0x20] sm:$0xf] }
 0x727   : > { %6093 = vmatpush.msrb.mxu0 %v7526_v33  ;;  %v7568_v33 = vld [vmem:[%s13857_s5 + $0x288] sm:$0xff] }
 0x728   : > { %7482 = vmatmul.msk.f32.gmra.mxu0 %vm573_vm10, %v13076_v24 }
 0x729   : > { %6094 = vmatpush.msrb.mxu0 %v7525_v36  ;;  %v6364_v36 = vld [vmem:[%s13859_s7 + $0x18] sm:$0xff] }
 0x72b   : > { %7475 = vmatmul.msk.f32.vlgmr.msra.gmra.mxu3 %vm573_vm10, %v5761_v31  ;;  %7487 = vmatmul.msk.f32.vlgmr.msrb.gmra.mxu1 %vm573_vm10, %v5837_v28  ;;  %v13294_v31 = vsel %vm836_vm3, %v5762_v35, %v6042_v2  ;;  %v6109_v28 = vsel %vm944_vm5, %v5838_v63, %v6108_v39  ;;  %v6395_v35 = vld [vmem:[%s13859_s7 + $0x50] sm:$0xff] }
 0x72c   : > { %7493 = vmatmul.msk.f32.vlgmr.msrb.gmra.mxu2 %vm573_vm10, %v5875_v56  ;;  %6058 = vmatpush.msra.mxu3 %v7522_v44  ;;  %v6397_v44 = vld [vmem:[%s13859_s7 + $0x60] sm:$0xff] }
 0x72d   : > { %6124 = vmatpush.msrb.mxu1 %v7534_v40  ;;  %6157 = vmatpush.msrb.mxu2 %v7540_v27  ;;  %v7567_v40 = vld [vmem:[%s13857_s5 + $0x280] sm:$0xff]  ;;  %v6206_v27 = vrot.slane %v13284_v23, 1 }
 0x72e   : > { %6059 = vmatpush.msra.mxu3 %v7521_v21  ;;  %v6363_v21 = vld [vmem:[%s13859_s7 + $0x10] sm:$0xff] }
 0x72f   : > { %6125 = vmatpush.msrb.mxu1 %v7533_v18  ;;  %6158 = vmatpush.msrb.mxu2 %v7539_v10  ;;  %v6396_v18 = vld [vmem:[%s13859_s7 + $0x58] sm:$0xff]  ;;  %v6362_v10 = vld [vmem:[%s13859_s7 + $0x8] sm:$0xff]  ;;  %v6207_v63 = vsel %vm674_vm0, %v5943_v7, %v6206_v27  ;;  %v13367_v7 = vld [vmem:[%s13858_s6] ss:$0 sm:$0xff]  ;;  %vm6944_vm0 = vcmask 212992  }
 0x730   : > { %7505 = vmatmul.msk.f32.vlgmr.msra.gmra.mxu0 %vm573_vm10, %v5624_v6  ;;  %6060 = vmatpush.msra.mxu3 %v7520_v54  ;;  %v7543_v6 = vld [vmem:[%s13857_s5 + $0x200] sm:$0xff] }
 0x731   : > { %6126 = vmatpush.msrb.mxu1 %v7532_v25  ;;  %6159 = vmatpush.msrb.mxu2 %v7538_v57  ;;  %v6361_v54 = vld [vmem:[%s13859_s7] sm:$0xff]  ;;  %v6496_v25 = vld [vmem:[%s13859_s7 + $0x138] sm:$0xff] }
 0x732   : > { %6222 = vmatpush.msra.mxu0 %v7552_v16  ;;  %6061 = vmatpush.msra.mxu3 %v7519_v0  ;;  %v6432_v57 = vld [vmem:[%s13859_s7 + $0xb8] sm:$0xff]  ;;  %v6495_v16 = vld [vmem:[%s13859_s7 + $0x130] sm:$0xff]  ;;  %v6393_v0 = vld [vmem:[%s13859_s7 + $0x40] sm:$0xff] }
 0x733   : > { %7476 = vmatmul.msk.f32.gmra.mxu3 %vm573_vm10, %v13133_v50  ;;  %7488 = vmatmul.msk.f32.gmra.mxu1 %vm573_vm10, %v13138_v19 }
 0x734   : > { %7494 = vmatmul.msk.f32.gmra.mxu2 %vm573_vm10, %v5877_v51  ;;  %6127 = vmatpush.msrb.mxu1 %v7531_v38  ;;  %v14590_v38 = vld [vmem:[#allocation43_spill] sm:$0xff] }
 0x735   : > { %6160 = vmatpush.msrb.mxu2 %v7537_v53  ;;  %6223 = vmatpush.msra.mxu0 %v7551_v17  ;;  %v14591_v53 = vld [vmem:[#allocation45_spill] sm:$0xff]  ;;  %v6239_v17 = vrot.slane %v13284_v23, 2 }
 0x737   : > { %6224 = vmatpush.msra.mxu0 %v7550_v37  ;;  %v6430_v37 = vld [vmem:[%s13859_s7 + $0xa8] sm:$0xff] }
 0x738   : > { %7506 = vmatmul.msk.f32.gmra.mxu0 %vm573_vm10, %v13166_v32 }
 0x739   : > { %6225 = vmatpush.msra.mxu0 %v7549_v22  ;;  %v6429_v22 = vld [vmem:[%s13859_s7 + $0xa0] sm:$0xff] }
 0x73b   : > { %7499 = vmatmul.msk.f32.vlgmr.msrb.gmra.mxu3 %vm573_vm10, %v12982_v12  ;;  %7511 = vmatmul.msk.f32.vlgmr.msra.gmra.mxu1 %vm573_vm10, %v13044_v45  ;;  %v7556_v12 = vld [vmem:[%s13857_s5 + $0x248] sm:$0xff]  ;;  %v6076_v45 = vsel %vm890_vm4, %v5800_v5, %v6075_v55  ;;  %v6399_v5 = vld [vmem:[%s13859_s7 + $0x70] sm:$0xff]  ;;  %v6489_v55 = vld [vmem:[%s13859_s7 + $0x100] sm:$0xff] }
 0x73c   : > { %7517 = vmatmul.msk.f32.vlgmr.msra.gmra.mxu2 %vm573_vm10, %v13049_v58  ;;  %6255 = vmatpush.msra.mxu1 %v7558_v26  ;;  %v6400_v58 = vld [vmem:[%s13859_s7 + $0x78] sm:$0xff]  ;;  %v6527_v26 = vld [vmem:[%s13859_s7 + $0x170] sm:$0xff] }
 0x73d   : > { %6288 = vmatpush.msra.mxu2 %v7564_v41  ;;  %6188 = vmatpush.msrb.mxu3 %v7546_v20  ;;  %v6493_v41 = vld [vmem:[%s13859_s7 + $0x120] sm:$0xff]  ;;  %v6240_v20 = vsel %vm728_vm1, %v5976_v4, %v6239_v17  ;;  %v6428_v4 = vld [vmem:[%s13859_s7 + $0x98] sm:$0xff] }
 0x73e   : > { %6256 = vmatpush.msra.mxu1 %v7557_v3 }
 0x73f   : > { %6289 = vmatpush.msra.mxu2 %v7563_v62  ;;  %6189 = vmatpush.msrb.mxu3 %v7545_v8  ;;  %v6526_v62 = vld [vmem:[%s13859_s7 + $0x168] sm:$0xff]  ;;  %v6525_v8 = vld [vmem:[%s13859_s7 + $0x160] sm:$0xff] }
 0x740   : > { %7529 = vmatmul.msk.f32.vlgmr.msrb.gmra.mxu0 %vm573_vm10, %v13076_v24  ;;  %6257 = vmatpush.msra.mxu1 %v7556_v12  ;;  %v6141_v24 = vrot.slane %v13125_v30, 7  ;;  %v6492_v12 = vld [vmem:[%s13859_s7 + $0x118] sm:$0xff] }
 0x741   : > { %6290 = vmatpush.msra.mxu2 %v7562_v61  ;;  %6190 = vmatpush.msrb.mxu3 %v7544_v49 }
 0x742   : > { %6258 = vmatpush.msra.mxu1 %v7555_v46  ;;  %v6142_v56 = vsel %vm998_vm6, %v5876_v1, %v6141_v24  ;;  %v6394_v1 = vld [vmem:[%s13859_s7 + $0x48] sm:$0xff]  ;;  %v6491_v46 = vld [vmem:[%s13859_s7 + $0x110] sm:$0xff] }
 0x743   : > { %7500 = vmatmul.msk.f32.gmra.mxu3 %vm573_vm10, %v13026_v52  ;;  %7512 = vmatmul.msk.f32.gmra.mxu1 %vm573_vm10, %v13218_v14 }
 0x744   : > { %7518 = vmatmul.msk.f32.gmra.mxu2 %vm573_vm10, %v13232_v29  ;;  %6191 = vmatpush.msrb.mxu3 %v7543_v6 }
 0x745   : > { %6291 = vmatpush.msra.mxu2 %v7561_v43  ;;  %v6490_v43 = vld [vmem:[%s13859_s7 + $0x108] sm:$0xff] }
 0x748   : > { %7530 = vmatmul.msk.f32.gmra.mxu0 %vm573_vm10, %v6076_v45  ;;  %v6523_v45 = vld [vmem:[%s13859_s7 + $0x150] sm:$0xff] }
 0x74b   : > { %7523 = vmatmul.msk.f32.vlgmr.msra.gmra.mxu3 %vm573_vm10, %v13133_v50  ;;  %7535 = vmatmul.msk.f32.vlgmr.msrb.gmra.mxu1 %vm573_vm10, %v13138_v19  ;;  %v6431_v50 = vld [vmem:[%s13859_s7 + $0xb0] sm:$0xff]  ;;  %v6494_v19 = vld [vmem:[%s13859_s7 + $0x128] sm:$0xff] }
 0x74c   : > { %7541 = vmatmul.msk.f32.vlgmr.msrb.gmra.mxu2 %vm573_vm10, %v5877_v51  ;;  %6380 = vmatpush.msrb.mxu1 %v6368_v34  ;;  %v3513_v51 = vmax.f32 %v14591_v53, %v14590_v38  ;;  %v6425_v34 = vld [vmem:[%s13859_s7 + $0x80] sm:$0xff] }
 0x74d   : > { %6412 = vmatpush.msrb.mxu2 %v6400_v58  ;;  %6321 = vmatpush.msra.mxu3 %v7570_v15  ;;  %v6560_v58 = vld [vmem:[%s13859_s7 + $0x1b8] sm:$0xff]  ;;  %v6522_v15 = vld [vmem:[%s13859_s7 + $0x148] sm:$0xff] }
 0x74e   : > { %6381 = vmatpush.msrb.mxu1 %v6367_v11  ;;  %v3517_v3 = vadd.f32 %v13367_v7, %v3513_v51  ;;  %v6559_v11 = vld [vmem:[%s13859_s7 + $0x1b0] sm:$0xff] }
 0x74f   : > { %6413 = vmatpush.msrb.mxu2 %v6399_v5  ;;  %6322 = vmatpush.msra.mxu3 %v7569_v59  ;;  %v6521_v5 = vld [vmem:[%s13859_s7 + $0x140] sm:$0xff]  ;;  %v6305_v59 = vrot.slane %v13284_v23, 4 }
 0x750   : > { %7553 = vmatmul.msk.f32.vlgmr.msra.gmra.mxu0 %vm573_vm10, %v13166_v32  ;;  %6382 = vmatpush.msrb.mxu1 %v6366_v47  ;;  %v6272_v32 = vrot.slane %v13284_v23, 3  ;;  %v13412_v49 = vmax.f32 %v3517_v3, 0.0  ;;  %v6558_v47 = vld [vmem:[%s13859_s7 + $0x1a8] sm:$0xff] }
 0x751   : > { %6414 = vmatpush.msrb.mxu2 %v6398_v13  ;;  %6323 = vmatpush.msra.mxu3 %v7568_v33  ;;  %v6557_v13 = vld [vmem:[%s13859_s7 + $0x1a0] sm:$0xff]  ;;  %v6306_v33 = vsel %vm836_vm3, %v6042_v2, %v6305_v59  ;;  %v6554_v2 = vld [vmem:[%s13859_s7 + $0x188] sm:$0xff] }
 0x752   : > { %6383 = vmatpush.msrb.mxu1 %v6365_v9  ;;  %v6273_v61 = vsel %vm782_vm2, %v6009_v48, %v6272_v32  ;;  %v6427_v48 = vld [vmem:[%s13859_s7 + $0x90] sm:$0xff]  ;;  %v6401_v6 = vrot.slane %v13412_v49, 1  ;;  %v6497_v39 = vrot.slane %v13412_v49, 4  ;;  %v6529_v24 = vrot.slane %v13412_v49, 5  ;;  %v6556_v9 = vld [vmem:[%s13859_s7 + $0x198] sm:$0xff] }
 0x753   : > { %7524 = vmatmul.msk.f32.gmra.mxu3 %vm573_vm10, %v13294_v31  ;;  %7536 = vmatmul.msk.f32.gmra.mxu1 %vm573_vm10, %v6109_v28  ;;  %v6433_v23 = vrot.slane %v13412_v49, 2  ;;  %v5673_v28 = vpop.f32.mrf.mxu0 }
 0x754   : > { %7542 = vmatmul.msk.f32.gmra.mxu2 %vm573_vm10, %v6142_v56  ;;  %6384 = vmatpush.msrb.mxu1 %v6364_v36  ;;  %v6553_v36 = vld [vmem:[%s13859_s7 + $0x180] sm:$0xff] }
 0x755   : > { %6415 = vmatpush.msrb.mxu2 %v6397_v44  ;;  %6324 = vmatpush.msra.mxu3 %v7567_v40 }
 0x756   : > { %6385 = vmatpush.msrb.mxu1 %v6363_v21 }
 0x757   : > { %6416 = vmatpush.msrb.mxu2 %v6396_v18 }
 0x758   : > { %7554 = vmatmul.msk.f32.gmra.mxu0 %vm573_vm10, %v6207_v63  ;;  %6386 = vmatpush.msrb.mxu1 %v6362_v10 }
 0x759   : > { %6417 = vmatpush.msrb.mxu2 %v6395_v35 }
 0x75a   : > { %6387 = vmatpush.msrb.mxu1 %v6361_v54 }
 0x75b   : > { %7547 = vmatmul.msk.f32.vlgmr.msrb.gmra.mxu3 %vm573_vm10, %v13026_v52  ;;  %7559 = vmatmul.msk.f32.vlgmr.msra.gmra.mxu1 %vm573_vm10, %v13218_v14  ;;  %v6528_v52 = vld [vmem:[%s13859_s7 + $0x178] sm:$0xff] }
 0x75c   : > { %7565 = vmatmul.msk.f32.vlgmr.msra.gmra.mxu2 %vm573_vm10, %v13232_v29  ;;  %6508 = vmatpush.msra.mxu1 %v6496_v25  ;;  %v6524_v14 = vld [vmem:[%s13859_s7 + $0x158] sm:$0xff]  ;;  %v6426_v29 = vld [vmem:[%s13859_s7 + $0x88] sm:$0xff] }
 0x75d   : > { %6418 = vmatpush.msrb.mxu2 %v6394_v1  ;;  %6444 = vmatpush.msrb.mxu3 %v6432_v57 }
 0x75e   : > { %6509 = vmatpush.msra.mxu1 %v6495_v16 }
 0x75f   : > { %6419 = vmatpush.msrb.mxu2 %v6393_v0  ;;  %6445 = vmatpush.msrb.mxu3 %v6431_v50 }
 0x760   : > { %6510 = vmatpush.msra.mxu1 %v6494_v19 }
 0x761   : > { %6540 = vmatpush.msra.mxu2 %v6528_v52  ;;  %6446 = vmatpush.msrb.mxu3 %v6430_v37 }
 0x762   : > { %6511 = vmatpush.msra.mxu1 %v6493_v41 }
 0x763   : > { %6541 = vmatpush.msra.mxu2 %v6527_v26  ;;  %7548 = vmatmul.msk.f32.gmra.mxu3 %vm573_vm10, %v13125_v30  ;;  %v6555_v30 = vld [vmem:[%s13859_s7 + $0x190] sm:$0xff] }
 0x764   : > { %7560 = vmatmul.msk.f32.gmra.mxu1 %vm573_vm10, %v6240_v20  ;;  %7566 = vmatmul.msk.f32.gmra.mxu2 %vm573_vm10, %v6273_v61 }
 0x765   : > { %6447 = vmatpush.msrb.mxu3 %v6429_v22  ;;  %6542 = vmatpush.msra.mxu2 %v6526_v62 }
 0x766   : > { %6512 = vmatpush.msra.mxu1 %v6492_v12 }
 0x767   : > { %6448 = vmatpush.msrb.mxu3 %v6428_v4  ;;  %6543 = vmatpush.msra.mxu2 %v6525_v8 }
 0x768   : > { %6513 = vmatpush.msra.mxu1 %v6491_v46 }
 0x769   : > { %6449 = vmatpush.msrb.mxu3 %v6427_v48  ;;  %6544 = vmatpush.msra.mxu2 %v6524_v14 }
 0x76a   : > { %6514 = vmatpush.msra.mxu1 %v6490_v43 }
 0x76b   : > { %6450 = vmatpush.msrb.mxu3 %v6426_v29  ;;  %6545 = vmatpush.msra.mxu2 %v6523_v45 }
 0x76c   : > { %7571 = vmatmul.msk.f32.vlgmr.msra.gmra.mxu3 %vm573_vm10, %v13294_v31  ;;  %7575 = vmatmul.msk.f32.vlgmr.msrb.gmra.mxu1 %vm1661_vm8, %v13412_v49  ;;  %v6561_v31 = vrot.slane %v13412_v49, 6 }
 0x76d   : > { %7576 = vmatmul.msk.f32.vlgmr.msrb.gmra.mxu2 %vm1661_vm8, %v6401_v6  ;;  %6515 = vmatpush.msra.mxu1 %v6489_v55 }
 0x76e   : > { %6451 = vmatpush.msrb.mxu3 %v6425_v34  ;;  %6546 = vmatpush.msra.mxu2 %v6522_v15 }
 0x770   : > { %6572 = vmatpush.msra.mxu3 %v6560_v58  ;;  %6547 = vmatpush.msra.mxu2 %v6521_v5 }
 0x772   : > { %6573 = vmatpush.msra.mxu3 %v6559_v11 }
 0x774   : > { %6574 = vmatpush.msra.mxu3 %v6558_v47  ;;  %7579 = vmatmul.msk.f32.vlgmr.msra.gmra.mxu1 %vm1661_vm8, %v6497_v39 }
 0x775   : > { %7572 = vmatmul.msk.f32.gmra.mxu3 %vm573_vm10, %v6306_v33  ;;  %7580 = vmatmul.msk.f32.vlgmr.msra.gmra.mxu2 %vm1661_vm8, %v6529_v24 }
 0x776   : > { %6575 = vmatpush.msra.mxu3 %v6557_v13 }
 0x778   : > { %6576 = vmatpush.msra.mxu3 %v6556_v9 }
 0x77a   : > { %6577 = vmatpush.msra.mxu3 %v6555_v30 }
 0x77c   : > { %6578 = vmatpush.msra.mxu3 %v6554_v2 }
 0x77d   : > { %7577 = vmatmul.msk.f32.vlgmr.msrb.gmra.mxu3 %vm1661_vm8, %v6433_v23 }
 0x77e   : > { %6579 = vmatpush.msra.mxu3 %v6553_v36 }
 0x785   : > { %7581 = vmatmul.msk.f32.vlgmr.msra.gmra.mxu3 %vm1661_vm8, %v6561_v31 }
 0x795   : > { %v5676_v40 = vpop.f32.mrf.mxu0 }
 0x798   : > { %v5709_v44 = vpop.f32.mrf.mxu1 }
 0x79d   : > { %v5823_v18 = vpop.f32.mrf.mxu0 }
 0x79e   : > { %v5646_v56 = vpop.f32.mrf.mxu3 }
 0x79f   : > { %v5747_v27 = vpop.f32.mrf.mxu2  ;;  %v5674_v50 = vadd.f32 %v5673_v28, %v5646_v56 }
 0x7a0   : > { %v5712_v21 = vpop.f32.mrf.mxu1 }
 0x7a1   : > { %v5715_v53 = vadd.f32 %v5709_v44, %v5674_v50 }
 0x7a3   : > { %v5753_v32 = vadd.f32 %v5747_v27, %v5715_v53 }
 0x7a5   : > { %v5826_v1 = vpop.f32.mrf.mxu0 }
 0x7a6   : > { %v5649_v10 = vpop.f32.mrf.mxu3 }
 0x7a7   : > { %v5750_v35 = vpop.f32.mrf.mxu2  ;;  %v5677_v16 = vadd.f32 %v5676_v40, %v5649_v10 }
 0x7a8   : > { %v5861_v63 = vpop.f32.mrf.mxu1 }
 0x7a9   : > { %v5716_v19 = vadd.f32 %v5712_v21, %v5677_v16 }
 0x7ab   : > { %v5754_v51 = vadd.f32 %v5750_v35, %v5716_v19 }
 0x7ad   : > { %v5964_v38 = vpop.f32.mrf.mxu0 }
 0x7ae   : > { %v5785_v54 = vpop.f32.mrf.mxu3 }
 0x7af   : > { %v5899_v25 = vpop.f32.mrf.mxu2  ;;  %v5791_v41 = vadd.f32 %v5785_v54, %v5753_v32  ;;  %v6655_v32 = vld [vmem:[%s13859_s7 + $0x270] sm:$0xff] }
 0x7b0   : > { %v5864_v57 = vpop.f32.mrf.mxu1 }
 0x7b1   : > { %v5829_v62 = vadd.f32 %v5823_v18, %v5791_v41  ;;  %v6463_v41 = vld [vmem:[%s13859_s7 + $0xf0] sm:$0xff] }
 0x7b3   : > { %v5867_v8 = vadd.f32 %v5861_v63, %v5829_v62  ;;  %v6461_v62 = vld [vmem:[%s13859_s7 + $0xe0] sm:$0xff] }
 0x7b5   : > { %v5967_v20 = vpop.f32.mrf.mxu0  ;;  %v5905_v14 = vadd.f32 %v5899_v25, %v5867_v8  ;;  %v6457_v8 = vld [vmem:[%s13859_s7 + $0xc0] sm:$0xff] }
 0x7b6   : > { %v5788_v0 = vpop.f32.mrf.mxu3 }
 0x7b7   : > { %v5902_v52 = vpop.f32.mrf.mxu2  ;;  %v5792_v26 = vadd.f32 %v5788_v0, %v5754_v51 }
 0x7b8   : > { %v5997_v17 = vpop.f32.mrf.mxu1 }
 0x7b9   : > { %v5830_v3 = vadd.f32 %v5826_v1, %v5792_v26  ;;  %v6688_v26 = vld [vmem:[%s13859_s7 + $0x2b8] sm:$0xff] }
 0x7ba   : > { %6700 = vmatpush.msrb.mxu3 %v6688_v26  ;;  %v6847_v26 = vld [vmem:[%s13859_s7 + $0x3f0] sm:$0xff] }
 0x7bb   : > { %v5868_v61 = vadd.f32 %v5864_v57, %v5830_v3  ;;  %v6687_v3 = vld [vmem:[%s13859_s7 + $0x2b0] sm:$0xff] }
 0x7bc   : > { %6701 = vmatpush.msrb.mxu3 %v6687_v3  ;;  %v6811_v3 = vld [vmem:[%s13859_s7 + $0x390] sm:$0xff] }
 0x7bd   : > { %v5906_v46 = vadd.f32 %v5902_v52, %v5868_v61  ;;  %v6096_v29 = vpop.f32.mrf.mxu0  ;;  %v6459_v61 = vld [vmem:[%s13859_s7 + $0xd0] sm:$0xff] }
 0x7be   : > { %v5930_v37 = vpop.f32.mrf.mxu3 }
 0x7bf   : > { %v6030_v22 = vpop.f32.mrf.mxu2  ;;  %v5936_v6 = vadd.f32 %v5930_v37, %v5905_v14  ;;  %v6656_v37 = vld [vmem:[%s13859_s7 + $0x278] sm:$0xff]  ;;  %v6590_v14 = vld [vmem:[%s13859_s7 + $0x1e8] sm:$0xff] }
 0x7c0   : > { %v6000_v4 = vpop.f32.mrf.mxu1  ;;  %6668 = vmatpush.msrb.mxu2 %v6656_v37  ;;  %v6779_v37 = vld [vmem:[%s13859_s7 + $0x350] sm:$0xff] }
 0x7c1   : > { %v5970_v58 = vadd.f32 %v5964_v38, %v5936_v6  ;;  %v6586_v6 = vld [vmem:[%s13859_s7 + $0x1c8] sm:$0xff] }
 0x7c2   : > { %6669 = vmatpush.msrb.mxu2 %v6655_v32  ;;  %v6812_v32 = vld [vmem:[%s13859_s7 + $0x398] sm:$0xff] }
 0x7c3   : > { %v6003_v59 = vadd.f32 %v5997_v17, %v5970_v58  ;;  %v6464_v17 = vld [vmem:[%s13859_s7 + $0xf8] sm:$0xff]  ;;  %v6623_v58 = vld [vmem:[%s13859_s7 + $0x230] sm:$0xff] }
 0x7c5   : > { %v6099_v47 = vpop.f32.mrf.mxu0  ;;  %v6036_v13 = vadd.f32 %v6030_v22, %v6003_v59  ;;  %v6624_v22 = vld [vmem:[%s13859_s7 + $0x238] sm:$0xff]  ;;  %v6685_v59 = vld [vmem:[%s13859_s7 + $0x2a0] sm:$0xff] }
 0x7c6   : > { %v5933_v12 = vpop.f32.mrf.mxu3  ;;  %6636 = vmatpush.msrb.mxu1 %v6624_v22  ;;  %v6778_v22 = vld [vmem:[%s13859_s7 + $0x348] sm:$0xff] }
 0x7c7   : > { %v6033_v48 = vpop.f32.mrf.mxu2  ;;  %v5937_v43 = vadd.f32 %v5933_v12, %v5906_v46  ;;  %v6460_v12 = vld [vmem:[%s13859_s7 + $0xd8] sm:$0xff] }
 0x7c8   : > { %v6129_v34 = vpop.f32.mrf.mxu1  ;;  %v6592_v46 = vld [vmem:[%s13859_s7 + $0x1f8] sm:$0xff]  ;;  %6637 = vmatpush.msrb.mxu1 %v6623_v58 }
 0x7c9   : > { %v5971_v45 = vadd.f32 %v5967_v20, %v5937_v43  ;;  %v6654_v20 = vld [vmem:[%s13859_s7 + $0x268] sm:$0xff]  ;;  %v6589_v43 = vld [vmem:[%s13859_s7 + $0x1e0] sm:$0xff]  ;;  %v6889_v58 = vld [vmem:[%s13861_s9 + $0x78] sm:$0xff] }
 0x7ca   : > { %6670 = vmatpush.msrb.mxu2 %v6654_v20  ;;  %v6846_v20 = vld [vmem:[%s13859_s7 + $0x3e8] sm:$0xff] }
 0x7cb   : > { %v6004_v15 = vadd.f32 %v6000_v4, %v5971_v45  ;;  %v6458_v4 = vld [vmem:[%s13859_s7 + $0xc8] sm:$0xff]  ;;  %v6585_v45 = vld [vmem:[%s13859_s7 + $0x1c0] sm:$0xff] }
 0x7cd   : > { %v6037_v39 = vadd.f32 %v6033_v48, %v6004_v15  ;;  %v6227_v31 = vpop.f32.mrf.mxu0  ;;  %v6591_v48 = vld [vmem:[%s13859_s7 + $0x1f0] sm:$0xff]  ;;  %v6653_v15 = vld [vmem:[%s13859_s7 + $0x260] sm:$0xff] }
 0x7ce   : > { %v6063_v55 = vpop.f32.mrf.mxu3  ;;  %6671 = vmatpush.msrb.mxu2 %v6653_v15 }
 0x7cf   : > { %v6162_v11 = vpop.f32.mrf.mxu2  ;;  %v6069_v9 = vadd.f32 %v6063_v55, %v6036_v13  ;;  %v6587_v55 = vld [vmem:[%s13859_s7 + $0x1d0] sm:$0xff] }
 0x7d0   : > { %v6132_v24 = vpop.f32.mrf.mxu1  ;;  %v6651_v13 = vld [vmem:[%s13859_s7 + $0x250] sm:$0xff] }
 0x7d1   : > { %v6102_v36 = vadd.f32 %v6096_v29, %v6069_v9  ;;  %v6588_v29 = vld [vmem:[%s13859_s7 + $0x1d8] sm:$0xff] }
 0x7d2   : > { %v6620_v9 = vld [vmem:[%s13859_s7 + $0x218] sm:$0xff] }
 0x7d3   : > { %v6135_v44 = vadd.f32 %v6129_v34, %v6102_v36  ;;  %v6593_v34 = vrot.slane %v13412_v49, 7  ;;  %v6619_v36 = vld [vmem:[%s13859_s7 + $0x210] sm:$0xff] }
 0x7d5   : > { %v6168_v21 = vadd.f32 %v6162_v11, %v6135_v44  ;;  %v6230_v63 = vpop.f32.mrf.mxu0  ;;  %v6686_v11 = vld [vmem:[%s13859_s7 + $0x2a8] sm:$0xff]  ;;  %v6717_v44 = vld [vmem:[%s13859_s7 + $0x2e0] sm:$0xff] }
 0x7d6   : > { %v6066_v5 = vpop.f32.mrf.mxu3  ;;  %6702 = vmatpush.msrb.mxu3 %v6686_v11 }
 0x7d7   : > { %v6070_v33 = vadd.f32 %v6066_v5, %v6037_v39  ;;  %v6165_v23 = vpop.f32.mrf.mxu2  ;;  %v6652_v5 = vld [vmem:[%s13859_s7 + $0x258] sm:$0xff]  ;;  %v6621_v39 = vld [vmem:[%s13859_s7 + $0x220] sm:$0xff] }
 0x7d8   : > { %v6260_v40 = vpop.f32.mrf.mxu1  ;;  %6672 = vmatpush.msrb.mxu2 %v6652_v5  ;;  %6703 = vmatpush.msrb.mxu3 %v6685_v59  ;;  %v6888_v5 = vld [vmem:[%s13861_s9 + $0x70] sm:$0xff] }
 0x7d9   : > { %v6103_v2 = vadd.f32 %v6099_v47, %v6070_v33  ;;  %v6720_v47 = vld [vmem:[%s13859_s7 + $0x2f8] sm:$0xff] }
 0x7da   : > { %v6684_v33 = vld [vmem:[%s13859_s7 + $0x298] sm:$0xff]  ;;  %6673 = vmatpush.msrb.mxu2 %v6651_v13 }
 0x7db   : > { %v6136_v28 = vadd.f32 %v6132_v24, %v6103_v2  ;;  %v6719_v24 = vld [vmem:[%s13859_s7 + $0x2f0] sm:$0xff]  ;;  %6704 = vmatpush.msrb.mxu3 %v6684_v33  ;;  %v6886_v33 = vld [vmem:[%s13861_s9 + $0x60] sm:$0xff] }
 0x7dc   : > { %v6683_v2 = vld [vmem:[%s13859_s7 + $0x290] sm:$0xff] }
 0x7dd   : > { %v6169_v27 = vadd.f32 %v6165_v23, %v6136_v28  ;;  %6705 = vmatpush.msrb.mxu3 %v6683_v2  ;;  %v6718_v23 = vld [vmem:[%s13859_s7 + $0x2e8] sm:$0xff]  ;;  %v6882_v2 = vld [vmem:[%s13861_s9 + $0x40] sm:$0xff] }
 0x7de   : > { %v6193_v30 = vpop.f32.mrf.mxu3  ;;  %v6682_v28 = vld [vmem:[%s13859_s7 + $0x288] sm:$0xff] }
 0x7df   : > { %v6293_v10 = vpop.f32.mrf.mxu2  ;;  %v6199_v35 = vadd.f32 %v6193_v30, %v6168_v21  ;;  %v6650_v30 = vld [vmem:[%s13859_s7 + $0x248] sm:$0xff]  ;;  %6706 = vmatpush.msrb.mxu3 %v6682_v28  ;;  %v6716_v21 = vld [vmem:[%s13859_s7 + $0x2d8] sm:$0xff] }
 0x7e0   : > { %6674 = vmatpush.msrb.mxu2 %v6650_v30  ;;  %v6883_v30 = vld [vmem:[%s13861_s9 + $0x48] sm:$0xff] }
 0x7e1   : > { %v6233_v1 = vadd.f32 %v6227_v31, %v6199_v35  ;;  %v6263_v57 = vpop.f32.mrf.mxu1  ;;  %v6649_v31 = vld [vmem:[%s13859_s7 + $0x240] sm:$0xff] }
 0x7e2   : > { %6675 = vmatpush.msrb.mxu2 %v6649_v31  ;;  %v6617_v35 = vld [vmem:[%s13859_s7 + $0x200] sm:$0xff] }
 0x7e3   : > { %v6266_v0 = vadd.f32 %v6260_v40, %v6233_v1  ;;  %v6784_v40 = vld [vmem:[%s13859_s7 + $0x378] sm:$0xff]  ;;  %v6815_v1 = vld [vmem:[%s13859_s7 + $0x3b0] sm:$0xff]  ;;  %v6360_v31 = vld [vmem:[%s13860_s8] sm:$0x1] }
 0x7e4   : > { %6796 = vmatpush.msra.mxu2 %v6784_v40 }
 0x7e5   : > { %v6299_v38 = vadd.f32 %v6293_v10, %v6266_v0  ;;  %v6816_v10 = vld [vmem:[%s13859_s7 + $0x3b8] sm:$0xff]  ;;  %v6781_v0 = vld [vmem:[%s13859_s7 + $0x360] sm:$0xff] }
 0x7e6   : > { %v6196_v56 = vpop.f32.mrf.mxu3 }
 0x7e7   : > { %v6200_v18 = vadd.f32 %v6196_v56, %v6169_v27  ;;  %v6296_v50 = vpop.f32.mrf.mxu2  ;;  %v6618_v56 = vld [vmem:[%s13859_s7 + $0x208] sm:$0xff]  ;;  %v6681_v27 = vld [vmem:[%s13859_s7 + $0x280] sm:$0xff] }
 0x7e8   : > { %6707 = vmatpush.msrb.mxu3 %v6681_v27  ;;  %v6878_v27 = vld [vmem:[%s13861_s9 + $0x20] sm:$0xff] }
 0x7e9   : > { %v6234_v54 = vadd.f32 %v6230_v63, %v6200_v18  ;;  %v6783_v18 = vld [vmem:[%s13859_s7 + $0x370] sm:$0xff]  ;;  %v6389_v28 = vpop.f32.mrf.mxu1 }
 0x7ea   : > { %v6715_v63 = vld [vmem:[%s13859_s7 + $0x2d0] sm:$0xff]  ;;  %6797 = vmatpush.msra.mxu2 %v6783_v18  ;;  %6828 = vmatpush.msra.mxu3 %v6816_v10  ;;  %v6877_v10 = vld [vmem:[%s13861_s9 + $0x18] sm:$0xff] }
 0x7eb   : > { %v6267_v16 = vadd.f32 %v6263_v57, %v6234_v54  ;;  %v6752_v54 = vld [vmem:[%s13859_s7 + $0x338] sm:$0xff]  ;;  %v6714_v57 = vld [vmem:[%s13859_s7 + $0x2c8] sm:$0xff] }
 0x7ec   : > { %6829 = vmatpush.msra.mxu3 %v6815_v1  ;;  %v6875_v1 = vld [vmem:[%s13861_s9 + $0x8] sm:$0xff] }
 0x7ed   : > { %v6300_v52 = vadd.f32 %v6296_v50, %v6267_v16  ;;  %v6751_v16 = vld [vmem:[%s13859_s7 + $0x330] sm:$0xff]  ;;  %v6814_v50 = vld [vmem:[%s13859_s7 + $0x3a8] sm:$0xff] }
 0x7ee   : > { %6830 = vmatpush.msra.mxu3 %v6814_v50 }
 0x7ef   : > { %v6326_v25 = vpop.f32.mrf.mxu3 }
 0x7f0   : > { %v6332_v51 = vadd.f32 %v6326_v25, %v6299_v38  ;;  %v6782_v25 = vld [vmem:[%s13859_s7 + $0x368] sm:$0xff]  ;;  %v6780_v38 = vld [vmem:[%s13859_s7 + $0x358] sm:$0xff]  ;;  %v6421_v40 = vpop.f32.mrf.mxu2 }
 0x7f1   : > { %6798 = vmatpush.msra.mxu2 %v6782_v25  ;;  %v6876_v25 = vld [vmem:[%s13861_s9 + $0x10] sm:$0xff]  ;;  %v6517_v50 = vpop.f32.mrf.mxu1 }
 0x7f3   : > { %6799 = vmatpush.msra.mxu2 %v6781_v0  ;;  %v6918_v0 = vld [vmem:[%s13863_s11 + $0x30] sm:$0xff] }
 0x7f5   : > { %6800 = vmatpush.msra.mxu2 %v6780_v38  ;;  %v6916_v38 = vld [vmem:[%s13863_s11 + $0x20] sm:$0xff] }
 0x7f7   : > { %6801 = vmatpush.msra.mxu2 %v6779_v37 }
 0x7f8   : > { %v6329_v19 = vpop.f32.mrf.mxu3 }
 0x7f9   : > { %v6333_v53 = vadd.f32 %v6329_v19, %v6300_v52  ;;  %v6713_v52 = vld [vmem:[%s13859_s7 + $0x2c0] sm:$0xff]  ;;  %v6750_v19 = vld [vmem:[%s13859_s7 + $0x328] sm:$0xff]  ;;  %6802 = vmatpush.msra.mxu2 %v6778_v22 }
 0x7fb   : > { %6348 = vmatpush.msrb.mxu0 %v6333_v53  ;;  %v6813_v53 = vld [vmem:[%s13859_s7 + $0x3a0] sm:$0xff] }
 0x7fc   : > { %6831 = vmatpush.msra.mxu3 %v6813_v53  ;;  %v6549_v53 = vpop.f32.mrf.mxu2 }
 0x7fd   : > { %6349 = vmatpush.msrb.mxu0 %v6332_v51  ;;  %v6848_v51 = vld [vmem:[%s13859_s7 + $0x3f8] sm:$0xff] }
 0x7fe   : > { %7573 = vmatmul.msk.f32.vlgmr.msrb.gmra.mxu0 %vm564_vm7, %v14586_v60  ;;  %v6462_v60 = vld [vmem:[%s13859_s7 + $0xe8] sm:$0xff]  ;;  %6832 = vmatpush.msra.mxu3 %v6812_v32 }
 0x7ff   : > { %6476 = vmatpush.msra.mxu0 %v6464_v17  ;;  %v6749_v17 = vld [vmem:[%s13859_s7 + $0x320] sm:$0xff] }
 0x800   : > { %6833 = vmatpush.msra.mxu3 %v6811_v3 }
 0x801   : > { %6477 = vmatpush.msra.mxu0 %v6463_v41  ;;  %v6748_v41 = vld [vmem:[%s13859_s7 + $0x318] sm:$0xff] }
 0x803   : > { %6478 = vmatpush.msra.mxu0 %v6462_v60  ;;  %v6747_v60 = vld [vmem:[%s13859_s7 + $0x310] sm:$0xff] }
 0x805   : > { %6479 = vmatpush.msra.mxu0 %v6461_v62  ;;  %v6777_v62 = vld [vmem:[%s13859_s7 + $0x340] sm:$0xff] }
 0x806   : > { %7574 = vmatmul.msk.f32.gmra.mxu0 %vm564_vm7, %v14588_v42  ;;  %v6465_v42 = vrot.slane %v13412_v49, 3  ;;  %v6622_v49 = vld [vmem:[%s13859_s7 + $0x228] sm:$0xff]  ;;  %6803 = vmatpush.msra.mxu2 %v6777_v62 }
 0x807   : > { %6480 = vmatpush.msra.mxu0 %v6460_v12  ;;  %6638 = vmatpush.msrb.mxu1 %v6622_v49  ;;  %v6810_v12 = vld [vmem:[%s13859_s7 + $0x388] sm:$0xff] }
 0x808   : > { %6834 = vmatpush.msra.mxu3 %v6810_v12 }
 0x809   : > { %6481 = vmatpush.msra.mxu0 %v6459_v61  ;;  %6639 = vmatpush.msrb.mxu1 %v6621_v39  ;;  %v6845_v61 = vld [vmem:[%s13859_s7 + $0x3e0] sm:$0xff] }
 0x80b   : > { %6482 = vmatpush.msra.mxu0 %v6458_v4  ;;  %6640 = vmatpush.msrb.mxu1 %v6620_v9  ;;  %v6746_v4 = vld [vmem:[%s13859_s7 + $0x308] sm:$0xff]  ;;  %v6884_v9 = vld [vmem:[%s13861_s9 + $0x50] sm:$0xff] }
 0x80d   : > { %6483 = vmatpush.msra.mxu0 %v6457_v8  ;;  %6641 = vmatpush.msrb.mxu1 %v6619_v36  ;;  %v6809_v8 = vld [vmem:[%s13859_s7 + $0x380] sm:$0xff]  ;;  %v6880_v36 = vld [vmem:[%s13861_s9 + $0x30] sm:$0xff] }
 0x80e   : > { %7578 = vmatmul.msk.f32.vlgmr.msra.gmra.mxu0 %vm1661_vm8, %v6465_v42  ;;  %v6745_v42 = vld [vmem:[%s13859_s7 + $0x300] sm:$0xff]  ;;  %6835 = vmatpush.msra.mxu3 %v6809_v8 }
 0x80f   : > { %6604 = vmatpush.msrb.mxu0 %v6592_v46  ;;  %6642 = vmatpush.msrb.mxu1 %v6618_v56  ;;  %v6844_v46 = vld [vmem:[%s13859_s7 + $0x3d8] sm:$0xff]  ;;  %v6392_v56 = vadd.f32 %v6389_v28, %v6360_v31 }
 0x811   : > { %6605 = vmatpush.msrb.mxu0 %v6591_v48  ;;  %6643 = vmatpush.msrb.mxu1 %v6617_v35  ;;  %v6424_v18 = vadd.f32 %v6421_v40, %v6392_v56 }
 0x813   : > { %6606 = vmatpush.msrb.mxu0 %v6590_v14  ;;  %6764 = vmatpush.msra.mxu1 %v6752_v54  ;;  %v6843_v14 = vld [vmem:[%s13859_s7 + $0x3d0] sm:$0xff] }
 0x815   : > { %6607 = vmatpush.msrb.mxu0 %v6589_v43  ;;  %6765 = vmatpush.msra.mxu1 %v6751_v16  ;;  %v6842_v43 = vld [vmem:[%s13859_s7 + $0x3c8] sm:$0xff]  ;;  %v6919_v16 = vld [vmem:[%s13863_s11 + $0x38] sm:$0xff] }
 0x817   : > { %6608 = vmatpush.msrb.mxu0 %v6588_v29  ;;  %6766 = vmatpush.msra.mxu1 %v6750_v19  ;;  %v6841_v29 = vld [vmem:[%s13859_s7 + $0x3c0] sm:$0xff]  ;;  %v6917_v19 = vld [vmem:[%s13863_s11 + $0x28] sm:$0xff] }
 0x819   : > { %6609 = vmatpush.msrb.mxu0 %v6587_v55  ;;  %6767 = vmatpush.msra.mxu1 %v6749_v17  ;;  %v6915_v17 = vld [vmem:[%s13863_s11 + $0x18] sm:$0xff] }
 0x81b   : > { %6610 = vmatpush.msrb.mxu0 %v6586_v6  ;;  %6768 = vmatpush.msra.mxu1 %v6748_v41 }
 0x81d   : > { %6611 = vmatpush.msrb.mxu0 %v6585_v45  ;;  %6769 = vmatpush.msra.mxu1 %v6747_v60 }
 0x81e   : > { %7582 = vmatmul.msk.f32.vlgmr.msrb.gmra.mxu0 %vm1661_vm8, %v6593_v34 }
 0x81f   : > { %6732 = vmatpush.msra.mxu0 %v6720_v47  ;;  %6770 = vmatpush.msra.mxu1 %v6746_v4 }
 0x821   : > { %6733 = vmatpush.msra.mxu0 %v6719_v24  ;;  %6771 = vmatpush.msra.mxu1 %v6745_v42  ;;  %v6885_v24 = vld [vmem:[%s13861_s9 + $0x58] sm:$0xff] }
 0x823   : > { %6734 = vmatpush.msra.mxu0 %v6718_v23  ;;  %v6881_v23 = vld [vmem:[%s13861_s9 + $0x38] sm:$0xff] }
 0x825   : > { %6735 = vmatpush.msra.mxu0 %v6717_v44  ;;  %v6879_v44 = vld [vmem:[%s13861_s9 + $0x28] sm:$0xff] }
 0x827   : > { %6736 = vmatpush.msra.mxu0 %v6716_v21  ;;  %v6453_v21 = vpop.f32.mrf.mxu3 }
 0x829   : > { %6737 = vmatpush.msra.mxu0 %v6715_v63  ;;  %v6456_v63 = vadd.f32 %v6453_v21, %v6424_v18 }
 0x82b   : > { %6738 = vmatpush.msra.mxu0 %v6714_v57  ;;  %v6874_v57 = vld [vmem:[%s13861_s9] sm:$0xff] }
 0x82d   : > { %6739 = vmatpush.msra.mxu0 %v6713_v52 }
 0x82f   : > { %6860 = vmatpush.msrb.mxu0 %v6848_v51  ;;  %v6581_v37 = vpop.f32.mrf.mxu3 }
 0x831   : > { %6861 = vmatpush.msrb.mxu0 %v6847_v26 }
 0x833   : > { %6862 = vmatpush.msrb.mxu0 %v6846_v20 }
 0x835   : > { %6863 = vmatpush.msrb.mxu0 %v6845_v61 }
 0x837   : > { %6864 = vmatpush.msrb.mxu0 %v6844_v46 }
 0x839   : > { %6865 = vmatpush.msrb.mxu0 %v6843_v14 }
 0x83b   : > { %6866 = vmatpush.msrb.mxu0 %v6842_v43 }
 0x83d   : > { %6867 = vmatpush.msrb.mxu0 %v6841_v29 }
 0x87b   : > { %v6351_v48 = vpop.f32.mrf.mxu0 }
 0x883   : > { %v6354_v55 = vpop.f32.mrf.mxu0 }
 0x884   : > { %v6357_v6 = vmax.f32 %v6351_v48, %v6354_v55 }
 0x886   : > { %v6358_v45 = vadd.f32 %v13367_v7, %v6357_v6  ;;  %v6887_v7 = vld [vmem:[%s13861_s9 + $0x68] sm:$0xff] }
 0x888   : > { %v6359_v34 = vmax.f32 %v6358_v45, 0.0  ;;  %v6914_v45 = vld [vmem:[%s13863_s11 + $0x10] sm:$0xff] }
 0x88a   : > { %7583 = vmatmul.msk.f32.vlgmr.msrb.gmra.mxu1 %vm1661_vm8, %v6359_v34  ;;  %v6657_v15 = vrot.slane %v6359_v34, 1  ;;  %v6689_v11 = vrot.slane %v6359_v34, 2  ;;  %v6721_v49 = vrot.slane %v6359_v34, 3  ;;  %v6753_v59 = vrot.slane %v6359_v34, 4 }
 0x88b   : > { %6891 = vmatpush.msrb.mxu1 %v6889_v58  ;;  %v6785_v47 = vrot.slane %v6359_v34, 5  ;;  %v6817_v39 = vrot.slane %v6359_v34, 6  ;;  %v6849_v13 = vrot.slane %v6359_v34, 7  ;;  %v6485_v35 = vpop.f32.mrf.mxu0  ;;  %v6913_v34 = vld [vmem:[%s13863_s11 + $0x8] sm:$0xff]  ;;  %v6912_v58 = vld [vmem:[%s13863_s11] sm:$0xff] }
 0x88c   : > { %7584 = vmatmul.msk.f32.vlgmr.msrb.gmra.mxu2 %vm1661_vm8, %v6657_v15  ;;  %7585 = vmatmul.msk.f32.vlgmr.msrb.gmra.mxu3 %vm1661_vm8, %v6689_v11  ;;  %v6488_v54 = vadd.f32 %v6485_v35, %v6456_v63  ;;  %v6890_v15 = vld [vmem:[%s13862_s10] sm:$0x1] }
 0x88d   : > { %7586 = vmatmul.msk.f32.vlgmr.msra.gmra.mxu0 %vm1661_vm8, %v6721_v49  ;;  %6892 = vmatpush.msrb.mxu1 %v6888_v5 }
 0x88e   : > { %6932 = vmatpush.msrb.mxu2 %v6919_v16  ;;  %v6520_v52 = vadd.f32 %v6517_v50, %v6488_v54 }
 0x88f   : > { %6893 = vmatpush.msrb.mxu1 %v6887_v7  ;;  %v6920_v7 = vld [vmem:[%s13864_s12] sm:$0x1] }
 0x890   : > { %6933 = vmatpush.msrb.mxu2 %v6918_v0  ;;  %v6552_v51 = vadd.f32 %v6549_v53, %v6520_v52 }
 0x891   : > { %6894 = vmatpush.msrb.mxu1 %v6886_v33 }
 0x892   : > { %7587 = vmatmul.msk.f32.vlgmr.msra.gmra.mxu1 %vm1661_vm8, %v6753_v59  ;;  %6934 = vmatpush.msrb.mxu2 %v6917_v19  ;;  %v6584_v26 = vadd.f32 %v6581_v37, %v6552_v51 }
 0x893   : > { %6895 = vmatpush.msrb.mxu1 %v6885_v24 }
 0x894   : > { %7588 = vmatmul.msk.f32.vlgmr.msra.gmra.mxu2 %vm1661_vm8, %v6785_v47  ;;  %7589 = vmatmul.msk.f32.vlgmr.msra.gmra.mxu3 %vm1661_vm8, %v6817_v39 }
 0x895   : > { %7590 = vmatmul.msk.f32.vlgmr.msrb.gmra.mxu0 %vm1661_vm8, %v6849_v13  ;;  %6896 = vmatpush.msrb.mxu1 %v6884_v9 }
 0x896   : > { %6935 = vmatpush.msrb.mxu2 %v6916_v38 }
 0x897   : > { %6897 = vmatpush.msrb.mxu1 %v6883_v30 }
 0x898   : > { %6936 = vmatpush.msrb.mxu2 %v6915_v17 }
 0x899   : > { %6898 = vmatpush.msrb.mxu1 %v6882_v2 }
 0x89a   : > { %6937 = vmatpush.msrb.mxu2 %v6914_v45 }
 0x89b   : > { %6899 = vmatpush.msrb.mxu1 %v6881_v23  ;;  %v6613_v32 = vpop.f32.mrf.mxu0 }
 0x89c   : > { %v6616_v22 = vadd.f32 %v6613_v32, %v6584_v26  ;;  %6938 = vmatpush.msrb.mxu2 %v6913_v34 }
 0x89d   : > { %6900 = vmatpush.msrb.mxu1 %v6880_v36 }
 0x89e   : > { %6939 = vmatpush.msrb.mxu2 %v6912_v58 }
 0x89f   : > { %6901 = vmatpush.msrb.mxu1 %v6879_v44 }
 0x8a1   : > { %6902 = vmatpush.msrb.mxu1 %v6878_v27 }
 0x8a3   : > { %6903 = vmatpush.msrb.mxu1 %v6877_v10 }
 0x8a5   : > { %6904 = vmatpush.msrb.mxu1 %v6876_v25 }
 0x8a7   : > { %6905 = vmatpush.msrb.mxu1 %v6875_v1 }
 0x8a9   : > { %6906 = vmatpush.msrb.mxu1 %v6874_v57 }
 0x907   : > { %v6645_v41 = vpop.f32.mrf.mxu1 }
 0x908   : > { %v6648_v3 = vadd.f32 %v6645_v41, %v6616_v22 }
 0x90a   : > { %v6741_v12 = vpop.f32.mrf.mxu0 }
 0x90f   : > { %v6677_v20 = vpop.f32.mrf.mxu2  ;;  %v6709_v60 = vpop.f32.mrf.mxu3 }
 0x910   : > { %v6680_v62 = vadd.f32 %v6677_v20, %v6648_v3  ;;  %v6773_v8 = vpop.f32.mrf.mxu1 }
 0x912   : > { %v6712_v61 = vadd.f32 %v6709_v60, %v6680_v62  ;;  %v6869_v29 = vpop.f32.mrf.mxu0 }
 0x914   : > { %v6744_v4 = vadd.f32 %v6741_v12, %v6712_v61 }
 0x916   : > { %v6776_v46 = vadd.f32 %v6773_v8, %v6744_v4 }
 0x917   : > { %v6805_v42 = vpop.f32.mrf.mxu2  ;;  %v6837_v14 = vpop.f32.mrf.mxu3 }
 0x918   : > { %v6808_v48 = vadd.f32 %v6805_v42, %v6776_v46 }
 0x91a   : > { %v6840_v43 = vadd.f32 %v6837_v14, %v6808_v48 }
 0x91c   : > { %v6872_v55 = vadd.f32 %v6869_v29, %v6840_v43 }
 0x91e   : > { %v6873_v6 = vmax.f32 %v6872_v55, 0.0 }
 0x920   : > { %6907 = vmatmul.f32.vlgmr.msrb.gmra.mxu1 %v6873_v6 }
 0x99d   : > { %v6908_v11 = vpop.f32.mrf.mxu1 }
 0x99e   : > { %v6909_v49 = vadd.f32 %v6908_v11, %v6890_v15 }
 0x9a0   : > { %v6911_v5 = vmax.f32 %v6909_v49, 0.0 }
 0x9a2   : > { %7591 = vmatmul.msk.f32.vlgmr.msrb.gmra.mxu2 %vm1661_vm8, %v6911_v5 }
 0xa25   : > { %v6941_v59 = vpop.f32.mrf.mxu2 }
 0xa26   : > { %v6942_v47 = vadd.f32 %v6941_v59, %v6920_v7 }
 0xa28   : > { %6945 = vst.msk [vmem:[%s432_s16] sm:$0x1] %vm6944_vm0, %v6942_v47 }
 0xa29   : > { %7743 = shalt.err (!%p7740_p3)
}
 0xa2a   : > { %7597 = dma.vmem_to_hbm [thread:$0]  (%p7890_p5), %s6958_s20, 16, %s6960_s21, %s6947_s22  }
 0xa2b PF: > { %p7603_p4 = scmp.ge.s32.totalorder %s7778_s28, 2  ;;  %s6971_s1 = sand.u32 1, %s7766_s25  }
 0xa2c   : > { %s6972_s15 = scalar_lea.sflag [#allocation5], %s6971_s1 }
 0xa2d   : > { %p7600_p7 = pnand %p7603_p4, %p7894_p6 }
 0xa2f   : > { %p7601_p8 = pneg %p7600_p7 }
 0xa31   : > { %7761 = dma.done.wait (%p7601_p8), %s6972_s15, 16  }
 0xa32   : > { %7763 = vsyncadd (%p7601_p8), %s6972_s15, 4294967280  ;;  %p23_p9 = scmp.ge.s32.totalorder %s7877_s14, 4   ;;  %s14592_s25 = smov %s7770_s26 }
 0xa33   : > { %s14593_s26 = smov %s7774_s27  ;;  %s14594_s27 = smov %s7888_s17 }
 0xa34   : > { %s14595_s28 = smov %s7877_s14  ;;  %25 = sbr.rel (!%p23_p9) target bundleno = 8 (0x8), region = 148 }
 0xa39   :  { %6977 = vsyncpa [#allocation5], 1 }
 0xa3a   :  { %6979 = vsyncpa [#allocation5 + $0x1], 1 }

</bundles_post_ra>
